<compile_context>
chip_gen: v5e
topology: v5e:2x2
jax: 0.10.0
libtpu: 0.0.40
codegen_flags: <defaults>
</compile_context>

<pallas_src>
import functools

import jax
import jax.numpy as jnp
from jax.experimental import pallas as pl
from jax.experimental.pallas import tpu as pltpu


# ------------------------------ fused kernel --------------------------------


def _rrdb_kernel(x_ref, w_ref, b_ref, o_ref, buf, patch, *, C, G, H, W, mxu_dtype):
    """Fused RRDB forward for one image.

    x_ref : (1, C, Lp)   zero-padded, spatially-flattened input, Lp=(H+2)*(W+2)
    w_ref : (Cout_max, sum_j 9*cin_j) packed conv weights (column order = patch rows)
    b_ref : (Cout_max, 15) packed biases, one column per conv
    o_ref : (1, C, Lp)   output, same padded-flat layout as the input
    buf   : (C+4G, Lp)   VMEM concat buffer (padded-flat activations)
    patch : (9*(C+4G), Lwin) VMEM im2col patch (tap-shifted copies of every channel)
    """
    Wp = W + 2
    Lp = (H + 2) * Wp
    start = Wp + 1                       # padded-flat index of pixel (0, 0)
    Lwin = (H - 1) * Wp + W              # contiguous window covering all real pixels
    Ctot = C + 4 * G

    # Static per-conv column offsets inside w_ref (same computation as the wrapper).
    cins = [C + j * G for j in range(5)]
    col0, c = [], 0
    for _ in range(3):
        for j in range(5):
            col0.append(c)
            c += 9 * cins[j]

    # Lane mask over the window: True at real pixels, False at the inter-row
    # padding lanes of the padded-flat layout.
    col = (start + jax.lax.broadcasted_iota(jnp.int32, (1, Lwin), 1)) % Wp
    valid = jnp.logical_and(col >= 1, col <= W)

    def masked_store(lo, hi, value):
        # Padding lanes inside the window must stay exactly zero -- they ARE the
        # 'same'-padding seen by the next conv's taps.
        buf[lo:hi, start:start + Lwin] = jnp.where(valid, value, 0.0)

    def build_patch(lo, g):
        # Append the 9 shifted copies of channels [lo, lo+g) to the im2col patch
        # (rows [9*lo, 9*(lo+g)), tap-major within the group).  One wide slab load
        # per kernel row; the kw taps are value slices of it (no extra VMEM loads).
        r0 = 9 * lo
        for kh in range(3):
            off = start + (kh - 1) * Wp                      # centre-tap offset
            slab = buf[lo:lo + g, off - 1:off + Lwin + 1]    # (g, Lwin+2)
            for kw in range(3):
                tap = kh * 3 + kw
                patch[r0 + tap * g:r0 + (tap + 1) * g, :] = slab[:, kw:kw + Lwin]

    def conv(idx, cin, cout):
        # ONE MXU matmul per conv: (cout, 9*cin) @ (9*cin, Lwin), f32 accumulation.
        lhs = w_ref[0:cout, col0[idx]:col0[idx] + 9 * cin].astype(mxu_dtype)
        rhs = patch[0:9 * cin, :].astype(mxu_dtype)
        acc = jnp.dot(lhs, rhs, preferred_element_type=jnp.float32)
        return acc + b_ref[0:cout, idx:idx + 1]

    # Init: only the outer-halo strips of the "grow" rows need zeroing (masked
    # stores keep their in-window padding lanes zero, and rows 0:C are fully
    # overwritten from the already-padded input every grid step -- do NOT gate
    # this on program_id: each TensorCore has its own scratch under "parallel").
    buf[C:Ctot, 0:start] = jnp.zeros((4 * G, start), jnp.float32)
    buf[C:Ctot, start + Lwin:Lp] = jnp.zeros((4 * G, Lp - start - Lwin), jnp.float32)
    buf[0:C, :] = x_ref[0]

    # ---- 3 ResidualDenseBlocks, all intermediates resident in VMEM ----------
    for rdb in range(3):
        build_patch(0, C)                               # base channels of this RDB
        for j in range(4):                              # conv1..conv4 + LeakyReLU
            acc = conv(5 * rdb + j, C + j * G, G)
            acc = jnp.maximum(acc, 0.2 * acc)           # LeakyReLU(0.2)
            masked_store(C + j * G, C + (j + 1) * G, acc)
            build_patch(C + j * G, G)                   # append 9*G patch rows
        acc5 = conv(5 * rdb + 4, C + 4 * G, C)          # conv5, no activation
        masked_store(0, C, acc5 * 0.2 + buf[0:C, start:start + Lwin])

    # ---- RRDB residual over the full padded-flat rows (halo is zero on both) --
    o_ref[0] = (buf[0:C, :] * 0.2 + x_ref[0]).astype(o_ref.dtype)


# ------------------------------ wrapper --------------------------------------


def _pack_params(params, C, G):
    """Repack the 15 conv weights/biases into two arrays.

    Weights -> (Cout_max, sum_j 9*cin_j): per-conv column blocks whose column order
    matches the incremental im2col patch row order (group-major, tap-major within
    a group, channel-minor).  Biases -> (Cout_max, 15), one column per conv.
    """
    Cout_max = max(C, G)
    wcols, bcols = [], []
    for blk in ("rdb1", "rdb2", "rdb3"):
        p = params[blk]
        for j in range(5):
            w = p[f"w{j + 1}"]                         # (cout, cin, 3, 3) OIHW
            b = p[f"b{j + 1}"]
            cout = w.shape[0]
            groups = [(0, C)] + [(C + t * G, G) for t in range(j)]
            gcols = []
            for lo, g in groups:
                wg = jnp.transpose(w[:, lo:lo + g], (0, 2, 3, 1))   # (cout, 3, 3, g)
                gcols.append(wg.reshape(cout, 9 * g))               # col = tap*g + c
            wj = jnp.concatenate(gcols, axis=1)        # (cout, 9*cin_j)
            wcols.append(jnp.pad(wj, ((0, Cout_max - cout), (0, 0))))
            bcols.append(jnp.pad(b, (0, Cout_max - cout)).reshape(Cout_max, 1))
    return jnp.concatenate(wcols, axis=1), jnp.concatenate(bcols, axis=1)


def rrdb_forward(x_nchw, params, mxu_dtype=jnp.float32):
    """RRDB forward.  x: (N, C, H, W) f32, params: PyTorch-layout weights.

    mxu_dtype=jnp.bfloat16 gives ~2x MXU throughput (f32 accumulation kept) at
    ~1e-2 absolute error; default f32 for tight parity with the reference.
    """
    N, C, H, W = x_nchw.shape
    G = params["rdb1"]["w1"].shape[0]
    Hp, Wp = H + 2, W + 2
    Lp = Hp * Wp
    Lwin = (H - 1) * Wp + W

    # glue: one zero-pad of the input, flattened to padded-flat layout.  The kernel
    # output stays in this layout, so only a cheap slice is needed on the way out.
    xp = jnp.pad(x_nchw, ((0, 0), (0, 0), (1, 1), (1, 1))).reshape(N, C, Lp)
    wpack, bpack = _pack_params(params, C, G)

    out_p = pl.pallas_call(
        functools.partial(_rrdb_kernel, C=C, G=G, H=H, W=W, mxu_dtype=mxu_dtype),
        out_shape=jax.ShapeDtypeStruct((N, C, Lp), x_nchw.dtype),
        grid=(N,),
        in_specs=[
            pl.BlockSpec((1, C, Lp), lambda n: (n, 0, 0)),
            pl.BlockSpec(wpack.shape, lambda n: (0, 0)),   # constant index -> resident
            pl.BlockSpec(bpack.shape, lambda n: (0, 0)),
        ],
        out_specs=pl.BlockSpec((1, C, Lp), lambda n: (n, 0, 0)),
        scratch_shapes=[
            pltpu.VMEM((C + 4 * G, Lp), jnp.float32),            # concat buffer
            pltpu.VMEM((9 * (C + 4 * G), Lwin), jnp.float32),    # im2col patch
        ],
        compiler_params=pltpu.CompilerParams(dimension_semantics=("parallel",)),
    )(xp, wpack, bpack)

    # glue: padded-flat -> NCHW, crop halo (pure reshape + slice, no pad).
    return out_p.reshape(N, C, Hp, Wp)[:, :, 1:-1, 1:-1]


# ------------------------------ params & reference ---------------------------


def init_rdb_params(key, num_feat, num_grow):
    keys = jax.random.split(key, 10)
    cins = [num_feat + i * num_grow for i in range(5)]
    couts = [num_grow] * 4 + [num_feat]
    p = {}
    for i in range(5):
        p[f"w{i + 1}"] = 0.05 * jax.random.normal(
            keys[2 * i], (couts[i], cins[i], 3, 3), jnp.float32)   # PyTorch OIHW
        p[f"b{i + 1}"] = 0.05 * jax.random.normal(
            keys[2 * i + 1], (couts[i],), jnp.float32)
    return p


def init_rrdb_params(key, num_feat, num_grow):
    k1, k2, k3 = jax.random.split(key, 3)
    return {
        "rdb1": init_rdb_params(k1, num_feat, num_grow),
        "rdb2": init_rdb_params(k2, num_feat, num_grow),
        "rdb3": init_rdb_params(k3, num_feat, num_grow),
    }


def _ref_conv(x, w, b, lrelu):
    y = jax.lax.conv_general_dilated(
        x, w, (1, 1), "SAME", dimension_numbers=("NCHW", "OIHW", "NCHW"))
    y = y + b[None, :, None, None]
    if lrelu:
        y = jnp.where(y >= 0.0, y, 0.2 * y)
    return y


def _ref_rdb(x, p):
    x1 = _ref_conv(x, p["w1"], p["b1"], True)
    x2 = _ref_conv(jnp.concatenate([x, x1], 1), p["w2"], p["b2"], True)
    x3 = _ref_conv(jnp.concatenate([x, x1, x2], 1), p["w3"], p["b3"], True)
    x4 = _ref_conv(jnp.concatenate([x, x1, x2, x3], 1), p["w4"], p["b4"], True)
    x5 = _ref_conv(jnp.concatenate([x, x1, x2, x3, x4], 1), p["w5"], p["b5"], False)
    return x5 * 0.2 + x


def rrdb_reference(x, params):
    out = _ref_rdb(x, params["rdb1"])
    out = _ref_rdb(out, params["rdb2"])
    out = _ref_rdb(out, params["rdb3"])
    return out * 0.2 + x


# ------------------------------ main -----------------------------------------


if __name__ == "__main__":
    num_feat, num_grow = 8, 8
    N, H, W = 2, 16, 16

    key = jax.random.PRNGKey(0)
    kx, kp = jax.random.split(key)
    x_nchw = jax.random.normal(kx, (N, num_feat, H, W), jnp.float32)
    params = init_rrdb_params(kp, num_feat, num_grow)

    out = jax.block_until_ready(rrdb_forward(x_nchw, params))

    ref = rrdb_reference(x_nchw, params)
    assert out.shape == (N, num_feat, H, W)
    assert jnp.allclose(out, ref, atol=5e-4, rtol=5e-4), "mismatch vs reference"

    print("KERNEL_OK")
</pallas_src>

<mosaic_0001>
module attributes {stable_mosaic.version = 11 : i64} {
  func.func @_rrdb_kernel(%arg0: i32, %arg1: memref<1x8x324xf32, #tpu.memory_space<vmem>>, %arg2: memref<8x3240xf32, #tpu.memory_space<vmem>>, %arg3: memref<8x15xf32, #tpu.memory_space<vmem>>, %arg4: memref<1x8x324xf32, #tpu.memory_space<vmem>>, %arg5: memref<40x324xf32, #tpu.memory_space<vmem>>, %arg6: memref<360x286xf32, #tpu.memory_space<vmem>>) attributes {dimension_semantics = [#tpu.dimension_semantics<parallel>], iteration_bounds = array<i64: 2>, scalar_prefetch = 0 : i64, scratch_operands = 2 : i64, tpu.core_type = #tpu.core_type<tc>, window_params = [{transform_indices = @transform_0, window_bounds = array<i64: 1, 8, 324>}, {pipeline_mode = #tpu.pipeline_mode<synchronous>, transform_indices = @transform_1, window_bounds = array<i64: 8, 3240>}, {pipeline_mode = #tpu.pipeline_mode<synchronous>, transform_indices = @transform_2, window_bounds = array<i64: 8, 15>}, {transform_indices = @transform_3, window_bounds = array<i64: 1, 8, 324>}]} {
    %0 = tpu.iota {dimensions = array<i32: 1>} : vector<1x286xi32>
    %c19_i32 = arith.constant 19 : i32
    %1 = vector.broadcast %c19_i32 : i32 to vector<1x286xi32>
    %2 = arith.addi %1, %0 : vector<1x286xi32>
    %c18_i32 = arith.constant 18 : i32
    %c0_i32 = arith.constant 0 : i32
    %3 = arith.cmpi eq, %c18_i32, %c0_i32 : i32
    %c1_i32 = arith.constant 1 : i32
    %4 = arith.select %3, %c1_i32, %c18_i32 : i32
    %5 = vector.broadcast %4 : i32 to vector<1x286xi32>
    %6 = arith.remsi %2, %5 : vector<1x286xi32>
    %c0_i32_0 = arith.constant 0 : i32
    %7 = vector.broadcast %c0_i32_0 : i32 to vector<1x286xi32>
    %8 = arith.cmpi ne, %6, %7 : vector<1x286xi32>
    %c0_i32_1 = arith.constant 0 : i32
    %9 = vector.broadcast %c0_i32_1 : i32 to vector<1x286xi32>
    %10 = arith.cmpi slt, %6, %9 : vector<1x286xi32>
    %c0_i32_2 = arith.constant 0 : i32
    %11 = arith.cmpi slt, %4, %c0_i32_2 : i32
    %12 = vector.broadcast %11 : i1 to vector<1x286xi1>
    %13 = vector.broadcast %12 : vector<1x286xi1> to vector<1x286xi1>
    %14 = arith.xori %10, %13 : vector<1x286xi1>
    %15 = arith.andi %14, %8 : vector<1x286xi1>
    %16 = vector.broadcast %4 : i32 to vector<1x286xi32>
    %17 = arith.addi %6, %16 : vector<1x286xi32>
    %18 = arith.select %15, %17, %6 : vector<1x286xi1>, vector<1x286xi32>
    %c1_i32_3 = arith.constant 1 : i32
    %19 = vector.broadcast %c1_i32_3 : i32 to vector<1x286xi32>
    %20 = arith.cmpi sge, %18, %19 : vector<1x286xi32>
    %c16_i32 = arith.constant 16 : i32
    %21 = vector.broadcast %c16_i32 : i32 to vector<1x286xi32>
    %22 = arith.cmpi sle, %18, %21 : vector<1x286xi32>
    %23 = arith.andi %20, %22 : vector<1x286xi1>
    %cst = arith.constant 0.000000e+00 : f32
    %24 = vector.broadcast %cst : f32 to vector<32x19xf32>
    %c8 = arith.constant 8 : index
    %c0 = arith.constant 0 : index
    %25 = vector.load %arg5[%c8, %c0] : memref<40x324xf32, #tpu.memory_space<vmem>>, vector<32x19xf32>
    tpu.vector_store %arg5[%c8, %c0], %24 {strides = array<i32>} : memref<40x324xf32, #tpu.memory_space<vmem>>, vector<32x19xf32>,
    %cst_4 = arith.constant 0.000000e+00 : f32
    %26 = vector.broadcast %cst_4 : f32 to vector<32x19xf32>
    %c8_5 = arith.constant 8 : index
    %c305 = arith.constant 305 : index
    %27 = vector.load %arg5[%c8_5, %c305] : memref<40x324xf32, #tpu.memory_space<vmem>>, vector<32x19xf32>
    tpu.vector_store %arg5[%c8_5, %c305], %26 {strides = array<i32>} : memref<40x324xf32, #tpu.memory_space<vmem>>, vector<32x19xf32>,
    %c0_6 = arith.constant 0 : index
    %c0_7 = arith.constant 0 : index
    %c0_8 = arith.constant 0 : index
    %28 = vector.load %arg1[%c0_6, %c0_7, %c0_8] : memref<1x8x324xf32, #tpu.memory_space<vmem>>, vector<1x8x324xf32>
    %29 = vector.shape_cast %28 : vector<1x8x324xf32> to vector<8x324xf32>
    %c0_9 = arith.constant 0 : index
    %c0_10 = arith.constant 0 : index
    %30 = vector.load %arg5[%c0_9, %c0_10] : memref<40x324xf32, #tpu.memory_space<vmem>>, vector<8x324xf32>
    tpu.vector_store %arg5[%c0_9, %c0_10], %29 {strides = array<i32>} : memref<40x324xf32, #tpu.memory_space<vmem>>, vector<8x324xf32>,
    %c0_11 = arith.constant 0 : index
    %c0_12 = arith.constant 0 : index
    %31 = vector.load %arg5[%c0_11, %c0_12] : memref<40x324xf32, #tpu.memory_space<vmem>>, vector<8x288xf32>
    %32 = vector.extract_strided_slice %31 {offsets = [0, 0], sizes = [8, 286], strides = [1, 1]} : vector<8x288xf32> to vector<8x286xf32>
    %c0_13 = arith.constant 0 : index
    %c0_14 = arith.constant 0 : index
    %33 = vector.load %arg6[%c0_13, %c0_14] : memref<360x286xf32, #tpu.memory_space<vmem>>, vector<8x286xf32>
    tpu.vector_store %arg6[%c0_13, %c0_14], %32 {strides = array<i32>} : memref<360x286xf32, #tpu.memory_space<vmem>>, vector<8x286xf32>,
    %34 = vector.extract_strided_slice %31 {offsets = [0, 1], sizes = [8, 286], strides = [1, 1]} : vector<8x288xf32> to vector<8x286xf32>
    %c8_15 = arith.constant 8 : index
    %c0_16 = arith.constant 0 : index
    %35 = vector.load %arg6[%c8_15, %c0_16] : memref<360x286xf32, #tpu.memory_space<vmem>>, vector<8x286xf32>
    tpu.vector_store %arg6[%c8_15, %c0_16], %34 {strides = array<i32>} : memref<360x286xf32, #tpu.memory_space<vmem>>, vector<8x286xf32>,
    %36 = vector.extract_strided_slice %31 {offsets = [0, 2], sizes = [8, 286], strides = [1, 1]} : vector<8x288xf32> to vector<8x286xf32>
    %c16 = arith.constant 16 : index
    %c0_17 = arith.constant 0 : index
    %37 = vector.load %arg6[%c16, %c0_17] : memref<360x286xf32, #tpu.memory_space<vmem>>, vector<8x286xf32>
    tpu.vector_store %arg6[%c16, %c0_17], %36 {strides = array<i32>} : memref<360x286xf32, #tpu.memory_space<vmem>>, vector<8x286xf32>,
    %c0_18 = arith.constant 0 : index
    %c18 = arith.constant 18 : index
    %38 = vector.load %arg5[%c0_18, %c18] : memref<40x324xf32, #tpu.memory_space<vmem>>, vector<8x288xf32>
    %39 = vector.extract_strided_slice %38 {offsets = [0, 0], sizes = [8, 286], strides = [1, 1]} : vector<8x288xf32> to vector<8x286xf32>
    %c24 = arith.constant 24 : index
    %c0_19 = arith.constant 0 : index
    %40 = vector.load %arg6[%c24, %c0_19] : memref<360x286xf32, #tpu.memory_space<vmem>>, vector<8x286xf32>
    tpu.vector_store %arg6[%c24, %c0_19], %39 {strides = array<i32>} : memref<360x286xf32, #tpu.memory_space<vmem>>, vector<8x286xf32>,
    %41 = vector.extract_strided_slice %38 {offsets = [0, 1], sizes = [8, 286], strides = [1, 1]} : vector<8x288xf32> to vector<8x286xf32>
    %c32 = arith.constant 32 : index
    %c0_20 = arith.constant 0 : index
    %42 = vector.load %arg6[%c32, %c0_20] : memref<360x286xf32, #tpu.memory_space<vmem>>, vector<8x286xf32>
    tpu.vector_store %arg6[%c32, %c0_20], %41 {strides = array<i32>} : memref<360x286xf32, #tpu.memory_space<vmem>>, vector<8x286xf32>,
    %43 = vector.extract_strided_slice %38 {offsets = [0, 2], sizes = [8, 286], strides = [1, 1]} : vector<8x288xf32> to vector<8x286xf32>
    %c40 = arith.constant 40 : index
    %c0_21 = arith.constant 0 : index
    %44 = vector.load %arg6[%c40, %c0_21] : memref<360x286xf32, #tpu.memory_space<vmem>>, vector<8x286xf32>
    tpu.vector_store %arg6[%c40, %c0_21], %43 {strides = array<i32>} : memref<360x286xf32, #tpu.memory_space<vmem>>, vector<8x286xf32>,
    %c0_22 = arith.constant 0 : index
    %c36 = arith.constant 36 : index
    %45 = vector.load %arg5[%c0_22, %c36] : memref<40x324xf32, #tpu.memory_space<vmem>>, vector<8x288xf32>
    %46 = vector.extract_strided_slice %45 {offsets = [0, 0], sizes = [8, 286], strides = [1, 1]} : vector<8x288xf32> to vector<8x286xf32>
    %c48 = arith.constant 48 : index
    %c0_23 = arith.constant 0 : index
    %47 = vector.load %arg6[%c48, %c0_23] : memref<360x286xf32, #tpu.memory_space<vmem>>, vector<8x286xf32>
    tpu.vector_store %arg6[%c48, %c0_23], %46 {strides = array<i32>} : memref<360x286xf32, #tpu.memory_space<vmem>>, vector<8x286xf32>,
    %48 = vector.extract_strided_slice %45 {offsets = [0, 1], sizes = [8, 286], strides = [1, 1]} : vector<8x288xf32> to vector<8x286xf32>
    %c56 = arith.constant 56 : index
    %c0_24 = arith.constant 0 : index
    %49 = vector.load %arg6[%c56, %c0_24] : memref<360x286xf32, #tpu.memory_space<vmem>>, vector<8x286xf32>
    tpu.vector_store %arg6[%c56, %c0_24], %48 {strides = array<i32>} : memref<360x286xf32, #tpu.memory_space<vmem>>, vector<8x286xf32>,
    %50 = vector.extract_strided_slice %45 {offsets = [0, 2], sizes = [8, 286], strides = [1, 1]} : vector<8x288xf32> to vector<8x286xf32>
    %c64 = arith.constant 64 : index
    %c0_25 = arith.constant 0 : index
    %51 = vector.load %arg6[%c64, %c0_25] : memref<360x286xf32, #tpu.memory_space<vmem>>, vector<8x286xf32>
    tpu.vector_store %arg6[%c64, %c0_25], %50 {strides = array<i32>} : memref<360x286xf32, #tpu.memory_space<vmem>>, vector<8x286xf32>,
    %c0_26 = arith.constant 0 : index
    %c0_27 = arith.constant 0 : index
    %52 = vector.load %arg2[%c0_26, %c0_27] : memref<8x3240xf32, #tpu.memory_space<vmem>>, vector<8x72xf32>
    %c0_28 = arith.constant 0 : index
    %c0_29 = arith.constant 0 : index
    %53 = vector.load %arg6[%c0_28, %c0_29] : memref<360x286xf32, #tpu.memory_space<vmem>>, vector<72x286xf32>
    %cst_30 = arith.constant dense<0.000000e+00> : vector<8x286xf32>
    %54 = tpu.matmul %52, %53, %cst_30 {dimension_numbers = #tpu.dot_dimension_numbers<[1], [0], [0], [1], [0, 0, 1, 1], [], []>} : vector<8x72xf32>, vector<72x286xf32>, vector<8x286xf32> -> vector<8x286xf32>
    %c0_31 = arith.constant 0 : index
    %c0_32 = arith.constant 0 : index
    %55 = vector.load %arg3[%c0_31, %c0_32] : memref<8x15xf32, #tpu.memory_space<vmem>>, vector<8x1xf32>
    %56 = vector.broadcast %55 : vector<8x1xf32> to vector<8x286xf32>
    %57 = arith.addf %54, %56 : vector<8x286xf32>
    %cst_33 = arith.constant 2.000000e-01 : f32
    %58 = vector.broadcast %cst_33 : f32 to vector<8x286xf32>
    %59 = arith.mulf %58, %57 : vector<8x286xf32>
    %60 = arith.maximumf %57, %59 : vector<8x286xf32>
    %cst_34 = arith.constant 0.000000e+00 : f32
    %61 = vector.shape_cast %23 : vector<1x286xi1> to vector<1x286xi1>
    %62 = vector.broadcast %61 : vector<1x286xi1> to vector<8x286xi1>
    %63 = vector.broadcast %cst_34 : f32 to vector<8x286xf32>
    %64 = arith.select %62, %60, %63 : vector<8x286xi1>, vector<8x286xf32>
    %c8_35 = arith.constant 8 : index
    %c19 = arith.constant 19 : index
    %65 = vector.load %arg5[%c8_35, %c19] : memref<40x324xf32, #tpu.memory_space<vmem>>, vector<8x286xf32>
    tpu.vector_store %arg5[%c8_35, %c19], %64 {strides = array<i32>} : memref<40x324xf32, #tpu.memory_space<vmem>>, vector<8x286xf32>,
    %c8_36 = arith.constant 8 : index
    %c0_37 = arith.constant 0 : index
    %66 = vector.load %arg5[%c8_36, %c0_37] : memref<40x324xf32, #tpu.memory_space<vmem>>, vector<8x288xf32>
    %67 = vector.extract_strided_slice %66 {offsets = [0, 0], sizes = [8, 286], strides = [1, 1]} : vector<8x288xf32> to vector<8x286xf32>
    %c72 = arith.constant 72 : index
    %c0_38 = arith.constant 0 : index
    %68 = vector.load %arg6[%c72, %c0_38] : memref<360x286xf32, #tpu.memory_space<vmem>>, vector<8x286xf32>
    tpu.vector_store %arg6[%c72, %c0_38], %67 {strides = array<i32>} : memref<360x286xf32, #tpu.memory_space<vmem>>, vector<8x286xf32>,
    %69 = vector.extract_strided_slice %66 {offsets = [0, 1], sizes = [8, 286], strides = [1, 1]} : vector<8x288xf32> to vector<8x286xf32>
    %c80 = arith.constant 80 : index
    %c0_39 = arith.constant 0 : index
    %70 = vector.load %arg6[%c80, %c0_39] : memref<360x286xf32, #tpu.memory_space<vmem>>, vector<8x286xf32>
    tpu.vector_store %arg6[%c80, %c0_39], %69 {strides = array<i32>} : memref<360x286xf32, #tpu.memory_space<vmem>>, vector<8x286xf32>,
    %71 = vector.extract_strided_slice %66 {offsets = [0, 2], sizes = [8, 286], strides = [1, 1]} : vector<8x288xf32> to vector<8x286xf32>
    %c88 = arith.constant 88 : index
    %c0_40 = arith.constant 0 : index
    %72 = vector.load %arg6[%c88, %c0_40] : memref<360x286xf32, #tpu.memory_space<vmem>>, vector<8x286xf32>
    tpu.vector_store %arg6[%c88, %c0_40], %71 {strides = array<i32>} : memref<360x286xf32, #tpu.memory_space<vmem>>, vector<8x286xf32>,
    %c8_41 = arith.constant 8 : index
    %c18_42 = arith.constant 18 : index
    %73 = vector.load %arg5[%c8_41, %c18_42] : memref<40x324xf32, #tpu.memory_space<vmem>>, vector<8x288xf32>
    %74 = vector.extract_strided_slice %73 {offsets = [0, 0], sizes = [8, 286], strides = [1, 1]} : vector<8x288xf32> to vector<8x286xf32>
    %c96 = arith.constant 96 : index
    %c0_43 = arith.constant 0 : index
    %75 = vector.load %arg6[%c96, %c0_43] : memref<360x286xf32, #tpu.memory_space<vmem>>, vector<8x286xf32>
    tpu.vector_store %arg6[%c96, %c0_43], %74 {strides = array<i32>} : memref<360x286xf32, #tpu.memory_space<vmem>>, vector<8x286xf32>,
    %76 = vector.extract_strided_slice %73 {offsets = [0, 1], sizes = [8, 286], strides = [1, 1]} : vector<8x288xf32> to vector<8x286xf32>
    %c104 = arith.constant 104 : index
    %c0_44 = arith.constant 0 : index
    %77 = vector.load %arg6[%c104, %c0_44] : memref<360x286xf32, #tpu.memory_space<vmem>>, vector<8x286xf32>
    tpu.vector_store %arg6[%c104, %c0_44], %76 {strides = array<i32>} : memref<360x286xf32, #tpu.memory_space<vmem>>, vector<8x286xf32>,
    %78 = vector.extract_strided_slice %73 {offsets = [0, 2], sizes = [8, 286], strides = [1, 1]} : vector<8x288xf32> to vector<8x286xf32>
    %c112 = arith.constant 112 : index
    %c0_45 = arith.constant 0 : index
    %79 = vector.load %arg6[%c112, %c0_45] : memref<360x286xf32, #tpu.memory_space<vmem>>, vector<8x286xf32>
    tpu.vector_store %arg6[%c112, %c0_45], %78 {strides = array<i32>} : memref<360x286xf32, #tpu.memory_space<vmem>>, vector<8x286xf32>,
    %c8_46 = arith.constant 8 : index
    %c36_47 = arith.constant 36 : index
    %80 = vector.load %arg5[%c8_46, %c36_47] : memref<40x324xf32, #tpu.memory_space<vmem>>, vector<8x288xf32>
    %81 = vector.extract_strided_slice %80 {offsets = [0, 0], sizes = [8, 286], strides = [1, 1]} : vector<8x288xf32> to vector<8x286xf32>
    %c120 = arith.constant 120 : index
    %c0_48 = arith.constant 0 : index
    %82 = vector.load %arg6[%c120, %c0_48] : memref<360x286xf32, #tpu.memory_space<vmem>>, vector<8x286xf32>
    tpu.vector_store %arg6[%c120, %c0_48], %81 {strides = array<i32>} : memref<360x286xf32, #tpu.memory_space<vmem>>, vector<8x286xf32>,
    %83 = vector.extract_strided_slice %80 {offsets = [0, 1], sizes = [8, 286], strides = [1, 1]} : vector<8x288xf32> to vector<8x286xf32>
    %c128 = arith.constant 128 : index
    %c0_49 = arith.constant 0 : index
    %84 = vector.load %arg6[%c128, %c0_49] : memref<360x286xf32, #tpu.memory_space<vmem>>, vector<8x286xf32>
    tpu.vector_store %arg6[%c128, %c0_49], %83 {strides = array<i32>} : memref<360x286xf32, #tpu.memory_space<vmem>>, vector<8x286xf32>,
    %85 = vector.extract_strided_slice %80 {offsets = [0, 2], sizes = [8, 286], strides = [1, 1]} : vector<8x288xf32> to vector<8x286xf32>
    %c136 = arith.constant 136 : index
    %c0_50 = arith.constant 0 : index
    %86 = vector.load %arg6[%c136, %c0_50] : memref<360x286xf32, #tpu.memory_space<vmem>>, vector<8x286xf32>
    tpu.vector_store %arg6[%c136, %c0_50], %85 {strides = array<i32>} : memref<360x286xf32, #tpu.memory_space<vmem>>, vector<8x286xf32>,
    %c0_51 = arith.constant 0 : index
    %c72_52 = arith.constant 72 : index
    %87 = vector.load %arg2[%c0_51, %c72_52] : memref<8x3240xf32, #tpu.memory_space<vmem>>, vector<8x144xf32>
    %c0_53 = arith.constant 0 : index
    %c0_54 = arith.constant 0 : index
    %88 = vector.load %arg6[%c0_53, %c0_54] : memref<360x286xf32, #tpu.memory_space<vmem>>, vector<144x286xf32>
    %cst_55 = arith.constant dense<0.000000e+00> : vector<8x286xf32>
    %89 = tpu.matmul %87, %88, %cst_55 {dimension_numbers = #tpu.dot_dimension_numbers<[1], [0], [0], [1], [0, 0, 1, 1], [], []>} : vector<8x144xf32>, vector<144x286xf32>, vector<8x286xf32> -> vector<8x286xf32>
    %c0_56 = arith.constant 0 : index
    %c1 = arith.constant 1 : index
    %90 = vector.load %arg3[%c0_56, %c1] : memref<8x15xf32, #tpu.memory_space<vmem>>, vector<8x1xf32>
    %91 = vector.broadcast %90 : vector<8x1xf32> to vector<8x286xf32>
    %92 = arith.addf %89, %91 : vector<8x286xf32>
    %cst_57 = arith.constant 2.000000e-01 : f32
    %93 = vector.broadcast %cst_57 : f32 to vector<8x286xf32>
    %94 = arith.mulf %93, %92 : vector<8x286xf32>
    %95 = arith.maximumf %92, %94 : vector<8x286xf32>
    %cst_58 = arith.constant 0.000000e+00 : f32
    %96 = vector.shape_cast %23 : vector<1x286xi1> to vector<1x286xi1>
    %97 = vector.broadcast %96 : vector<1x286xi1> to vector<8x286xi1>
    %98 = vector.broadcast %cst_58 : f32 to vector<8x286xf32>
    %99 = arith.select %97, %95, %98 : vector<8x286xi1>, vector<8x286xf32>
    %c16_59 = arith.constant 16 : index
    %c19_60 = arith.constant 19 : index
    %100 = vector.load %arg5[%c16_59, %c19_60] : memref<40x324xf32, #tpu.memory_space<vmem>>, vector<8x286xf32>
    tpu.vector_store %arg5[%c16_59, %c19_60], %99 {strides = array<i32>} : memref<40x324xf32, #tpu.memory_space<vmem>>, vector<8x286xf32>,
    %c16_61 = arith.constant 16 : index
    %c0_62 = arith.constant 0 : index
    %101 = vector.load %arg5[%c16_61, %c0_62] : memref<40x324xf32, #tpu.memory_space<vmem>>, vector<8x288xf32>
    %102 = vector.extract_strided_slice %101 {offsets = [0, 0], sizes = [8, 286], strides = [1, 1]} : vector<8x288xf32> to vector<8x286xf32>
    %c144 = arith.constant 144 : index
    %c0_63 = arith.constant 0 : index
    %103 = vector.load %arg6[%c144, %c0_63] : memref<360x286xf32, #tpu.memory_space<vmem>>, vector<8x286xf32>
    tpu.vector_store %arg6[%c144, %c0_63], %102 {strides = array<i32>} : memref<360x286xf32, #tpu.memory_space<vmem>>, vector<8x286xf32>,
    %104 = vector.extract_strided_slice %101 {offsets = [0, 1], sizes = [8, 286], strides = [1, 1]} : vector<8x288xf32> to vector<8x286xf32>
    %c152 = arith.constant 152 : index
    %c0_64 = arith.constant 0 : index
    %105 = vector.load %arg6[%c152, %c0_64] : memref<360x286xf32, #tpu.memory_space<vmem>>, vector<8x286xf32>
    tpu.vector_store %arg6[%c152, %c0_64], %104 {strides = array<i32>} : memref<360x286xf32, #tpu.memory_space<vmem>>, vector<8x286xf32>,
    %106 = vector.extract_strided_slice %101 {offsets = [0, 2], sizes = [8, 286], strides = [1, 1]} : vector<8x288xf32> to vector<8x286xf32>
    %c160 = arith.constant 160 : index
    %c0_65 = arith.constant 0 : index
    %107 = vector.load %arg6[%c160, %c0_65] : memref<360x286xf32, #tpu.memory_space<vmem>>, vector<8x286xf32>
    tpu.vector_store %arg6[%c160, %c0_65], %106 {strides = array<i32>} : memref<360x286xf32, #tpu.memory_space<vmem>>, vector<8x286xf32>,
    %c16_66 = arith.constant 16 : index
    %c18_67 = arith.constant 18 : index
    %108 = vector.load %arg5[%c16_66, %c18_67] : memref<40x324xf32, #tpu.memory_space<vmem>>, vector<8x288xf32>
    %109 = vector.extract_strided_slice %108 {offsets = [0, 0], sizes = [8, 286], strides = [1, 1]} : vector<8x288xf32> to vector<8x286xf32>
    %c168 = arith.constant 168 : index
    %c0_68 = arith.constant 0 : index
    %110 = vector.load %arg6[%c168, %c0_68] : memref<360x286xf32, #tpu.memory_space<vmem>>, vector<8x286xf32>
    tpu.vector_store %arg6[%c168, %c0_68], %109 {strides = array<i32>} : memref<360x286xf32, #tpu.memory_space<vmem>>, vector<8x286xf32>,
    %111 = vector.extract_strided_slice %108 {offsets = [0, 1], sizes = [8, 286], strides = [1, 1]} : vector<8x288xf32> to vector<8x286xf32>
    %c176 = arith.constant 176 : index
    %c0_69 = arith.constant 0 : index
    %112 = vector.load %arg6[%c176, %c0_69] : memref<360x286xf32, #tpu.memory_space<vmem>>, vector<8x286xf32>
    tpu.vector_store %arg6[%c176, %c0_69], %111 {strides = array<i32>} : memref<360x286xf32, #tpu.memory_space<vmem>>, vector<8x286xf32>,
    %113 = vector.extract_strided_slice %108 {offsets = [0, 2], sizes = [8, 286], strides = [1, 1]} : vector<8x288xf32> to vector<8x286xf32>
    %c184 = arith.constant 184 : index
    %c0_70 = arith.constant 0 : index
    %114 = vector.load %arg6[%c184, %c0_70] : memref<360x286xf32, #tpu.memory_space<vmem>>, vector<8x286xf32>
    tpu.vector_store %arg6[%c184, %c0_70], %113 {strides = array<i32>} : memref<360x286xf32, #tpu.memory_space<vmem>>, vector<8x286xf32>,
    %c16_71 = arith.constant 16 : index
    %c36_72 = arith.constant 36 : index
    %115 = vector.load %arg5[%c16_71, %c36_72] : memref<40x324xf32, #tpu.memory_space<vmem>>, vector<8x288xf32>
    %116 = vector.extract_strided_slice %115 {offsets = [0, 0], sizes = [8, 286], strides = [1, 1]} : vector<8x288xf32> to vector<8x286xf32>
    %c192 = arith.constant 192 : index
    %c0_73 = arith.constant 0 : index
    %117 = vector.load %arg6[%c192, %c0_73] : memref<360x286xf32, #tpu.memory_space<vmem>>, vector<8x286xf32>
    tpu.vector_store %arg6[%c192, %c0_73], %116 {strides = array<i32>} : memref<360x286xf32, #tpu.memory_space<vmem>>, vector<8x286xf32>,
    %118 = vector.extract_strided_slice %115 {offsets = [0, 1], sizes = [8, 286], strides = [1, 1]} : vector<8x288xf32> to vector<8x286xf32>
    %c200 = arith.constant 200 : index
    %c0_74 = arith.constant 0 : index
    %119 = vector.load %arg6[%c200, %c0_74] : memref<360x286xf32, #tpu.memory_space<vmem>>, vector<8x286xf32>
    tpu.vector_store %arg6[%c200, %c0_74], %118 {strides = array<i32>} : memref<360x286xf32, #tpu.memory_space<vmem>>, vector<8x286xf32>,
    %120 = vector.extract_strided_slice %115 {offsets = [0, 2], sizes = [8, 286], strides = [1, 1]} : vector<8x288xf32> to vector<8x286xf32>
    %c208 = arith.constant 208 : index
    %c0_75 = arith.constant 0 : index
    %121 = vector.load %arg6[%c208, %c0_75] : memref<360x286xf32, #tpu.memory_space<vmem>>, vector<8x286xf32>
    tpu.vector_store %arg6[%c208, %c0_75], %120 {strides = array<i32>} : memref<360x286xf32, #tpu.memory_space<vmem>>, vector<8x286xf32>,
    %c0_76 = arith.constant 0 : index
    %c216 = arith.constant 216 : index
    %122 = vector.load %arg2[%c0_76, %c216] : memref<8x3240xf32, #tpu.memory_space<vmem>>, vector<8x216xf32>
    %c0_77 = arith.constant 0 : index
    %c0_78 = arith.constant 0 : index
    %123 = vector.load %arg6[%c0_77, %c0_78] : memref<360x286xf32, #tpu.memory_space<vmem>>, vector<216x286xf32>
    %cst_79 = arith.constant dense<0.000000e+00> : vector<8x286xf32>
    %124 = tpu.matmul %122, %123, %cst_79 {dimension_numbers = #tpu.dot_dimension_numbers<[1], [0], [0], [1], [0, 0, 1, 1], [], []>} : vector<8x216xf32>, vector<216x286xf32>, vector<8x286xf32> -> vector<8x286xf32>
    %c0_80 = arith.constant 0 : index
    %c2 = arith.constant 2 : index
    %125 = vector.load %arg3[%c0_80, %c2] : memref<8x15xf32, #tpu.memory_space<vmem>>, vector<8x1xf32>
    %126 = vector.broadcast %125 : vector<8x1xf32> to vector<8x286xf32>
    %127 = arith.addf %124, %126 : vector<8x286xf32>
    %cst_81 = arith.constant 2.000000e-01 : f32
    %128 = vector.broadcast %cst_81 : f32 to vector<8x286xf32>
    %129 = arith.mulf %128, %127 : vector<8x286xf32>
    %130 = arith.maximumf %127, %129 : vector<8x286xf32>
    %cst_82 = arith.constant 0.000000e+00 : f32
    %131 = vector.shape_cast %23 : vector<1x286xi1> to vector<1x286xi1>
    %132 = vector.broadcast %131 : vector<1x286xi1> to vector<8x286xi1>
    %133 = vector.broadcast %cst_82 : f32 to vector<8x286xf32>
    %134 = arith.select %132, %130, %133 : vector<8x286xi1>, vector<8x286xf32>
    %c24_83 = arith.constant 24 : index
    %c19_84 = arith.constant 19 : index
    %135 = vector.load %arg5[%c24_83, %c19_84] : memref<40x324xf32, #tpu.memory_space<vmem>>, vector<8x286xf32>
    tpu.vector_store %arg5[%c24_83, %c19_84], %134 {strides = array<i32>} : memref<40x324xf32, #tpu.memory_space<vmem>>, vector<8x286xf32>,
    %c24_85 = arith.constant 24 : index
    %c0_86 = arith.constant 0 : index
    %136 = vector.load %arg5[%c24_85, %c0_86] : memref<40x324xf32, #tpu.memory_space<vmem>>, vector<8x288xf32>
    %137 = vector.extract_strided_slice %136 {offsets = [0, 0], sizes = [8, 286], strides = [1, 1]} : vector<8x288xf32> to vector<8x286xf32>
    %c216_87 = arith.constant 216 : index
    %c0_88 = arith.constant 0 : index
    %138 = vector.load %arg6[%c216_87, %c0_88] : memref<360x286xf32, #tpu.memory_space<vmem>>, vector<8x286xf32>
    tpu.vector_store %arg6[%c216_87, %c0_88], %137 {strides = array<i32>} : memref<360x286xf32, #tpu.memory_space<vmem>>, vector<8x286xf32>,
    %139 = vector.extract_strided_slice %136 {offsets = [0, 1], sizes = [8, 286], strides = [1, 1]} : vector<8x288xf32> to vector<8x286xf32>
    %c224 = arith.constant 224 : index
    %c0_89 = arith.constant 0 : index
    %140 = vector.load %arg6[%c224, %c0_89] : memref<360x286xf32, #tpu.memory_space<vmem>>, vector<8x286xf32>
    tpu.vector_store %arg6[%c224, %c0_89], %139 {strides = array<i32>} : memref<360x286xf32, #tpu.memory_space<vmem>>, vector<8x286xf32>,
    %141 = vector.extract_strided_slice %136 {offsets = [0, 2], sizes = [8, 286], strides = [1, 1]} : vector<8x288xf32> to vector<8x286xf32>
    %c232 = arith.constant 232 : index
    %c0_90 = arith.constant 0 : index
    %142 = vector.load %arg6[%c232, %c0_90] : memref<360x286xf32, #tpu.memory_space<vmem>>, vector<8x286xf32>
    tpu.vector_store %arg6[%c232, %c0_90], %141 {strides = array<i32>} : memref<360x286xf32, #tpu.memory_space<vmem>>, vector<8x286xf32>,
    %c24_91 = arith.constant 24 : index
    %c18_92 = arith.constant 18 : index
    %143 = vector.load %arg5[%c24_91, %c18_92] : memref<40x324xf32, #tpu.memory_space<vmem>>, vector<8x288xf32>
    %144 = vector.extract_strided_slice %143 {offsets = [0, 0], sizes = [8, 286], strides = [1, 1]} : vector<8x288xf32> to vector<8x286xf32>
    %c240 = arith.constant 240 : index
    %c0_93 = arith.constant 0 : index
    %145 = vector.load %arg6[%c240, %c0_93] : memref<360x286xf32, #tpu.memory_space<vmem>>, vector<8x286xf32>
    tpu.vector_store %arg6[%c240, %c0_93], %144 {strides = array<i32>} : memref<360x286xf32, #tpu.memory_space<vmem>>, vector<8x286xf32>,
    %146 = vector.extract_strided_slice %143 {offsets = [0, 1], sizes = [8, 286], strides = [1, 1]} : vector<8x288xf32> to vector<8x286xf32>
    %c248 = arith.constant 248 : index
    %c0_94 = arith.constant 0 : index
    %147 = vector.load %arg6[%c248, %c0_94] : memref<360x286xf32, #tpu.memory_space<vmem>>, vector<8x286xf32>
    tpu.vector_store %arg6[%c248, %c0_94], %146 {strides = array<i32>} : memref<360x286xf32, #tpu.memory_space<vmem>>, vector<8x286xf32>,
    %148 = vector.extract_strided_slice %143 {offsets = [0, 2], sizes = [8, 286], strides = [1, 1]} : vector<8x288xf32> to vector<8x286xf32>
    %c256 = arith.constant 256 : index
    %c0_95 = arith.constant 0 : index
    %149 = vector.load %arg6[%c256, %c0_95] : memref<360x286xf32, #tpu.memory_space<vmem>>, vector<8x286xf32>
    tpu.vector_store %arg6[%c256, %c0_95], %148 {strides = array<i32>} : memref<360x286xf32, #tpu.memory_space<vmem>>, vector<8x286xf32>,
    %c24_96 = arith.constant 24 : index
    %c36_97 = arith.constant 36 : index
    %150 = vector.load %arg5[%c24_96, %c36_97] : memref<40x324xf32, #tpu.memory_space<vmem>>, vector<8x288xf32>
    %151 = vector.extract_strided_slice %150 {offsets = [0, 0], sizes = [8, 286], strides = [1, 1]} : vector<8x288xf32> to vector<8x286xf32>
    %c264 = arith.constant 264 : index
    %c0_98 = arith.constant 0 : index
    %152 = vector.load %arg6[%c264, %c0_98] : memref<360x286xf32, #tpu.memory_space<vmem>>, vector<8x286xf32>
    tpu.vector_store %arg6[%c264, %c0_98], %151 {strides = array<i32>} : memref<360x286xf32, #tpu.memory_space<vmem>>, vector<8x286xf32>,
    %153 = vector.extract_strided_slice %150 {offsets = [0, 1], sizes = [8, 286], strides = [1, 1]} : vector<8x288xf32> to vector<8x286xf32>
    %c272 = arith.constant 272 : index
    %c0_99 = arith.constant 0 : index
    %154 = vector.load %arg6[%c272, %c0_99] : memref<360x286xf32, #tpu.memory_space<vmem>>, vector<8x286xf32>
    tpu.vector_store %arg6[%c272, %c0_99], %153 {strides = array<i32>} : memref<360x286xf32, #tpu.memory_space<vmem>>, vector<8x286xf32>,
    %155 = vector.extract_strided_slice %150 {offsets = [0, 2], sizes = [8, 286], strides = [1, 1]} : vector<8x288xf32> to vector<8x286xf32>
    %c280 = arith.constant 280 : index
    %c0_100 = arith.constant 0 : index
    %156 = vector.load %arg6[%c280, %c0_100] : memref<360x286xf32, #tpu.memory_space<vmem>>, vector<8x286xf32>
    tpu.vector_store %arg6[%c280, %c0_100], %155 {strides = array<i32>} : memref<360x286xf32, #tpu.memory_space<vmem>>, vector<8x286xf32>,
    %c0_101 = arith.constant 0 : index
    %c432 = arith.constant 432 : index
    %157 = vector.load %arg2[%c0_101, %c432] : memref<8x3240xf32, #tpu.memory_space<vmem>>, vector<8x288xf32>
    %c0_102 = arith.constant 0 : index
    %c0_103 = arith.constant 0 : index
    %158 = vector.load %arg6[%c0_102, %c0_103] : memref<360x286xf32, #tpu.memory_space<vmem>>, vector<288x286xf32>
    %cst_104 = arith.constant dense<0.000000e+00> : vector<8x286xf32>
    %159 = tpu.matmul %157, %158, %cst_104 {dimension_numbers = #tpu.dot_dimension_numbers<[1], [0], [0], [1], [0, 0, 1, 1], [], []>} : vector<8x288xf32>, vector<288x286xf32>, vector<8x286xf32> -> vector<8x286xf32>
    %c0_105 = arith.constant 0 : index
    %c3 = arith.constant 3 : index
    %160 = vector.load %arg3[%c0_105, %c3] : memref<8x15xf32, #tpu.memory_space<vmem>>, vector<8x1xf32>
    %161 = vector.broadcast %160 : vector<8x1xf32> to vector<8x286xf32>
    %162 = arith.addf %159, %161 : vector<8x286xf32>
    %cst_106 = arith.constant 2.000000e-01 : f32
    %163 = vector.broadcast %cst_106 : f32 to vector<8x286xf32>
    %164 = arith.mulf %163, %162 : vector<8x286xf32>
    %165 = arith.maximumf %162, %164 : vector<8x286xf32>
    %cst_107 = arith.constant 0.000000e+00 : f32
    %166 = vector.shape_cast %23 : vector<1x286xi1> to vector<1x286xi1>
    %167 = vector.broadcast %166 : vector<1x286xi1> to vector<8x286xi1>
    %168 = vector.broadcast %cst_107 : f32 to vector<8x286xf32>
    %169 = arith.select %167, %165, %168 : vector<8x286xi1>, vector<8x286xf32>
    %c32_108 = arith.constant 32 : index
    %c19_109 = arith.constant 19 : index
    %170 = vector.load %arg5[%c32_108, %c19_109] : memref<40x324xf32, #tpu.memory_space<vmem>>, vector<8x286xf32>
    tpu.vector_store %arg5[%c32_108, %c19_109], %169 {strides = array<i32>} : memref<40x324xf32, #tpu.memory_space<vmem>>, vector<8x286xf32>,
    %c32_110 = arith.constant 32 : index
    %c0_111 = arith.constant 0 : index
    %171 = vector.load %arg5[%c32_110, %c0_111] : memref<40x324xf32, #tpu.memory_space<vmem>>, vector<8x288xf32>
    %172 = vector.extract_strided_slice %171 {offsets = [0, 0], sizes = [8, 286], strides = [1, 1]} : vector<8x288xf32> to vector<8x286xf32>
    %c288 = arith.constant 288 : index
    %c0_112 = arith.constant 0 : index
    %173 = vector.load %arg6[%c288, %c0_112] : memref<360x286xf32, #tpu.memory_space<vmem>>, vector<8x286xf32>
    tpu.vector_store %arg6[%c288, %c0_112], %172 {strides = array<i32>} : memref<360x286xf32, #tpu.memory_space<vmem>>, vector<8x286xf32>,
    %174 = vector.extract_strided_slice %171 {offsets = [0, 1], sizes = [8, 286], strides = [1, 1]} : vector<8x288xf32> to vector<8x286xf32>
    %c296 = arith.constant 296 : index
    %c0_113 = arith.constant 0 : index
    %175 = vector.load %arg6[%c296, %c0_113] : memref<360x286xf32, #tpu.memory_space<vmem>>, vector<8x286xf32>
    tpu.vector_store %arg6[%c296, %c0_113], %174 {strides = array<i32>} : memref<360x286xf32, #tpu.memory_space<vmem>>, vector<8x286xf32>,
    %176 = vector.extract_strided_slice %171 {offsets = [0, 2], sizes = [8, 286], strides = [1, 1]} : vector<8x288xf32> to vector<8x286xf32>
    %c304 = arith.constant 304 : index
    %c0_114 = arith.constant 0 : index
    %177 = vector.load %arg6[%c304, %c0_114] : memref<360x286xf32, #tpu.memory_space<vmem>>, vector<8x286xf32>
    tpu.vector_store %arg6[%c304, %c0_114], %176 {strides = array<i32>} : memref<360x286xf32, #tpu.memory_space<vmem>>, vector<8x286xf32>,
    %c32_115 = arith.constant 32 : index
    %c18_116 = arith.constant 18 : index
    %178 = vector.load %arg5[%c32_115, %c18_116] : memref<40x324xf32, #tpu.memory_space<vmem>>, vector<8x288xf32>
    %179 = vector.extract_strided_slice %178 {offsets = [0, 0], sizes = [8, 286], strides = [1, 1]} : vector<8x288xf32> to vector<8x286xf32>
    %c312 = arith.constant 312 : index
    %c0_117 = arith.constant 0 : index
    %180 = vector.load %arg6[%c312, %c0_117] : memref<360x286xf32, #tpu.memory_space<vmem>>, vector<8x286xf32>
    tpu.vector_store %arg6[%c312, %c0_117], %179 {strides = array<i32>} : memref<360x286xf32, #tpu.memory_space<vmem>>, vector<8x286xf32>,
    %181 = vector.extract_strided_slice %178 {offsets = [0, 1], sizes = [8, 286], strides = [1, 1]} : vector<8x288xf32> to vector<8x286xf32>
    %c320 = arith.constant 320 : index
    %c0_118 = arith.constant 0 : index
    %182 = vector.load %arg6[%c320, %c0_118] : memref<360x286xf32, #tpu.memory_space<vmem>>, vector<8x286xf32>
    tpu.vector_store %arg6[%c320, %c0_118], %181 {strides = array<i32>} : memref<360x286xf32, #tpu.memory_space<vmem>>, vector<8x286xf32>,
    %183 = vector.extract_strided_slice %178 {offsets = [0, 2], sizes = [8, 286], strides = [1, 1]} : vector<8x288xf32> to vector<8x286xf32>
    %c328 = arith.constant 328 : index
    %c0_119 = arith.constant 0 : index
    %184 = vector.load %arg6[%c328, %c0_119] : memref<360x286xf32, #tpu.memory_space<vmem>>, vector<8x286xf32>
    tpu.vector_store %arg6[%c328, %c0_119], %183 {strides = array<i32>} : memref<360x286xf32, #tpu.memory_space<vmem>>, vector<8x286xf32>,
    %c32_120 = arith.constant 32 : index
    %c36_121 = arith.constant 36 : index
    %185 = vector.load %arg5[%c32_120, %c36_121] : memref<40x324xf32, #tpu.memory_space<vmem>>, vector<8x288xf32>
    %186 = vector.extract_strided_slice %185 {offsets = [0, 0], sizes = [8, 286], strides = [1, 1]} : vector<8x288xf32> to vector<8x286xf32>
    %c336 = arith.constant 336 : index
    %c0_122 = arith.constant 0 : index
    %187 = vector.load %arg6[%c336, %c0_122] : memref<360x286xf32, #tpu.memory_space<vmem>>, vector<8x286xf32>
    tpu.vector_store %arg6[%c336, %c0_122], %186 {strides = array<i32>} : memref<360x286xf32, #tpu.memory_space<vmem>>, vector<8x286xf32>,
    %188 = vector.extract_strided_slice %185 {offsets = [0, 1], sizes = [8, 286], strides = [1, 1]} : vector<8x288xf32> to vector<8x286xf32>
    %c344 = arith.constant 344 : index
    %c0_123 = arith.constant 0 : index
    %189 = vector.load %arg6[%c344, %c0_123] : memref<360x286xf32, #tpu.memory_space<vmem>>, vector<8x286xf32>
    tpu.vector_store %arg6[%c344, %c0_123], %188 {strides = array<i32>} : memref<360x286xf32, #tpu.memory_space<vmem>>, vector<8x286xf32>,
    %190 = vector.extract_strided_slice %185 {offsets = [0, 2], sizes = [8, 286], strides = [1, 1]} : vector<8x288xf32> to vector<8x286xf32>
    %c352 = arith.constant 352 : index
    %c0_124 = arith.constant 0 : index
    %191 = vector.load %arg6[%c352, %c0_124] : memref<360x286xf32, #tpu.memory_space<vmem>>, vector<8x286xf32>
    tpu.vector_store %arg6[%c352, %c0_124], %190 {strides = array<i32>} : memref<360x286xf32, #tpu.memory_space<vmem>>, vector<8x286xf32>,
    %c0_125 = arith.constant 0 : index
    %c720 = arith.constant 720 : index
    %192 = vector.load %arg2[%c0_125, %c720] : memref<8x3240xf32, #tpu.memory_space<vmem>>, vector<8x360xf32>
    %c0_126 = arith.constant 0 : index
    %c0_127 = arith.constant 0 : index
    %193 = vector.load %arg6[%c0_126, %c0_127] : memref<360x286xf32, #tpu.memory_space<vmem>>, vector<360x286xf32>
    %cst_128 = arith.constant dense<0.000000e+00> : vector<8x286xf32>
    %194 = tpu.matmul %192, %193, %cst_128 {dimension_numbers = #tpu.dot_dimension_numbers<[1], [0], [0], [1], [0, 0, 1, 1], [], []>} : vector<8x360xf32>, vector<360x286xf32>, vector<8x286xf32> -> vector<8x286xf32>
    %c0_129 = arith.constant 0 : index
    %c4 = arith.constant 4 : index
    %195 = vector.load %arg3[%c0_129, %c4] : memref<8x15xf32, #tpu.memory_space<vmem>>, vector<8x1xf32>
    %196 = vector.broadcast %195 : vector<8x1xf32> to vector<8x286xf32>
    %197 = arith.addf %194, %196 : vector<8x286xf32>
    %cst_130 = arith.constant 2.000000e-01 : f32
    %198 = vector.broadcast %cst_130 : f32 to vector<8x286xf32>
    %199 = arith.mulf %197, %198 : vector<8x286xf32>
    %c0_131 = arith.constant 0 : index
    %c19_132 = arith.constant 19 : index
    %200 = vector.load %arg5[%c0_131, %c19_132] : memref<40x324xf32, #tpu.memory_space<vmem>>, vector<8x286xf32>
    %201 = arith.addf %199, %200 : vector<8x286xf32>
    %cst_133 = arith.constant 0.000000e+00 : f32
    %202 = vector.shape_cast %23 : vector<1x286xi1> to vector<1x286xi1>
    %203 = vector.broadcast %202 : vector<1x286xi1> to vector<8x286xi1>
    %204 = vector.broadcast %cst_133 : f32 to vector<8x286xf32>
    %205 = arith.select %203, %201, %204 : vector<8x286xi1>, vector<8x286xf32>
    %c0_134 = arith.constant 0 : index
    %c19_135 = arith.constant 19 : index
    %206 = vector.load %arg5[%c0_134, %c19_135] : memref<40x324xf32, #tpu.memory_space<vmem>>, vector<8x286xf32>
    tpu.vector_store %arg5[%c0_134, %c19_135], %205 {strides = array<i32>} : memref<40x324xf32, #tpu.memory_space<vmem>>, vector<8x286xf32>,
    %c0_136 = arith.constant 0 : index
    %c0_137 = arith.constant 0 : index
    %207 = vector.load %arg5[%c0_136, %c0_137] : memref<40x324xf32, #tpu.memory_space<vmem>>, vector<8x288xf32>
    %208 = vector.extract_strided_slice %207 {offsets = [0, 0], sizes = [8, 286], strides = [1, 1]} : vector<8x288xf32> to vector<8x286xf32>
    %c0_138 = arith.constant 0 : index
    %c0_139 = arith.constant 0 : index
    %209 = vector.load %arg6[%c0_138, %c0_139] : memref<360x286xf32, #tpu.memory_space<vmem>>, vector<8x286xf32>
    tpu.vector_store %arg6[%c0_138, %c0_139], %208 {strides = array<i32>} : memref<360x286xf32, #tpu.memory_space<vmem>>, vector<8x286xf32>,
    %210 = vector.extract_strided_slice %207 {offsets = [0, 1], sizes = [8, 286], strides = [1, 1]} : vector<8x288xf32> to vector<8x286xf32>
    %c8_140 = arith.constant 8 : index
    %c0_141 = arith.constant 0 : index
    %211 = vector.load %arg6[%c8_140, %c0_141] : memref<360x286xf32, #tpu.memory_space<vmem>>, vector<8x286xf32>
    tpu.vector_store %arg6[%c8_140, %c0_141], %210 {strides = array<i32>} : memref<360x286xf32, #tpu.memory_space<vmem>>, vector<8x286xf32>,
    %212 = vector.extract_strided_slice %207 {offsets = [0, 2], sizes = [8, 286], strides = [1, 1]} : vector<8x288xf32> to vector<8x286xf32>
    %c16_142 = arith.constant 16 : index
    %c0_143 = arith.constant 0 : index
    %213 = vector.load %arg6[%c16_142, %c0_143] : memref<360x286xf32, #tpu.memory_space<vmem>>, vector<8x286xf32>
    tpu.vector_store %arg6[%c16_142, %c0_143], %212 {strides = array<i32>} : memref<360x286xf32, #tpu.memory_space<vmem>>, vector<8x286xf32>,
    %c0_144 = arith.constant 0 : index
    %c18_145 = arith.constant 18 : index
    %214 = vector.load %arg5[%c0_144, %c18_145] : memref<40x324xf32, #tpu.memory_space<vmem>>, vector<8x288xf32>
    %215 = vector.extract_strided_slice %214 {offsets = [0, 0], sizes = [8, 286], strides = [1, 1]} : vector<8x288xf32> to vector<8x286xf32>
    %c24_146 = arith.constant 24 : index
    %c0_147 = arith.constant 0 : index
    %216 = vector.load %arg6[%c24_146, %c0_147] : memref<360x286xf32, #tpu.memory_space<vmem>>, vector<8x286xf32>
    tpu.vector_store %arg6[%c24_146, %c0_147], %215 {strides = array<i32>} : memref<360x286xf32, #tpu.memory_space<vmem>>, vector<8x286xf32>,
    %217 = vector.extract_strided_slice %214 {offsets = [0, 1], sizes = [8, 286], strides = [1, 1]} : vector<8x288xf32> to vector<8x286xf32>
    %c32_148 = arith.constant 32 : index
    %c0_149 = arith.constant 0 : index
    %218 = vector.load %arg6[%c32_148, %c0_149] : memref<360x286xf32, #tpu.memory_space<vmem>>, vector<8x286xf32>
    tpu.vector_store %arg6[%c32_148, %c0_149], %217 {strides = array<i32>} : memref<360x286xf32, #tpu.memory_space<vmem>>, vector<8x286xf32>,
    %219 = vector.extract_strided_slice %214 {offsets = [0, 2], sizes = [8, 286], strides = [1, 1]} : vector<8x288xf32> to vector<8x286xf32>
    %c40_150 = arith.constant 40 : index
    %c0_151 = arith.constant 0 : index
    %220 = vector.load %arg6[%c40_150, %c0_151] : memref<360x286xf32, #tpu.memory_space<vmem>>, vector<8x286xf32>
    tpu.vector_store %arg6[%c40_150, %c0_151], %219 {strides = array<i32>} : memref<360x286xf32, #tpu.memory_space<vmem>>, vector<8x286xf32>,
    %c0_152 = arith.constant 0 : index
    %c36_153 = arith.constant 36 : index
    %221 = vector.load %arg5[%c0_152, %c36_153] : memref<40x324xf32, #tpu.memory_space<vmem>>, vector<8x288xf32>
    %222 = vector.extract_strided_slice %221 {offsets = [0, 0], sizes = [8, 286], strides = [1, 1]} : vector<8x288xf32> to vector<8x286xf32>
    %c48_154 = arith.constant 48 : index
    %c0_155 = arith.constant 0 : index
    %223 = vector.load %arg6[%c48_154, %c0_155] : memref<360x286xf32, #tpu.memory_space<vmem>>, vector<8x286xf32>
    tpu.vector_store %arg6[%c48_154, %c0_155], %222 {strides = array<i32>} : memref<360x286xf32, #tpu.memory_space<vmem>>, vector<8x286xf32>,
    %224 = vector.extract_strided_slice %221 {offsets = [0, 1], sizes = [8, 286], strides = [1, 1]} : vector<8x288xf32> to vector<8x286xf32>
    %c56_156 = arith.constant 56 : index
    %c0_157 = arith.constant 0 : index
    %225 = vector.load %arg6[%c56_156, %c0_157] : memref<360x286xf32, #tpu.memory_space<vmem>>, vector<8x286xf32>
    tpu.vector_store %arg6[%c56_156, %c0_157], %224 {strides = array<i32>} : memref<360x286xf32, #tpu.memory_space<vmem>>, vector<8x286xf32>,
    %226 = vector.extract_strided_slice %221 {offsets = [0, 2], sizes = [8, 286], strides = [1, 1]} : vector<8x288xf32> to vector<8x286xf32>
    %c64_158 = arith.constant 64 : index
    %c0_159 = arith.constant 0 : index
    %227 = vector.load %arg6[%c64_158, %c0_159] : memref<360x286xf32, #tpu.memory_space<vmem>>, vector<8x286xf32>
    tpu.vector_store %arg6[%c64_158, %c0_159], %226 {strides = array<i32>} : memref<360x286xf32, #tpu.memory_space<vmem>>, vector<8x286xf32>,
    %c0_160 = arith.constant 0 : index
    %c1080 = arith.constant 1080 : index
    %228 = vector.load %arg2[%c0_160, %c1080] : memref<8x3240xf32, #tpu.memory_space<vmem>>, vector<8x72xf32>
    %c0_161 = arith.constant 0 : index
    %c0_162 = arith.constant 0 : index
    %229 = vector.load %arg6[%c0_161, %c0_162] : memref<360x286xf32, #tpu.memory_space<vmem>>, vector<72x286xf32>
    %cst_163 = arith.constant dense<0.000000e+00> : vector<8x286xf32>
    %230 = tpu.matmul %228, %229, %cst_163 {dimension_numbers = #tpu.dot_dimension_numbers<[1], [0], [0], [1], [0, 0, 1, 1], [], []>} : vector<8x72xf32>, vector<72x286xf32>, vector<8x286xf32> -> vector<8x286xf32>
    %c0_164 = arith.constant 0 : index
    %c5 = arith.constant 5 : index
    %231 = vector.load %arg3[%c0_164, %c5] : memref<8x15xf32, #tpu.memory_space<vmem>>, vector<8x1xf32>
    %232 = vector.broadcast %231 : vector<8x1xf32> to vector<8x286xf32>
    %233 = arith.addf %230, %232 : vector<8x286xf32>
    %cst_165 = arith.constant 2.000000e-01 : f32
    %234 = vector.broadcast %cst_165 : f32 to vector<8x286xf32>
    %235 = arith.mulf %234, %233 : vector<8x286xf32>
    %236 = arith.maximumf %233, %235 : vector<8x286xf32>
    %cst_166 = arith.constant 0.000000e+00 : f32
    %237 = vector.shape_cast %23 : vector<1x286xi1> to vector<1x286xi1>
    %238 = vector.broadcast %237 : vector<1x286xi1> to vector<8x286xi1>
    %239 = vector.broadcast %cst_166 : f32 to vector<8x286xf32>
    %240 = arith.select %238, %236, %239 : vector<8x286xi1>, vector<8x286xf32>
    %c8_167 = arith.constant 8 : index
    %c19_168 = arith.constant 19 : index
    %241 = vector.load %arg5[%c8_167, %c19_168] : memref<40x324xf32, #tpu.memory_space<vmem>>, vector<8x286xf32>
    tpu.vector_store %arg5[%c8_167, %c19_168], %240 {strides = array<i32>} : memref<40x324xf32, #tpu.memory_space<vmem>>, vector<8x286xf32>,
    %c8_169 = arith.constant 8 : index
    %c0_170 = arith.constant 0 : index
    %242 = vector.load %arg5[%c8_169, %c0_170] : memref<40x324xf32, #tpu.memory_space<vmem>>, vector<8x288xf32>
    %243 = vector.extract_strided_slice %242 {offsets = [0, 0], sizes = [8, 286], strides = [1, 1]} : vector<8x288xf32> to vector<8x286xf32>
    %c72_171 = arith.constant 72 : index
    %c0_172 = arith.constant 0 : index
    %244 = vector.load %arg6[%c72_171, %c0_172] : memref<360x286xf32, #tpu.memory_space<vmem>>, vector<8x286xf32>
    tpu.vector_store %arg6[%c72_171, %c0_172], %243 {strides = array<i32>} : memref<360x286xf32, #tpu.memory_space<vmem>>, vector<8x286xf32>,
    %245 = vector.extract_strided_slice %242 {offsets = [0, 1], sizes = [8, 286], strides = [1, 1]} : vector<8x288xf32> to vector<8x286xf32>
    %c80_173 = arith.constant 80 : index
    %c0_174 = arith.constant 0 : index
    %246 = vector.load %arg6[%c80_173, %c0_174] : memref<360x286xf32, #tpu.memory_space<vmem>>, vector<8x286xf32>
    tpu.vector_store %arg6[%c80_173, %c0_174], %245 {strides = array<i32>} : memref<360x286xf32, #tpu.memory_space<vmem>>, vector<8x286xf32>,
    %247 = vector.extract_strided_slice %242 {offsets = [0, 2], sizes = [8, 286], strides = [1, 1]} : vector<8x288xf32> to vector<8x286xf32>
    %c88_175 = arith.constant 88 : index
    %c0_176 = arith.constant 0 : index
    %248 = vector.load %arg6[%c88_175, %c0_176] : memref<360x286xf32, #tpu.memory_space<vmem>>, vector<8x286xf32>
    tpu.vector_store %arg6[%c88_175, %c0_176], %247 {strides = array<i32>} : memref<360x286xf32, #tpu.memory_space<vmem>>, vector<8x286xf32>,
    %c8_177 = arith.constant 8 : index
    %c18_178 = arith.constant 18 : index
    %249 = vector.load %arg5[%c8_177, %c18_178] : memref<40x324xf32, #tpu.memory_space<vmem>>, vector<8x288xf32>
    %250 = vector.extract_strided_slice %249 {offsets = [0, 0], sizes = [8, 286], strides = [1, 1]} : vector<8x288xf32> to vector<8x286xf32>
    %c96_179 = arith.constant 96 : index
    %c0_180 = arith.constant 0 : index
    %251 = vector.load %arg6[%c96_179, %c0_180] : memref<360x286xf32, #tpu.memory_space<vmem>>, vector<8x286xf32>
    tpu.vector_store %arg6[%c96_179, %c0_180], %250 {strides = array<i32>} : memref<360x286xf32, #tpu.memory_space<vmem>>, vector<8x286xf32>,
    %252 = vector.extract_strided_slice %249 {offsets = [0, 1], sizes = [8, 286], strides = [1, 1]} : vector<8x288xf32> to vector<8x286xf32>
    %c104_181 = arith.constant 104 : index
    %c0_182 = arith.constant 0 : index
    %253 = vector.load %arg6[%c104_181, %c0_182] : memref<360x286xf32, #tpu.memory_space<vmem>>, vector<8x286xf32>
    tpu.vector_store %arg6[%c104_181, %c0_182], %252 {strides = array<i32>} : memref<360x286xf32, #tpu.memory_space<vmem>>, vector<8x286xf32>,
    %254 = vector.extract_strided_slice %249 {offsets = [0, 2], sizes = [8, 286], strides = [1, 1]} : vector<8x288xf32> to vector<8x286xf32>
    %c112_183 = arith.constant 112 : index
    %c0_184 = arith.constant 0 : index
    %255 = vector.load %arg6[%c112_183, %c0_184] : memref<360x286xf32, #tpu.memory_space<vmem>>, vector<8x286xf32>
    tpu.vector_store %arg6[%c112_183, %c0_184], %254 {strides = array<i32>} : memref<360x286xf32, #tpu.memory_space<vmem>>, vector<8x286xf32>,
    %c8_185 = arith.constant 8 : index
    %c36_186 = arith.constant 36 : index
    %256 = vector.load %arg5[%c8_185, %c36_186] : memref<40x324xf32, #tpu.memory_space<vmem>>, vector<8x288xf32>
    %257 = vector.extract_strided_slice %256 {offsets = [0, 0], sizes = [8, 286], strides = [1, 1]} : vector<8x288xf32> to vector<8x286xf32>
    %c120_187 = arith.constant 120 : index
    %c0_188 = arith.constant 0 : index
    %258 = vector.load %arg6[%c120_187, %c0_188] : memref<360x286xf32, #tpu.memory_space<vmem>>, vector<8x286xf32>
    tpu.vector_store %arg6[%c120_187, %c0_188], %257 {strides = array<i32>} : memref<360x286xf32, #tpu.memory_space<vmem>>, vector<8x286xf32>,
    %259 = vector.extract_strided_slice %256 {offsets = [0, 1], sizes = [8, 286], strides = [1, 1]} : vector<8x288xf32> to vector<8x286xf32>
    %c128_189 = arith.constant 128 : index
    %c0_190 = arith.constant 0 : index
    %260 = vector.load %arg6[%c128_189, %c0_190] : memref<360x286xf32, #tpu.memory_space<vmem>>, vector<8x286xf32>
    tpu.vector_store %arg6[%c128_189, %c0_190], %259 {strides = array<i32>} : memref<360x286xf32, #tpu.memory_space<vmem>>, vector<8x286xf32>,
    %261 = vector.extract_strided_slice %256 {offsets = [0, 2], sizes = [8, 286], strides = [1, 1]} : vector<8x288xf32> to vector<8x286xf32>
    %c136_191 = arith.constant 136 : index
    %c0_192 = arith.constant 0 : index
    %262 = vector.load %arg6[%c136_191, %c0_192] : memref<360x286xf32, #tpu.memory_space<vmem>>, vector<8x286xf32>
    tpu.vector_store %arg6[%c136_191, %c0_192], %261 {strides = array<i32>} : memref<360x286xf32, #tpu.memory_space<vmem>>, vector<8x286xf32>,
    %c0_193 = arith.constant 0 : index
    %c1152 = arith.constant 1152 : index
    %263 = vector.load %arg2[%c0_193, %c1152] : memref<8x3240xf32, #tpu.memory_space<vmem>>, vector<8x144xf32>
    %c0_194 = arith.constant 0 : index
    %c0_195 = arith.constant 0 : index
    %264 = vector.load %arg6[%c0_194, %c0_195] : memref<360x286xf32, #tpu.memory_space<vmem>>, vector<144x286xf32>
    %cst_196 = arith.constant dense<0.000000e+00> : vector<8x286xf32>
    %265 = tpu.matmul %263, %264, %cst_196 {dimension_numbers = #tpu.dot_dimension_numbers<[1], [0], [0], [1], [0, 0, 1, 1], [], []>} : vector<8x144xf32>, vector<144x286xf32>, vector<8x286xf32> -> vector<8x286xf32>
    %c0_197 = arith.constant 0 : index
    %c6 = arith.constant 6 : index
    %266 = vector.load %arg3[%c0_197, %c6] : memref<8x15xf32, #tpu.memory_space<vmem>>, vector<8x1xf32>
    %267 = vector.broadcast %266 : vector<8x1xf32> to vector<8x286xf32>
    %268 = arith.addf %265, %267 : vector<8x286xf32>
    %cst_198 = arith.constant 2.000000e-01 : f32
    %269 = vector.broadcast %cst_198 : f32 to vector<8x286xf32>
    %270 = arith.mulf %269, %268 : vector<8x286xf32>
    %271 = arith.maximumf %268, %270 : vector<8x286xf32>
    %cst_199 = arith.constant 0.000000e+00 : f32
    %272 = vector.shape_cast %23 : vector<1x286xi1> to vector<1x286xi1>
    %273 = vector.broadcast %272 : vector<1x286xi1> to vector<8x286xi1>
    %274 = vector.broadcast %cst_199 : f32 to vector<8x286xf32>
    %275 = arith.select %273, %271, %274 : vector<8x286xi1>, vector<8x286xf32>
    %c16_200 = arith.constant 16 : index
    %c19_201 = arith.constant 19 : index
    %276 = vector.load %arg5[%c16_200, %c19_201] : memref<40x324xf32, #tpu.memory_space<vmem>>, vector<8x286xf32>
    tpu.vector_store %arg5[%c16_200, %c19_201], %275 {strides = array<i32>} : memref<40x324xf32, #tpu.memory_space<vmem>>, vector<8x286xf32>,
    %c16_202 = arith.constant 16 : index
    %c0_203 = arith.constant 0 : index
    %277 = vector.load %arg5[%c16_202, %c0_203] : memref<40x324xf32, #tpu.memory_space<vmem>>, vector<8x288xf32>
    %278 = vector.extract_strided_slice %277 {offsets = [0, 0], sizes = [8, 286], strides = [1, 1]} : vector<8x288xf32> to vector<8x286xf32>
    %c144_204 = arith.constant 144 : index
    %c0_205 = arith.constant 0 : index
    %279 = vector.load %arg6[%c144_204, %c0_205] : memref<360x286xf32, #tpu.memory_space<vmem>>, vector<8x286xf32>
    tpu.vector_store %arg6[%c144_204, %c0_205], %278 {strides = array<i32>} : memref<360x286xf32, #tpu.memory_space<vmem>>, vector<8x286xf32>,
    %280 = vector.extract_strided_slice %277 {offsets = [0, 1], sizes = [8, 286], strides = [1, 1]} : vector<8x288xf32> to vector<8x286xf32>
    %c152_206 = arith.constant 152 : index
    %c0_207 = arith.constant 0 : index
    %281 = vector.load %arg6[%c152_206, %c0_207] : memref<360x286xf32, #tpu.memory_space<vmem>>, vector<8x286xf32>
    tpu.vector_store %arg6[%c152_206, %c0_207], %280 {strides = array<i32>} : memref<360x286xf32, #tpu.memory_space<vmem>>, vector<8x286xf32>,
    %282 = vector.extract_strided_slice %277 {offsets = [0, 2], sizes = [8, 286], strides = [1, 1]} : vector<8x288xf32> to vector<8x286xf32>
    %c160_208 = arith.constant 160 : index
    %c0_209 = arith.constant 0 : index
    %283 = vector.load %arg6[%c160_208, %c0_209] : memref<360x286xf32, #tpu.memory_space<vmem>>, vector<8x286xf32>
    tpu.vector_store %arg6[%c160_208, %c0_209], %282 {strides = array<i32>} : memref<360x286xf32, #tpu.memory_space<vmem>>, vector<8x286xf32>,
    %c16_210 = arith.constant 16 : index
    %c18_211 = arith.constant 18 : index
    %284 = vector.load %arg5[%c16_210, %c18_211] : memref<40x324xf32, #tpu.memory_space<vmem>>, vector<8x288xf32>
    %285 = vector.extract_strided_slice %284 {offsets = [0, 0], sizes = [8, 286], strides = [1, 1]} : vector<8x288xf32> to vector<8x286xf32>
    %c168_212 = arith.constant 168 : index
    %c0_213 = arith.constant 0 : index
    %286 = vector.load %arg6[%c168_212, %c0_213] : memref<360x286xf32, #tpu.memory_space<vmem>>, vector<8x286xf32>
    tpu.vector_store %arg6[%c168_212, %c0_213], %285 {strides = array<i32>} : memref<360x286xf32, #tpu.memory_space<vmem>>, vector<8x286xf32>,
    %287 = vector.extract_strided_slice %284 {offsets = [0, 1], sizes = [8, 286], strides = [1, 1]} : vector<8x288xf32> to vector<8x286xf32>
    %c176_214 = arith.constant 176 : index
    %c0_215 = arith.constant 0 : index
    %288 = vector.load %arg6[%c176_214, %c0_215] : memref<360x286xf32, #tpu.memory_space<vmem>>, vector<8x286xf32>
    tpu.vector_store %arg6[%c176_214, %c0_215], %287 {strides = array<i32>} : memref<360x286xf32, #tpu.memory_space<vmem>>, vector<8x286xf32>,
    %289 = vector.extract_strided_slice %284 {offsets = [0, 2], sizes = [8, 286], strides = [1, 1]} : vector<8x288xf32> to vector<8x286xf32>
    %c184_216 = arith.constant 184 : index
    %c0_217 = arith.constant 0 : index
    %290 = vector.load %arg6[%c184_216, %c0_217] : memref<360x286xf32, #tpu.memory_space<vmem>>, vector<8x286xf32>
    tpu.vector_store %arg6[%c184_216, %c0_217], %289 {strides = array<i32>} : memref<360x286xf32, #tpu.memory_space<vmem>>, vector<8x286xf32>,
    %c16_218 = arith.constant 16 : index
    %c36_219 = arith.constant 36 : index
    %291 = vector.load %arg5[%c16_218, %c36_219] : memref<40x324xf32, #tpu.memory_space<vmem>>, vector<8x288xf32>
    %292 = vector.extract_strided_slice %291 {offsets = [0, 0], sizes = [8, 286], strides = [1, 1]} : vector<8x288xf32> to vector<8x286xf32>
    %c192_220 = arith.constant 192 : index
    %c0_221 = arith.constant 0 : index
    %293 = vector.load %arg6[%c192_220, %c0_221] : memref<360x286xf32, #tpu.memory_space<vmem>>, vector<8x286xf32>
    tpu.vector_store %arg6[%c192_220, %c0_221], %292 {strides = array<i32>} : memref<360x286xf32, #tpu.memory_space<vmem>>, vector<8x286xf32>,
    %294 = vector.extract_strided_slice %291 {offsets = [0, 1], sizes = [8, 286], strides = [1, 1]} : vector<8x288xf32> to vector<8x286xf32>
    %c200_222 = arith.constant 200 : index
    %c0_223 = arith.constant 0 : index
    %295 = vector.load %arg6[%c200_222, %c0_223] : memref<360x286xf32, #tpu.memory_space<vmem>>, vector<8x286xf32>
    tpu.vector_store %arg6[%c200_222, %c0_223], %294 {strides = array<i32>} : memref<360x286xf32, #tpu.memory_space<vmem>>, vector<8x286xf32>,
    %296 = vector.extract_strided_slice %291 {offsets = [0, 2], sizes = [8, 286], strides = [1, 1]} : vector<8x288xf32> to vector<8x286xf32>
    %c208_224 = arith.constant 208 : index
    %c0_225 = arith.constant 0 : index
    %297 = vector.load %arg6[%c208_224, %c0_225] : memref<360x286xf32, #tpu.memory_space<vmem>>, vector<8x286xf32>
    tpu.vector_store %arg6[%c208_224, %c0_225], %296 {strides = array<i32>} : memref<360x286xf32, #tpu.memory_space<vmem>>, vector<8x286xf32>,
    %c0_226 = arith.constant 0 : index
    %c1296 = arith.constant 1296 : index
    %298 = vector.load %arg2[%c0_226, %c1296] : memref<8x3240xf32, #tpu.memory_space<vmem>>, vector<8x216xf32>
    %c0_227 = arith.constant 0 : index
    %c0_228 = arith.constant 0 : index
    %299 = vector.load %arg6[%c0_227, %c0_228] : memref<360x286xf32, #tpu.memory_space<vmem>>, vector<216x286xf32>
    %cst_229 = arith.constant dense<0.000000e+00> : vector<8x286xf32>
    %300 = tpu.matmul %298, %299, %cst_229 {dimension_numbers = #tpu.dot_dimension_numbers<[1], [0], [0], [1], [0, 0, 1, 1], [], []>} : vector<8x216xf32>, vector<216x286xf32>, vector<8x286xf32> -> vector<8x286xf32>
    %c0_230 = arith.constant 0 : index
    %c7 = arith.constant 7 : index
    %301 = vector.load %arg3[%c0_230, %c7] : memref<8x15xf32, #tpu.memory_space<vmem>>, vector<8x1xf32>
    %302 = vector.broadcast %301 : vector<8x1xf32> to vector<8x286xf32>
    %303 = arith.addf %300, %302 : vector<8x286xf32>
    %cst_231 = arith.constant 2.000000e-01 : f32
    %304 = vector.broadcast %cst_231 : f32 to vector<8x286xf32>
    %305 = arith.mulf %304, %303 : vector<8x286xf32>
    %306 = arith.maximumf %303, %305 : vector<8x286xf32>
    %cst_232 = arith.constant 0.000000e+00 : f32
    %307 = vector.shape_cast %23 : vector<1x286xi1> to vector<1x286xi1>
    %308 = vector.broadcast %307 : vector<1x286xi1> to vector<8x286xi1>
    %309 = vector.broadcast %cst_232 : f32 to vector<8x286xf32>
    %310 = arith.select %308, %306, %309 : vector<8x286xi1>, vector<8x286xf32>
    %c24_233 = arith.constant 24 : index
    %c19_234 = arith.constant 19 : index
    %311 = vector.load %arg5[%c24_233, %c19_234] : memref<40x324xf32, #tpu.memory_space<vmem>>, vector<8x286xf32>
    tpu.vector_store %arg5[%c24_233, %c19_234], %310 {strides = array<i32>} : memref<40x324xf32, #tpu.memory_space<vmem>>, vector<8x286xf32>,
    %c24_235 = arith.constant 24 : index
    %c0_236 = arith.constant 0 : index
    %312 = vector.load %arg5[%c24_235, %c0_236] : memref<40x324xf32, #tpu.memory_space<vmem>>, vector<8x288xf32>
    %313 = vector.extract_strided_slice %312 {offsets = [0, 0], sizes = [8, 286], strides = [1, 1]} : vector<8x288xf32> to vector<8x286xf32>
    %c216_237 = arith.constant 216 : index
    %c0_238 = arith.constant 0 : index
    %314 = vector.load %arg6[%c216_237, %c0_238] : memref<360x286xf32, #tpu.memory_space<vmem>>, vector<8x286xf32>
    tpu.vector_store %arg6[%c216_237, %c0_238], %313 {strides = array<i32>} : memref<360x286xf32, #tpu.memory_space<vmem>>, vector<8x286xf32>,
    %315 = vector.extract_strided_slice %312 {offsets = [0, 1], sizes = [8, 286], strides = [1, 1]} : vector<8x288xf32> to vector<8x286xf32>
    %c224_239 = arith.constant 224 : index
    %c0_240 = arith.constant 0 : index
    %316 = vector.load %arg6[%c224_239, %c0_240] : memref<360x286xf32, #tpu.memory_space<vmem>>, vector<8x286xf32>
    tpu.vector_store %arg6[%c224_239, %c0_240], %315 {strides = array<i32>} : memref<360x286xf32, #tpu.memory_space<vmem>>, vector<8x286xf32>,
    %317 = vector.extract_strided_slice %312 {offsets = [0, 2], sizes = [8, 286], strides = [1, 1]} : vector<8x288xf32> to vector<8x286xf32>
    %c232_241 = arith.constant 232 : index
    %c0_242 = arith.constant 0 : index
    %318 = vector.load %arg6[%c232_241, %c0_242] : memref<360x286xf32, #tpu.memory_space<vmem>>, vector<8x286xf32>
    tpu.vector_store %arg6[%c232_241, %c0_242], %317 {strides = array<i32>} : memref<360x286xf32, #tpu.memory_space<vmem>>, vector<8x286xf32>,
    %c24_243 = arith.constant 24 : index
    %c18_244 = arith.constant 18 : index
    %319 = vector.load %arg5[%c24_243, %c18_244] : memref<40x324xf32, #tpu.memory_space<vmem>>, vector<8x288xf32>
    %320 = vector.extract_strided_slice %319 {offsets = [0, 0], sizes = [8, 286], strides = [1, 1]} : vector<8x288xf32> to vector<8x286xf32>
    %c240_245 = arith.constant 240 : index
    %c0_246 = arith.constant 0 : index
    %321 = vector.load %arg6[%c240_245, %c0_246] : memref<360x286xf32, #tpu.memory_space<vmem>>, vector<8x286xf32>
    tpu.vector_store %arg6[%c240_245, %c0_246], %320 {strides = array<i32>} : memref<360x286xf32, #tpu.memory_space<vmem>>, vector<8x286xf32>,
    %322 = vector.extract_strided_slice %319 {offsets = [0, 1], sizes = [8, 286], strides = [1, 1]} : vector<8x288xf32> to vector<8x286xf32>
    %c248_247 = arith.constant 248 : index
    %c0_248 = arith.constant 0 : index
    %323 = vector.load %arg6[%c248_247, %c0_248] : memref<360x286xf32, #tpu.memory_space<vmem>>, vector<8x286xf32>
    tpu.vector_store %arg6[%c248_247, %c0_248], %322 {strides = array<i32>} : memref<360x286xf32, #tpu.memory_space<vmem>>, vector<8x286xf32>,
    %324 = vector.extract_strided_slice %319 {offsets = [0, 2], sizes = [8, 286], strides = [1, 1]} : vector<8x288xf32> to vector<8x286xf32>
    %c256_249 = arith.constant 256 : index
    %c0_250 = arith.constant 0 : index
    %325 = vector.load %arg6[%c256_249, %c0_250] : memref<360x286xf32, #tpu.memory_space<vmem>>, vector<8x286xf32>
    tpu.vector_store %arg6[%c256_249, %c0_250], %324 {strides = array<i32>} : memref<360x286xf32, #tpu.memory_space<vmem>>, vector<8x286xf32>,
    %c24_251 = arith.constant 24 : index
    %c36_252 = arith.constant 36 : index
    %326 = vector.load %arg5[%c24_251, %c36_252] : memref<40x324xf32, #tpu.memory_space<vmem>>, vector<8x288xf32>
    %327 = vector.extract_strided_slice %326 {offsets = [0, 0], sizes = [8, 286], strides = [1, 1]} : vector<8x288xf32> to vector<8x286xf32>
    %c264_253 = arith.constant 264 : index
    %c0_254 = arith.constant 0 : index
    %328 = vector.load %arg6[%c264_253, %c0_254] : memref<360x286xf32, #tpu.memory_space<vmem>>, vector<8x286xf32>
    tpu.vector_store %arg6[%c264_253, %c0_254], %327 {strides = array<i32>} : memref<360x286xf32, #tpu.memory_space<vmem>>, vector<8x286xf32>,
    %329 = vector.extract_strided_slice %326 {offsets = [0, 1], sizes = [8, 286], strides = [1, 1]} : vector<8x288xf32> to vector<8x286xf32>
    %c272_255 = arith.constant 272 : index
    %c0_256 = arith.constant 0 : index
    %330 = vector.load %arg6[%c272_255, %c0_256] : memref<360x286xf32, #tpu.memory_space<vmem>>, vector<8x286xf32>
    tpu.vector_store %arg6[%c272_255, %c0_256], %329 {strides = array<i32>} : memref<360x286xf32, #tpu.memory_space<vmem>>, vector<8x286xf32>,
    %331 = vector.extract_strided_slice %326 {offsets = [0, 2], sizes = [8, 286], strides = [1, 1]} : vector<8x288xf32> to vector<8x286xf32>
    %c280_257 = arith.constant 280 : index
    %c0_258 = arith.constant 0 : index
    %332 = vector.load %arg6[%c280_257, %c0_258] : memref<360x286xf32, #tpu.memory_space<vmem>>, vector<8x286xf32>
    tpu.vector_store %arg6[%c280_257, %c0_258], %331 {strides = array<i32>} : memref<360x286xf32, #tpu.memory_space<vmem>>, vector<8x286xf32>,
    %c0_259 = arith.constant 0 : index
    %c1512 = arith.constant 1512 : index
    %333 = vector.load %arg2[%c0_259, %c1512] : memref<8x3240xf32, #tpu.memory_space<vmem>>, vector<8x288xf32>
    %c0_260 = arith.constant 0 : index
    %c0_261 = arith.constant 0 : index
    %334 = vector.load %arg6[%c0_260, %c0_261] : memref<360x286xf32, #tpu.memory_space<vmem>>, vector<288x286xf32>
    %cst_262 = arith.constant dense<0.000000e+00> : vector<8x286xf32>
    %335 = tpu.matmul %333, %334, %cst_262 {dimension_numbers = #tpu.dot_dimension_numbers<[1], [0], [0], [1], [0, 0, 1, 1], [], []>} : vector<8x288xf32>, vector<288x286xf32>, vector<8x286xf32> -> vector<8x286xf32>
    %c0_263 = arith.constant 0 : index
    %c8_264 = arith.constant 8 : index
    %336 = vector.load %arg3[%c0_263, %c8_264] : memref<8x15xf32, #tpu.memory_space<vmem>>, vector<8x1xf32>
    %337 = vector.broadcast %336 : vector<8x1xf32> to vector<8x286xf32>
    %338 = arith.addf %335, %337 : vector<8x286xf32>
    %cst_265 = arith.constant 2.000000e-01 : f32
    %339 = vector.broadcast %cst_265 : f32 to vector<8x286xf32>
    %340 = arith.mulf %339, %338 : vector<8x286xf32>
    %341 = arith.maximumf %338, %340 : vector<8x286xf32>
    %cst_266 = arith.constant 0.000000e+00 : f32
    %342 = vector.shape_cast %23 : vector<1x286xi1> to vector<1x286xi1>
    %343 = vector.broadcast %342 : vector<1x286xi1> to vector<8x286xi1>
    %344 = vector.broadcast %cst_266 : f32 to vector<8x286xf32>
    %345 = arith.select %343, %341, %344 : vector<8x286xi1>, vector<8x286xf32>
    %c32_267 = arith.constant 32 : index
    %c19_268 = arith.constant 19 : index
    %346 = vector.load %arg5[%c32_267, %c19_268] : memref<40x324xf32, #tpu.memory_space<vmem>>, vector<8x286xf32>
    tpu.vector_store %arg5[%c32_267, %c19_268], %345 {strides = array<i32>} : memref<40x324xf32, #tpu.memory_space<vmem>>, vector<8x286xf32>,
    %c32_269 = arith.constant 32 : index
    %c0_270 = arith.constant 0 : index
    %347 = vector.load %arg5[%c32_269, %c0_270] : memref<40x324xf32, #tpu.memory_space<vmem>>, vector<8x288xf32>
    %348 = vector.extract_strided_slice %347 {offsets = [0, 0], sizes = [8, 286], strides = [1, 1]} : vector<8x288xf32> to vector<8x286xf32>
    %c288_271 = arith.constant 288 : index
    %c0_272 = arith.constant 0 : index
    %349 = vector.load %arg6[%c288_271, %c0_272] : memref<360x286xf32, #tpu.memory_space<vmem>>, vector<8x286xf32>
    tpu.vector_store %arg6[%c288_271, %c0_272], %348 {strides = array<i32>} : memref<360x286xf32, #tpu.memory_space<vmem>>, vector<8x286xf32>,
    %350 = vector.extract_strided_slice %347 {offsets = [0, 1], sizes = [8, 286], strides = [1, 1]} : vector<8x288xf32> to vector<8x286xf32>
    %c296_273 = arith.constant 296 : index
    %c0_274 = arith.constant 0 : index
    %351 = vector.load %arg6[%c296_273, %c0_274] : memref<360x286xf32, #tpu.memory_space<vmem>>, vector<8x286xf32>
    tpu.vector_store %arg6[%c296_273, %c0_274], %350 {strides = array<i32>} : memref<360x286xf32, #tpu.memory_space<vmem>>, vector<8x286xf32>,
    %352 = vector.extract_strided_slice %347 {offsets = [0, 2], sizes = [8, 286], strides = [1, 1]} : vector<8x288xf32> to vector<8x286xf32>
    %c304_275 = arith.constant 304 : index
    %c0_276 = arith.constant 0 : index
    %353 = vector.load %arg6[%c304_275, %c0_276] : memref<360x286xf32, #tpu.memory_space<vmem>>, vector<8x286xf32>
    tpu.vector_store %arg6[%c304_275, %c0_276], %352 {strides = array<i32>} : memref<360x286xf32, #tpu.memory_space<vmem>>, vector<8x286xf32>,
    %c32_277 = arith.constant 32 : index
    %c18_278 = arith.constant 18 : index
    %354 = vector.load %arg5[%c32_277, %c18_278] : memref<40x324xf32, #tpu.memory_space<vmem>>, vector<8x288xf32>
    %355 = vector.extract_strided_slice %354 {offsets = [0, 0], sizes = [8, 286], strides = [1, 1]} : vector<8x288xf32> to vector<8x286xf32>
    %c312_279 = arith.constant 312 : index
    %c0_280 = arith.constant 0 : index
    %356 = vector.load %arg6[%c312_279, %c0_280] : memref<360x286xf32, #tpu.memory_space<vmem>>, vector<8x286xf32>
    tpu.vector_store %arg6[%c312_279, %c0_280], %355 {strides = array<i32>} : memref<360x286xf32, #tpu.memory_space<vmem>>, vector<8x286xf32>,
    %357 = vector.extract_strided_slice %354 {offsets = [0, 1], sizes = [8, 286], strides = [1, 1]} : vector<8x288xf32> to vector<8x286xf32>
    %c320_281 = arith.constant 320 : index
    %c0_282 = arith.constant 0 : index
    %358 = vector.load %arg6[%c320_281, %c0_282] : memref<360x286xf32, #tpu.memory_space<vmem>>, vector<8x286xf32>
    tpu.vector_store %arg6[%c320_281, %c0_282], %357 {strides = array<i32>} : memref<360x286xf32, #tpu.memory_space<vmem>>, vector<8x286xf32>,
    %359 = vector.extract_strided_slice %354 {offsets = [0, 2], sizes = [8, 286], strides = [1, 1]} : vector<8x288xf32> to vector<8x286xf32>
    %c328_283 = arith.constant 328 : index
    %c0_284 = arith.constant 0 : index
    %360 = vector.load %arg6[%c328_283, %c0_284] : memref<360x286xf32, #tpu.memory_space<vmem>>, vector<8x286xf32>
    tpu.vector_store %arg6[%c328_283, %c0_284], %359 {strides = array<i32>} : memref<360x286xf32, #tpu.memory_space<vmem>>, vector<8x286xf32>,
    %c32_285 = arith.constant 32 : index
    %c36_286 = arith.constant 36 : index
    %361 = vector.load %arg5[%c32_285, %c36_286] : memref<40x324xf32, #tpu.memory_space<vmem>>, vector<8x288xf32>
    %362 = vector.extract_strided_slice %361 {offsets = [0, 0], sizes = [8, 286], strides = [1, 1]} : vector<8x288xf32> to vector<8x286xf32>
    %c336_287 = arith.constant 336 : index
    %c0_288 = arith.constant 0 : index
    %363 = vector.load %arg6[%c336_287, %c0_288] : memref<360x286xf32, #tpu.memory_space<vmem>>, vector<8x286xf32>
    tpu.vector_store %arg6[%c336_287, %c0_288], %362 {strides = array<i32>} : memref<360x286xf32, #tpu.memory_space<vmem>>, vector<8x286xf32>,
    %364 = vector.extract_strided_slice %361 {offsets = [0, 1], sizes = [8, 286], strides = [1, 1]} : vector<8x288xf32> to vector<8x286xf32>
    %c344_289 = arith.constant 344 : index
    %c0_290 = arith.constant 0 : index
    %365 = vector.load %arg6[%c344_289, %c0_290] : memref<360x286xf32, #tpu.memory_space<vmem>>, vector<8x286xf32>
    tpu.vector_store %arg6[%c344_289, %c0_290], %364 {strides = array<i32>} : memref<360x286xf32, #tpu.memory_space<vmem>>, vector<8x286xf32>,
    %366 = vector.extract_strided_slice %361 {offsets = [0, 2], sizes = [8, 286], strides = [1, 1]} : vector<8x288xf32> to vector<8x286xf32>
    %c352_291 = arith.constant 352 : index
    %c0_292 = arith.constant 0 : index
    %367 = vector.load %arg6[%c352_291, %c0_292] : memref<360x286xf32, #tpu.memory_space<vmem>>, vector<8x286xf32>
    tpu.vector_store %arg6[%c352_291, %c0_292], %366 {strides = array<i32>} : memref<360x286xf32, #tpu.memory_space<vmem>>, vector<8x286xf32>,
    %c0_293 = arith.constant 0 : index
    %c1800 = arith.constant 1800 : index
    %368 = vector.load %arg2[%c0_293, %c1800] : memref<8x3240xf32, #tpu.memory_space<vmem>>, vector<8x360xf32>
    %c0_294 = arith.constant 0 : index
    %c0_295 = arith.constant 0 : index
    %369 = vector.load %arg6[%c0_294, %c0_295] : memref<360x286xf32, #tpu.memory_space<vmem>>, vector<360x286xf32>
    %cst_296 = arith.constant dense<0.000000e+00> : vector<8x286xf32>
    %370 = tpu.matmul %368, %369, %cst_296 {dimension_numbers = #tpu.dot_dimension_numbers<[1], [0], [0], [1], [0, 0, 1, 1], [], []>} : vector<8x360xf32>, vector<360x286xf32>, vector<8x286xf32> -> vector<8x286xf32>
    %c0_297 = arith.constant 0 : index
    %c9 = arith.constant 9 : index
    %371 = vector.load %arg3[%c0_297, %c9] : memref<8x15xf32, #tpu.memory_space<vmem>>, vector<8x1xf32>
    %372 = vector.broadcast %371 : vector<8x1xf32> to vector<8x286xf32>
    %373 = arith.addf %370, %372 : vector<8x286xf32>
    %cst_298 = arith.constant 2.000000e-01 : f32
    %374 = vector.broadcast %cst_298 : f32 to vector<8x286xf32>
    %375 = arith.mulf %373, %374 : vector<8x286xf32>
    %c0_299 = arith.constant 0 : index
    %c19_300 = arith.constant 19 : index
    %376 = vector.load %arg5[%c0_299, %c19_300] : memref<40x324xf32, #tpu.memory_space<vmem>>, vector<8x286xf32>
    %377 = arith.addf %375, %376 : vector<8x286xf32>
    %cst_301 = arith.constant 0.000000e+00 : f32
    %378 = vector.shape_cast %23 : vector<1x286xi1> to vector<1x286xi1>
    %379 = vector.broadcast %378 : vector<1x286xi1> to vector<8x286xi1>
    %380 = vector.broadcast %cst_301 : f32 to vector<8x286xf32>
    %381 = arith.select %379, %377, %380 : vector<8x286xi1>, vector<8x286xf32>
    %c0_302 = arith.constant 0 : index
    %c19_303 = arith.constant 19 : index
    %382 = vector.load %arg5[%c0_302, %c19_303] : memref<40x324xf32, #tpu.memory_space<vmem>>, vector<8x286xf32>
    tpu.vector_store %arg5[%c0_302, %c19_303], %381 {strides = array<i32>} : memref<40x324xf32, #tpu.memory_space<vmem>>, vector<8x286xf32>,
    %c0_304 = arith.constant 0 : index
    %c0_305 = arith.constant 0 : index
    %383 = vector.load %arg5[%c0_304, %c0_305] : memref<40x324xf32, #tpu.memory_space<vmem>>, vector<8x288xf32>
    %384 = vector.extract_strided_slice %383 {offsets = [0, 0], sizes = [8, 286], strides = [1, 1]} : vector<8x288xf32> to vector<8x286xf32>
    %c0_306 = arith.constant 0 : index
    %c0_307 = arith.constant 0 : index
    %385 = vector.load %arg6[%c0_306, %c0_307] : memref<360x286xf32, #tpu.memory_space<vmem>>, vector<8x286xf32>
    tpu.vector_store %arg6[%c0_306, %c0_307], %384 {strides = array<i32>} : memref<360x286xf32, #tpu.memory_space<vmem>>, vector<8x286xf32>,
    %386 = vector.extract_strided_slice %383 {offsets = [0, 1], sizes = [8, 286], strides = [1, 1]} : vector<8x288xf32> to vector<8x286xf32>
    %c8_308 = arith.constant 8 : index
    %c0_309 = arith.constant 0 : index
    %387 = vector.load %arg6[%c8_308, %c0_309] : memref<360x286xf32, #tpu.memory_space<vmem>>, vector<8x286xf32>
    tpu.vector_store %arg6[%c8_308, %c0_309], %386 {strides = array<i32>} : memref<360x286xf32, #tpu.memory_space<vmem>>, vector<8x286xf32>,
    %388 = vector.extract_strided_slice %383 {offsets = [0, 2], sizes = [8, 286], strides = [1, 1]} : vector<8x288xf32> to vector<8x286xf32>
    %c16_310 = arith.constant 16 : index
    %c0_311 = arith.constant 0 : index
    %389 = vector.load %arg6[%c16_310, %c0_311] : memref<360x286xf32, #tpu.memory_space<vmem>>, vector<8x286xf32>
    tpu.vector_store %arg6[%c16_310, %c0_311], %388 {strides = array<i32>} : memref<360x286xf32, #tpu.memory_space<vmem>>, vector<8x286xf32>,
    %c0_312 = arith.constant 0 : index
    %c18_313 = arith.constant 18 : index
    %390 = vector.load %arg5[%c0_312, %c18_313] : memref<40x324xf32, #tpu.memory_space<vmem>>, vector<8x288xf32>
    %391 = vector.extract_strided_slice %390 {offsets = [0, 0], sizes = [8, 286], strides = [1, 1]} : vector<8x288xf32> to vector<8x286xf32>
    %c24_314 = arith.constant 24 : index
    %c0_315 = arith.constant 0 : index
    %392 = vector.load %arg6[%c24_314, %c0_315] : memref<360x286xf32, #tpu.memory_space<vmem>>, vector<8x286xf32>
    tpu.vector_store %arg6[%c24_314, %c0_315], %391 {strides = array<i32>} : memref<360x286xf32, #tpu.memory_space<vmem>>, vector<8x286xf32>,
    %393 = vector.extract_strided_slice %390 {offsets = [0, 1], sizes = [8, 286], strides = [1, 1]} : vector<8x288xf32> to vector<8x286xf32>
    %c32_316 = arith.constant 32 : index
    %c0_317 = arith.constant 0 : index
    %394 = vector.load %arg6[%c32_316, %c0_317] : memref<360x286xf32, #tpu.memory_space<vmem>>, vector<8x286xf32>
    tpu.vector_store %arg6[%c32_316, %c0_317], %393 {strides = array<i32>} : memref<360x286xf32, #tpu.memory_space<vmem>>, vector<8x286xf32>,
    %395 = vector.extract_strided_slice %390 {offsets = [0, 2], sizes = [8, 286], strides = [1, 1]} : vector<8x288xf32> to vector<8x286xf32>
    %c40_318 = arith.constant 40 : index
    %c0_319 = arith.constant 0 : index
    %396 = vector.load %arg6[%c40_318, %c0_319] : memref<360x286xf32, #tpu.memory_space<vmem>>, vector<8x286xf32>
    tpu.vector_store %arg6[%c40_318, %c0_319], %395 {strides = array<i32>} : memref<360x286xf32, #tpu.memory_space<vmem>>, vector<8x286xf32>,
    %c0_320 = arith.constant 0 : index
    %c36_321 = arith.constant 36 : index
    %397 = vector.load %arg5[%c0_320, %c36_321] : memref<40x324xf32, #tpu.memory_space<vmem>>, vector<8x288xf32>
    %398 = vector.extract_strided_slice %397 {offsets = [0, 0], sizes = [8, 286], strides = [1, 1]} : vector<8x288xf32> to vector<8x286xf32>
    %c48_322 = arith.constant 48 : index
    %c0_323 = arith.constant 0 : index
    %399 = vector.load %arg6[%c48_322, %c0_323] : memref<360x286xf32, #tpu.memory_space<vmem>>, vector<8x286xf32>
    tpu.vector_store %arg6[%c48_322, %c0_323], %398 {strides = array<i32>} : memref<360x286xf32, #tpu.memory_space<vmem>>, vector<8x286xf32>,
    %400 = vector.extract_strided_slice %397 {offsets = [0, 1], sizes = [8, 286], strides = [1, 1]} : vector<8x288xf32> to vector<8x286xf32>
    %c56_324 = arith.constant 56 : index
    %c0_325 = arith.constant 0 : index
    %401 = vector.load %arg6[%c56_324, %c0_325] : memref<360x286xf32, #tpu.memory_space<vmem>>, vector<8x286xf32>
    tpu.vector_store %arg6[%c56_324, %c0_325], %400 {strides = array<i32>} : memref<360x286xf32, #tpu.memory_space<vmem>>, vector<8x286xf32>,
    %402 = vector.extract_strided_slice %397 {offsets = [0, 2], sizes = [8, 286], strides = [1, 1]} : vector<8x288xf32> to vector<8x286xf32>
    %c64_326 = arith.constant 64 : index
    %c0_327 = arith.constant 0 : index
    %403 = vector.load %arg6[%c64_326, %c0_327] : memref<360x286xf32, #tpu.memory_space<vmem>>, vector<8x286xf32>
    tpu.vector_store %arg6[%c64_326, %c0_327], %402 {strides = array<i32>} : memref<360x286xf32, #tpu.memory_space<vmem>>, vector<8x286xf32>,
    %c0_328 = arith.constant 0 : index
    %c2160 = arith.constant 2160 : index
    %404 = vector.load %arg2[%c0_328, %c2160] : memref<8x3240xf32, #tpu.memory_space<vmem>>, vector<8x72xf32>
    %c0_329 = arith.constant 0 : index
    %c0_330 = arith.constant 0 : index
    %405 = vector.load %arg6[%c0_329, %c0_330] : memref<360x286xf32, #tpu.memory_space<vmem>>, vector<72x286xf32>
    %cst_331 = arith.constant dense<0.000000e+00> : vector<8x286xf32>
    %406 = tpu.matmul %404, %405, %cst_331 {dimension_numbers = #tpu.dot_dimension_numbers<[1], [0], [0], [1], [0, 0, 1, 1], [], []>} : vector<8x72xf32>, vector<72x286xf32>, vector<8x286xf32> -> vector<8x286xf32>
    %c0_332 = arith.constant 0 : index
    %c10 = arith.constant 10 : index
    %407 = vector.load %arg3[%c0_332, %c10] : memref<8x15xf32, #tpu.memory_space<vmem>>, vector<8x1xf32>
    %408 = vector.broadcast %407 : vector<8x1xf32> to vector<8x286xf32>
    %409 = arith.addf %406, %408 : vector<8x286xf32>
    %cst_333 = arith.constant 2.000000e-01 : f32
    %410 = vector.broadcast %cst_333 : f32 to vector<8x286xf32>
    %411 = arith.mulf %410, %409 : vector<8x286xf32>
    %412 = arith.maximumf %409, %411 : vector<8x286xf32>
    %cst_334 = arith.constant 0.000000e+00 : f32
    %413 = vector.shape_cast %23 : vector<1x286xi1> to vector<1x286xi1>
    %414 = vector.broadcast %413 : vector<1x286xi1> to vector<8x286xi1>
    %415 = vector.broadcast %cst_334 : f32 to vector<8x286xf32>
    %416 = arith.select %414, %412, %415 : vector<8x286xi1>, vector<8x286xf32>
    %c8_335 = arith.constant 8 : index
    %c19_336 = arith.constant 19 : index
    %417 = vector.load %arg5[%c8_335, %c19_336] : memref<40x324xf32, #tpu.memory_space<vmem>>, vector<8x286xf32>
    tpu.vector_store %arg5[%c8_335, %c19_336], %416 {strides = array<i32>} : memref<40x324xf32, #tpu.memory_space<vmem>>, vector<8x286xf32>,
    %c8_337 = arith.constant 8 : index
    %c0_338 = arith.constant 0 : index
    %418 = vector.load %arg5[%c8_337, %c0_338] : memref<40x324xf32, #tpu.memory_space<vmem>>, vector<8x288xf32>
    %419 = vector.extract_strided_slice %418 {offsets = [0, 0], sizes = [8, 286], strides = [1, 1]} : vector<8x288xf32> to vector<8x286xf32>
    %c72_339 = arith.constant 72 : index
    %c0_340 = arith.constant 0 : index
    %420 = vector.load %arg6[%c72_339, %c0_340] : memref<360x286xf32, #tpu.memory_space<vmem>>, vector<8x286xf32>
    tpu.vector_store %arg6[%c72_339, %c0_340], %419 {strides = array<i32>} : memref<360x286xf32, #tpu.memory_space<vmem>>, vector<8x286xf32>,
    %421 = vector.extract_strided_slice %418 {offsets = [0, 1], sizes = [8, 286], strides = [1, 1]} : vector<8x288xf32> to vector<8x286xf32>
    %c80_341 = arith.constant 80 : index
    %c0_342 = arith.constant 0 : index
    %422 = vector.load %arg6[%c80_341, %c0_342] : memref<360x286xf32, #tpu.memory_space<vmem>>, vector<8x286xf32>
    tpu.vector_store %arg6[%c80_341, %c0_342], %421 {strides = array<i32>} : memref<360x286xf32, #tpu.memory_space<vmem>>, vector<8x286xf32>,
    %423 = vector.extract_strided_slice %418 {offsets = [0, 2], sizes = [8, 286], strides = [1, 1]} : vector<8x288xf32> to vector<8x286xf32>
    %c88_343 = arith.constant 88 : index
    %c0_344 = arith.constant 0 : index
    %424 = vector.load %arg6[%c88_343, %c0_344] : memref<360x286xf32, #tpu.memory_space<vmem>>, vector<8x286xf32>
    tpu.vector_store %arg6[%c88_343, %c0_344], %423 {strides = array<i32>} : memref<360x286xf32, #tpu.memory_space<vmem>>, vector<8x286xf32>,
    %c8_345 = arith.constant 8 : index
    %c18_346 = arith.constant 18 : index
    %425 = vector.load %arg5[%c8_345, %c18_346] : memref<40x324xf32, #tpu.memory_space<vmem>>, vector<8x288xf32>
    %426 = vector.extract_strided_slice %425 {offsets = [0, 0], sizes = [8, 286], strides = [1, 1]} : vector<8x288xf32> to vector<8x286xf32>
    %c96_347 = arith.constant 96 : index
    %c0_348 = arith.constant 0 : index
    %427 = vector.load %arg6[%c96_347, %c0_348] : memref<360x286xf32, #tpu.memory_space<vmem>>, vector<8x286xf32>
    tpu.vector_store %arg6[%c96_347, %c0_348], %426 {strides = array<i32>} : memref<360x286xf32, #tpu.memory_space<vmem>>, vector<8x286xf32>,
    %428 = vector.extract_strided_slice %425 {offsets = [0, 1], sizes = [8, 286], strides = [1, 1]} : vector<8x288xf32> to vector<8x286xf32>
    %c104_349 = arith.constant 104 : index
    %c0_350 = arith.constant 0 : index
    %429 = vector.load %arg6[%c104_349, %c0_350] : memref<360x286xf32, #tpu.memory_space<vmem>>, vector<8x286xf32>
    tpu.vector_store %arg6[%c104_349, %c0_350], %428 {strides = array<i32>} : memref<360x286xf32, #tpu.memory_space<vmem>>, vector<8x286xf32>,
    %430 = vector.extract_strided_slice %425 {offsets = [0, 2], sizes = [8, 286], strides = [1, 1]} : vector<8x288xf32> to vector<8x286xf32>
    %c112_351 = arith.constant 112 : index
    %c0_352 = arith.constant 0 : index
    %431 = vector.load %arg6[%c112_351, %c0_352] : memref<360x286xf32, #tpu.memory_space<vmem>>, vector<8x286xf32>
    tpu.vector_store %arg6[%c112_351, %c0_352], %430 {strides = array<i32>} : memref<360x286xf32, #tpu.memory_space<vmem>>, vector<8x286xf32>,
    %c8_353 = arith.constant 8 : index
    %c36_354 = arith.constant 36 : index
    %432 = vector.load %arg5[%c8_353, %c36_354] : memref<40x324xf32, #tpu.memory_space<vmem>>, vector<8x288xf32>
    %433 = vector.extract_strided_slice %432 {offsets = [0, 0], sizes = [8, 286], strides = [1, 1]} : vector<8x288xf32> to vector<8x286xf32>
    %c120_355 = arith.constant 120 : index
    %c0_356 = arith.constant 0 : index
    %434 = vector.load %arg6[%c120_355, %c0_356] : memref<360x286xf32, #tpu.memory_space<vmem>>, vector<8x286xf32>
    tpu.vector_store %arg6[%c120_355, %c0_356], %433 {strides = array<i32>} : memref<360x286xf32, #tpu.memory_space<vmem>>, vector<8x286xf32>,
    %435 = vector.extract_strided_slice %432 {offsets = [0, 1], sizes = [8, 286], strides = [1, 1]} : vector<8x288xf32> to vector<8x286xf32>
    %c128_357 = arith.constant 128 : index
    %c0_358 = arith.constant 0 : index
    %436 = vector.load %arg6[%c128_357, %c0_358] : memref<360x286xf32, #tpu.memory_space<vmem>>, vector<8x286xf32>
    tpu.vector_store %arg6[%c128_357, %c0_358], %435 {strides = array<i32>} : memref<360x286xf32, #tpu.memory_space<vmem>>, vector<8x286xf32>,
    %437 = vector.extract_strided_slice %432 {offsets = [0, 2], sizes = [8, 286], strides = [1, 1]} : vector<8x288xf32> to vector<8x286xf32>
    %c136_359 = arith.constant 136 : index
    %c0_360 = arith.constant 0 : index
    %438 = vector.load %arg6[%c136_359, %c0_360] : memref<360x286xf32, #tpu.memory_space<vmem>>, vector<8x286xf32>
    tpu.vector_store %arg6[%c136_359, %c0_360], %437 {strides = array<i32>} : memref<360x286xf32, #tpu.memory_space<vmem>>, vector<8x286xf32>,
    %c0_361 = arith.constant 0 : index
    %c2232 = arith.constant 2232 : index
    %439 = vector.load %arg2[%c0_361, %c2232] : memref<8x3240xf32, #tpu.memory_space<vmem>>, vector<8x144xf32>
    %c0_362 = arith.constant 0 : index
    %c0_363 = arith.constant 0 : index
    %440 = vector.load %arg6[%c0_362, %c0_363] : memref<360x286xf32, #tpu.memory_space<vmem>>, vector<144x286xf32>
    %cst_364 = arith.constant dense<0.000000e+00> : vector<8x286xf32>
    %441 = tpu.matmul %439, %440, %cst_364 {dimension_numbers = #tpu.dot_dimension_numbers<[1], [0], [0], [1], [0, 0, 1, 1], [], []>} : vector<8x144xf32>, vector<144x286xf32>, vector<8x286xf32> -> vector<8x286xf32>
    %c0_365 = arith.constant 0 : index
    %c11 = arith.constant 11 : index
    %442 = vector.load %arg3[%c0_365, %c11] : memref<8x15xf32, #tpu.memory_space<vmem>>, vector<8x1xf32>
    %443 = vector.broadcast %442 : vector<8x1xf32> to vector<8x286xf32>
    %444 = arith.addf %441, %443 : vector<8x286xf32>
    %cst_366 = arith.constant 2.000000e-01 : f32
    %445 = vector.broadcast %cst_366 : f32 to vector<8x286xf32>
    %446 = arith.mulf %445, %444 : vector<8x286xf32>
    %447 = arith.maximumf %444, %446 : vector<8x286xf32>
    %cst_367 = arith.constant 0.000000e+00 : f32
    %448 = vector.shape_cast %23 : vector<1x286xi1> to vector<1x286xi1>
    %449 = vector.broadcast %448 : vector<1x286xi1> to vector<8x286xi1>
    %450 = vector.broadcast %cst_367 : f32 to vector<8x286xf32>
    %451 = arith.select %449, %447, %450 : vector<8x286xi1>, vector<8x286xf32>
    %c16_368 = arith.constant 16 : index
    %c19_369 = arith.constant 19 : index
    %452 = vector.load %arg5[%c16_368, %c19_369] : memref<40x324xf32, #tpu.memory_space<vmem>>, vector<8x286xf32>
    tpu.vector_store %arg5[%c16_368, %c19_369], %451 {strides = array<i32>} : memref<40x324xf32, #tpu.memory_space<vmem>>, vector<8x286xf32>,
    %c16_370 = arith.constant 16 : index
    %c0_371 = arith.constant 0 : index
    %453 = vector.load %arg5[%c16_370, %c0_371] : memref<40x324xf32, #tpu.memory_space<vmem>>, vector<8x288xf32>
    %454 = vector.extract_strided_slice %453 {offsets = [0, 0], sizes = [8, 286], strides = [1, 1]} : vector<8x288xf32> to vector<8x286xf32>
    %c144_372 = arith.constant 144 : index
    %c0_373 = arith.constant 0 : index
    %455 = vector.load %arg6[%c144_372, %c0_373] : memref<360x286xf32, #tpu.memory_space<vmem>>, vector<8x286xf32>
    tpu.vector_store %arg6[%c144_372, %c0_373], %454 {strides = array<i32>} : memref<360x286xf32, #tpu.memory_space<vmem>>, vector<8x286xf32>,
    %456 = vector.extract_strided_slice %453 {offsets = [0, 1], sizes = [8, 286], strides = [1, 1]} : vector<8x288xf32> to vector<8x286xf32>
    %c152_374 = arith.constant 152 : index
    %c0_375 = arith.constant 0 : index
    %457 = vector.load %arg6[%c152_374, %c0_375] : memref<360x286xf32, #tpu.memory_space<vmem>>, vector<8x286xf32>
    tpu.vector_store %arg6[%c152_374, %c0_375], %456 {strides = array<i32>} : memref<360x286xf32, #tpu.memory_space<vmem>>, vector<8x286xf32>,
    %458 = vector.extract_strided_slice %453 {offsets = [0, 2], sizes = [8, 286], strides = [1, 1]} : vector<8x288xf32> to vector<8x286xf32>
    %c160_376 = arith.constant 160 : index
    %c0_377 = arith.constant 0 : index
    %459 = vector.load %arg6[%c160_376, %c0_377] : memref<360x286xf32, #tpu.memory_space<vmem>>, vector<8x286xf32>
    tpu.vector_store %arg6[%c160_376, %c0_377], %458 {strides = array<i32>} : memref<360x286xf32, #tpu.memory_space<vmem>>, vector<8x286xf32>,
    %c16_378 = arith.constant 16 : index
    %c18_379 = arith.constant 18 : index
    %460 = vector.load %arg5[%c16_378, %c18_379] : memref<40x324xf32, #tpu.memory_space<vmem>>, vector<8x288xf32>
    %461 = vector.extract_strided_slice %460 {offsets = [0, 0], sizes = [8, 286], strides = [1, 1]} : vector<8x288xf32> to vector<8x286xf32>
    %c168_380 = arith.constant 168 : index
    %c0_381 = arith.constant 0 : index
    %462 = vector.load %arg6[%c168_380, %c0_381] : memref<360x286xf32, #tpu.memory_space<vmem>>, vector<8x286xf32>
    tpu.vector_store %arg6[%c168_380, %c0_381], %461 {strides = array<i32>} : memref<360x286xf32, #tpu.memory_space<vmem>>, vector<8x286xf32>,
    %463 = vector.extract_strided_slice %460 {offsets = [0, 1], sizes = [8, 286], strides = [1, 1]} : vector<8x288xf32> to vector<8x286xf32>
    %c176_382 = arith.constant 176 : index
    %c0_383 = arith.constant 0 : index
    %464 = vector.load %arg6[%c176_382, %c0_383] : memref<360x286xf32, #tpu.memory_space<vmem>>, vector<8x286xf32>
    tpu.vector_store %arg6[%c176_382, %c0_383], %463 {strides = array<i32>} : memref<360x286xf32, #tpu.memory_space<vmem>>, vector<8x286xf32>,
    %465 = vector.extract_strided_slice %460 {offsets = [0, 2], sizes = [8, 286], strides = [1, 1]} : vector<8x288xf32> to vector<8x286xf32>
    %c184_384 = arith.constant 184 : index
    %c0_385 = arith.constant 0 : index
    %466 = vector.load %arg6[%c184_384, %c0_385] : memref<360x286xf32, #tpu.memory_space<vmem>>, vector<8x286xf32>
    tpu.vector_store %arg6[%c184_384, %c0_385], %465 {strides = array<i32>} : memref<360x286xf32, #tpu.memory_space<vmem>>, vector<8x286xf32>,
    %c16_386 = arith.constant 16 : index
    %c36_387 = arith.constant 36 : index
    %467 = vector.load %arg5[%c16_386, %c36_387] : memref<40x324xf32, #tpu.memory_space<vmem>>, vector<8x288xf32>
    %468 = vector.extract_strided_slice %467 {offsets = [0, 0], sizes = [8, 286], strides = [1, 1]} : vector<8x288xf32> to vector<8x286xf32>
    %c192_388 = arith.constant 192 : index
    %c0_389 = arith.constant 0 : index
    %469 = vector.load %arg6[%c192_388, %c0_389] : memref<360x286xf32, #tpu.memory_space<vmem>>, vector<8x286xf32>
    tpu.vector_store %arg6[%c192_388, %c0_389], %468 {strides = array<i32>} : memref<360x286xf32, #tpu.memory_space<vmem>>, vector<8x286xf32>,
    %470 = vector.extract_strided_slice %467 {offsets = [0, 1], sizes = [8, 286], strides = [1, 1]} : vector<8x288xf32> to vector<8x286xf32>
    %c200_390 = arith.constant 200 : index
    %c0_391 = arith.constant 0 : index
    %471 = vector.load %arg6[%c200_390, %c0_391] : memref<360x286xf32, #tpu.memory_space<vmem>>, vector<8x286xf32>
    tpu.vector_store %arg6[%c200_390, %c0_391], %470 {strides = array<i32>} : memref<360x286xf32, #tpu.memory_space<vmem>>, vector<8x286xf32>,
    %472 = vector.extract_strided_slice %467 {offsets = [0, 2], sizes = [8, 286], strides = [1, 1]} : vector<8x288xf32> to vector<8x286xf32>
    %c208_392 = arith.constant 208 : index
    %c0_393 = arith.constant 0 : index
    %473 = vector.load %arg6[%c208_392, %c0_393] : memref<360x286xf32, #tpu.memory_space<vmem>>, vector<8x286xf32>
    tpu.vector_store %arg6[%c208_392, %c0_393], %472 {strides = array<i32>} : memref<360x286xf32, #tpu.memory_space<vmem>>, vector<8x286xf32>,
    %c0_394 = arith.constant 0 : index
    %c2376 = arith.constant 2376 : index
    %474 = vector.load %arg2[%c0_394, %c2376] : memref<8x3240xf32, #tpu.memory_space<vmem>>, vector<8x216xf32>
    %c0_395 = arith.constant 0 : index
    %c0_396 = arith.constant 0 : index
    %475 = vector.load %arg6[%c0_395, %c0_396] : memref<360x286xf32, #tpu.memory_space<vmem>>, vector<216x286xf32>
    %cst_397 = arith.constant dense<0.000000e+00> : vector<8x286xf32>
    %476 = tpu.matmul %474, %475, %cst_397 {dimension_numbers = #tpu.dot_dimension_numbers<[1], [0], [0], [1], [0, 0, 1, 1], [], []>} : vector<8x216xf32>, vector<216x286xf32>, vector<8x286xf32> -> vector<8x286xf32>
    %c0_398 = arith.constant 0 : index
    %c12 = arith.constant 12 : index
    %477 = vector.load %arg3[%c0_398, %c12] : memref<8x15xf32, #tpu.memory_space<vmem>>, vector<8x1xf32>
    %478 = vector.broadcast %477 : vector<8x1xf32> to vector<8x286xf32>
    %479 = arith.addf %476, %478 : vector<8x286xf32>
    %cst_399 = arith.constant 2.000000e-01 : f32
    %480 = vector.broadcast %cst_399 : f32 to vector<8x286xf32>
    %481 = arith.mulf %480, %479 : vector<8x286xf32>
    %482 = arith.maximumf %479, %481 : vector<8x286xf32>
    %cst_400 = arith.constant 0.000000e+00 : f32
    %483 = vector.shape_cast %23 : vector<1x286xi1> to vector<1x286xi1>
    %484 = vector.broadcast %483 : vector<1x286xi1> to vector<8x286xi1>
    %485 = vector.broadcast %cst_400 : f32 to vector<8x286xf32>
    %486 = arith.select %484, %482, %485 : vector<8x286xi1>, vector<8x286xf32>
    %c24_401 = arith.constant 24 : index
    %c19_402 = arith.constant 19 : index
    %487 = vector.load %arg5[%c24_401, %c19_402] : memref<40x324xf32, #tpu.memory_space<vmem>>, vector<8x286xf32>
    tpu.vector_store %arg5[%c24_401, %c19_402], %486 {strides = array<i32>} : memref<40x324xf32, #tpu.memory_space<vmem>>, vector<8x286xf32>,
    %c24_403 = arith.constant 24 : index
    %c0_404 = arith.constant 0 : index
    %488 = vector.load %arg5[%c24_403, %c0_404] : memref<40x324xf32, #tpu.memory_space<vmem>>, vector<8x288xf32>
    %489 = vector.extract_strided_slice %488 {offsets = [0, 0], sizes = [8, 286], strides = [1, 1]} : vector<8x288xf32> to vector<8x286xf32>
    %c216_405 = arith.constant 216 : index
    %c0_406 = arith.constant 0 : index
    %490 = vector.load %arg6[%c216_405, %c0_406] : memref<360x286xf32, #tpu.memory_space<vmem>>, vector<8x286xf32>
    tpu.vector_store %arg6[%c216_405, %c0_406], %489 {strides = array<i32>} : memref<360x286xf32, #tpu.memory_space<vmem>>, vector<8x286xf32>,
    %491 = vector.extract_strided_slice %488 {offsets = [0, 1], sizes = [8, 286], strides = [1, 1]} : vector<8x288xf32> to vector<8x286xf32>
    %c224_407 = arith.constant 224 : index
    %c0_408 = arith.constant 0 : index
    %492 = vector.load %arg6[%c224_407, %c0_408] : memref<360x286xf32, #tpu.memory_space<vmem>>, vector<8x286xf32>
    tpu.vector_store %arg6[%c224_407, %c0_408], %491 {strides = array<i32>} : memref<360x286xf32, #tpu.memory_space<vmem>>, vector<8x286xf32>,
    %493 = vector.extract_strided_slice %488 {offsets = [0, 2], sizes = [8, 286], strides = [1, 1]} : vector<8x288xf32> to vector<8x286xf32>
    %c232_409 = arith.constant 232 : index
    %c0_410 = arith.constant 0 : index
    %494 = vector.load %arg6[%c232_409, %c0_410] : memref<360x286xf32, #tpu.memory_space<vmem>>, vector<8x286xf32>
    tpu.vector_store %arg6[%c232_409, %c0_410], %493 {strides = array<i32>} : memref<360x286xf32, #tpu.memory_space<vmem>>, vector<8x286xf32>,
    %c24_411 = arith.constant 24 : index
    %c18_412 = arith.constant 18 : index
    %495 = vector.load %arg5[%c24_411, %c18_412] : memref<40x324xf32, #tpu.memory_space<vmem>>, vector<8x288xf32>
    %496 = vector.extract_strided_slice %495 {offsets = [0, 0], sizes = [8, 286], strides = [1, 1]} : vector<8x288xf32> to vector<8x286xf32>
    %c240_413 = arith.constant 240 : index
    %c0_414 = arith.constant 0 : index
    %497 = vector.load %arg6[%c240_413, %c0_414] : memref<360x286xf32, #tpu.memory_space<vmem>>, vector<8x286xf32>
    tpu.vector_store %arg6[%c240_413, %c0_414], %496 {strides = array<i32>} : memref<360x286xf32, #tpu.memory_space<vmem>>, vector<8x286xf32>,
    %498 = vector.extract_strided_slice %495 {offsets = [0, 1], sizes = [8, 286], strides = [1, 1]} : vector<8x288xf32> to vector<8x286xf32>
    %c248_415 = arith.constant 248 : index
    %c0_416 = arith.constant 0 : index
    %499 = vector.load %arg6[%c248_415, %c0_416] : memref<360x286xf32, #tpu.memory_space<vmem>>, vector<8x286xf32>
    tpu.vector_store %arg6[%c248_415, %c0_416], %498 {strides = array<i32>} : memref<360x286xf32, #tpu.memory_space<vmem>>, vector<8x286xf32>,
    %500 = vector.extract_strided_slice %495 {offsets = [0, 2], sizes = [8, 286], strides = [1, 1]} : vector<8x288xf32> to vector<8x286xf32>
    %c256_417 = arith.constant 256 : index
    %c0_418 = arith.constant 0 : index
    %501 = vector.load %arg6[%c256_417, %c0_418] : memref<360x286xf32, #tpu.memory_space<vmem>>, vector<8x286xf32>
    tpu.vector_store %arg6[%c256_417, %c0_418], %500 {strides = array<i32>} : memref<360x286xf32, #tpu.memory_space<vmem>>, vector<8x286xf32>,
    %c24_419 = arith.constant 24 : index
    %c36_420 = arith.constant 36 : index
    %502 = vector.load %arg5[%c24_419, %c36_420] : memref<40x324xf32, #tpu.memory_space<vmem>>, vector<8x288xf32>
    %503 = vector.extract_strided_slice %502 {offsets = [0, 0], sizes = [8, 286], strides = [1, 1]} : vector<8x288xf32> to vector<8x286xf32>
    %c264_421 = arith.constant 264 : index
    %c0_422 = arith.constant 0 : index
    %504 = vector.load %arg6[%c264_421, %c0_422] : memref<360x286xf32, #tpu.memory_space<vmem>>, vector<8x286xf32>
    tpu.vector_store %arg6[%c264_421, %c0_422], %503 {strides = array<i32>} : memref<360x286xf32, #tpu.memory_space<vmem>>, vector<8x286xf32>,
    %505 = vector.extract_strided_slice %502 {offsets = [0, 1], sizes = [8, 286], strides = [1, 1]} : vector<8x288xf32> to vector<8x286xf32>
    %c272_423 = arith.constant 272 : index
    %c0_424 = arith.constant 0 : index
    %506 = vector.load %arg6[%c272_423, %c0_424] : memref<360x286xf32, #tpu.memory_space<vmem>>, vector<8x286xf32>
    tpu.vector_store %arg6[%c272_423, %c0_424], %505 {strides = array<i32>} : memref<360x286xf32, #tpu.memory_space<vmem>>, vector<8x286xf32>,
    %507 = vector.extract_strided_slice %502 {offsets = [0, 2], sizes = [8, 286], strides = [1, 1]} : vector<8x288xf32> to vector<8x286xf32>
    %c280_425 = arith.constant 280 : index
    %c0_426 = arith.constant 0 : index
    %508 = vector.load %arg6[%c280_425, %c0_426] : memref<360x286xf32, #tpu.memory_space<vmem>>, vector<8x286xf32>
    tpu.vector_store %arg6[%c280_425, %c0_426], %507 {strides = array<i32>} : memref<360x286xf32, #tpu.memory_space<vmem>>, vector<8x286xf32>,
    %c0_427 = arith.constant 0 : index
    %c2592 = arith.constant 2592 : index
    %509 = vector.load %arg2[%c0_427, %c2592] : memref<8x3240xf32, #tpu.memory_space<vmem>>, vector<8x288xf32>
    %c0_428 = arith.constant 0 : index
    %c0_429 = arith.constant 0 : index
    %510 = vector.load %arg6[%c0_428, %c0_429] : memref<360x286xf32, #tpu.memory_space<vmem>>, vector<288x286xf32>
    %cst_430 = arith.constant dense<0.000000e+00> : vector<8x286xf32>
    %511 = tpu.matmul %509, %510, %cst_430 {dimension_numbers = #tpu.dot_dimension_numbers<[1], [0], [0], [1], [0, 0, 1, 1], [], []>} : vector<8x288xf32>, vector<288x286xf32>, vector<8x286xf32> -> vector<8x286xf32>
    %c0_431 = arith.constant 0 : index
    %c13 = arith.constant 13 : index
    %512 = vector.load %arg3[%c0_431, %c13] : memref<8x15xf32, #tpu.memory_space<vmem>>, vector<8x1xf32>
    %513 = vector.broadcast %512 : vector<8x1xf32> to vector<8x286xf32>
    %514 = arith.addf %511, %513 : vector<8x286xf32>
    %cst_432 = arith.constant 2.000000e-01 : f32
    %515 = vector.broadcast %cst_432 : f32 to vector<8x286xf32>
    %516 = arith.mulf %515, %514 : vector<8x286xf32>
    %517 = arith.maximumf %514, %516 : vector<8x286xf32>
    %cst_433 = arith.constant 0.000000e+00 : f32
    %518 = vector.shape_cast %23 : vector<1x286xi1> to vector<1x286xi1>
    %519 = vector.broadcast %518 : vector<1x286xi1> to vector<8x286xi1>
    %520 = vector.broadcast %cst_433 : f32 to vector<8x286xf32>
    %521 = arith.select %519, %517, %520 : vector<8x286xi1>, vector<8x286xf32>
    %c32_434 = arith.constant 32 : index
    %c19_435 = arith.constant 19 : index
    %522 = vector.load %arg5[%c32_434, %c19_435] : memref<40x324xf32, #tpu.memory_space<vmem>>, vector<8x286xf32>
    tpu.vector_store %arg5[%c32_434, %c19_435], %521 {strides = array<i32>} : memref<40x324xf32, #tpu.memory_space<vmem>>, vector<8x286xf32>,
    %c32_436 = arith.constant 32 : index
    %c0_437 = arith.constant 0 : index
    %523 = vector.load %arg5[%c32_436, %c0_437] : memref<40x324xf32, #tpu.memory_space<vmem>>, vector<8x288xf32>
    %524 = vector.extract_strided_slice %523 {offsets = [0, 0], sizes = [8, 286], strides = [1, 1]} : vector<8x288xf32> to vector<8x286xf32>
    %c288_438 = arith.constant 288 : index
    %c0_439 = arith.constant 0 : index
    %525 = vector.load %arg6[%c288_438, %c0_439] : memref<360x286xf32, #tpu.memory_space<vmem>>, vector<8x286xf32>
    tpu.vector_store %arg6[%c288_438, %c0_439], %524 {strides = array<i32>} : memref<360x286xf32, #tpu.memory_space<vmem>>, vector<8x286xf32>,
    %526 = vector.extract_strided_slice %523 {offsets = [0, 1], sizes = [8, 286], strides = [1, 1]} : vector<8x288xf32> to vector<8x286xf32>
    %c296_440 = arith.constant 296 : index
    %c0_441 = arith.constant 0 : index
    %527 = vector.load %arg6[%c296_440, %c0_441] : memref<360x286xf32, #tpu.memory_space<vmem>>, vector<8x286xf32>
    tpu.vector_store %arg6[%c296_440, %c0_441], %526 {strides = array<i32>} : memref<360x286xf32, #tpu.memory_space<vmem>>, vector<8x286xf32>,
    %528 = vector.extract_strided_slice %523 {offsets = [0, 2], sizes = [8, 286], strides = [1, 1]} : vector<8x288xf32> to vector<8x286xf32>
    %c304_442 = arith.constant 304 : index
    %c0_443 = arith.constant 0 : index
    %529 = vector.load %arg6[%c304_442, %c0_443] : memref<360x286xf32, #tpu.memory_space<vmem>>, vector<8x286xf32>
    tpu.vector_store %arg6[%c304_442, %c0_443], %528 {strides = array<i32>} : memref<360x286xf32, #tpu.memory_space<vmem>>, vector<8x286xf32>,
    %c32_444 = arith.constant 32 : index
    %c18_445 = arith.constant 18 : index
    %530 = vector.load %arg5[%c32_444, %c18_445] : memref<40x324xf32, #tpu.memory_space<vmem>>, vector<8x288xf32>
    %531 = vector.extract_strided_slice %530 {offsets = [0, 0], sizes = [8, 286], strides = [1, 1]} : vector<8x288xf32> to vector<8x286xf32>
    %c312_446 = arith.constant 312 : index
    %c0_447 = arith.constant 0 : index
    %532 = vector.load %arg6[%c312_446, %c0_447] : memref<360x286xf32, #tpu.memory_space<vmem>>, vector<8x286xf32>
    tpu.vector_store %arg6[%c312_446, %c0_447], %531 {strides = array<i32>} : memref<360x286xf32, #tpu.memory_space<vmem>>, vector<8x286xf32>,
    %533 = vector.extract_strided_slice %530 {offsets = [0, 1], sizes = [8, 286], strides = [1, 1]} : vector<8x288xf32> to vector<8x286xf32>
    %c320_448 = arith.constant 320 : index
    %c0_449 = arith.constant 0 : index
    %534 = vector.load %arg6[%c320_448, %c0_449] : memref<360x286xf32, #tpu.memory_space<vmem>>, vector<8x286xf32>
    tpu.vector_store %arg6[%c320_448, %c0_449], %533 {strides = array<i32>} : memref<360x286xf32, #tpu.memory_space<vmem>>, vector<8x286xf32>,
    %535 = vector.extract_strided_slice %530 {offsets = [0, 2], sizes = [8, 286], strides = [1, 1]} : vector<8x288xf32> to vector<8x286xf32>
    %c328_450 = arith.constant 328 : index
    %c0_451 = arith.constant 0 : index
    %536 = vector.load %arg6[%c328_450, %c0_451] : memref<360x286xf32, #tpu.memory_space<vmem>>, vector<8x286xf32>
    tpu.vector_store %arg6[%c328_450, %c0_451], %535 {strides = array<i32>} : memref<360x286xf32, #tpu.memory_space<vmem>>, vector<8x286xf32>,
    %c32_452 = arith.constant 32 : index
    %c36_453 = arith.constant 36 : index
    %537 = vector.load %arg5[%c32_452, %c36_453] : memref<40x324xf32, #tpu.memory_space<vmem>>, vector<8x288xf32>
    %538 = vector.extract_strided_slice %537 {offsets = [0, 0], sizes = [8, 286], strides = [1, 1]} : vector<8x288xf32> to vector<8x286xf32>
    %c336_454 = arith.constant 336 : index
    %c0_455 = arith.constant 0 : index
    %539 = vector.load %arg6[%c336_454, %c0_455] : memref<360x286xf32, #tpu.memory_space<vmem>>, vector<8x286xf32>
    tpu.vector_store %arg6[%c336_454, %c0_455], %538 {strides = array<i32>} : memref<360x286xf32, #tpu.memory_space<vmem>>, vector<8x286xf32>,
    %540 = vector.extract_strided_slice %537 {offsets = [0, 1], sizes = [8, 286], strides = [1, 1]} : vector<8x288xf32> to vector<8x286xf32>
    %c344_456 = arith.constant 344 : index
    %c0_457 = arith.constant 0 : index
    %541 = vector.load %arg6[%c344_456, %c0_457] : memref<360x286xf32, #tpu.memory_space<vmem>>, vector<8x286xf32>
    tpu.vector_store %arg6[%c344_456, %c0_457], %540 {strides = array<i32>} : memref<360x286xf32, #tpu.memory_space<vmem>>, vector<8x286xf32>,
    %542 = vector.extract_strided_slice %537 {offsets = [0, 2], sizes = [8, 286], strides = [1, 1]} : vector<8x288xf32> to vector<8x286xf32>
    %c352_458 = arith.constant 352 : index
    %c0_459 = arith.constant 0 : index
    %543 = vector.load %arg6[%c352_458, %c0_459] : memref<360x286xf32, #tpu.memory_space<vmem>>, vector<8x286xf32>
    tpu.vector_store %arg6[%c352_458, %c0_459], %542 {strides = array<i32>} : memref<360x286xf32, #tpu.memory_space<vmem>>, vector<8x286xf32>,
    %c0_460 = arith.constant 0 : index
    %c2880 = arith.constant 2880 : index
    %544 = vector.load %arg2[%c0_460, %c2880] : memref<8x3240xf32, #tpu.memory_space<vmem>>, vector<8x360xf32>
    %c0_461 = arith.constant 0 : index
    %c0_462 = arith.constant 0 : index
    %545 = vector.load %arg6[%c0_461, %c0_462] : memref<360x286xf32, #tpu.memory_space<vmem>>, vector<360x286xf32>
    %cst_463 = arith.constant dense<0.000000e+00> : vector<8x286xf32>
    %546 = tpu.matmul %544, %545, %cst_463 {dimension_numbers = #tpu.dot_dimension_numbers<[1], [0], [0], [1], [0, 0, 1, 1], [], []>} : vector<8x360xf32>, vector<360x286xf32>, vector<8x286xf32> -> vector<8x286xf32>
    %c0_464 = arith.constant 0 : index
    %c14 = arith.constant 14 : index
    %547 = vector.load %arg3[%c0_464, %c14] : memref<8x15xf32, #tpu.memory_space<vmem>>, vector<8x1xf32>
    %548 = vector.broadcast %547 : vector<8x1xf32> to vector<8x286xf32>
    %549 = arith.addf %546, %548 : vector<8x286xf32>
    %cst_465 = arith.constant 2.000000e-01 : f32
    %550 = vector.broadcast %cst_465 : f32 to vector<8x286xf32>
    %551 = arith.mulf %549, %550 : vector<8x286xf32>
    %c0_466 = arith.constant 0 : index
    %c19_467 = arith.constant 19 : index
    %552 = vector.load %arg5[%c0_466, %c19_467] : memref<40x324xf32, #tpu.memory_space<vmem>>, vector<8x286xf32>
    %553 = arith.addf %551, %552 : vector<8x286xf32>
    %cst_468 = arith.constant 0.000000e+00 : f32
    %554 = vector.shape_cast %23 : vector<1x286xi1> to vector<1x286xi1>
    %555 = vector.broadcast %554 : vector<1x286xi1> to vector<8x286xi1>
    %556 = vector.broadcast %cst_468 : f32 to vector<8x286xf32>
    %557 = arith.select %555, %553, %556 : vector<8x286xi1>, vector<8x286xf32>
    %c0_469 = arith.constant 0 : index
    %c19_470 = arith.constant 19 : index
    %558 = vector.load %arg5[%c0_469, %c19_470] : memref<40x324xf32, #tpu.memory_space<vmem>>, vector<8x286xf32>
    tpu.vector_store %arg5[%c0_469, %c19_470], %557 {strides = array<i32>} : memref<40x324xf32, #tpu.memory_space<vmem>>, vector<8x286xf32>,
    %c0_471 = arith.constant 0 : index
    %c0_472 = arith.constant 0 : index
    %559 = vector.load %arg5[%c0_471, %c0_472] : memref<40x324xf32, #tpu.memory_space<vmem>>, vector<8x324xf32>
    %cst_473 = arith.constant 2.000000e-01 : f32
    %560 = vector.broadcast %cst_473 : f32 to vector<8x324xf32>
    %561 = arith.mulf %559, %560 : vector<8x324xf32>
    %c0_474 = arith.constant 0 : index
    %c0_475 = arith.constant 0 : index
    %c0_476 = arith.constant 0 : index
    %562 = vector.load %arg1[%c0_474, %c0_475, %c0_476] : memref<1x8x324xf32, #tpu.memory_space<vmem>>, vector<1x8x324xf32>
    %563 = vector.shape_cast %562 : vector<1x8x324xf32> to vector<8x324xf32>
    %564 = arith.addf %561, %563 : vector<8x324xf32>
    %c0_477 = arith.constant 0 : index
    %c0_478 = arith.constant 0 : index
    %c0_479 = arith.constant 0 : index
    %565 = vector.load %arg4[%c0_477, %c0_478, %c0_479] : memref<1x8x324xf32, #tpu.memory_space<vmem>>, vector<1x8x324xf32>
    %566 = vector.shape_cast %565 : vector<1x8x324xf32> to vector<8x324xf32>
    %567 = vector.shape_cast %564 : vector<8x324xf32> to vector<1x8x324xf32>
    tpu.vector_store %arg4[%c0_477, %c0_478, %c0_479], %567 {strides = array<i32>} : memref<1x8x324xf32, #tpu.memory_space<vmem>>, vector<1x8x324xf32>,
    return
  }
  func.func @transform_0(%arg0: i32) -> (i32, i32, i32) {
    %c0_i32 = arith.constant 0 : i32
    %c0_i32_0 = arith.constant 0 : i32
    %c0_i32_1 = arith.constant 0 : i32
    return %arg0, %c0_i32, %c0_i32_0 : i32, i32, i32
  }
  func.func @transform_1(%arg0: i32) -> (i32, i32) {
    %c0_i32 = arith.constant 0 : i32
    %c0_i32_0 = arith.constant 0 : i32
    %c0_i32_1 = arith.constant 0 : i32
    return %c0_i32, %c0_i32_0 : i32, i32
  }
  func.func @transform_2(%arg0: i32) -> (i32, i32) {
    %c0_i32 = arith.constant 0 : i32
    %c0_i32_0 = arith.constant 0 : i32
    %c0_i32_1 = arith.constant 0 : i32
    return %c0_i32, %c0_i32_0 : i32, i32
  }
  func.func @transform_3(%arg0: i32) -> (i32, i32, i32) {
    %c0_i32 = arith.constant 0 : i32
    %c0_i32_0 = arith.constant 0 : i32
    %c0_i32_1 = arith.constant 0 : i32
    return %arg0, %c0_i32, %c0_i32_0 : i32, i32, i32
  }
}

</mosaic_0001>

<bundles_post_ra>
// kernel: tpu_custom_call.1
= control target key start
LH: loop header
LB: loop body
LE: loop exit
PB: predicated region body
PF: predicated region fallthrough
CT: control target
= control target key end

     0   :  { %8 = vsyncpa [#allocation5], 0  ;;  %s10460_s0 = inlined_call_operand.hbm [shape: f32[2,8,324], index: 0, kind: input, shape index: {}]   ;;  %s10461_s1 = inlined_call_operand.hbm [shape: f32[8,3240], index: 1, kind: input, shape index: {}]   ;;  %s10462_s2 = inlined_call_operand.hbm [shape: f32[8,15], index: 2, kind: input, shape index: {}]   ;;  %s10463_s3 = inlined_call_operand.hbm [shape: f32[2,8,324], index: 3, kind: output, shape index: {}]  }
   0x1   :  { %10 = vsyncpa [#allocation5 + $0x1], 0 }
   0x2   :  { %11 = vsyncpa [#allocation8], 0 }
   0x3   :  { %12 = vsyncpa [#allocation6], 0 }
   0x4   :  { %14 = vsyncpa [#allocation6 + $0x1], 0  ;;  %s6870_s12 = smov 0   ;;  %s6872_s13 = smov 0  }
   0x5   :  { %s6874_s14 = smov 0   ;;  %s6876_s15 = smov 0  }
   0x6 LB: > { %s6891_s16 = sadd.s32 4294967295, %s6810_s15   ;;  %s6445_s17 = sadd.s32 4294967294, %s6810_s15   ;;  %s6810_s15 = sphi %s6876_s15, %s10782_s15   ;;  %s6806_s14 = sphi %s6874_s14, %s10781_s14   ;;  %s6802_s13 = sphi %s6872_s13, %s10780_s13   ;;  %s6798_s12 = sphi %s6870_s12, %s10779_s12  }
   0x7   : > { %p40_p0 = scmp.ne.s32.totalorder %s6802_s13, %s6798_s12  ;;  %p41_p1 = scmp.eq.s32.totalorder %s6891_s16, 0 }
   0x8   : > { %p106_p2 = scmp.eq.s32.totalorder %s6891_s16, 1  ;;  %p112_p3 = scmp.eq.s32.totalorder %s6445_s17, 1 }
   0x9   : > { %p6900_p4 = por %p41_p1, %p40_p0  ;;  %p6446_p5 = scmp.ge.s32.totalorder %s6810_s15, 1 }
   0xa   : > { %p6905_p6 = por %p112_p3, %p40_p0  ;;  %p119_p7 = scmp.lt.s32.totalorder %s6810_s15, 3 }
   0xb   : > { %s131_s22 = sshll.u32 %s10461_s1, 4  ;;  %s6812_s24 = smov [#allocation7]   ;;  %s132_s22 = int_to_ptr.hbm [resolvable:$true] %s131_s22 }
   0xc   : > { %p6913_p8 = pnand %p6446_p5, %p119_p7  ;;  %s133_s25 = sshll.u32 %s6812_s24, 4  ;;  %s134_s25 = int_to_ptr.vmem [resolvable:$true] %s133_s25 }
   0xd   : > { %s143_s28 = sshll.u32 %s10462_s2, 4  ;;  %s6813_s29 = smov [#allocation9]   ;;  %s144_s28 = int_to_ptr.hbm [resolvable:$true] %s143_s28 }
   0xe   : > { %p6518_p10 = pneg %p6913_p8  ;;  %s145_s30 = sshll.u32 %s6813_s29, 4  ;;  %s146_s30 = int_to_ptr.vmem [resolvable:$true] %s145_s30 }
   0xf   : > { %s6926_s4 = sadd.s32 1, %s6810_s15   ;;  %s27_s5 = sadd.s32 1, %s6806_s14 }
  0x10   : > { %p6519_p11 = pnand %p6518_p10, %p41_p1  ;;  %s24_s6 = ssub.s32 %s6810_s15, %s6926_s4 }
  0x11   : > { %p34_p12 = scmp.ne.s32.totalorder %s6806_s14, %s6802_s13  ;;  %p25_p13 = scmp.eq.s32.totalorder %s24_s6, 0 }
  0x12   : > { %6521 = dma.hbm_to_vmem [thread:$0]  (!%p6519_p11), %s132_s22, 3328, %s134_s25, [#allocation8]  }
  0x13   : > { %6524 = dma.hbm_to_vmem [thread:$0]  (!%p6519_p11), %s144_s28, 128, %s146_s30, [#allocation8]  }
  0x14   : > { %p35_p0 = scmp.eq.s32.totalorder %s6810_s15, 0  ;;  %p6936_p3 = por %p106_p2, %p34_p12 }
  0x15   : > { %p6535_p5 = scmp.lt.s32.totalorder %s6810_s15, 2  ;;  %s156_s9 = sand.u32 1, %s6806_s14  }
  0x16   : > { %s6942_s8 = scalar_select %p25_p13, %s6806_s14, %s27_s5  }
  0x17   : > { %p36_p7 = por %p35_p0, %p34_p12  ;;  %s6502_s10 = smul.u32 24, %s156_s9 }
  0x18   : > { %s6503_s11 = smul.u32 24, %s6810_s15  ;;  %s157_s27 = scalar_lea.sflag [#allocation5], %s156_s9 }
  0x19   : > { %p6946_p10 = pnand %p6535_p5, %p36_p7  ;;  %s160_s24 = scalar_lea.vmem [#allocation4], %s6502_s10 }
  0x1a   : > { %s165_s22 = scalar_lea.hbm %s10460_s0, %s6503_s11  ;;  %s169_s25 = sshll.u32 %s160_s24, 4  ;;  %s170_s25 = int_to_ptr.vmem [resolvable:$true] %s169_s25 }
  0x1b   : > { %s167_s26 = sshll.u32 %s165_s22, 4  ;;  %p6714_p11 = pneg %p6946_p10  ;;  %s168_s26 = int_to_ptr.hbm [resolvable:$true] %s167_s26 }
  0x1c   : > { %s6710_s28 = sshra.s32 %s168_s26, 4  ;;  %s6717_s6 = scalar_lea.hbm %s10460_s0, 48  ;;  %s6711_s28 = int_to_ptr.hbm [resolvable:$true] %s6710_s28 }
  0x1d   : > { %s6712_s29 = scalar_lea.hbm %s6711_s28, 24  ;;  %p6718_p0 = scmp.lt.s32.totalorder %s6711_s28, %s10460_s0 }
  0x1e   : > { %p6713_p2 = scmp.ne.s32.totalorder %s6711_s28, %s6712_s29  ;;  %p6719_p5 = scmp.lt.s32.totalorder %s6717_s6, %s6712_s29 }
  0x20   : > { %p6715_p12 = pnand %p6714_p11, %p6713_p2  ;;  %p6720_p7 = por %p6719_p5, %p6718_p0 }
  0x22   : > { %p6716_p13 = pneg %p6715_p12 }
  0x24   : > { %p6721_p9 = pnand %p6720_p7, %p6716_p13 }
  0x26   : > { %6724 = shalt.err (!%p6721_p9)
}
  0x27   : > { %6528 = dma.hbm_to_vmem [thread:$0]  (!%p6946_p10), %s168_s26, 384, %s170_s25, %s157_s27  }
  0x28   : > { %178 = sbr.rel (%p6913_p8) target bundleno = 6747 (0x1a5b), region = 32 }
  0x2d   : > { %s6966_s9 = sand.u32 1, %s6802_s13  }
  0x2e   : > { %s6504_s10 = smul.u32 24, %s6966_s9  ;;  %s181_s21 = scalar_lea.sflag [#allocation5], %s6966_s9 }
  0x30   : > { %s6972_s22 = scalar_lea.vmem [#allocation4], %s6504_s10 }
  0x31   : > { %6785 = dma.done.wait (%p6900_p4), %s181_s21, 384  }
  0x32   : > { %6787 = vsyncadd (%p6900_p4), %s181_s21, 4294966912 }
  0x33   : > { %6789 = dma.done.wait (%p41_p1), [#allocation8], 3456  }
  0x34   : > { %6791 = vsyncadd (%p41_p1), [#allocation8], 4294963840  ;;  %vm10464_vm0 = vcmask 556032   ;;  %v348_v0 = vld [vmem:[%s6972_s22 + $0x10] sm:$0xff]  ;;  %v6984_v1 = vld [vmem:[%s6972_s22] sm:$0xff]  ;;  %s6814_s23 = smov 90   ;;  %v218_v56 = vlaneseq }
  0x35   : > { %v6987_v2 = vld [vmem:[%s6972_s22 + $0x8] sm:$0xff]  ;;  %352 = vst.msk [vmem:[#allocation2 + $0x10] sm:$0xff] %vm10464_vm0, %v348_v0  ;;  %480 = vrot.lane.b32.xlu0 %v6984_v1, %s6814_s23  ;;  %s6815_s18 = smov 91   ;;  %s6816_s17 = smov 92   ;;  %vm358_vm1 = vcmask 244736   ;;  %vm10466_vm2 = vcmask 744448  }
  0x36   : > { %467 = vrot.lane.b32.xlu2 %v6987_v2, %s6815_s18  ;;  %349 = vst [vmem:[#allocation2] sm:$0xff] %v6984_v1  ;;  %s6817_s24 = smov 108   ;;  %s6818_s25 = smov 109   ;;  %vm10467_vm3 = vcmask 736256   ;;  %vm456_vm4 = vcmask 752640   ;;  %vm435_vm5 = vcmask 883712  }
  0x37   : > { %350 = vst [vmem:[#allocation2 + $0x8] sm:$0xff] %v6987_v2  ;;  %s6819_s26 = smov 110   ;;  %s6820_s27 = smov 126   ;;  %vm420_vm6 = vcmask 891904   ;;  %v6822_v36 = vmov 0   ;;  %v7120_v43 = vld [vmem:[#allocation7] sm:$0xff] }
  0x38   : > { %357 = vst [vmem:[#allocation3 + $0x8] sm:$0xff] %v6987_v2  ;;  %s6821_s28 = smov 127   ;;  %6609 = vset.pattern.permute.xlu0 %v6822_v36  ;;  %vm10465_vm7 = vcmask 588800   ;;  %v7122_v44 = vld [vmem:[#allocation9] sm:$0xff]  ;;  %vm10470_vm8 = vcmask 900096   ;;  %vm10469_vm9 = vcmask 1031168  }
  0x39   : > { %356 = vst [vmem:[#allocation3] sm:$0xff] %v6984_v1  ;;  %vm10468_vm10 = vcmask 1039360   ;;  %v219_v57 = vand.u32 127, %v218_v56  ;;  %s6823_s29 = smov 19   ;;  %s6825_s30 = smov 56  }
  0x3a   : > { %s6827_s5 = smov 40   ;;  %s6829_s6 = smov 80  }
  0x3b   : > { %v220_v58 = vadd.s32 128, %v219_v57  ;;  %v7164_v59 = vadd.s32 19, %v219_v57  ;;  %v221_v62 = vadd.s32 256, %v219_v57  ;;  %s6831_s20 = smov 48   ;;  %s6833_s11 = smov 72  }
  0x3c   : > { %v446_v3 = vld [vmem:[#allocation2 + $0x10] sm:$0xff]  ;;  %s6836_s21 = smov 112  }
  0x3d   : > { %484 = vrot.lane.b32.xlu1 %v446_v3, %s6814_s23  ;;  %482 = vrot.lane.b32.xlu0 %v6987_v2, %s6814_s23  ;;  %359 = vst.msk [vmem:[#allocation3 + $0x10] sm:$0xff] %vm358_vm1, %v446_v3  ;;  %v7166_v60 = vadd.s32 19, %v220_v58  ;;  %v228_v61 = vand.u32 65535, %v7164_v59  ;;  %v229_v0 = vshrl.u32 %v7164_v59, 16 }
  0x3e   : > { %469 = vrot.lane.b32.xlu2 %v446_v3, %s6815_s18 }
  0x3f   : > { %v257_v63 = vand.u32 65535, %v7166_v60 }
  0x44   : > { %v7117_v42 = vld [vmem:[#allocation3 + $0x10] sm:$0xff] }
  0x45   : > { %465 = vrot.lane.b32.xlu1 %v6984_v1, %s6815_s18  ;;  %450 = vrot.lane.b32.xlu0 %v6984_v1, %s6816_s17 }
  0x46   : > { %454 = vrot.lane.b32.xlu2 %v446_v3, %s6816_s17 }
  0x4d   : > { %452 = vrot.lane.b32.xlu1 %v6987_v2, %s6816_s17  ;;  %429 = vrot.lane.b32.xlu0 %v6984_v1, %s6817_s24 }
  0x4e   : > { %433 = vrot.lane.b32.xlu2 %v446_v3, %s6817_s24 }
  0x55   : > { %431 = vrot.lane.b32.xlu1 %v6987_v2, %s6817_s24  ;;  %414 = vrot.lane.b32.xlu0 %v6984_v1, %s6818_s25 }
  0x56   : > { %418 = vrot.lane.b32.xlu2 %v446_v3, %s6818_s25 }
  0x5d   : > { %416 = vrot.lane.b32.xlu1 %v6987_v2, %s6818_s25  ;;  %399 = vrot.lane.b32.xlu0 %v6984_v1, %s6819_s26 }
  0x5e   : > { %403 = vrot.lane.b32.xlu2 %v446_v3, %s6819_s26 }
  0x65   : > { %401 = vrot.lane.b32.xlu1 %v6987_v2, %s6819_s26  ;;  %378 = vrot.lane.b32.xlu0 %v6984_v1, %s6820_s27 }
  0x66   : > { %382 = vrot.lane.b32.xlu2 %v446_v3, %s6820_s27 }
  0x6d   : > { %380 = vrot.lane.b32.xlu1 %v6987_v2, %s6820_s27  ;;  %363 = vrot.lane.b32.xlu0 %v6984_v1, %s6821_s28 }
  0x6e   : > { %367 = vrot.lane.b32.xlu2 %v446_v3, %s6821_s28  ;;  %v7171_v3 = vadd.s32 19, %v221_v62 }
  0x75   : > { %365 = vrot.lane.b32.xlu1 %v6987_v2, %s6821_s28  ;;  %526 = vperm.xlu0 %6609, %v7122_v44  }
  0x90   : > { %v468_v4 = vpop.permute.xlu2 %467 }
  0x98   : > { %v470_v5 = vpop.permute.xlu2 %469 }
  0x99   : > { %v7036_v6 = vsel %vm10466_vm2, %v468_v4, %v470_v5  ;;  %479 = vst.msk [vmem:[#allocation3 + $0xb8] sm:$0xff] %vm358_vm1, %v470_v5  ;;  %v261_v5 = vmul.u32 58254, %v257_v63 }
  0x9a   : > { %478 = vst [vmem:[#allocation3 + $0xb0] sm:$0xff] %v7036_v6 }
  0xa0   : > { %v455_v7 = vpop.permute.xlu2 %454  ;;  %v7057_v18 = vld [vmem:[#allocation3 + $0xb8] sm:$0xff] }
  0xa1   : > { %464 = vst.msk [vmem:[#allocation3 + $0xa0] sm:$0xff] %vm358_vm1, %v455_v7 }
  0xa7   : > { %v481_v8 = vpop.permute.xlu0 %480 }
  0xa8   : > { %v434_v9 = vpop.permute.xlu2 %433  ;;  %v7065_v21 = vld [vmem:[#allocation3 + $0xa0] sm:$0xff] }
  0xa9   : > { %443 = vst.msk [vmem:[#allocation3 + $0x88] sm:$0xff] %vm358_vm1, %v434_v9 }
  0xaf   : > { %v485_v10 = vpop.permute.xlu1 %484  ;;  %v483_v11 = vpop.permute.xlu0 %482 }
  0xb0   : > { %494 = vst.msk [vmem:[#allocation3 + $0xd0] sm:$0xff] %vm358_vm1, %v485_v10  ;;  %v7044_v12 = vsel %vm10467_vm3, %v481_v8, %v483_v11  ;;  %v7047_v13 = vsel %vm10467_vm3, %v483_v11, %v485_v10  ;;  %v419_v14 = vpop.permute.xlu2 %418  ;;  %v7069_v22 = vld [vmem:[#allocation3 + $0x88] sm:$0xff]  ;;  %v233_v8 = vmul.u32 14564, %v229_v0  ;;  %v260_v10 = vmul.u32 14564, %v257_v63 }
  0xb1   : > { %492 = vst [vmem:[#allocation3 + $0xc0] sm:$0xff] %v7044_v12  ;;  %540 = vmatpush.msra.mxu0 %v7044_v12  ;;  %560 = vmatpush.msra.mxu1 %v7047_v13 }
  0xb2   : > { %493 = vst [vmem:[#allocation3 + $0xc8] sm:$0xff] %v7047_v13 }
  0xb3   : > { %561 = vmatpush.msra.mxu1 %v7036_v6  ;;  %428 = vst.msk [vmem:[#allocation3 + $0x70] sm:$0xff] %vm358_vm1, %v419_v14 }
  0xb7   : > { %v466_v15 = vpop.permute.xlu1 %465  ;;  %v7055_v16 = vld [vmem:[#allocation3 + $0xd0] sm:$0xff]  ;;  %v451_v17 = vpop.permute.xlu0 %450 }
  0xb8   : > { %v7060_v19 = vsel %vm10466_vm2, %v466_v15, %v468_v4  ;;  %580 = vmatpush.msra.mxu2 %v7055_v16  ;;  %v404_v20 = vpop.permute.xlu2 %403  ;;  %v258_v4 = vshrl.u32 %v7166_v60, 16  ;;  %v286_v15 = vand.u32 65535, %v7171_v3 }
  0xb9   : > { %477 = vst [vmem:[#allocation3 + $0xa8] sm:$0xff] %v7060_v19  ;;  %541 = vmatpush.msra.mxu0 %v7060_v19 }
  0xba   : > { %581 = vmatpush.msra.mxu2 %v7057_v18  ;;  %413 = vst.msk [vmem:[#allocation3 + $0x58] sm:$0xff] %vm358_vm1, %v404_v20  ;;  %v7072_v23 = vld [vmem:[#allocation3 + $0x70] sm:$0xff]  ;;  %v262_v11 = vmul.u32 14564, %v258_v4 }
  0xbc   : > { %582 = vmatpush.msra.mxu2 %v7065_v21 }
  0xbe   : > { %583 = vmatpush.msra.mxu2 %v7069_v22 }
  0xbf   : > { %v453_v24 = vpop.permute.xlu1 %452  ;;  %v430_v25 = vpop.permute.xlu0 %429 }
  0xc0   : > { %v7076_v26 = vsel %vm456_vm4, %v453_v24, %v455_v7  ;;  %v7079_v27 = vsel %vm456_vm4, %v451_v17, %v453_v24  ;;  %v383_v28 = vpop.permute.xlu2 %382  ;;  %584 = vmatpush.msra.mxu2 %v7072_v23  ;;  %v231_v7 = vmul.u32 14564, %v228_v61  ;;  %v237_v17 = vshll.u32 %v233_v8, 16 }
  0xc1   : > { %463 = vst [vmem:[#allocation3 + $0x98] sm:$0xff] %v7076_v26  ;;  %542 = vmatpush.msra.mxu0 %v7079_v27  ;;  %562 = vmatpush.msra.mxu1 %v7076_v26  ;;  %v7085_v29 = vld [vmem:[#allocation3 + $0x58] sm:$0xff]  ;;  %v234_v24 = vmul.u32 58254, %v229_v0  ;;  %v265_v0 = vshrl.u32 %v261_v5, 16 }
  0xc2   : > { %462 = vst [vmem:[#allocation3 + $0x90] sm:$0xff] %v7079_v27  ;;  %585 = vmatpush.msra.mxu2 %v7085_v29 }
  0xc3   : > { %392 = vst.msk [vmem:[#allocation3 + $0x40] sm:$0xff] %vm358_vm1, %v383_v28 }
  0xc7   : > { %v432_v30 = vpop.permute.xlu1 %431  ;;  %v415_v31 = vpop.permute.xlu0 %414 }
  0xc8   : > { %v7091_v32 = vsel %vm435_vm5, %v432_v30, %v434_v9  ;;  %v7094_v33 = vsel %vm435_vm5, %v430_v25, %v432_v30  ;;  %v368_v34 = vpop.permute.xlu2 %367  ;;  %v287_v25 = vshrl.u32 %v7171_v3, 16 }
  0xc9   : > { %442 = vst [vmem:[#allocation3 + $0x80] sm:$0xff] %v7091_v32  ;;  %543 = vmatpush.msra.mxu0 %v7094_v33  ;;  %563 = vmatpush.msra.mxu1 %v7091_v32 }
  0xca   : > { %441 = vst [vmem:[#allocation3 + $0x78] sm:$0xff] %v7094_v33  ;;  %v7100_v35 = vld [vmem:[#allocation3 + $0x40] sm:$0xff] }
  0xcb   : > { %377 = vst.msk [vmem:[#allocation3 + $0x28] sm:$0xff] %vm358_vm1, %v368_v34  ;;  %586 = vmatpush.msra.mxu2 %v7100_v35 }
  0xcf   : > { %v417_v37 = vpop.permute.xlu1 %416  ;;  %v400_v40 = vpop.permute.xlu0 %399 }
  0xd0   : > { %v7106_v38 = vsel %vm420_vm6, %v417_v37, %v419_v14  ;;  %v7109_v39 = vsel %vm420_vm6, %v415_v31, %v417_v37  ;;  %v264_v14 = vshll.u32 %v261_v5, 16  ;;  %v290_v31 = vmul.u32 58254, %v286_v15 }
  0xd1   : > { %427 = vst [vmem:[#allocation3 + $0x68] sm:$0xff] %v7106_v38  ;;  %544 = vmatpush.msra.mxu0 %v7109_v39  ;;  %564 = vmatpush.msra.mxu1 %v7106_v38  ;;  %v263_v37 = vmul.u32 58254, %v258_v4  ;;  %v292_v4 = vmul.u32 58254, %v287_v25 }
  0xd2   : > { %426 = vst [vmem:[#allocation3 + $0x60] sm:$0xff] %v7109_v39  ;;  %v7115_v41 = vld [vmem:[#allocation3 + $0x28] sm:$0xff]  ;;  %vm268_vm12 = vc.u32 %v260_v10, %v264_v14  ;;  %v270_v30 = vadd.s32 %v264_v14, %v260_v10  ;;  %v238_v10 = vshrl.u32 %v233_v8, 16 }
  0xd3   : > { %587 = vmatpush.msra.mxu2 %v7115_v41 }
  0xd5   : > { %588 = vmatpush.msra.mxu2 %v7117_v42 }
  0xd6   : > { %6456 = vmatmul.msk.f32.vlgmr.msra.gmra.mxu2 %vm10465_vm7, %v7120_v43 }
  0xd7   : > { %v402_v45 = vpop.permute.xlu1 %401  ;;  %v379_v48 = vpop.permute.xlu0 %378 }
  0xd8   : > { %v7129_v46 = vsel %vm10470_vm8, %v402_v45, %v404_v20  ;;  %v7132_v47 = vsel %vm10470_vm8, %v400_v40, %v402_v45  ;;  %v269_v40 = vsel %vm268_vm12, 1, %v6822_v36  ;;  %v289_v45 = vmul.u32 14564, %v286_v15 }
  0xd9   : > { %412 = vst [vmem:[#allocation3 + $0x50] sm:$0xff] %v7129_v46  ;;  %545 = vmatpush.msra.mxu0 %v7132_v47  ;;  %565 = vmatpush.msra.mxu1 %v7129_v46  ;;  %v271_v56 = vadd.s32 %v269_v40, %v263_v37  ;;  %v267_v15 = vshrl.u32 %v262_v11, 16 }
  0xda   : > { %411 = vst [vmem:[#allocation3 + $0x48] sm:$0xff] %v7132_v47 }
  0xdf   : > { %v381_v49 = vpop.permute.xlu1 %380  ;;  %v364_v52 = vpop.permute.xlu0 %363 }
  0xe0   : > { %v7139_v50 = vsel %vm10469_vm9, %v381_v49, %v383_v28  ;;  %v7142_v51 = vsel %vm10469_vm9, %v379_v48, %v381_v49  ;;  %v266_v28 = vshll.u32 %v262_v11, 16  ;;  %v291_v49 = vmul.u32 14564, %v287_v25 }
  0xe1   : > { %391 = vst [vmem:[#allocation3 + $0x38] sm:$0xff] %v7139_v50  ;;  %546 = vmatpush.msra.mxu0 %v7142_v51  ;;  %566 = vmatpush.msra.mxu1 %v7139_v50 }
  0xe2   : > { %390 = vst [vmem:[#allocation3 + $0x30] sm:$0xff] %v7142_v51  ;;  %vm272_vm14 = vc.u32 %v270_v30, %v266_v28  ;;  %v295_v62 = vshll.u32 %v291_v49, 16  ;;  %v294_v30 = vshrl.u32 %v290_v31, 16 }
  0xe3   : > { %v273_v58 = vsel %vm272_vm14, 1, %v6822_v36 }
  0xe7   : > { %v366_v53 = vpop.permute.xlu1 %365 }
  0xe8   : > { %v7149_v54 = vsel %vm10468_vm10, %v366_v53, %v368_v34  ;;  %v7152_v55 = vsel %vm10468_vm10, %v364_v52, %v366_v53  ;;  %v293_v52 = vshll.u32 %v290_v31, 16 }
  0xe9   : > { %376 = vst [vmem:[#allocation3 + $0x20] sm:$0xff] %v7149_v54  ;;  %547 = vmatpush.msra.mxu0 %v7152_v55  ;;  %567 = vmatpush.msra.mxu1 %v7149_v54 }
  0xea   : > { %375 = vst [vmem:[#allocation3 + $0x18] sm:$0xff] %v7152_v55  ;;  %vm297_vm15 = vc.u32 %v289_v45, %v293_v52  ;;  %v299_v63 = vadd.s32 %v293_v52, %v289_v45  ;;  %v296_v45 = vshrl.u32 %v291_v49, 16 }
  0xeb   : > { %548 = vmatpush.msra.mxu0 %v6984_v1  ;;  %568 = vmatpush.msra.mxu1 %v6987_v2  ;;  %v232_v2 = vmul.u32 58254, %v228_v61 }
  0xec   : > { %6454 = vmatmul.msk.f32.vlgmr.msra.gmra.mxu0 %vm10465_vm7, %v7120_v43  ;;  %6455 = vmatmul.msk.f32.vlgmr.msra.gmra.mxu1 %vm10465_vm7, %v7120_v43 }
  0xed   : > { %v235_v9 = vshll.u32 %v232_v2, 16  ;;  %v236_v57 = vshrl.u32 %v232_v2, 16 }
  0xef   : > { %vm239_vm11 = vc.u32 %v231_v7, %v235_v9  ;;  %v241_v20 = vadd.s32 %v235_v9, %v231_v7  ;;  %v275_v7 = vadd.s32 %v273_v58, %v271_v56  ;;  %v298_v9 = vsel %vm297_vm15, 1, %v6822_v36 }
  0xf0   : > { %v240_v34 = vsel %vm239_vm11, 1, %v6822_v36  ;;  %vm301_vm11 = vc.u32 %v299_v63, %v295_v62 }
  0xf1   : > { %vm243_vm13 = vc.u32 %v241_v20, %v237_v17  ;;  %v242_v48 = vadd.s32 %v240_v34, %v234_v24  ;;  %v276_v17 = vadd.s32 %v275_v7, %v265_v0  ;;  %v300_v20 = vadd.s32 %v298_v9, %v292_v4 }
  0xf2   : > { %v244_v53 = vsel %vm243_vm13, 1, %v6822_v36  ;;  %v302_v24 = vsel %vm301_vm11, 1, %v6822_v36  ;;  %v10531_v4 = vmov 0 }
  0xf3   : > { %v246_v61 = vadd.s32 %v244_v53, %v242_v48  ;;  %v277_v28 = vadd.s32 %v276_v17, %v267_v15  ;;  %v304_v34 = vadd.s32 %v302_v24, %v300_v20 }
  0xf5   : > { %v247_v14 = vadd.s32 %v246_v61, %v236_v57  ;;  %v278_v40 = vshrl.u32 %v277_v28, 4  ;;  %v305_v5 = vadd.s32 %v304_v34, %v294_v30  ;;  %v10537_v34 = vmov 0 }
  0xf7   : > { %v248_v2 = vadd.s32 %v247_v14, %v238_v10  ;;  %v279_v25 = vmul.u32 18, %v278_v40  ;;  %v306_v52 = vadd.s32 %v305_v5, %v296_v45  ;;  %v10534_v14 = vmov 0 }
  0xf8   : > { %v6824_v40 = vmov 0.0  }
  0xf9   : > { %v249_v37 = vshrl.u32 %v248_v2, 4  ;;  %v280_v53 = vsub.s32 %v7166_v60, %v279_v25  ;;  %v307_v11 = vshrl.u32 %v306_v52, 4 }
  0xfb   : > { %v250_v48 = vmul.u32 18, %v249_v37  ;;  %v308_v56 = vmul.u32 18, %v307_v11  ;;  %vm313_vm14 = vcmp.ne.s32.totalorder %v280_v53, 0  ;;  %vm316_vm15 = vcmp.lt.s32.totalorder %v280_v53, 0  ;;  %v7261_v11 = vld [vmem:[#allocation7 + $0x8] sm:$0xff] }
  0xfc   : > { %v322_v31 = vadd.s32 18, %v280_v53  ;;  %vm319_vm0 = vmand %vm316_vm15, %vm313_vm14  ;;  %vm625_vm14 = vcmask 400384   ;;  %vm10540_vm15 = vcmask 900096  }
  0xfd   : > { %v251_v8 = vsub.s32 %v7164_v59, %v250_v48  ;;  %v309_v49 = vsub.s32 %v7171_v3, %v308_v56  ;;  %v527_v59 = vpop.permute.xlu0 %526 }
  0xfe   : > { %v325_v58 = vsel %vm319_vm0, %v322_v31, %v280_v53 }
  0xff   : > { %vm312_vm12 = vcmp.ne.s32.totalorder %v251_v8, 0  ;;  %vm315_vm13 = vcmp.lt.s32.totalorder %v251_v8, 0  ;;  %v321_v36 = vadd.s32 18, %v251_v8  ;;  %vm314_vm3 = vcmp.ne.s32.totalorder %v309_v49, 0 }
 0x100   : > { %vm318_vm11 = vmand %vm315_vm13, %vm312_vm12  ;;  %vm317_vm10 = vcmp.lt.s32.totalorder %v309_v49, 0  ;;  %vm328_vm9 = vcmp.ge.s32.totalorder %v325_v58, 1  ;;  %vm331_vm8 = vcmp.le.s32.totalorder %v325_v58, 16  ;;  %v323_v7 = vadd.s32 18, %v309_v49 }
 0x101   : > { %v324_v57 = vsel %vm318_vm11, %v321_v36, %v251_v8  ;;  %vm320_vm13 = vmand %vm317_vm10, %vm314_vm3  ;;  %vm622_vm10 = vcmask 1047704  }
 0x102   : > { %vm327_vm7 = vcmp.ge.s32.totalorder %v324_v57, 1  ;;  %vm330_vm2 = vcmp.le.s32.totalorder %v324_v57, 16  ;;  %vm7189_vm0 = vmand %vm328_vm9, %vm331_vm8  ;;  %v326_v20 = vsel %vm320_vm13, %v323_v7, %v309_v49  ;;  %vm336_vm8 = vcmask 154624  }
 0x103   : > { %vm7185_vm12 = vmand %vm327_vm7, %vm330_vm2  ;;  %v10535_v14 = vsel %vm7189_vm0, 4294967295, %v10534_v14  ;;  %vm329_vm2 = vcmp.ge.s32.totalorder %v326_v20, 1  ;;  %vm332_vm3 = vcmp.le.s32.totalorder %v326_v20, 16  ;;  %337 = vst.msk [vmem:[#allocation2 + $0x18] sm:$0xff] %vm336_vm8, %v6824_v40  ;;  %vm341_vm9 = vcmask 556424  }
 0x104   : > { %v10532_v4 = vsel %vm7185_vm12, 4294967295, %v10531_v4  ;;  %10536 = vst [vmem:[#allocation15_spill] sm:$0xff] %v10535_v14  ;;  %vm7199_vm7 = vmand %vm329_vm2, %vm332_vm3  ;;  %vm10542_vm13 = vcmask 1031168   ;;  %vm10543_vm2 = vcmask 1039360  }
 0x105   : > { %10533 = vst [vmem:[#allocation14_spill] sm:$0xff] %v10532_v4  ;;  %v10538_v34 = vsel %vm7199_vm7, 4294967295, %v10537_v34  ;;  %vm10541_vm11 = vmmov %vm10540_vm15 }
 0x106   : > { %10539 = vst [vmem:[#allocation16_spill] sm:$0xff] %v10538_v34  ;;  %vm10544_vm3 = vmmov %vm10542_vm13 }
 0x107   : > { %338 = vst.msk [vmem:[#allocation2 + $0x30] sm:$0xff] %vm336_vm8, %v6824_v40 }
 0x108   : > { %339 = vst.msk [vmem:[#allocation2 + $0x48] sm:$0xff] %vm336_vm8, %v6824_v40 }
 0x109   : > { %340 = vst.msk [vmem:[#allocation2 + $0x60] sm:$0xff] %vm336_vm8, %v6824_v40 }
 0x10a   : > { %342 = vst.msk [vmem:[#allocation2 + $0x28] sm:$0xff] %vm341_vm9, %v6824_v40 }
 0x10b   : > { %343 = vst.msk [vmem:[#allocation2 + $0x40] sm:$0xff] %vm341_vm9, %v6824_v40 }
 0x10c   : > { %344 = vst.msk [vmem:[#allocation2 + $0x58] sm:$0xff] %vm341_vm9, %v6824_v40 }
 0x10d   : > { %345 = vst.msk [vmem:[#allocation2 + $0x70] sm:$0xff] %vm341_vm9, %v6824_v40  ;;  %vm10545_vm9 = vmmov %vm10543_vm2 }
 0x159   : > { %v590_v61 = vpop.f32.mrf.mxu2 }
 0x15a   : > { %v591_v10 = vadd.f32 %v590_v61, %v527_v59 }
 0x15c   : > { %v595_v28 = vmul.f32 0.2, %v591_v10 }
 0x15e   : > { %v598_v30 = vmax.f32 %v591_v10, %v595_v28 }
 0x160   : > { %v607_v37 = vsel %vm7199_vm7, %v598_v30, 0.0 }
 0x169   : > { %v550_v60 = vpop.f32.mrf.mxu0  ;;  %v570_v62 = vpop.f32.mrf.mxu1 }
 0x16a   : > { %v551_v63 = vadd.f32 %v550_v60, %v527_v59  ;;  %v571_v0 = vadd.f32 %v570_v62, %v527_v59 }
 0x16c   : > { %v593_v3 = vmul.f32 0.2, %v551_v63  ;;  %v594_v9 = vmul.f32 0.2, %v571_v0 }
 0x16e   : > { %v596_v15 = vmax.f32 %v551_v63, %v593_v3  ;;  %v597_v17 = vmax.f32 %v571_v0, %v594_v9 }
 0x170   : > { %v606_v24 = vsel %vm7189_vm0, %v597_v17, 0.0  ;;  %v605_v2 = vsel %vm7185_vm12, %v596_v15, 0.0 }
 0x171   : > { %613 = vrot.lane.b32.xlu2 %v606_v24, %s6823_s29  ;;  %611 = vrot.lane.b32.xlu1 %v605_v2, %s6823_s29 }
 0x179   : > { %615 = vrot.lane.b32.xlu1 %v607_v37, %s6823_s29 }
 0x1cb   : > { %v614_v45 = vpop.permute.xlu2 %613 }
 0x1e3   : > { %v612_v5 = vpop.permute.xlu1 %611 }
 0x1e4   : > { %v7211_v48 = vsel %vm336_vm8, %v612_v5, %v614_v45  ;;  %623 = vst.msk [vmem:[#allocation2 + $0x18] sm:$0xff] %vm622_vm10, %v612_v5 }
 0x1e5   : > { %631 = vst [vmem:[#allocation3 + $0xe0] sm:$0xff] %v7211_v48 }
 0x1eb   : > { %v616_v25 = vpop.permute.xlu1 %615  ;;  %v7215_v52 = vld [vmem:[#allocation2 + $0x18] sm:$0xff] }
 0x1ec   : > { %v618_v8 = vsel %vm336_vm8, %v614_v45, %v616_v25  ;;  %718 = vrot.lane.b32.xlu2 %v7215_v52, %s6816_s17  ;;  %684 = vrot.lane.b32.xlu0 %v7215_v52, %s6818_s25  ;;  %630 = vst [vmem:[#allocation3 + $0xd8] sm:$0xff] %v7215_v52 }
 0x1ed   : > { %626 = vst.msk [vmem:[#allocation2 + $0x28] sm:$0xff] %vm625_vm14, %v618_v8  ;;  %698 = vrot.lane.b32.xlu1 %v7215_v52, %s6817_s24 }
 0x1f4   : > { %670 = vrot.lane.b32.xlu2 %v7215_v52, %s6819_s26  ;;  %720 = vrot.lane.b32.xlu0 %v7211_v48, %s6816_s17  ;;  %v714_v53 = vld [vmem:[#allocation2 + $0x28] sm:$0xff] }
 0x1f5   : > { %686 = vrot.lane.b32.xlu1 %v7211_v48, %s6818_s25  ;;  %632 = vst.msk [vmem:[#allocation3 + $0xe8] sm:$0xff] %vm358_vm1, %v714_v53 }
 0x1fc   : > { %672 = vrot.lane.b32.xlu0 %v7211_v48, %s6819_s26  ;;  %650 = vrot.lane.b32.xlu2 %v7215_v52, %s6820_s27 }
 0x1fd   : > { %722 = vrot.lane.b32.xlu1 %v714_v53, %s6816_s17 }
 0x204   : > { %652 = vrot.lane.b32.xlu0 %v7211_v48, %s6820_s27  ;;  %700 = vrot.lane.b32.xlu2 %v7211_v48, %s6817_s24 }
 0x205   : > { %702 = vrot.lane.b32.xlu1 %v714_v53, %s6817_s24 }
 0x20c   : > { %638 = vrot.lane.b32.xlu0 %v7211_v48, %s6821_s28  ;;  %636 = vrot.lane.b32.xlu2 %v7215_v52, %s6821_s28 }
 0x20d   : > { %688 = vrot.lane.b32.xlu1 %v714_v53, %s6818_s25 }
 0x214   : > { %654 = vrot.lane.b32.xlu0 %v714_v53, %s6820_s27  ;;  %674 = vrot.lane.b32.xlu2 %v714_v53, %s6819_s26 }
 0x215   : > { %640 = vrot.lane.b32.xlu1 %v714_v53, %s6821_s28 }
 0x21c   : > { %748 = vrot.lane.b32.xlu0 %v7211_v48, %s6814_s23  ;;  %746 = vrot.lane.b32.xlu2 %v7215_v52, %s6814_s23 }
 0x21d   : > { %732 = vrot.lane.b32.xlu1 %v7215_v52, %s6815_s18 }
 0x224   : > { %750 = vrot.lane.b32.xlu0 %v714_v53, %s6814_s23  ;;  %734 = vrot.lane.b32.xlu2 %v7211_v48, %s6815_s18 }
 0x225   : > { %736 = vrot.lane.b32.xlu1 %v714_v53, %s6815_s18 }
 0x22c   : > { %824 = vrot.lane.b32.xlu0 %v7120_v43, %s6825_s30  ;;  %826 = vrot.lane.b32.xlu2 %v7261_v11, %s6825_s30 }
 0x246   : > { %v719_v56 = vpop.permute.xlu2 %718 }
 0x24e   : > { %v671_v36 = vpop.permute.xlu2 %670 }
 0x256   : > { %v651_v31 = vpop.permute.xlu2 %650 }
 0x25e   : > { %v685_v49 = vpop.permute.xlu0 %684  ;;  %v701_v57 = vpop.permute.xlu2 %700 }
 0x25f   : > { %v699_v58 = vpop.permute.xlu1 %698 }
 0x260   : > { %v7268_v61 = vsel %vm435_vm5, %v699_v58, %v701_v57 }
 0x261   : > { %709 = vst [vmem:[#allocation3 + $0x150] sm:$0xff] %v7268_v61 }
 0x266   : > { %v721_v59 = vpop.permute.xlu0 %720  ;;  %v637_v60 = vpop.permute.xlu2 %636 }
 0x267   : > { %v7272_v62 = vsel %vm456_vm4, %v719_v56, %v721_v59  ;;  %v687_v43 = vpop.permute.xlu1 %686 }
 0x268   : > { %729 = vst [vmem:[#allocation3 + $0x168] sm:$0xff] %v7272_v62  ;;  %v7276_v63 = vsel %vm420_vm6, %v685_v49, %v687_v43  ;;  %834 = vmatpush.msra.mxu3 %v7272_v62 }
 0x269   : > { %695 = vst [vmem:[#allocation3 + $0x138] sm:$0xff] %v7276_v63 }
 0x26a   : > { %835 = vmatpush.msra.mxu3 %v7268_v61 }
 0x26c   : > { %836 = vmatpush.msra.mxu3 %v7276_v63 }
 0x26e   : > { %v673_v0 = vpop.permute.xlu0 %672  ;;  %v675_v7 = vpop.permute.xlu2 %674 }
 0x26f   : > { %v7283_v3 = vsel %vm10540_vm15, %v671_v36, %v673_v0  ;;  %v723_v9 = vpop.permute.xlu1 %722  ;;  %683 = vst.msk [vmem:[#allocation3 + $0x130] sm:$0xff] %vm358_vm1, %v675_v7  ;;  %v7291_v15 = vsel %vm10541_vm11, %v673_v0, %v675_v7  ;;  %vm10546_vm15 = vcmask 736256   ;;  %vm10547_vm11 = vcmask 744448  }
 0x270   : > { %681 = vst [vmem:[#allocation3 + $0x120] sm:$0xff] %v7283_v3  ;;  %v7288_v10 = vsel %vm456_vm4, %v721_v59, %v723_v9  ;;  %837 = vmatpush.msra.mxu3 %v7283_v3 }
 0x271   : > { %730 = vst [vmem:[#allocation3 + $0x170] sm:$0xff] %v7288_v10 }
 0x272   : > { %731 = vst.msk [vmem:[#allocation3 + $0x178] sm:$0xff] %vm358_vm1, %v723_v9  ;;  %v6826_v9 = vmov 1  }
 0x273   : > { %682 = vst [vmem:[#allocation3 + $0x128] sm:$0xff] %v7291_v15  ;;  %6610 = vset.pattern.permute.xlu1 %v6826_v9  ;;  %v7524_v9 = vld [vmem:[#allocation3] sm:$0xff] }
 0x274   : > { %819 = vperm.xlu1 %6610, %v7122_v44  }
 0x276   : > { %v653_v17 = vpop.permute.xlu0 %652  ;;  %v747_v25 = vpop.permute.xlu2 %746  ;;  %v7341_v49 = vld [vmem:[#allocation3 + $0x130] sm:$0xff] }
 0x277   : > { %v7298_v20 = vsel %vm10542_vm13, %v651_v31, %v653_v17  ;;  %v703_v24 = vpop.permute.xlu1 %702  ;;  %vm10495_vm13 = vcmask 130048  }
 0x278   : > { %661 = vst [vmem:[#allocation3 + $0x108] sm:$0xff] %v7298_v20  ;;  %v7302_v2 = vsel %vm435_vm5, %v701_v57, %v703_v24  ;;  %838 = vmatpush.msra.mxu3 %v7298_v20 }
 0x279   : > { %710 = vst [vmem:[#allocation3 + $0x158] sm:$0xff] %v7302_v2  ;;  %v7306_v28 = vld [vmem:[#allocation3 + $0x178] sm:$0xff] }
 0x27a   : > { %711 = vst.msk [vmem:[#allocation3 + $0x160] sm:$0xff] %vm358_vm1, %v703_v24  ;;  %914 = vmatpush.msrb.mxu0 %v7306_v28 }
 0x27e   : > { %v639_v30 = vpop.permute.xlu0 %638  ;;  %v735_v57 = vpop.permute.xlu2 %734 }
 0x27f   : > { %v7311_v37 = vsel %vm10543_vm2, %v637_v60, %v639_v30  ;;  %v689_v40 = vpop.permute.xlu1 %688  ;;  %vm10548_vm2 = vmmov %vm10546_vm15 }
 0x280   : > { %647 = vst [vmem:[#allocation3 + $0xf0] sm:$0xff] %v7311_v37  ;;  %v7315_v45 = vsel %vm420_vm6, %v687_v43, %v689_v40  ;;  %839 = vmatpush.msra.mxu3 %v7311_v37 }
 0x281   : > { %696 = vst [vmem:[#allocation3 + $0x140] sm:$0xff] %v7315_v45  ;;  %v7319_v5 = vld [vmem:[#allocation3 + $0x160] sm:$0xff] }
 0x282   : > { %697 = vst.msk [vmem:[#allocation3 + $0x148] sm:$0xff] %vm358_vm1, %v689_v40  ;;  %915 = vmatpush.msrb.mxu0 %v7319_v5  ;;  %840 = vmatpush.msra.mxu3 %v7215_v52 }
 0x284   : > { %841 = vmatpush.msra.mxu3 %v7044_v12 }
 0x286   : > { %v655_v8 = vpop.permute.xlu0 %654  ;;  %842 = vmatpush.msra.mxu3 %v7060_v19  ;;  %v827_v24 = vpop.permute.xlu2 %826 }
 0x287   : > { %v7327_v53 = vsel %vm10544_vm3, %v653_v17, %v655_v8  ;;  %663 = vst.msk [vmem:[#allocation3 + $0x118] sm:$0xff] %vm358_vm1, %v655_v8  ;;  %v641_v56 = vpop.permute.xlu1 %640  ;;  %v7363_v17 = vld [vmem:[#allocation3 + $0xe8] sm:$0xff]  ;;  %vm10549_vm3 = vmmov %vm10547_vm11 }
 0x288   : > { %662 = vst [vmem:[#allocation3 + $0x110] sm:$0xff] %v7327_v53  ;;  %v7332_v36 = vsel %vm10545_vm9, %v639_v30, %v641_v56  ;;  %843 = vmatpush.msra.mxu3 %v7079_v27  ;;  %vm10475_vm9 = vcmask 457728  }
 0x289   : > { %648 = vst [vmem:[#allocation3 + $0xf8] sm:$0xff] %v7332_v36  ;;  %v7336_v31 = vld [vmem:[#allocation3 + $0x148] sm:$0xff] }
 0x28a   : > { %649 = vst.msk [vmem:[#allocation3 + $0x100] sm:$0xff] %vm358_vm1, %v641_v56  ;;  %916 = vmatpush.msrb.mxu0 %v7336_v31  ;;  %844 = vmatpush.msra.mxu3 %v7094_v33 }
 0x28c   : > { %917 = vmatpush.msrb.mxu0 %v7341_v49  ;;  %845 = vmatpush.msra.mxu3 %v7109_v39 }
 0x28e   : > { %v749_v58 = vpop.permute.xlu0 %748  ;;  %v7345_v59 = vld [vmem:[#allocation3 + $0x118] sm:$0xff]  ;;  %846 = vmatpush.msra.mxu3 %v7132_v47 }
 0x28f   : > { %v7349_v60 = vsel %vm10546_vm15, %v747_v25, %v749_v58  ;;  %v733_v43 = vpop.permute.xlu1 %732  ;;  %918 = vmatpush.msrb.mxu0 %v7345_v59  ;;  %vm10550_vm15 = vmmov %vm10549_vm3 }
 0x290   : > { %757 = vst [vmem:[#allocation3 + $0x198] sm:$0xff] %v7349_v60  ;;  %v7354_v0 = vsel %vm10547_vm11, %v733_v43, %v735_v57  ;;  %847 = vmatpush.msra.mxu3 %v7142_v51  ;;  %868 = vmatpush.msrb.mxu1 %v7349_v60  ;;  %vm10551_vm11 = vcmask 900096  }
 0x291   : > { %743 = vst [vmem:[#allocation3 + $0x180] sm:$0xff] %v7354_v0  ;;  %v7359_v7 = vld [vmem:[#allocation3 + $0x100] sm:$0xff] }
 0x292   : > { %919 = vmatpush.msrb.mxu0 %v7359_v7  ;;  %848 = vmatpush.msra.mxu3 %v7152_v55 }
 0x293   : > { %869 = vmatpush.msrb.mxu1 %v7354_v0 }
 0x294   : > { %920 = vmatpush.msrb.mxu0 %v7363_v17  ;;  %849 = vmatpush.msra.mxu3 %v6984_v1 }
 0x295   : > { %874 = vmatpush.msra.mxu1 %v7288_v10 }
 0x296   : > { %6457 = vmatmul.msk.f32.vlgmr.msrb.gmra.mxu1 %vm10495_vm13, %v827_v24  ;;  %921 = vmatpush.msrb.mxu0 %v7055_v16  ;;  %v751_v30 = vpop.permute.xlu0 %750 }
 0x297   : > { %875 = vmatpush.msra.mxu1 %v7302_v2  ;;  %v7374_v40 = vsel %vm10548_vm2, %v749_v58, %v751_v30  ;;  %759 = vst.msk [vmem:[#allocation3 + $0x1a8] sm:$0xff] %vm358_vm1, %v751_v30  ;;  %v737_v44 = vpop.permute.xlu1 %736  ;;  %1219 = vmatpush.msrb.mxu3 %v7272_v62  ;;  %vm10552_vm2 = vcmask 1039360  }
 0x298   : > { %758 = vst [vmem:[#allocation3 + $0x1a0] sm:$0xff] %v7374_v40  ;;  %v7380_v25 = vsel %vm10549_vm3, %v735_v57, %v737_v44  ;;  %922 = vmatpush.msrb.mxu0 %v7057_v18  ;;  %908 = vmatpush.msrb.mxu2 %v7374_v40  ;;  %v7521_v57 = vld [vmem:[#allocation7 + $0x18] sm:$0xff]  ;;  %vm1212_vm3 = vcmask 326656  }
 0x299   : > { %876 = vmatpush.msra.mxu1 %v7315_v45  ;;  %744 = vst [vmem:[#allocation3 + $0x188] sm:$0xff] %v7380_v25  ;;  %1220 = vmatpush.msrb.mxu3 %v7268_v61 }
 0x29a   : > { %745 = vst.msk [vmem:[#allocation3 + $0x190] sm:$0xff] %vm358_vm1, %v737_v44  ;;  %923 = vmatpush.msrb.mxu0 %v7065_v21  ;;  %909 = vmatpush.msrb.mxu2 %v7380_v25 }
 0x29b   : > { %877 = vmatpush.msra.mxu1 %v7291_v15  ;;  %1221 = vmatpush.msrb.mxu3 %v7276_v63 }
 0x29c   : > { %924 = vmatpush.msrb.mxu0 %v7069_v22  ;;  %6458 = vmatmul.msk.f32.vlgmr.msrb.gmra.mxu2 %vm10495_vm13, %v827_v24 }
 0x29d   : > { %878 = vmatpush.msra.mxu1 %v7327_v53  ;;  %1222 = vmatpush.msrb.mxu3 %v7283_v3 }
 0x29e   : > { %925 = vmatpush.msrb.mxu0 %v7072_v23  ;;  %v825_v1 = vpop.permute.xlu0 %824  ;;  %v7397_v16 = vld [vmem:[#allocation3 + $0x1a8] sm:$0xff] }
 0x29f   : > { %879 = vmatpush.msra.mxu1 %v7332_v36  ;;  %v829_v61 = vsel %vm10475_vm9, %v825_v1, %v827_v24  ;;  %948 = vmatpush.msra.mxu2 %v7397_v16 }
 0x2a0   : > { %1223 = vmatpush.msrb.mxu3 %v7298_v20  ;;  %926 = vmatpush.msrb.mxu0 %v7085_v29 }
 0x2a1   : > { %850 = vmatmul.f32.vlgmr.msra.gmra.mxu3 %v829_v61  ;;  %v7404_v62 = vld [vmem:[#allocation3 + $0x190] sm:$0xff]  ;;  %880 = vmatpush.msra.mxu1 %v7211_v48 }
 0x2a2   : > { %1224 = vmatpush.msrb.mxu3 %v7311_v37  ;;  %927 = vmatpush.msrb.mxu0 %v7100_v35 }
 0x2a3   : > { %949 = vmatpush.msra.mxu2 %v7404_v62  ;;  %881 = vmatpush.msra.mxu1 %v7047_v13  ;;  %v1141_v13 = vld [vmem:[#allocation3 + $0xc8] sm:$0xff] }
 0x2a4   : > { %1225 = vmatpush.msrb.mxu3 %v7215_v52  ;;  %928 = vmatpush.msrb.mxu0 %v7115_v41 }
 0x2a5   : > { %882 = vmatpush.msra.mxu1 %v7036_v6  ;;  %6459 = vmatmul.msk.f32.vlgmr.msra.gmra.mxu2 %vm10495_vm13, %v827_v24  ;;  %v763_v6 = vld [vmem:[#allocation3 + $0x8] sm:$0xff] }
 0x2a6   : > { %929 = vmatpush.msrb.mxu0 %v7117_v42  ;;  %1226 = vmatpush.msrb.mxu3 %v7044_v12  ;;  %v1142_v12 = vld [vmem:[#allocation3 + $0xd0] sm:$0xff] }
 0x2a7   : > { %883 = vmatpush.msra.mxu1 %v7076_v26  ;;  %930 = vmatmul.f32.vlgmr.msrb.gmra.mxu0 %v829_v61  ;;  %v1123_v26 = vld [vmem:[#allocation3 + $0x38] sm:$0xff] }
 0x2a8   : > { %1299 = vmatpush.msra.mxu0 %v7306_v28  ;;  %1227 = vmatpush.msrb.mxu3 %v7060_v19  ;;  %v1135_v19 = vld [vmem:[#allocation3 + $0x98] sm:$0xff] }
 0x2a9   : > { %884 = vmatpush.msra.mxu1 %v7091_v32 }
 0x2aa   : > { %1300 = vmatpush.msra.mxu0 %v7319_v5  ;;  %1228 = vmatpush.msrb.mxu3 %v7079_v27  ;;  %v1505_v27 = vld [vmem:[#allocation3 + $0x20] sm:$0xff] }
 0x2ab   : > { %885 = vmatpush.msra.mxu1 %v7106_v38 }
 0x2ac   : > { %1301 = vmatpush.msra.mxu0 %v7336_v31  ;;  %1229 = vmatpush.msrb.mxu3 %v7094_v33 }
 0x2ad   : > { %886 = vmatpush.msra.mxu1 %v7129_v46 }
 0x2ae   : > { %1302 = vmatpush.msra.mxu0 %v7341_v49  ;;  %1230 = vmatpush.msrb.mxu3 %v7109_v39  ;;  %v1114_v49 = vld [vmem:[#allocation7 + $0x10] sm:$0xff] }
 0x2af   : > { %887 = vmatpush.msra.mxu1 %v7139_v50 }
 0x2b0   : > { %1303 = vmatpush.msra.mxu0 %v7345_v59  ;;  %1231 = vmatpush.msrb.mxu3 %v7132_v47 }
 0x2b1   : > { %888 = vmatpush.msra.mxu1 %v7149_v54 }
 0x2b2   : > { %1304 = vmatpush.msra.mxu0 %v7359_v7  ;;  %1232 = vmatpush.msrb.mxu3 %v7142_v51 }
 0x2b3   : > { %889 = vmatpush.msra.mxu1 %v763_v6 }
 0x2b4   : > { %1305 = vmatpush.msra.mxu0 %v7363_v17  ;;  %1233 = vmatpush.msrb.mxu3 %v7152_v55 }
 0x2b5   : > { %890 = vmatmul.f32.vlgmr.msra.gmra.mxu1 %v829_v61 }
 0x2b6   : > { %1306 = vmatpush.msra.mxu0 %v1142_v12  ;;  %1259 = vmatpush.msrb.mxu1 %v7288_v10 }
 0x2b7   : > { %1234 = vmatpush.msrb.mxu3 %v7524_v9 }
 0x2b8   : > { %1307 = vmatpush.msra.mxu0 %v7057_v18  ;;  %1260 = vmatpush.msrb.mxu1 %v7302_v2  ;;  %v1138_v18 = vld [vmem:[#allocation3 + $0xb0] sm:$0xff] }
 0x2ba   : > { %1308 = vmatpush.msra.mxu0 %v7065_v21  ;;  %1261 = vmatpush.msrb.mxu1 %v7315_v45  ;;  %v1132_v21 = vld [vmem:[#allocation3 + $0x80] sm:$0xff] }
 0x2bc   : > { %1309 = vmatpush.msra.mxu0 %v7069_v22  ;;  %1262 = vmatpush.msrb.mxu1 %v7291_v15  ;;  %v1129_v22 = vld [vmem:[#allocation3 + $0x68] sm:$0xff] }
 0x2be   : > { %1310 = vmatpush.msra.mxu0 %v7072_v23  ;;  %1263 = vmatpush.msrb.mxu1 %v7327_v53  ;;  %v1126_v23 = vld [vmem:[#allocation3 + $0x50] sm:$0xff] }
 0x2c0   : > { %1311 = vmatpush.msra.mxu0 %v7085_v29  ;;  %1264 = vmatpush.msrb.mxu1 %v7332_v36 }
 0x2c2   : > { %1312 = vmatpush.msra.mxu0 %v7100_v35  ;;  %1265 = vmatpush.msrb.mxu1 %v7211_v48 }
 0x2c4   : > { %1313 = vmatpush.msra.mxu0 %v7115_v41  ;;  %1266 = vmatpush.msrb.mxu1 %v1141_v13 }
 0x2c6   : > { %1314 = vmatpush.msra.mxu0 %v7117_v42  ;;  %1267 = vmatpush.msrb.mxu1 %v1138_v18 }
 0x2c8   : > { %1692 = vmatpush.msrb.mxu0 %v7288_v10  ;;  %1268 = vmatpush.msrb.mxu1 %v1135_v19 }
 0x2ca   : > { %1693 = vmatpush.msrb.mxu0 %v7302_v2  ;;  %1269 = vmatpush.msrb.mxu1 %v1132_v21 }
 0x2cc   : > { %1694 = vmatpush.msrb.mxu0 %v7315_v45  ;;  %1270 = vmatpush.msrb.mxu1 %v1129_v22 }
 0x2ce   : > { %1695 = vmatpush.msrb.mxu0 %v7291_v15  ;;  %1271 = vmatpush.msrb.mxu1 %v1126_v23 }
 0x2d0   : > { %1696 = vmatpush.msrb.mxu0 %v7327_v53  ;;  %1272 = vmatpush.msrb.mxu1 %v1123_v26 }
 0x2d2   : > { %1697 = vmatpush.msrb.mxu0 %v7332_v36  ;;  %1273 = vmatpush.msrb.mxu1 %v7149_v54 }
 0x2d4   : > { %1698 = vmatpush.msrb.mxu0 %v7211_v48  ;;  %1274 = vmatpush.msrb.mxu1 %v763_v6 }
 0x2d6   : > { %1699 = vmatpush.msrb.mxu0 %v1141_v13 }
 0x2d8   : > { %1700 = vmatpush.msrb.mxu0 %v1138_v18 }
 0x2da   : > { %1701 = vmatpush.msrb.mxu0 %v1135_v19 }
 0x2dc   : > { %1702 = vmatpush.msrb.mxu0 %v1132_v21 }
 0x2de   : > { %1703 = vmatpush.msrb.mxu0 %v1129_v22 }
 0x2e0   : > { %1704 = vmatpush.msrb.mxu0 %v1126_v23 }
 0x2e2   : > { %1705 = vmatpush.msrb.mxu0 %v1123_v26 }
 0x2e4   : > { %1706 = vmatpush.msrb.mxu0 %v1505_v27 }
 0x2e6   : > { %1707 = vmatpush.msrb.mxu0 %v763_v6  ;;  %v820_v32 = vpop.permute.xlu1 %819 }
 0x313   : > { %v871_v38 = vpop.f32.mrf.mxu1 }
 0x31f   : > { %v911_v29 = vpop.f32.mrf.mxu2 }
 0x324   : > { %v851_v33 = vpop.f32.mrf.mxu3  ;;  %v931_v39 = vpop.f32.mrf.mxu0 }
 0x325   : > { %v852_v35 = vadd.f32 %v851_v33, %v820_v32  ;;  %v932_v42 = vadd.f32 %v931_v39, %v820_v32 }
 0x327   : > { %v872_v41 = vadd.f32 %v871_v38, %v852_v35 }
 0x328   : > { %v951_v47 = vpop.f32.mrf.mxu2 }
 0x329   : > { %v954_v46 = vmul.f32 0.2, %v872_v41  ;;  %v952_v50 = vadd.f32 %v951_v47, %v932_v42 }
 0x32b   : > { %v957_v51 = vmax.f32 %v872_v41, %v954_v46  ;;  %v956_v54 = vmul.f32 0.2, %v952_v50 }
 0x32d   : > { %v960_v55 = vsel %vm7185_vm12, %v957_v51, 0.0  ;;  %v959_v48 = vmax.f32 %v952_v50, %v956_v54 }
 0x32e   : > { %966 = vrot.lane.b32.xlu2 %v960_v55, %s6823_s29 }
 0x32f   : > { %v962_v52 = vsel %vm7199_vm7, %v959_v48, 0.0 }
 0x330   : > { %970 = vrot.lane.b32.xlu1 %v962_v52, %s6823_s29 }
 0x332   : > { %v891_v63 = vpop.f32.mrf.mxu1 }
 0x333   : > { %v892_v3 = vadd.f32 %v891_v63, %v820_v32 }
 0x335   : > { %v912_v10 = vadd.f32 %v911_v29, %v892_v3 }
 0x337   : > { %v955_v15 = vmul.f32 0.2, %v912_v10 }
 0x339   : > { %v958_v2 = vmax.f32 %v912_v10, %v955_v15 }
 0x33b   : > { %v961_v28 = vsel %vm7189_vm0, %v958_v2, 0.0 }
 0x33c   : > { %968 = vrot.lane.b32.xlu0 %v961_v28, %s6823_s29 }
 0x388   : > { %v967_v45 = vpop.permute.xlu2 %966 }
 0x389   : > { %977 = vst.msk [vmem:[#allocation2 + $0x30] sm:$0xff] %vm622_vm10, %v967_v45 }
 0x390   : > { %v7470_v5 = vld [vmem:[#allocation2 + $0x30] sm:$0xff] }
 0x391   : > { %1085 = vrot.lane.b32.xlu1 %v7470_v5, %s6815_s18  ;;  %1099 = vrot.lane.b32.xlu2 %v7470_v5, %s6814_s23  ;;  %983 = vst [vmem:[#allocation3 + $0x1b0] sm:$0xff] %v7470_v5 }
 0x392   : > { %1071 = vrot.lane.b32.xlu0 %v7470_v5, %s6816_s17 }
 0x399   : > { %1037 = vrot.lane.b32.xlu1 %v7470_v5, %s6818_s25  ;;  %1051 = vrot.lane.b32.xlu2 %v7470_v5, %s6817_s24 }
 0x3a1   : > { %1023 = vrot.lane.b32.xlu1 %v7470_v5, %s6819_s26 }
 0x3a2   : > { %v971_v8 = vpop.permute.xlu1 %970 }
 0x3a9   : > { %1003 = vrot.lane.b32.xlu1 %v7470_v5, %s6820_s27 }
 0x3ae   : > { %v969_v53 = vpop.permute.xlu0 %968 }
 0x3af   : > { %v7488_v56 = vsel %vm336_vm8, %v967_v45, %v969_v53  ;;  %v973_v36 = vsel %vm336_vm8, %v969_v53, %v971_v8 }
 0x3b0   : > { %979 = vst.msk [vmem:[#allocation2 + $0x40] sm:$0xff] %vm625_vm14, %v973_v36  ;;  %1087 = vrot.lane.b32.xlu2 %v7488_v56, %s6815_s18 }
 0x3b1   : > { %1073 = vrot.lane.b32.xlu1 %v7488_v56, %s6816_s17  ;;  %984 = vst [vmem:[#allocation3 + $0x1b8] sm:$0xff] %v7488_v56 }
 0x3b7   : > { %v1067_v31 = vld [vmem:[#allocation2 + $0x40] sm:$0xff] }
 0x3b8   : > { %1103 = vrot.lane.b32.xlu0 %v1067_v31, %s6814_s23  ;;  %1039 = vrot.lane.b32.xlu2 %v7488_v56, %s6818_s25  ;;  %985 = vst.msk [vmem:[#allocation3 + $0x1c0] sm:$0xff] %vm358_vm1, %v1067_v31 }
 0x3b9   : > { %989 = vrot.lane.b32.xlu1 %v7470_v5, %s6821_s28 }
 0x3c0   : > { %1089 = vrot.lane.b32.xlu0 %v1067_v31, %s6815_s18  ;;  %1025 = vrot.lane.b32.xlu2 %v7488_v56, %s6819_s26 }
 0x3c1   : > { %1041 = vrot.lane.b32.xlu1 %v1067_v31, %s6818_s25 }
 0x3c8   : > { %1075 = vrot.lane.b32.xlu0 %v1067_v31, %s6816_s17  ;;  %1005 = vrot.lane.b32.xlu2 %v7488_v56, %s6820_s27 }
 0x3c9   : > { %993 = vrot.lane.b32.xlu1 %v1067_v31, %s6821_s28 }
 0x3d0   : > { %1101 = vrot.lane.b32.xlu0 %v7488_v56, %s6814_s23  ;;  %991 = vrot.lane.b32.xlu2 %v7488_v56, %s6821_s28 }
 0x3d1   : > { %1206 = vrot.lane.b32.xlu1 %v7261_v11, %s6827_s5 }
 0x3d8   : > { %1053 = vrot.lane.b32.xlu0 %v7488_v56, %s6817_s24  ;;  %1027 = vrot.lane.b32.xlu2 %v1067_v31, %s6819_s26 }
 0x3e0   : > { %1055 = vrot.lane.b32.xlu0 %v1067_v31, %s6817_s24  ;;  %1208 = vrot.lane.b32.xlu2 %v1114_v49, %s6827_s5 }
 0x3e8   : > { %1007 = vrot.lane.b32.xlu0 %v1067_v31, %s6820_s27 }
 0x3eb   : > { %v1100_v58 = vpop.permute.xlu2 %1099 }
 0x3f0   : > { %1210 = vrot.lane.b32.xlu0 %v7521_v57, %s6827_s5  ;;  %s6838_s5 = smov 24  }
 0x3f3   : > { %v1052_v59 = vpop.permute.xlu2 %1051 }
 0x403   : > { %v1086_v43 = vpop.permute.xlu1 %1085 }
 0x404   : > { %v1072_v1 = vpop.permute.xlu0 %1071 }
 0x40a   : > { %v1088_v7 = vpop.permute.xlu2 %1087 }
 0x40b   : > { %v1038_v11 = vpop.permute.xlu1 %1037 }
 0x412   : > { %v1040_v17 = vpop.permute.xlu2 %1039 }
 0x413   : > { %v1024_v24 = vpop.permute.xlu1 %1023  ;;  %v7586_v3 = vsel %vm420_vm6, %v1038_v11, %v1040_v17  ;;  %v7642_v11 = vld [vmem:[#allocation3 + $0x1c0] sm:$0xff] }
 0x41a   : > { %v1026_v30 = vpop.permute.xlu2 %1025 }
 0x41b   : > { %v1004_v44 = vpop.permute.xlu1 %1003 }
 0x422   : > { %v7527_v61 = vpop.permute.xlu2 %1005 }
 0x423   : > { %v1074_v6 = vpop.permute.xlu1 %1073 }
 0x424   : > { %v7578_v48 = vsel %vm456_vm4, %v1072_v1, %v1074_v6  ;;  %v7680_v1 = vld [vmem:[#allocation3 + $0x78] sm:$0xff] }
 0x42a   : > { %v1104_v12 = vpop.permute.xlu0 %1103  ;;  %v992_v13 = vpop.permute.xlu2 %991 }
 0x42b   : > { %1112 = vst.msk [vmem:[#allocation3 + $0x280] sm:$0xff] %vm358_vm1, %v1104_v12  ;;  %v990_v18 = vpop.permute.xlu1 %989 }
 0x432   : > { %v1090_v19 = vpop.permute.xlu0 %1089  ;;  %v7530_v21 = vld [vmem:[#allocation3 + $0x280] sm:$0xff]  ;;  %v1028_v22 = vpop.permute.xlu2 %1027 }
 0x433   : > { %v7533_v23 = vsel %vm10550_vm15, %v1088_v7, %v1090_v19  ;;  %1098 = vst.msk [vmem:[#allocation3 + $0x268] sm:$0xff] %vm358_vm1, %v1090_v19  ;;  %1324 = vmatpush.msra.mxu3 %v7530_v21  ;;  %v1042_v26 = vpop.permute.xlu1 %1041  ;;  %v7542_v29 = vsel %vm10551_vm11, %v1026_v30, %v1028_v22  ;;  %vm10553_vm15 = vcmask 736256  }
 0x434   : > { %1097 = vst [vmem:[#allocation3 + $0x260] sm:$0xff] %v7533_v23  ;;  %v7539_v27 = vsel %vm420_vm6, %v1040_v17, %v1042_v26  ;;  %vm10554_vm11 = vmmov %vm10553_vm15  ;;  %v7654_v17 = vld [vmem:[#allocation3 + $0x168] sm:$0xff] }
 0x435   : > { %1049 = vst [vmem:[#allocation3 + $0x218] sm:$0xff] %v7539_v27 }
 0x436   : > { %1050 = vst.msk [vmem:[#allocation3 + $0x220] sm:$0xff] %vm358_vm1, %v1042_v26 }
 0x437   : > { %1035 = vst [vmem:[#allocation3 + $0x200] sm:$0xff] %v7542_v29 }
 0x438   : > { %1036 = vst.msk [vmem:[#allocation3 + $0x208] sm:$0xff] %vm358_vm1, %v1028_v22 }
 0x43a   : > { %v1076_v32 = vpop.permute.xlu0 %1075  ;;  %v7548_v33 = vld [vmem:[#allocation3 + $0x268] sm:$0xff]  ;;  %v1209_v41 = vpop.permute.xlu2 %1208 }
 0x43b   : > { %v7551_v35 = vsel %vm456_vm4, %v1074_v6, %v1076_v32  ;;  %1084 = vst.msk [vmem:[#allocation3 + $0x250] sm:$0xff] %vm358_vm1, %v1076_v32  ;;  %1325 = vmatpush.msra.mxu3 %v7548_v33  ;;  %v994_v38 = vpop.permute.xlu1 %993  ;;  %v7692_v6 = vld [vmem:[#allocation3 + $0x18] sm:$0xff] }
 0x43c   : > { %1083 = vst [vmem:[#allocation3 + $0x248] sm:$0xff] %v7551_v35  ;;  %v7557_v39 = vsel %vm10552_vm2, %v992_v13, %v994_v38  ;;  %vm10555_vm2 = vcmask 744448  }
 0x43d   : > { %1001 = vst [vmem:[#allocation3 + $0x1d0] sm:$0xff] %v7557_v39  ;;  %v7574_v55 = vsel %vm10555_vm2, %v1086_v43, %v1088_v7  ;;  %vm10558_vm2 = vcmask 1039360   ;;  %v7620_v31 = vld [vmem:[#allocation3 + $0x220] sm:$0xff] }
 0x43e   : > { %1002 = vst.msk [vmem:[#allocation3 + $0x1d8] sm:$0xff] %vm358_vm1, %v994_v38  ;;  %v7599_v28 = vsel %vm10558_vm2, %v990_v18, %v992_v13  ;;  %vm10561_vm2 = vcmask 736256  }
 0x442   : > { %v1102_v42 = vpop.permute.xlu0 %1101  ;;  %v7561_v46 = vld [vmem:[#allocation3 + $0x250] sm:$0xff] }
 0x443   : > { %v7564_v47 = vsel %vm10553_vm15, %v1100_v58, %v1102_v42  ;;  %v7567_v50 = vsel %vm10554_vm11, %v1102_v42, %v1104_v12  ;;  %1326 = vmatpush.msra.mxu3 %v7561_v46  ;;  %v1207_v51 = vpop.permute.xlu1 %1206  ;;  %vm10556_vm15 = vcmask 900096   ;;  %vm10557_vm11 = vcmask 1031168  }
 0x444   : > { %1111 = vst [vmem:[#allocation3 + $0x278] sm:$0xff] %v7567_v50  ;;  %1244 = vmatpush.msrb.mxu2 %v7564_v47  ;;  %v1213_v54 = vsel %vm1212_vm3, %v1207_v51, %v1209_v41  ;;  %v7590_v10 = vsel %vm10556_vm15, %v1024_v24, %v1026_v30  ;;  %v7595_v15 = vsel %vm10557_vm11, %v1004_v44, %v7527_v61  ;;  %vm10559_vm15 = vmmov %vm10557_vm11  ;;  %vm10480_vm11 = vcmask 719872   ;;  %v7657_v24 = vld [vmem:[#allocation3 + $0x150] sm:$0xff]  ;;  %v7674_v30 = vld [vmem:[#allocation3 + $0xa8] sm:$0xff] }
 0x445   : > { %1235 = vmatmul.f32.vlgmr.msrb.gmra.mxu3 %v1213_v54  ;;  %1275 = vmatmul.f32.vlgmr.msrb.gmra.mxu1 %v1213_v54  ;;  %v7637_v7 = vld [vmem:[#allocation3 + $0x1d8] sm:$0xff]  ;;  %v7677_v44 = vld [vmem:[#allocation3 + $0x90] sm:$0xff] }
 0x446   : > { %1245 = vmatpush.msrb.mxu2 %v7574_v55  ;;  %1315 = vmatmul.f32.vlgmr.msra.gmra.mxu0 %v1213_v54 }
 0x448   : > { %1246 = vmatpush.msrb.mxu2 %v7578_v48 }
 0x44a   : > { %v1054_v52 = vpop.permute.xlu0 %1053 }
 0x44b   : > { %v7582_v63 = vsel %vm435_vm5, %v1052_v59, %v1054_v52  ;;  %v6828_v59 = vmov 2  }
 0x44c   : > { %1247 = vmatpush.msrb.mxu2 %v7582_v63  ;;  %6611 = vset.pattern.permute.xlu2 %v6828_v59 }
 0x44e   : > { %1248 = vmatpush.msrb.mxu2 %v7586_v3 }
 0x450   : > { %1249 = vmatpush.msrb.mxu2 %v7590_v10 }
 0x452   : > { %v1056_v2 = vpop.permute.xlu0 %1055  ;;  %1250 = vmatpush.msrb.mxu2 %v7595_v15 }
 0x453   : > { %v7602_v45 = vsel %vm435_vm5, %v1054_v52, %v1056_v2  ;;  %1064 = vst.msk [vmem:[#allocation3 + $0x238] sm:$0xff] %vm358_vm1, %v1056_v2 }
 0x454   : > { %1063 = vst [vmem:[#allocation3 + $0x230] sm:$0xff] %v7602_v45  ;;  %1251 = vmatpush.msrb.mxu2 %v7599_v28 }
 0x456   : > { %1252 = vmatpush.msrb.mxu2 %v7470_v5 }
 0x458   : > { %1253 = vmatpush.msrb.mxu2 %v7349_v60  ;;  %v7624_v60 = vld [vmem:[#allocation3 + $0x208] sm:$0xff] }
 0x45a   : > { %v1008_v8 = vpop.permute.xlu0 %1007  ;;  %v7609_v53 = vld [vmem:[#allocation3 + $0x238] sm:$0xff]  ;;  %1254 = vmatpush.msrb.mxu2 %v7354_v0 }
 0x45b   : > { %v7614_v36 = vsel %vm10559_vm15, %v7527_v61, %v1008_v8  ;;  %1016 = vst.msk [vmem:[#allocation3 + $0x1f0] sm:$0xff] %vm358_vm1, %v1008_v8  ;;  %1327 = vmatpush.msra.mxu3 %v7609_v53  ;;  %v7629_v0 = vld [vmem:[#allocation9] sm:$0xff]  ;;  %v7689_v61 = vld [vmem:[#allocation3 + $0x30] sm:$0xff]  ;;  %vm10562_vm15 = vcmask 744448  }
 0x45c   : > { %1284 = vmatpush.msra.mxu2 %v7567_v50  ;;  %1015 = vst [vmem:[#allocation3 + $0x1e8] sm:$0xff] %v7614_v36  ;;  %1200 = vperm.xlu2 %6611, %v7629_v0   ;;  %vm10564_vm9 = vmmov %vm10562_vm15 }
 0x45d   : > { %1328 = vmatpush.msra.mxu3 %v7620_v31 }
 0x45e   : > { %1285 = vmatpush.msra.mxu2 %v7533_v23 }
 0x45f   : > { %1329 = vmatpush.msra.mxu3 %v7624_v60 }
 0x460   : > { %1286 = vmatpush.msra.mxu2 %v7551_v35 }
 0x462   : > { %1287 = vmatpush.msra.mxu2 %v7602_v45  ;;  %v1211_v49 = vpop.permute.xlu0 %1210  ;;  %v7631_v58 = vld [vmem:[#allocation3 + $0x1f0] sm:$0xff] }
 0x463   : > { %v1214_v43 = vsel %vm1212_vm3, %v1209_v41, %v1211_v49  ;;  %1330 = vmatpush.msra.mxu3 %v7631_v58  ;;  %vm1624_vm3 = vcmask 654336  }
 0x464   : > { %1288 = vmatpush.msra.mxu2 %v7539_v27 }
 0x465   : > { %6460 = vmatmul.msk.f32.vlgmr.msrb.gmra.mxu2 %vm10480_vm11, %v1214_v43  ;;  %1331 = vmatpush.msra.mxu3 %v7637_v7 }
 0x466   : > { %1289 = vmatpush.msra.mxu2 %v7542_v29 }
 0x467   : > { %1332 = vmatpush.msra.mxu3 %v7642_v11 }
 0x468   : > { %1290 = vmatpush.msra.mxu2 %v7614_v36 }
 0x469   : > { %1333 = vmatpush.msra.mxu3 %v7397_v16  ;;  %v7660_v16 = vld [vmem:[#allocation3 + $0x138] sm:$0xff] }
 0x46a   : > { %1291 = vmatpush.msra.mxu2 %v7557_v39 }
 0x46b   : > { %1334 = vmatpush.msra.mxu3 %v7404_v62  ;;  %v7663_v62 = vld [vmem:[#allocation3 + $0x120] sm:$0xff] }
 0x46c   : > { %1292 = vmatpush.msra.mxu2 %v7488_v56  ;;  %6462 = vmatmul.msk.f32.vlgmr.msra.gmra.mxu3 %vm10480_vm11, %v1214_v43 }
 0x46e   : > { %1293 = vmatpush.msra.mxu2 %v7374_v40  ;;  %v7668_v40 = vld [vmem:[#allocation3 + $0xd8] sm:$0xff] }
 0x470   : > { %1294 = vmatpush.msra.mxu2 %v7380_v25  ;;  %v7671_v25 = vld [vmem:[#allocation3 + $0xc0] sm:$0xff] }
 0x471   : > { %6461 = vmatmul.msk.f32.vlgmr.msra.gmra.mxu2 %vm10480_vm11, %v1214_v43 }
 0x472   : > { %1632 = vmatpush.msrb.mxu2 %v7654_v17 }
 0x474   : > { %1633 = vmatpush.msrb.mxu2 %v7657_v24 }
 0x476   : > { %1634 = vmatpush.msrb.mxu2 %v7660_v16 }
 0x478   : > { %1635 = vmatpush.msrb.mxu2 %v7663_v62 }
 0x47a   : > { %1636 = vmatpush.msrb.mxu2 %v7298_v20  ;;  %v7683_v20 = vld [vmem:[#allocation3 + $0x60] sm:$0xff] }
 0x47c   : > { %1637 = vmatpush.msrb.mxu2 %v7311_v37  ;;  %v7686_v37 = vld [vmem:[#allocation3 + $0x48] sm:$0xff] }
 0x47e   : > { %1638 = vmatpush.msrb.mxu2 %v7668_v40 }
 0x480   : > { %1639 = vmatpush.msrb.mxu2 %v7671_v25 }
 0x482   : > { %1640 = vmatpush.msrb.mxu2 %v7674_v30 }
 0x484   : > { %1641 = vmatpush.msrb.mxu2 %v7677_v44 }
 0x486   : > { %1642 = vmatpush.msrb.mxu2 %v7680_v1 }
 0x488   : > { %1643 = vmatpush.msrb.mxu2 %v7683_v20 }
 0x48a   : > { %1644 = vmatpush.msrb.mxu2 %v7686_v37 }
 0x48c   : > { %1645 = vmatpush.msrb.mxu2 %v7689_v61 }
 0x48e   : > { %1646 = vmatpush.msrb.mxu2 %v7692_v6 }
 0x490   : > { %1647 = vmatpush.msrb.mxu2 %v7524_v9 }
 0x4b6   : > { %v1201_v13 = vpop.permute.xlu2 %1200 }
 0x4c2   : > { %v1276_v51 = vpop.f32.mrf.mxu1 }
 0x4c3   : > { %v1316_v32 = vpop.f32.mrf.mxu0  ;;  %v1277_v8 = vadd.f32 %v1276_v51, %v1201_v13 }
 0x4c4   : > { %v1317_v41 = vadd.f32 %v1316_v32, %v1201_v13 }
 0x4c8   : > { %v1236_v12 = vpop.f32.mrf.mxu3 }
 0x4c9   : > { %v1237_v18 = vadd.f32 %v1236_v12, %v1201_v13 }
 0x4e8   : > { %v1256_v19 = vpop.f32.mrf.mxu2 }
 0x4e9   : > { %v1257_v22 = vadd.f32 %v1256_v19, %v1237_v18 }
 0x4eb   : > { %v1339_v26 = vmul.f32 0.2, %v1257_v22 }
 0x4ed   : > { %v1342_v38 = vmax.f32 %v1257_v22, %v1339_v26  ;;  %v1499_v22 = vld [vmem:[#allocation7 + $0x20] sm:$0xff] }
 0x4ee   : > { %v6612_v26 = vpack.i.bf16 %v1499_v22, %v7521_v57 }
 0x4ef   : > { %v1345_v42 = vsel %vm7185_vm12, %v1342_v38, 0.0  ;;  %v1336_v54 = vpop.f32.mrf.mxu3 }
 0x4f0   : > { %1351 = vrot.lane.b32.xlu0 %v1345_v42, %s6823_s29  ;;  %v1337_v52 = vadd.f32 %v1336_v54, %v1317_v41  ;;  %v7753_v54 = vld [vmem:[#allocation7 + $0x28] sm:$0xff] }
 0x4f1   : > { %10560 = vst [vmem:[#allocation17_spill] sm:$0xff] %v7753_v54 }
 0x4f2   : > { %v1341_v2 = vmul.f32 0.2, %v1337_v52 }
 0x4f4   : > { %v1296_v9 = vpop.f32.mrf.mxu2  ;;  %v1344_v49 = vmax.f32 %v1337_v52, %v1341_v2 }
 0x4f5   : > { %v1297_v59 = vadd.f32 %v1296_v9, %v1277_v8 }
 0x4f6   : > { %v1347_v43 = vsel %vm7199_vm7, %v1344_v49, 0.0 }
 0x4f7   : > { %v1340_v12 = vmul.f32 0.2, %v1297_v59  ;;  %1355 = vrot.lane.b32.xlu2 %v1347_v43, %s6823_s29 }
 0x4f9   : > { %v1343_v18 = vmax.f32 %v1297_v59, %v1340_v12 }
 0x4fb   : > { %v1346_v19 = vsel %vm7189_vm0, %v1343_v18, 0.0 }
 0x4fc   : > { %1353 = vrot.lane.b32.xlu1 %v1346_v19, %s6823_s29 }
 0x504   : > { %6613 = vrot.lane.b32.xlu1 %v6612_v26, %s6829_s6 }
 0x551   : > { %v1356_v38 = vpop.permute.xlu2 %1355 }
 0x562   : > { %v1352_v13 = vpop.permute.xlu0 %1351 }
 0x563   : > { %1362 = vst.msk [vmem:[#allocation2 + $0x48] sm:$0xff] %vm622_vm10, %v1352_v13 }
 0x56a   : > { %v7708_v32 = vld [vmem:[#allocation2 + $0x48] sm:$0xff] }
 0x56b   : > { %1470 = vrot.lane.b32.xlu2 %v7708_v32, %s6815_s18  ;;  %1484 = vrot.lane.b32.xlu0 %v7708_v32, %s6814_s23 }
 0x56c   : > { %1422 = vrot.lane.b32.xlu1 %v7708_v32, %s6818_s25 }
 0x56e   : > { %v1354_v41 = vpop.permute.xlu1 %1353 }
 0x56f   : > { %v1358_v57 = vsel %vm336_vm8, %v1354_v41, %v1356_v38  ;;  %v7723_v42 = vsel %vm336_vm8, %v1352_v13, %v1354_v41 }
 0x570   : > { %1364 = vst.msk [vmem:[#allocation2 + $0x58] sm:$0xff] %vm625_vm14, %v1358_v57 }
 0x573   : > { %1456 = vrot.lane.b32.xlu0 %v7708_v32, %s6816_s17  ;;  %1436 = vrot.lane.b32.xlu2 %v7708_v32, %s6817_s24 }
 0x574   : > { %1486 = vrot.lane.b32.xlu1 %v7723_v42, %s6814_s23 }
 0x576   : > { %v7760_v52 = vpop.permute.xlu1 %6613 }
 0x577   : > { %v1404_v51 = vld [vmem:[#allocation2 + $0x58] sm:$0xff]  ;;  %v10471_v2 = vunpack.i.h.bf16 %v7760_v52  ;;  %v6615_v8 = vunpack.i.l.bf16 %v7760_v52 }
 0x578   : > { %1370 = vst.msk [vmem:[#allocation3 + $0x298] sm:$0xff] %vm358_vm1, %v1404_v51 }
 0x579   : > { %v7767_v49 = vsel %vm1624_vm3, %v6615_v8, %v10471_v2 }
 0x57a   : > { %1648 = vmatmul.f32.vlgmr.msrb.gmra.mxu2 %v7767_v49  ;;  %1708 = vmatmul.f32.vlgmr.msrb.gmra.mxu0 %v7767_v49 }
 0x57b   : > { %1408 = vrot.lane.b32.xlu0 %v7708_v32, %s6819_s26  ;;  %1388 = vrot.lane.b32.xlu2 %v7708_v32, %s6820_s27 }
 0x57c   : > { %1458 = vrot.lane.b32.xlu1 %v7723_v42, %s6816_s17 }
 0x583   : > { %1472 = vrot.lane.b32.xlu0 %v7723_v42, %s6815_s18  ;;  %1424 = vrot.lane.b32.xlu2 %v7723_v42, %s6818_s25 }
 0x584   : > { %1410 = vrot.lane.b32.xlu1 %v7723_v42, %s6819_s26 }
 0x58b   : > { %1438 = vrot.lane.b32.xlu0 %v7723_v42, %s6817_s24  ;;  %1426 = vrot.lane.b32.xlu2 %v1404_v51, %s6818_s25 }
 0x58c   : > { %1412 = vrot.lane.b32.xlu1 %v1404_v51, %s6819_s26 }
 0x593   : > { %1392 = vrot.lane.b32.xlu2 %v1404_v51, %s6820_s27  ;;  %1390 = vrot.lane.b32.xlu0 %v7723_v42, %s6820_s27 }
 0x594   : > { %1376 = vrot.lane.b32.xlu1 %v7723_v42, %s6821_s28 }
 0x59b   : > { %1378 = vrot.lane.b32.xlu2 %v1404_v51, %s6821_s28  ;;  %1374 = vrot.lane.b32.xlu0 %v7708_v32, %s6821_s28 }
 0x59c   : > { %1488 = vrot.lane.b32.xlu1 %v1404_v51, %s6814_s23 }
 0x5a3   : > { %1474 = vrot.lane.b32.xlu2 %v1404_v51, %s6815_s18  ;;  %1622 = vrot.lane.b32.xlu0 %v7753_v54, %s6829_s6  ;;  %s6840_s6 = smov 120  }
 0x5a4   : > { %1440 = vrot.lane.b32.xlu1 %v1404_v51, %s6817_s24 }
 0x5ab   : > { %1460 = vrot.lane.b32.xlu0 %v1404_v51, %s6816_s17  ;;  %v6830_v51 = vmov 3  }
 0x5ac   : > { %6617 = vset.pattern.permute.xlu2 %v6830_v51 }
 0x5ad   : > { %1612 = vperm.xlu2 %6617, %v7629_v0  }
 0x5c5   : > { %v1471_v9 = vpop.permute.xlu2 %1470 }
 0x5cd   : > { %v1437_v59 = vpop.permute.xlu2 %1436 }
 0x5d5   : > { %v1389_v43 = vpop.permute.xlu2 %1388 }
 0x5dd   : > { %v1485_v12 = vpop.permute.xlu0 %1484  ;;  %v1425_v18 = vpop.permute.xlu2 %1424 }
 0x5de   : > { %v1423_v19 = vpop.permute.xlu1 %1422 }
 0x5df   : > { %v7772_v22 = vsel %vm420_vm6, %v1423_v19, %v1425_v18 }
 0x5e0   : > { %1652 = vmatpush.msra.mxu1 %v7772_v22 }
 0x5e5   : > { %v1457_v26 = vpop.permute.xlu0 %1456  ;;  %v1427_v13 = vpop.permute.xlu2 %1426 }
 0x5e6   : > { %v7776_v38 = vsel %vm420_vm6, %v1425_v18, %v1427_v13  ;;  %1435 = vst.msk [vmem:[#allocation3 + $0x2f8] sm:$0xff] %vm358_vm1, %v1427_v13  ;;  %v1487_v41 = vpop.permute.xlu1 %1486 }
 0x5e7   : > { %1712 = vmatpush.msrb.mxu3 %v7776_v38  ;;  %v1490_v57 = vsel %vm10561_vm2, %v1485_v12, %v1487_v41  ;;  %vm10563_vm2 = vcmask 900096  }
 0x5e8   : > { %1495 = vst [vmem:[#allocation3 + $0x348] sm:$0xff] %v1490_v57  ;;  %1684 = vmatpush.msra.mxu2 %v1490_v57 }
 0x5ed   : > { %v1409_v8 = vpop.permute.xlu0 %1408  ;;  %v1393_v19 = vpop.permute.xlu2 %1392 }
 0x5ee   : > { %1401 = vst.msk [vmem:[#allocation3 + $0x2c8] sm:$0xff] %vm358_vm1, %v1393_v19  ;;  %v7783_v2 = vpop.permute.xlu1 %1458 }
 0x5ef   : > { %v1462_v18 = vsel %vm456_vm4, %v1457_v26, %v7783_v2 }
 0x5f0   : > { %1467 = vst [vmem:[#allocation3 + $0x318] sm:$0xff] %v1462_v18 }
 0x5f5   : > { %v1473_v13 = vpop.permute.xlu0 %1472  ;;  %v1379_v54 = vpop.permute.xlu2 %1378 }
 0x5f6   : > { %v1476_v12 = vsel %vm10562_vm15, %v1471_v9, %v1473_v13  ;;  %1387 = vst.msk [vmem:[#allocation3 + $0x2b0] sm:$0xff] %vm358_vm1, %v1379_v54  ;;  %v1411_v51 = vpop.permute.xlu1 %1410  ;;  %vm10565_vm15 = vmmov %vm10563_vm2 }
 0x5f7   : > { %1481 = vst [vmem:[#allocation3 + $0x330] sm:$0xff] %v1476_v12  ;;  %1685 = vmatpush.msra.mxu2 %v1476_v12  ;;  %v7790_v0 = vsel %vm10563_vm2, %v1409_v8, %v1411_v51  ;;  %vm10566_vm2 = vcmask 1031168  }
 0x5f8   : > { %1653 = vmatpush.msra.mxu1 %v7790_v0  ;;  %vm10567_vm11 = vmmov %vm10566_vm2 }
 0x5f9   : > { %1686 = vmatpush.msra.mxu2 %v1462_v18 }
 0x5fd   : > { %v1439_v57 = vpop.permute.xlu0 %1438  ;;  %v1475_v34 = vpop.permute.xlu2 %1474 }
 0x5fe   : > { %v1442_v26 = vsel %vm435_vm5, %v1437_v59, %v1439_v57  ;;  %v1477_v14 = vsel %vm10564_vm9, %v1473_v13, %v1475_v34  ;;  %1483 = vst.msk [vmem:[#allocation3 + $0x340] sm:$0xff] %vm358_vm1, %v1475_v34  ;;  %v1413_v9 = vpop.permute.xlu1 %1412  ;;  %vm10568_vm9 = vcmask 1039360  }
 0x5ff   : > { %1447 = vst [vmem:[#allocation3 + $0x300] sm:$0xff] %v1442_v26  ;;  %1687 = vmatpush.msra.mxu2 %v1442_v26  ;;  %v7797_v4 = vsel %vm10565_vm15, %v1411_v51, %v1413_v9  ;;  %vm10569_vm15 = vmmov %vm10568_vm9 }
 0x600   : > { %1482 = vst [vmem:[#allocation3 + $0x338] sm:$0xff] %v1477_v14  ;;  %1713 = vmatpush.msrb.mxu3 %v7797_v4 }
 0x601   : > { %1421 = vst.msk [vmem:[#allocation3 + $0x2e0] sm:$0xff] %vm358_vm1, %v1413_v9  ;;  %v7867_v9 = vld [vmem:[#allocation3 + $0x2c8] sm:$0xff] }
 0x605   : > { %v1391_v8 = vpop.permute.xlu0 %1390 }
 0x606   : > { %v7802_v18 = vsel %vm10566_vm2, %v1389_v43, %v1391_v8  ;;  %v7805_v59 = vsel %vm10567_vm11, %v1391_v8, %v1393_v19  ;;  %v1377_v13 = vpop.permute.xlu1 %1376  ;;  %vm10570_vm11 = vcmask 736256   ;;  %vm1629_vm2 = vcmask 261120   ;;  %v7874_v8 = vld [vmem:[#allocation3 + $0x2b0] sm:$0xff] }
 0x607   : > { %1654 = vmatpush.msra.mxu1 %v7802_v18  ;;  %1714 = vmatpush.msrb.mxu3 %v7805_v59  ;;  %v7810_v34 = vsel %vm10568_vm9, %v1377_v13, %v1379_v54  ;;  %vm10577_vm9 = vcmask 744448  }
 0x609   : > { %1715 = vmatpush.msrb.mxu3 %v7810_v34 }
 0x60b   : > { %1716 = vmatpush.msrb.mxu3 %v7723_v42 }
 0x60d   : > { %v1375_v12 = vpop.permute.xlu0 %1374  ;;  %1717 = vmatpush.msrb.mxu3 %v7567_v50 }
 0x60e   : > { %v7816_v43 = vsel %vm10569_vm15, %v1375_v12, %v1377_v13  ;;  %v1489_v19 = vpop.permute.xlu1 %1488  ;;  %v7879_v13 = vld [vmem:[#allocation3 + $0x178] sm:$0xff]  ;;  %v7886_v12 = vld [vmem:[#allocation3 + $0x160] sm:$0xff] }
 0x60f   : > { %v1491_v51 = vsel %vm10570_vm11, %v1487_v41, %v1489_v19  ;;  %1497 = vst.msk [vmem:[#allocation3 + $0x358] sm:$0xff] %vm358_vm1, %v1489_v19  ;;  %1655 = vmatpush.msra.mxu1 %v7816_v43  ;;  %1718 = vmatpush.msrb.mxu3 %v7533_v23  ;;  %v7892_v19 = vld [vmem:[#allocation3 + $0x148] sm:$0xff] }
 0x610   : > { %1496 = vst [vmem:[#allocation3 + $0x350] sm:$0xff] %v1491_v51  ;;  %1744 = vmatpush.msrb.mxu2 %v1491_v51  ;;  %v1976_v51 = vld [vmem:[#allocation3 + $0x8] sm:$0xff] }
 0x611   : > { %1656 = vmatpush.msra.mxu1 %v7708_v32  ;;  %1719 = vmatpush.msrb.mxu3 %v7551_v35 }
 0x612   : > { %1745 = vmatpush.msrb.mxu2 %v1477_v14  ;;  %v1605_v14 = vld [vmem:[#allocation3 + $0x340] sm:$0xff] }
 0x613   : > { %1657 = vmatpush.msra.mxu1 %v7564_v47  ;;  %1720 = vmatpush.msrb.mxu3 %v7602_v45  ;;  %v7850_v45 = vld [vmem:[#allocation3 + $0x2f8] sm:$0xff] }
 0x615   : > { %v1623_v50 = vpop.permute.xlu0 %1622  ;;  %1658 = vmatpush.msra.mxu1 %v7574_v55  ;;  %1721 = vmatpush.msrb.mxu3 %v7539_v27 }
 0x616   : > { %v1441_v54 = vpop.permute.xlu1 %1440  ;;  %6463 = vmatmul.msk.f32.vlgmr.msra.gmra.mxu2 %vm1629_vm2, %v1623_v50  ;;  %v1608_v23 = vld [vmem:[#allocation3 + $0x358] sm:$0xff] }
 0x617   : > { %v1443_v41 = vsel %vm435_vm5, %v1439_v57, %v1441_v54  ;;  %1449 = vst.msk [vmem:[#allocation3 + $0x310] sm:$0xff] %vm358_vm1, %v1441_v54  ;;  %1804 = vmatpush.msra.mxu0 %v1608_v23  ;;  %1659 = vmatpush.msra.mxu1 %v7578_v48  ;;  %v7862_v57 = vld [vmem:[#allocation3 + $0x198] sm:$0xff]  ;;  %v2033_v54 = vld [vmem:[#allocation3 + $0x1d0] sm:$0xff] }
 0x618   : > { %1448 = vst [vmem:[#allocation3 + $0x308] sm:$0xff] %v1443_v41  ;;  %1722 = vmatpush.msrb.mxu3 %v7542_v29  ;;  %v7843_v29 = vld [vmem:[#allocation3 + $0x1a0] sm:$0xff]  ;;  %v2030_v23 = vld [vmem:[#allocation3 + $0x1b8] sm:$0xff] }
 0x619   : > { %1805 = vmatpush.msra.mxu0 %v1605_v14  ;;  %1660 = vmatpush.msra.mxu1 %v7582_v63  ;;  %v2052_v14 = vld [vmem:[#allocation3 + $0x268] sm:$0xff] }
 0x61a   : > { %1723 = vmatpush.msrb.mxu3 %v7614_v36 }
 0x61b   : > { %1661 = vmatpush.msra.mxu1 %v7586_v3 }
 0x61c   : > { %1724 = vmatpush.msrb.mxu3 %v7557_v39  ;;  %v7847_v39 = vld [vmem:[#allocation3 + $0x188] sm:$0xff] }
 0x61d   : > { %v1461_v27 = vpop.permute.xlu0 %1460  ;;  %1662 = vmatpush.msra.mxu1 %v7590_v10 }
 0x61e   : > { %v1463_v35 = vsel %vm456_vm4, %v7783_v2, %v1461_v27  ;;  %1469 = vst.msk [vmem:[#allocation3 + $0x328] sm:$0xff] %vm358_vm1, %v1461_v27  ;;  %1725 = vmatpush.msrb.mxu3 %v7488_v56  ;;  %v10571_v56 = vunpack.i.h.bf16 %v7760_v52  ;;  %v7860_v2 = vld [vmem:[#allocation3 + $0x2e0] sm:$0xff]  ;;  %v1599_v52 = vld [vmem:[#allocation3 + $0x310] sm:$0xff] }
 0x61f   : > { %1468 = vst [vmem:[#allocation3 + $0x320] sm:$0xff] %v1463_v35  ;;  %1746 = vmatpush.msrb.mxu2 %v1463_v35  ;;  %1663 = vmatpush.msra.mxu1 %v7595_v15  ;;  %v2049_v27 = vld [vmem:[#allocation3 + $0x250] sm:$0xff]  ;;  %v2046_v35 = vld [vmem:[#allocation3 + $0x238] sm:$0xff] }
 0x620   : > { %1726 = vmatpush.msrb.mxu3 %v7843_v29  ;;  %v7858_v36 = vsel %vm1624_vm3, %v10571_v56, %v1623_v50  ;;  %v2040_v56 = vld [vmem:[#allocation3 + $0x208] sm:$0xff]  ;;  %vm10576_vm3 = vmmov %vm10570_vm11 }
 0x621   : > { %1747 = vmatpush.msrb.mxu2 %v1443_v41  ;;  %1664 = vmatpush.msra.mxu1 %v7599_v28  ;;  %v2055_v41 = vld [vmem:[#allocation3 + $0x280] sm:$0xff]  ;;  %vm10578_vm15 = vmmov %vm10576_vm3 }
 0x622   : > { %6464 = vmatmul.msk.f32.vlgmr.msrb.gmra.mxu2 %vm1629_vm2, %v1623_v50  ;;  %1727 = vmatpush.msrb.mxu3 %v7847_v39  ;;  %vm10579_vm11 = vmmov %vm10577_vm9 }
 0x623   : > { %1772 = vmatpush.msra.mxu2 %v7850_v45  ;;  %1665 = vmatpush.msra.mxu1 %v7470_v5  ;;  %v7869_v5 = vld [vmem:[#allocation3 + $0x180] sm:$0xff] }
 0x624   : > { %1728 = vmatmul.f32.vlgmr.msrb.gmra.mxu3 %v7858_v36 }
 0x625   : > { %v1602_v26 = vld [vmem:[#allocation3 + $0x328] sm:$0xff]  ;;  %1773 = vmatpush.msra.mxu2 %v7860_v2  ;;  %1666 = vmatpush.msra.mxu1 %v7862_v57 }
 0x626   : > { %1806 = vmatpush.msra.mxu0 %v1602_v26  ;;  %2137 = vmatpush.msra.mxu3 %v7654_v17  ;;  %v7883_v17 = vld [vmem:[#allocation3 + $0x298] sm:$0xff]  ;;  %v1613_v26 = vpop.permute.xlu2 %1612 }
 0x627   : > { %1774 = vmatpush.msra.mxu2 %v7867_v9  ;;  %1667 = vmatpush.msra.mxu1 %v7869_v5 }
 0x628   : > { %1807 = vmatpush.msra.mxu0 %v1599_v52  ;;  %1668 = vmatmul.f32.vlgmr.msra.gmra.mxu1 %v7858_v36 }
 0x629   : > { %6465 = vmatmul.msk.f32.vlgmr.msra.gmra.mxu0 %vm1629_vm2, %v1623_v50  ;;  %1775 = vmatpush.msra.mxu2 %v7874_v8  ;;  %v2036_v50 = vld [vmem:[#allocation3 + $0x1e8] sm:$0xff] }
 0x62a   : > { %2157 = vmatpush.msrb.mxu0 %v7772_v22  ;;  %1752 = vmatpush.msrb.mxu1 %v7879_v13  ;;  %v7898_v22 = vld [vmem:[#allocation3 + $0x130] sm:$0xff] }
 0x62b   : > { %1776 = vmatpush.msra.mxu2 %v7883_v17  ;;  %2138 = vmatpush.msra.mxu3 %v7657_v24  ;;  %v2008_v24 = vld [vmem:[#allocation3 + $0x108] sm:$0xff] }
 0x62c   : > { %2158 = vmatpush.msrb.mxu0 %v7790_v0  ;;  %1753 = vmatpush.msrb.mxu1 %v7886_v12  ;;  %v2045_v0 = vld [vmem:[#allocation3 + $0x230] sm:$0xff] }
 0x62d   : > { %1777 = vmatpush.msra.mxu2 %v7530_v21  ;;  %2139 = vmatpush.msra.mxu3 %v7660_v16  ;;  %v7904_v21 = vld [vmem:[#allocation3 + $0x118] sm:$0xff]  ;;  %v2005_v16 = vld [vmem:[#allocation3 + $0xf0] sm:$0xff] }
 0x62e   : > { %2159 = vmatpush.msrb.mxu0 %v7802_v18  ;;  %1754 = vmatpush.msrb.mxu1 %v7892_v19  ;;  %v1985_v18 = vld [vmem:[#allocation3 + $0x50] sm:$0xff] }
 0x62f   : > { %1778 = vmatpush.msra.mxu2 %v7548_v33  ;;  %2140 = vmatpush.msra.mxu3 %v7663_v62  ;;  %v7909_v33 = vld [vmem:[#allocation3 + $0x100] sm:$0xff]  ;;  %v7965_v62 = vld [vmem:[#allocation3 + $0x28] sm:$0xff] }
 0x630   : > { %2160 = vmatpush.msrb.mxu0 %v7816_v43  ;;  %1755 = vmatpush.msrb.mxu1 %v7898_v22  ;;  %v1979_v43 = vld [vmem:[#allocation3 + $0x20] sm:$0xff] }
 0x631   : > { %1779 = vmatpush.msra.mxu2 %v7561_v46  ;;  %2141 = vmatpush.msra.mxu3 %v2008_v24  ;;  %v7914_v46 = vld [vmem:[#allocation3 + $0xe8] sm:$0xff] }
 0x632   : > { %2161 = vmatpush.msrb.mxu0 %v7708_v32  ;;  %1756 = vmatpush.msrb.mxu1 %v7904_v21  ;;  %v2051_v32 = vld [vmem:[#allocation3 + $0x260] sm:$0xff] }
 0x633   : > { %1780 = vmatpush.msra.mxu2 %v7609_v53  ;;  %2142 = vmatpush.msra.mxu3 %v2005_v16  ;;  %v7920_v53 = vld [vmem:[#allocation3 + $0xd0] sm:$0xff] }
 0x634   : > { %2162 = vmatpush.msrb.mxu0 %v7564_v47  ;;  %1757 = vmatpush.msrb.mxu1 %v7909_v33  ;;  %v7926_v47 = vld [vmem:[#allocation3 + $0xb8] sm:$0xff] }
 0x635   : > { %1781 = vmatpush.msra.mxu2 %v7620_v31  ;;  %2143 = vmatpush.msra.mxu3 %v7668_v40  ;;  %v7946_v31 = vld [vmem:[#allocation3 + $0x70] sm:$0xff] }
 0x636   : > { %2163 = vmatpush.msrb.mxu0 %v7574_v55  ;;  %1758 = vmatpush.msrb.mxu1 %v7914_v46  ;;  %v7932_v55 = vld [vmem:[#allocation3 + $0xa0] sm:$0xff]  ;;  %v7968_v40 = vld [vmem:[#allocation3 + $0x10] sm:$0xff] }
 0x637   : > { %1782 = vmatpush.msra.mxu2 %v7624_v60  ;;  %2144 = vmatpush.msra.mxu3 %v7671_v25  ;;  %v7957_v60 = vld [vmem:[#allocation3 + $0x58] sm:$0xff]  ;;  %v2012_v25 = vld [vmem:[#allocation3 + $0x128] sm:$0xff] }
 0x638   : > { %2164 = vmatpush.msrb.mxu0 %v7578_v48  ;;  %1759 = vmatpush.msrb.mxu1 %v7920_v53  ;;  %v7938_v48 = vld [vmem:[#allocation3 + $0x88] sm:$0xff] }
 0x639   : > { %1783 = vmatpush.msra.mxu2 %v7631_v58  ;;  %2145 = vmatpush.msra.mxu3 %v7674_v30  ;;  %v2029_v58 = vld [vmem:[#allocation3 + $0x1b0] sm:$0xff] }
 0x63a   : > { %2165 = vmatpush.msrb.mxu0 %v7582_v63  ;;  %1760 = vmatpush.msrb.mxu1 %v7926_v47  ;;  %v7943_v63 = vld [vmem:[#allocation3 + $0x1a8] sm:$0xff]  ;;  %v2009_v30 = vld [vmem:[#allocation3 + $0x110] sm:$0xff] }
 0x63b   : > { %1784 = vmatpush.msra.mxu2 %v7637_v7  ;;  %2146 = vmatpush.msra.mxu3 %v7677_v44  ;;  %v7960_v7 = vld [vmem:[#allocation3 + $0x40] sm:$0xff]  ;;  %v2006_v44 = vld [vmem:[#allocation3 + $0xf8] sm:$0xff] }
 0x63c   : > { %2166 = vmatpush.msrb.mxu0 %v7586_v3  ;;  %1761 = vmatpush.msrb.mxu1 %v7932_v55  ;;  %v7951_v3 = vld [vmem:[#allocation3 + $0x190] sm:$0xff] }
 0x63d   : > { %1785 = vmatpush.msra.mxu2 %v7642_v11  ;;  %2147 = vmatpush.msra.mxu3 %v7680_v1  ;;  %v1975_v11 = vld [vmem:[#allocation3] sm:$0xff] }
 0x63e   : > { %2167 = vmatpush.msrb.mxu0 %v7590_v10  ;;  %1762 = vmatpush.msrb.mxu1 %v7938_v48  ;;  %v2021_v10 = vld [vmem:[#allocation3 + $0x170] sm:$0xff]  ;;  %v2003_v1 = vld [vmem:[#allocation3 + $0xe0] sm:$0xff] }
 0x63f   : > { %1786 = vmatpush.msra.mxu2 %v7943_v63  ;;  %2148 = vmatpush.msra.mxu3 %v7683_v20  ;;  %v2000_v20 = vld [vmem:[#allocation3 + $0xc8] sm:$0xff] }
 0x640   : > { %2168 = vmatpush.msrb.mxu0 %v7595_v15  ;;  %1763 = vmatpush.msrb.mxu1 %v7946_v31  ;;  %v2018_v15 = vld [vmem:[#allocation3 + $0x158] sm:$0xff] }
 0x641   : > { %1787 = vmatpush.msra.mxu2 %v7951_v3  ;;  %2149 = vmatpush.msra.mxu3 %v7686_v37  ;;  %v1997_v37 = vld [vmem:[#allocation3 + $0xb0] sm:$0xff] }
 0x642   : > { %2169 = vmatpush.msrb.mxu0 %v7599_v28  ;;  %1788 = vmatmul.f32.vlgmr.msra.gmra.mxu2 %v7858_v36  ;;  %v2015_v28 = vld [vmem:[#allocation3 + $0x140] sm:$0xff]  ;;  %v2037_v36 = vld [vmem:[#allocation3 + $0x1f0] sm:$0xff] }
 0x643   : > { %2197 = vmatpush.msrb.mxu2 %v2021_v10  ;;  %1764 = vmatpush.msrb.mxu1 %v7957_v60 }
 0x644   : > { %2170 = vmatpush.msrb.mxu0 %v2029_v58  ;;  %2150 = vmatpush.msra.mxu3 %v7689_v61  ;;  %v2054_v61 = vld [vmem:[#allocation3 + $0x278] sm:$0xff] }
 0x645   : > { %2198 = vmatpush.msrb.mxu2 %v2018_v15  ;;  %1765 = vmatpush.msrb.mxu1 %v7960_v7 }
 0x646   : > { %2171 = vmatpush.msrb.mxu0 %v7862_v57  ;;  %2151 = vmatpush.msra.mxu3 %v7692_v6  ;;  %v1994_v6 = vld [vmem:[#allocation3 + $0x98] sm:$0xff] }
 0x647   : > { %2199 = vmatpush.msrb.mxu2 %v2015_v28  ;;  %1766 = vmatpush.msrb.mxu1 %v7965_v62 }
 0x648   : > { %2172 = vmatpush.msrb.mxu0 %v7869_v5  ;;  %2152 = vmatpush.msra.mxu3 %v1975_v11 }
 0x649   : > { %2200 = vmatpush.msrb.mxu2 %v2012_v25  ;;  %1767 = vmatpush.msrb.mxu1 %v7968_v40 }
 0x64a   : > { %1768 = vmatmul.f32.vlgmr.msrb.gmra.mxu1 %v7767_v49  ;;  %2217 = vmatpush.msrb.mxu3 %v7776_v38  ;;  %v1991_v49 = vld [vmem:[#allocation3 + $0x80] sm:$0xff]  ;;  %v1988_v38 = vld [vmem:[#allocation3 + $0x68] sm:$0xff] }
 0x64b   : > { %2201 = vmatpush.msrb.mxu2 %v2009_v30 }
 0x64c   : > { %2218 = vmatpush.msrb.mxu3 %v7797_v4  ;;  %v2048_v4 = vld [vmem:[#allocation3 + $0x248] sm:$0xff] }
 0x64d   : > { %2202 = vmatpush.msrb.mxu2 %v2006_v44 }
 0x64e   : > { %2219 = vmatpush.msrb.mxu3 %v7805_v59  ;;  %v2042_v59 = vld [vmem:[#allocation3 + $0x218] sm:$0xff] }
 0x64f   : > { %2203 = vmatpush.msrb.mxu2 %v2003_v1 }
 0x650   : > { %2220 = vmatpush.msrb.mxu3 %v7810_v34  ;;  %v1982_v34 = vld [vmem:[#allocation3 + $0x38] sm:$0xff] }
 0x651   : > { %2204 = vmatpush.msrb.mxu2 %v2000_v20 }
 0x652   : > { %2221 = vmatpush.msrb.mxu3 %v7723_v42  ;;  %v2039_v42 = vld [vmem:[#allocation3 + $0x200] sm:$0xff] }
 0x653   : > { %2205 = vmatpush.msrb.mxu2 %v1997_v37 }
 0x654   : > { %2222 = vmatpush.msrb.mxu3 %v2054_v61 }
 0x655   : > { %2206 = vmatpush.msrb.mxu2 %v1994_v6 }
 0x656   : > { %2223 = vmatpush.msrb.mxu3 %v2051_v32 }
 0x657   : > { %2207 = vmatpush.msrb.mxu2 %v1991_v49 }
 0x658   : > { %2224 = vmatpush.msrb.mxu3 %v2048_v4 }
 0x659   : > { %2208 = vmatpush.msrb.mxu2 %v1988_v38 }
 0x65a   : > { %2225 = vmatpush.msrb.mxu3 %v2045_v0 }
 0x65b   : > { %2209 = vmatpush.msrb.mxu2 %v1985_v18 }
 0x65c   : > { %2226 = vmatpush.msrb.mxu3 %v2042_v59 }
 0x65d   : > { %2210 = vmatpush.msrb.mxu2 %v1982_v34 }
 0x65e   : > { %2227 = vmatpush.msrb.mxu3 %v2039_v42 }
 0x65f   : > { %2211 = vmatpush.msrb.mxu2 %v1979_v43 }
 0x660   : > { %2228 = vmatpush.msrb.mxu3 %v2036_v50 }
 0x661   : > { %2212 = vmatpush.msrb.mxu2 %v1976_v51 }
 0x662   : > { %2229 = vmatpush.msrb.mxu3 %v2033_v54 }
 0x663   : > { %2277 = vmatpush.msra.mxu2 %v7850_v45  ;;  %v2043_v45 = vld [vmem:[#allocation3 + $0x220] sm:$0xff] }
 0x664   : > { %2230 = vmatpush.msrb.mxu3 %v2030_v23  ;;  %v1972_v23 = vld [vmem:[#allocation7 + $0x30] sm:$0xff] }
 0x665   : > { %2278 = vmatpush.msra.mxu2 %v7860_v2  ;;  %v2031_v2 = vld [vmem:[#allocation3 + $0x1c0] sm:$0xff] }
 0x666   : > { %2231 = vmatpush.msrb.mxu3 %v7843_v29  ;;  %v2034_v29 = vld [vmem:[#allocation3 + $0x1d8] sm:$0xff] }
 0x667   : > { %2279 = vmatpush.msra.mxu2 %v7867_v9  ;;  %v1709_v9 = vpop.f32.mrf.mxu0 }
 0x668   : > { %2232 = vmatpush.msrb.mxu3 %v7847_v39  ;;  %v1649_v39 = vpop.f32.mrf.mxu2 }
 0x669   : > { %2280 = vmatpush.msra.mxu2 %v7874_v8  ;;  %v1650_v5 = vadd.f32 %v1649_v39, %v1613_v26  ;;  %v1710_v8 = vadd.f32 %v1709_v9, %v1613_v26 }
 0x66b   : > { %2281 = vmatpush.msra.mxu2 %v7883_v17 }
 0x66d   : > { %2282 = vmatpush.msra.mxu2 %v2055_v41  ;;  %v10575_v41 = vld [vmem:[#allocation17_spill] sm:$0xff] }
 0x66f   : > { %2283 = vmatpush.msra.mxu2 %v2052_v14  ;;  %v6618_v14 = vpack.i.bf16 %v1972_v23, %v10575_v41 }
 0x671   : > { %2284 = vmatpush.msra.mxu2 %v2049_v27  ;;  %v1973_v27 = vld [vmem:[#allocation7 + $0x38] sm:$0xff] }
 0x673   : > { %2285 = vmatpush.msra.mxu2 %v2046_v35  ;;  %v8047_v35 = vld [vmem:[#allocation7 + $0x40] sm:$0xff] }
 0x675   : > { %2286 = vmatpush.msra.mxu2 %v2043_v45 }
 0x677   : > { %2287 = vmatpush.msra.mxu2 %v2040_v56 }
 0x679   : > { %2288 = vmatpush.msra.mxu2 %v2037_v36 }
 0x67b   : > { %2289 = vmatpush.msra.mxu2 %v2034_v29 }
 0x67d   : > { %2290 = vmatpush.msra.mxu2 %v2031_v2 }
 0x67f   : > { %2291 = vmatpush.msra.mxu2 %v7943_v63 }
 0x681   : > { %2292 = vmatpush.msra.mxu2 %v7951_v3 }
 0x699   : > { %v1689_v57 = vpop.f32.mrf.mxu2 }
 0x6a5   : > { %v1669_v52 = vpop.f32.mrf.mxu1  ;;  %v1749_v58 = vpop.f32.mrf.mxu2 }
 0x6a6   : > { %v1670_v17 = vadd.f32 %v1669_v52, %v1650_v5  ;;  %v1809_v32 = vpop.f32.mrf.mxu0 }
 0x6a7   : > { %v1729_v24 = vpop.f32.mrf.mxu3 }
 0x6a8   : > { %v1690_v16 = vadd.f32 %v1689_v57, %v1670_v17  ;;  %v1730_v10 = vadd.f32 %v1729_v24, %v1710_v8 }
 0x6aa   : > { %v1812_v15 = vmul.f32 0.2, %v1690_v16  ;;  %v1750_v11 = vadd.f32 %v1749_v58, %v1730_v10 }
 0x6ac   : > { %v1813_v28 = vmul.f32 0.2, %v1750_v11  ;;  %v1815_v25 = vmax.f32 %v1690_v16, %v1812_v15 }
 0x6ae   : > { %v1818_v63 = vsel %vm7185_vm12, %v1815_v25, 0.0  ;;  %v1816_v3 = vmax.f32 %v1750_v11, %v1813_v28 }
 0x6af   : > { %1824 = vrot.lane.b32.xlu0 %v1818_v63, %s6823_s29 }
 0x6b0   : > { %v1819_v1 = vsel %vm7189_vm0, %v1816_v3, 0.0 }
 0x6b1   : > { %1826 = vrot.lane.b32.xlu1 %v1819_v1, %s6823_s29 }
 0x6c5   : > { %v1789_v61 = vpop.f32.mrf.mxu2 }
 0x6c7   : > { %v1769_v20 = vpop.f32.mrf.mxu1 }
 0x6c8   : > { %v1770_v37 = vadd.f32 %v1769_v20, %v1613_v26 }
 0x6ca   : > { %v1790_v6 = vadd.f32 %v1789_v61, %v1770_v37 }
 0x6cc   : > { %v1810_v49 = vadd.f32 %v1809_v32, %v1790_v6 }
 0x6ce   : > { %v1814_v4 = vmul.f32 0.2, %v1810_v49 }
 0x6d0   : > { %v1817_v38 = vmax.f32 %v1810_v49, %v1814_v4  ;;  %v8065_v4 = vld [vmem:[#allocation9] sm:$0xff] }
 0x6d2   : > { %v1820_v18 = vsel %vm7199_vm7, %v1817_v38, 0.0 }
 0x6d3   : > { %1828 = vrot.lane.b32.xlu2 %v1820_v18, %s6823_s29  ;;  %v6832_v18 = vmov 4  }
 0x6d4   : > { %6623 = vset.pattern.permute.xlu0 %v6832_v18 }
 0x721   : > { %v1825_v59 = vpop.permute.xlu0 %1824 }
 0x722   : > { %1835 = vst.msk [vmem:[#allocation2 + $0x60] sm:$0xff] %vm622_vm10, %v1825_v59 }
 0x723   : > { %v1827_v34 = vpop.permute.xlu1 %1826 }
 0x724   : > { %v7999_v42 = vsel %vm336_vm8, %v1825_v59, %v1827_v34 }
 0x725   : > { %1959 = vrot.lane.b32.xlu1 %v7999_v42, %s6814_s23 }
 0x729   : > { %v8003_v43 = vld [vmem:[#allocation2 + $0x60] sm:$0xff] }
 0x72a   : > { %1943 = vrot.lane.b32.xlu2 %v8003_v43, %s6815_s18  ;;  %1957 = vrot.lane.b32.xlu0 %v8003_v43, %s6814_s23 }
 0x72d   : > { %v1829_v51 = vpop.permute.xlu2 %1828 }
 0x72e   : > { %v1831_v50 = vsel %vm336_vm8, %v1827_v34, %v1829_v51 }
 0x72f   : > { %1837 = vst.msk [vmem:[#allocation2 + $0x70] sm:$0xff] %vm625_vm14, %v1831_v50  ;;  %v2320_v50 = vld [vmem:[#allocation2] sm:$0xff] }
 0x732   : > { %1929 = vrot.lane.b32.xlu2 %v8003_v43, %s6816_s17  ;;  %1945 = vrot.lane.b32.xlu0 %v7999_v42, %s6815_s18 }
 0x736   : > { %v1925_v54 = vld [vmem:[#allocation2 + $0x70] sm:$0xff] }
 0x737   : > { %1961 = vrot.lane.b32.xlu1 %v1925_v54, %s6814_s23  ;;  %1843 = vst.msk [vmem:[#allocation3 + $0x370] sm:$0xff] %vm358_vm1, %v1925_v54 }
 0x73a   : > { %1909 = vrot.lane.b32.xlu2 %v8003_v43, %s6817_s24  ;;  %1931 = vrot.lane.b32.xlu0 %v7999_v42, %s6816_s17 }
 0x73f   : > { %1947 = vrot.lane.b32.xlu1 %v1925_v54, %s6815_s18 }
 0x742   : > { %1895 = vrot.lane.b32.xlu2 %v8003_v43, %s6818_s25  ;;  %1911 = vrot.lane.b32.xlu0 %v7999_v42, %s6817_s24 }
 0x747   : > { %1933 = vrot.lane.b32.xlu1 %v1925_v54, %s6816_s17 }
 0x74a   : > { %1881 = vrot.lane.b32.xlu2 %v8003_v43, %s6819_s26  ;;  %1897 = vrot.lane.b32.xlu0 %v7999_v42, %s6818_s25 }
 0x74f   : > { %1913 = vrot.lane.b32.xlu1 %v1925_v54, %s6817_s24 }
 0x752   : > { %1861 = vrot.lane.b32.xlu2 %v8003_v43, %s6820_s27  ;;  %1883 = vrot.lane.b32.xlu0 %v7999_v42, %s6819_s26 }
 0x757   : > { %1899 = vrot.lane.b32.xlu1 %v1925_v54, %s6818_s25 }
 0x75a   : > { %1847 = vrot.lane.b32.xlu2 %v8003_v43, %s6821_s28  ;;  %1863 = vrot.lane.b32.xlu0 %v7999_v42, %s6820_s27 }
 0x75f   : > { %1885 = vrot.lane.b32.xlu1 %v1925_v54, %s6819_s26 }
 0x762   : > { %1851 = vrot.lane.b32.xlu2 %v1925_v54, %s6821_s28  ;;  %1849 = vrot.lane.b32.xlu0 %v7999_v42, %s6821_s28 }
 0x767   : > { %1865 = vrot.lane.b32.xlu1 %v1925_v54, %s6820_s27 }
 0x76a   : > { %6619 = vrot.lane.b32.xlu0 %v6618_v14, %s6831_s20  ;;  %2126 = vrot.lane.b32.xlu2 %v8047_v35, %s6831_s20 }
 0x76f   : > { %2124 = vrot.lane.b32.xlu1 %v1973_v27, %s6831_s20  ;;  %v2080_v27 = vld [vmem:[#allocation3 + $0x348] sm:$0xff]  ;;  %s6842_s20 = smov 16  }
 0x772   : > { %2113 = vperm.xlu0 %6623, %v8065_v4  }
 0x777   : > { %2326 = vrot.lane.b32.xlu1 %v2320_v50, %s6818_s25 }
 0x784   : > { %v1944_v45 = vpop.permute.xlu2 %1943 }
 0x78c   : > { %v1930_v56 = vpop.permute.xlu2 %1929 }
 0x794   : > { %v1910_v36 = vpop.permute.xlu2 %1909 }
 0x797   : > { %v1960_v29 = vpop.permute.xlu1 %1959 }
 0x79c   : > { %v1958_v2 = vpop.permute.xlu0 %1957  ;;  %v1896_v39 = vpop.permute.xlu2 %1895 }
 0x79d   : > { %v1963_v57 = vsel %vm10576_vm3, %v1958_v2, %v1960_v29  ;;  %vm10580_vm3 = vcmask 900096  }
 0x79e   : > { %2180 = vmatpush.msra.mxu1 %v1963_v57 }
 0x7a4   : > { %v1882_v26 = vpop.permute.xlu2 %1881  ;;  %v1946_v9 = vpop.permute.xlu0 %1945 }
 0x7a5   : > { %v1949_v5 = vsel %vm10577_vm9, %v1944_v45, %v1946_v9  ;;  %vm10581_vm9 = vcmask 1031168   ;;  %v2322_v45 = vld [vmem:[#allocation2 + $0x10] sm:$0xff] }
 0x7a6   : > { %2181 = vmatpush.msra.mxu1 %v1949_v5  ;;  %2330 = vrot.lane.b32.xlu1 %v2322_v45, %s6818_s25  ;;  %v2071_v5 = vld [vmem:[#allocation3 + $0x300] sm:$0xff] }
 0x7a9   : > { %v1962_v52 = vpop.permute.xlu1 %1961 }
 0x7aa   : > { %v1964_v8 = vsel %vm10578_vm15, %v1960_v29, %v1962_v52  ;;  %1970 = vst.msk [vmem:[#allocation3 + $0x430] sm:$0xff] %vm358_vm1, %v1962_v52  ;;  %vm10582_vm15 = vmmov %vm10580_vm3  ;;  %v2081_v52 = vld [vmem:[#allocation3 + $0x350] sm:$0xff] }
 0x7ab   : > { %2240 = vmatpush.msra.mxu0 %v1964_v8 }
 0x7ac   : > { %v1862_v17 = vpop.permute.xlu2 %1861  ;;  %v1932_v24 = vpop.permute.xlu0 %1931 }
 0x7ad   : > { %v1935_v16 = vsel %vm456_vm4, %v1930_v56, %v1932_v24 }
 0x7ae   : > { %2182 = vmatpush.msra.mxu1 %v1935_v16  ;;  %v2321_v16 = vld [vmem:[#allocation2 + $0x8] sm:$0xff] }
 0x7af   : > { %2328 = vrot.lane.b32.xlu2 %v2321_v16, %s6818_s25 }
 0x7b1   : > { %v1948_v10 = vpop.permute.xlu1 %1947 }
 0x7b2   : > { %v1950_v58 = vsel %vm10579_vm11, %v1946_v9, %v1948_v10  ;;  %1956 = vst.msk [vmem:[#allocation3 + $0x418] sm:$0xff] %vm358_vm1, %v1948_v10  ;;  %vm10583_vm11 = vcmask 1039360   ;;  %v2075_v10 = vld [vmem:[#allocation3 + $0x320] sm:$0xff] }
 0x7b3   : > { %2241 = vmatpush.msra.mxu0 %v1950_v58  ;;  %v2072_v58 = vld [vmem:[#allocation3 + $0x308] sm:$0xff] }
 0x7b4   : > { %v1848_v15 = vpop.permute.xlu2 %1847  ;;  %v1912_v11 = vpop.permute.xlu0 %1911 }
 0x7b5   : > { %v1915_v28 = vsel %vm435_vm5, %v1910_v36, %v1912_v11  ;;  %v2077_v36 = vld [vmem:[#allocation3 + $0x330] sm:$0xff] }
 0x7b6   : > { %2183 = vmatpush.msra.mxu1 %v1915_v28 }
 0x7b9   : > { %v1934_v25 = vpop.permute.xlu1 %1933 }
 0x7ba   : > { %v1936_v63 = vsel %vm456_vm4, %v1932_v24, %v1934_v25  ;;  %1942 = vst.msk [vmem:[#allocation3 + $0x400] sm:$0xff] %vm358_vm1, %v1934_v25 }
 0x7bb   : > { %2242 = vmatpush.msra.mxu0 %v1936_v63 }
 0x7bc   : > { %v1852_v3 = vpop.permute.xlu2 %1851  ;;  %v1898_v1 = vpop.permute.xlu0 %1897 }
 0x7bd   : > { %1860 = vst.msk [vmem:[#allocation3 + $0x388] sm:$0xff] %vm358_vm1, %v1852_v3  ;;  %v1901_v20 = vsel %vm420_vm6, %v1896_v39, %v1898_v1 }
 0x7be   : > { %2184 = vmatpush.msra.mxu1 %v1901_v20 }
 0x7c1   : > { %v1914_v37 = vpop.permute.xlu1 %1913 }
 0x7c2   : > { %v1916_v61 = vsel %vm435_vm5, %v1912_v11, %v1914_v37  ;;  %1922 = vst.msk [vmem:[#allocation3 + $0x3e8] sm:$0xff] %vm358_vm1, %v1914_v37 }
 0x7c3   : > { %2243 = vmatpush.msra.mxu0 %v1916_v61 }
 0x7c4   : > { %v1884_v6 = vpop.permute.xlu0 %1883  ;;  %v2127_v9 = vpop.permute.xlu2 %2126 }
 0x7c5   : > { %v1887_v32 = vsel %vm10580_vm3, %v1882_v26, %v1884_v6  ;;  %vm10584_vm3 = vmmov %vm10581_vm9 }
 0x7c6   : > { %2185 = vmatpush.msra.mxu1 %v1887_v32 }
 0x7c9   : > { %v1900_v49 = vpop.permute.xlu1 %1899 }
 0x7ca   : > { %v1902_v38 = vsel %vm420_vm6, %v1898_v1, %v1900_v49  ;;  %1908 = vst.msk [vmem:[#allocation3 + $0x3d0] sm:$0xff] %vm358_vm1, %v1900_v49 }
 0x7cb   : > { %2244 = vmatpush.msra.mxu0 %v1902_v38 }
 0x7cc   : > { %v1864_v59 = vpop.permute.xlu0 %1863 }
 0x7cd   : > { %v1867_v34 = vsel %vm10581_vm9, %v1862_v17, %v1864_v59  ;;  %vm10585_vm9 = vmmov %vm10583_vm11 }
 0x7ce   : > { %2186 = vmatpush.msra.mxu1 %v1867_v34 }
 0x7d1   : > { %v1886_v51 = vpop.permute.xlu1 %1885 }
 0x7d2   : > { %v1888_v54 = vsel %vm10582_vm15, %v1884_v6, %v1886_v51  ;;  %1894 = vst.msk [vmem:[#allocation3 + $0x3b8] sm:$0xff] %vm358_vm1, %v1886_v51  ;;  %vm2128_vm15 = vcmask 392192  }
 0x7d3   : > { %2245 = vmatpush.msra.mxu0 %v1888_v54 }
 0x7d4   : > { %v1850_v23 = vpop.permute.xlu0 %1849 }
 0x7d5   : > { %v1853_v41 = vsel %vm10583_vm11, %v1848_v15, %v1850_v23  ;;  %v1854_v29 = vsel %vm10585_vm9, %v1850_v23, %v1852_v3  ;;  %vm10519_vm11 = vcmask 850944   ;;  %v2103_v15 = vld [vmem:[#allocation3 + $0x400] sm:$0xff]  ;;  %vm10587_vm9 = vcmask 900096  }
 0x7d6   : > { %2187 = vmatpush.msra.mxu1 %v1853_v41 }
 0x7d8   : > { %2188 = vmatpush.msra.mxu1 %v8003_v43  ;;  %v2074_v43 = vld [vmem:[#allocation3 + $0x318] sm:$0xff] }
 0x7d9   : > { %v1866_v14 = vpop.permute.xlu1 %1865  ;;  %v2094_v11 = vld [vmem:[#allocation3 + $0x3b8] sm:$0xff] }
 0x7da   : > { %v1868_v56 = vsel %vm10584_vm3, %v1864_v59, %v1866_v14  ;;  %1874 = vst.msk [vmem:[#allocation3 + $0x3a0] sm:$0xff] %vm358_vm1, %v1866_v14  ;;  %2189 = vmatpush.msra.mxu1 %v2080_v27  ;;  %vm10586_vm3 = vcmask 744448  }
 0x7db   : > { %2246 = vmatpush.msra.mxu0 %v1868_v56 }
 0x7dc   : > { %v6620_v2 = vpop.permute.xlu0 %6619  ;;  %2190 = vmatpush.msra.mxu1 %v2077_v36 }
 0x7dd   : > { %v6622_v39 = vunpack.i.h.bf16 %v6620_v2  ;;  %v6621_v57 = vunpack.i.l.bf16 %v6620_v2  ;;  %2247 = vmatpush.msra.mxu0 %v1854_v29 }
 0x7de   : > { %2191 = vmatpush.msra.mxu1 %v2074_v43 }
 0x7df   : > { %v8081_v26 = vsel %vm2128_vm15, %v6621_v57, %v6622_v39  ;;  %2248 = vmatpush.msra.mxu0 %v7999_v42  ;;  %v2078_v42 = vld [vmem:[#allocation3 + $0x338] sm:$0xff] }
 0x7e0   : > { %2153 = vmatmul.f32.vlgmr.msra.gmra.mxu3 %v8081_v26  ;;  %2213 = vmatmul.f32.vlgmr.msrb.gmra.mxu2 %v8081_v26 }
 0x7e1   : > { %v2125_v8 = vpop.permute.xlu1 %2124  ;;  %2192 = vmatpush.msra.mxu1 %v2071_v5  ;;  %2249 = vmatpush.msra.mxu0 %v2081_v52 }
 0x7e2   : > { %v2131_v17 = vsel %vm2128_vm15, %v2125_v8, %v2127_v9  ;;  %v2130_v24 = vsel %vm2128_vm15, %v6622_v39, %v2125_v8  ;;  %vm10588_vm15 = vcmask 736256  }
 0x7e3   : > { %2257 = vmatpush.msrb.mxu1 %v7879_v13  ;;  %2173 = vmatmul.f32.vlgmr.msrb.gmra.mxu0 %v2130_v24  ;;  %v2109_v13 = vld [vmem:[#allocation3 + $0x430] sm:$0xff] }
 0x7e4   : > { %6466 = vmatmul.msk.f32.vlgmr.msra.gmra.mxu1 %vm10519_vm11, %v2131_v17  ;;  %2250 = vmatpush.msra.mxu0 %v2078_v42 }
 0x7e5   : > { %2258 = vmatpush.msrb.mxu1 %v7886_v12  ;;  %v2106_v12 = vld [vmem:[#allocation3 + $0x418] sm:$0xff] }
 0x7e6   : > { %2251 = vmatpush.msra.mxu0 %v2075_v10 }
 0x7e7   : > { %2259 = vmatpush.msrb.mxu1 %v7892_v19  ;;  %v2100_v19 = vld [vmem:[#allocation3 + $0x3e8] sm:$0xff] }
 0x7e8   : > { %2233 = vmatmul.f32.vlgmr.msrb.gmra.mxu3 %v2130_v24  ;;  %2293 = vmatmul.f32.vlgmr.msra.gmra.mxu2 %v2130_v24 }
 0x7e9   : > { %2260 = vmatpush.msrb.mxu1 %v7898_v22  ;;  %2252 = vmatpush.msra.mxu0 %v2072_v58  ;;  %v2097_v22 = vld [vmem:[#allocation3 + $0x3d0] sm:$0xff] }
 0x7eb   : > { %2300 = vmatpush.msrb.mxu0 %v2109_v13  ;;  %2261 = vmatpush.msrb.mxu1 %v7904_v21  ;;  %v2091_v21 = vld [vmem:[#allocation3 + $0x3a0] sm:$0xff] }
 0x7ec   : > { %6467 = vmatmul.msk.f32.vlgmr.msra.gmra.mxu0 %vm10519_vm11, %v2131_v17 }
 0x7ed   : > { %2301 = vmatpush.msrb.mxu0 %v2106_v12  ;;  %2262 = vmatpush.msrb.mxu1 %v7909_v33  ;;  %v2088_v33 = vld [vmem:[#allocation3 + $0x388] sm:$0xff] }
 0x7ef   : > { %2302 = vmatpush.msrb.mxu0 %v2103_v15  ;;  %2263 = vmatpush.msrb.mxu1 %v7914_v46  ;;  %v2085_v46 = vld [vmem:[#allocation3 + $0x370] sm:$0xff] }
 0x7f1   : > { %2303 = vmatpush.msrb.mxu0 %v2100_v19  ;;  %2264 = vmatpush.msrb.mxu1 %v7920_v53  ;;  %v2082_v53 = vld [vmem:[#allocation3 + $0x358] sm:$0xff] }
 0x7f3   : > { %2304 = vmatpush.msrb.mxu0 %v2097_v22  ;;  %2265 = vmatpush.msrb.mxu1 %v7926_v47  ;;  %v2079_v47 = vld [vmem:[#allocation3 + $0x340] sm:$0xff] }
 0x7f5   : > { %2305 = vmatpush.msrb.mxu0 %v2094_v11  ;;  %2266 = vmatpush.msrb.mxu1 %v7932_v55  ;;  %v2076_v55 = vld [vmem:[#allocation3 + $0x328] sm:$0xff] }
 0x7f7   : > { %2306 = vmatpush.msrb.mxu0 %v2091_v21  ;;  %2267 = vmatpush.msrb.mxu1 %v7938_v48  ;;  %v2073_v48 = vld [vmem:[#allocation3 + $0x310] sm:$0xff] }
 0x7f9   : > { %2307 = vmatpush.msrb.mxu0 %v2088_v33  ;;  %2268 = vmatpush.msrb.mxu1 %v7946_v31  ;;  %v2114_v31 = vpop.permute.xlu0 %2113 }
 0x7fb   : > { %2308 = vmatpush.msrb.mxu0 %v2085_v46  ;;  %2269 = vmatpush.msrb.mxu1 %v7957_v60  ;;  %v2327_v60 = vpop.permute.xlu1 %2326 }
 0x7fd   : > { %2309 = vmatpush.msrb.mxu0 %v2082_v53  ;;  %2270 = vmatpush.msrb.mxu1 %v7960_v7 }
 0x7ff   : > { %2310 = vmatpush.msrb.mxu0 %v2079_v47  ;;  %2271 = vmatpush.msrb.mxu1 %v7965_v62 }
 0x801   : > { %2311 = vmatpush.msrb.mxu0 %v2076_v55  ;;  %2272 = vmatpush.msrb.mxu1 %v7968_v40 }
 0x802   : > { %2273 = vmatmul.f32.vlgmr.msrb.gmra.mxu1 %v8081_v26 }
 0x803   : > { %2312 = vmatpush.msrb.mxu0 %v2073_v48 }
 0x804   : > { %6468 = vmatmul.msk.f32.vlgmr.msrb.gmra.mxu0 %vm10519_vm11, %v2131_v17 }
 0x809   : > { %v2329_v1 = vpop.permute.xlu2 %2328 }
 0x80a   : > { %v2332_v61 = vsel %vm420_vm6, %v2327_v60, %v2329_v1 }
 0x818   : > { %v2331_v38 = vpop.permute.xlu1 %2330 }
 0x819   : > { %v2333_v51 = vsel %vm420_vm6, %v2329_v1, %v2331_v38 }
 0x860   : > { %v2174_v25 = vpop.f32.mrf.mxu0 }
 0x861   : > { %v2194_v7 = vpop.f32.mrf.mxu1 }
 0x863   : > { %v2154_v28 = vpop.f32.mrf.mxu3  ;;  %v2214_v20 = vpop.f32.mrf.mxu2 }
 0x864   : > { %v2155_v63 = vadd.f32 %v2154_v28, %v2114_v31  ;;  %v2215_v37 = vadd.f32 %v2214_v20, %v2114_v31 }
 0x866   : > { %v2175_v3 = vadd.f32 %v2174_v25, %v2155_v63 }
 0x868   : > { %v2195_v62 = vadd.f32 %v2194_v7, %v2175_v3 }
 0x869   : > { %v2254_v18 = vpop.f32.mrf.mxu0 }
 0x86a   : > { %v2317_v40 = vmul.f32 0.2, %v2195_v62 }
 0x86b   : > { %v2234_v6 = vpop.f32.mrf.mxu3  ;;  %v2294_v27 = vpop.f32.mrf.mxu2 }
 0x86c   : > { %v2337_v32 = vadd.f32 %v2332_v61, %v2317_v40  ;;  %v2235_v49 = vadd.f32 %v2234_v6, %v2215_v37 }
 0x86e   : > { %v2340_v59 = vsel %vm7185_vm12, %v2337_v32, 0.0  ;;  %v2255_v34 = vadd.f32 %v2254_v18, %v2235_v49 }
 0x86f   : > { %2346 = vrot.lane.b32.xlu2 %v2340_v59, %s6823_s29 }
 0x870   : > { %v2318_v50 = vmul.f32 0.2, %v2255_v34 }
 0x872   : > { %v2338_v54 = vadd.f32 %v2333_v51, %v2318_v50 }
 0x874   : > { %v2341_v23 = vsel %vm7189_vm0, %v2338_v54, 0.0 }
 0x875   : > { %2348 = vrot.lane.b32.xlu0 %v2341_v23, %s6823_s29 }
 0x87f   : > { %v2274_v41 = vpop.f32.mrf.mxu1 }
 0x880   : > { %v2275_v14 = vadd.f32 %v2274_v41, %v2114_v31 }
 0x881   : > { %v2314_v56 = vpop.f32.mrf.mxu0 }
 0x882   : > { %v2295_v45 = vadd.f32 %v2294_v27, %v2275_v14 }
 0x884   : > { %v2315_v36 = vadd.f32 %v2314_v56, %v2295_v45 }
 0x886   : > { %v2319_v29 = vmul.f32 0.2, %v2315_v36 }
 0x888   : > { %v2339_v2 = vadd.f32 %v2331_v38, %v2319_v29  ;;  %v6834_v38 = vmov 5  }
 0x889   : > { %6624 = vset.pattern.permute.xlu0 %v6834_v38 }
 0x88a   : > { %v2342_v39 = vsel %vm7199_vm7, %v2339_v2, 0.0 }
 0x88b   : > { %2350 = vrot.lane.b32.xlu1 %v2342_v39, %s6823_s29 }
 0x8c9   : > { %v2347_v57 = vpop.permute.xlu2 %2346 }
 0x8ca   : > { %2357 = vst.msk [vmem:[#allocation2] sm:$0xff] %vm622_vm10, %v2347_v57 }
 0x8d1   : > { %v8121_v43 = vld [vmem:[#allocation2] sm:$0xff] }
 0x8d2   : > { %2479 = vrot.lane.b32.xlu2 %v8121_v43, %s6814_s23  ;;  %2465 = vrot.lane.b32.xlu1 %v8121_v43, %s6815_s18  ;;  %2363 = vst [vmem:[#allocation3] sm:$0xff] %v8121_v43 }
 0x8d3   : > { %2451 = vrot.lane.b32.xlu0 %v8121_v43, %s6816_s17 }
 0x8da   : > { %2431 = vrot.lane.b32.xlu2 %v8121_v43, %s6817_s24  ;;  %2417 = vrot.lane.b32.xlu1 %v8121_v43, %s6818_s25 }
 0x8e2   : > { %2403 = vrot.lane.b32.xlu1 %v8121_v43, %s6819_s26 }
 0x8e7   : > { %v2349_v26 = vpop.permute.xlu0 %2348 }
 0x8e8   : > { %v8137_v9 = vsel %vm336_vm8, %v2347_v57, %v2349_v26 }
 0x8e9   : > { %2358 = vst [vmem:[#allocation2 + $0x8] sm:$0xff] %v8137_v9  ;;  %2467 = vrot.lane.b32.xlu2 %v8137_v9, %s6815_s18  ;;  %2481 = vrot.lane.b32.xlu0 %v8137_v9, %s6814_s23 }
 0x8ea   : > { %2383 = vrot.lane.b32.xlu1 %v8121_v43, %s6820_s27  ;;  %2364 = vst [vmem:[#allocation3 + $0x8] sm:$0xff] %v8137_v9 }
 0x8f1   : > { %2419 = vrot.lane.b32.xlu2 %v8137_v9, %s6818_s25  ;;  %2433 = vrot.lane.b32.xlu0 %v8137_v9, %s6817_s24 }
 0x8f2   : > { %2453 = vrot.lane.b32.xlu1 %v8137_v9, %s6816_s17 }
 0x8f9   : > { %2405 = vrot.lane.b32.xlu2 %v8137_v9, %s6819_s26 }
 0x8fa   : > { %2369 = vrot.lane.b32.xlu1 %v8121_v43, %s6821_s28 }
 0x8fd   : > { %v2351_v5 = vpop.permute.xlu1 %2350 }
 0x8fe   : > { %v2353_v52 = vsel %vm336_vm8, %v2349_v26, %v2351_v5 }
 0x8ff   : > { %2359 = vst.msk [vmem:[#allocation2 + $0x10] sm:$0xff] %vm625_vm14, %v2353_v52 }
 0x901   : > { %2385 = vrot.lane.b32.xlu2 %v8137_v9, %s6820_s27 }
 0x906   : > { %v2399_v8 = vld [vmem:[#allocation2 + $0x10] sm:$0xff] }
 0x907   : > { %2421 = vrot.lane.b32.xlu1 %v2399_v8, %s6818_s25  ;;  %2483 = vrot.lane.b32.xlu0 %v2399_v8, %s6814_s23  ;;  %2365 = vst.msk [vmem:[#allocation3 + $0x10] sm:$0xff] %vm358_vm1, %v2399_v8 }
 0x909   : > { %2371 = vrot.lane.b32.xlu2 %v8137_v9, %s6821_s28 }
 0x90e   : > { %v8295_v36 = vld [vmem:[#allocation3 + $0x10] sm:$0xff] }
 0x90f   : > { %2373 = vrot.lane.b32.xlu1 %v2399_v8, %s6821_s28  ;;  %2469 = vrot.lane.b32.xlu0 %v2399_v8, %s6815_s18 }
 0x911   : > { %2407 = vrot.lane.b32.xlu2 %v2399_v8, %s6819_s26 }
 0x917   : > { %2455 = vrot.lane.b32.xlu0 %v2399_v8, %s6816_s17 }
 0x919   : > { %2528 = vrot.lane.b32.xlu2 %v8047_v35, %s6833_s11 }
 0x91f   : > { %2435 = vrot.lane.b32.xlu0 %v2399_v8, %s6817_s24 }
 0x927   : > { %2387 = vrot.lane.b32.xlu0 %v2399_v8, %s6820_s27 }
 0x92c   : > { %v2480_v17 = vpop.permute.xlu2 %2479 }
 0x92f   : > { %2524 = vperm.xlu0 %6624, %v8065_v4  }
 0x934   : > { %v2432_v24 = vpop.permute.xlu2 %2431 }
 0x943   : > { %v2468_v42 = vpop.permute.xlu2 %2467 }
 0x944   : > { %v2466_v16 = vpop.permute.xlu1 %2465 }
 0x945   : > { %v8175_v10 = vsel %vm10586_vm3, %v2466_v16, %v2468_v42  ;;  %v2452_v35 = vpop.permute.xlu0 %2451  ;;  %vm10589_vm3 = vcmask 1031168  }
 0x946   : > { %2476 = vst [vmem:[#allocation3 + $0xa8] sm:$0xff] %v8175_v10 }
 0x94b   : > { %v2420_v58 = vpop.permute.xlu2 %2419 }
 0x94c   : > { %v2418_v13 = vpop.permute.xlu1 %2417 }
 0x94d   : > { %v8179_v12 = vsel %vm420_vm6, %v2418_v13, %v2420_v58 }
 0x94e   : > { %2428 = vst [vmem:[#allocation3 + $0x60] sm:$0xff] %v8179_v12 }
 0x953   : > { %v2406_v15 = vpop.permute.xlu2 %2405 }
 0x954   : > { %v2404_v19 = vpop.permute.xlu1 %2403 }
 0x955   : > { %v8183_v22 = vsel %vm10587_vm9, %v2404_v19, %v2406_v15 }
 0x956   : > { %2414 = vst [vmem:[#allocation3 + $0x48] sm:$0xff] %v8183_v22 }
 0x95b   : > { %v8186_v11 = vpop.permute.xlu2 %2385  ;;  %v2482_v21 = vpop.permute.xlu0 %2481 }
 0x95c   : > { %v2384_v33 = vpop.permute.xlu1 %2383  ;;  %v8189_v46 = vsel %vm10588_vm15, %v2480_v17, %v2482_v21  ;;  %vm10590_vm15 = vcmask 1039360  }
 0x95d   : > { %v8193_v53 = vsel %vm10589_vm3, %v2384_v33, %v8186_v11  ;;  %2490 = vst [vmem:[#allocation3 + $0xc0] sm:$0xff] %v8189_v46  ;;  %2539 = vmatpush.msra.mxu3 %v8189_v46  ;;  %vm10591_vm3 = vcmask 736256  }
 0x95e   : > { %2394 = vst [vmem:[#allocation3 + $0x30] sm:$0xff] %v8193_v53 }
 0x95f   : > { %2540 = vmatpush.msra.mxu3 %v8175_v10 }
 0x963   : > { %v2372_v47 = vpop.permute.xlu2 %2371  ;;  %v2434_v55 = vpop.permute.xlu0 %2433 }
 0x964   : > { %v2454_v48 = vpop.permute.xlu1 %2453  ;;  %v8200_v31 = vsel %vm435_vm5, %v2432_v24, %v2434_v55 }
 0x965   : > { %v8203_v60 = vsel %vm456_vm4, %v2452_v35, %v2454_v48  ;;  %2442 = vst [vmem:[#allocation3 + $0x78] sm:$0xff] %v8200_v31 }
 0x966   : > { %2462 = vst [vmem:[#allocation3 + $0x90] sm:$0xff] %v8203_v60  ;;  %2541 = vmatpush.msra.mxu3 %v8203_v60 }
 0x968   : > { %2542 = vmatpush.msra.mxu3 %v8200_v31 }
 0x96a   : > { %2543 = vmatpush.msra.mxu3 %v8179_v12 }
 0x96b   : > { %v2408_v28 = vpop.permute.xlu2 %2407 }
 0x96c   : > { %v2370_v25 = vpop.permute.xlu1 %2369  ;;  %v8211_v63 = vsel %vm10587_vm9, %v2406_v15, %v2408_v28  ;;  %2416 = vst.msk [vmem:[#allocation3 + $0x58] sm:$0xff] %vm358_vm1, %v2408_v28  ;;  %2544 = vmatpush.msra.mxu3 %v8183_v22  ;;  %vm10592_vm9 = vcmask 588800  }
 0x96d   : > { %v8216_v7 = vsel %vm10590_vm15, %v2370_v25, %v2372_v47  ;;  %2415 = vst [vmem:[#allocation3 + $0x50] sm:$0xff] %v8211_v63 }
 0x96e   : > { %2380 = vst [vmem:[#allocation3 + $0x18] sm:$0xff] %v8216_v7  ;;  %2545 = vmatpush.msra.mxu3 %v8193_v53 }
 0x970   : > { %2546 = vmatpush.msra.mxu3 %v8216_v7 }
 0x972   : > { %2547 = vmatpush.msra.mxu3 %v8121_v43 }
 0x973   : > { %v2529_v37 = vpop.permute.xlu2 %2528  ;;  %v8283_v27 = vld [vmem:[#allocation3 + $0x58] sm:$0xff] }
 0x974   : > { %6469 = vmatmul.msk.f32.vlgmr.msra.gmra.mxu3 %vm10592_vm9, %v2529_v37  ;;  %vm10594_vm9 = vcmask 1031168  }
 0x979   : > { %v2422_v3 = vpop.permute.xlu1 %2421  ;;  %v2484_v1 = vpop.permute.xlu0 %2483 }
 0x97a   : > { %v8224_v20 = vsel %vm420_vm6, %v2420_v58, %v2422_v3  ;;  %2430 = vst.msk [vmem:[#allocation3 + $0x70] sm:$0xff] %vm358_vm1, %v2422_v3  ;;  %v8228_v62 = vsel %vm10591_vm3, %v2482_v21, %v2484_v1  ;;  %vm10593_vm3 = vcmask 744448  }
 0x97b   : > { %2429 = vst [vmem:[#allocation3 + $0x68] sm:$0xff] %v8224_v20  ;;  %2559 = vmatpush.msra.mxu1 %v8228_v62 }
 0x97c   : > { %2491 = vst [vmem:[#allocation3 + $0xc8] sm:$0xff] %v8228_v62 }
 0x97d   : > { %2492 = vst.msk [vmem:[#allocation3 + $0xd0] sm:$0xff] %vm358_vm1, %v2484_v1 }
 0x981   : > { %v2374_v61 = vpop.permute.xlu1 %2373  ;;  %v2470_v40 = vpop.permute.xlu0 %2469  ;;  %v8279_v14 = vld [vmem:[#allocation3 + $0x70] sm:$0xff] }
 0x982   : > { %v8236_v6 = vsel %vm10590_vm15, %v2372_v47, %v2374_v61  ;;  %2382 = vst.msk [vmem:[#allocation3 + $0x28] sm:$0xff] %vm358_vm1, %v2374_v61  ;;  %v8240_v32 = vsel %vm10593_vm3, %v2468_v42, %v2470_v40  ;;  %vm10595_vm15 = vcmask 588800  }
 0x983   : > { %2381 = vst [vmem:[#allocation3 + $0x20] sm:$0xff] %v8236_v6  ;;  %2560 = vmatpush.msra.mxu1 %v8240_v32  ;;  %vm10596_vm3 = vmmov %vm10595_vm15 }
 0x984   : > { %2477 = vst [vmem:[#allocation3 + $0xb0] sm:$0xff] %v8240_v32  ;;  %v8245_v49 = vld [vmem:[#allocation3 + $0xd0] sm:$0xff] }
 0x985   : > { %2478 = vst.msk [vmem:[#allocation3 + $0xb8] sm:$0xff] %vm358_vm1, %v2470_v40  ;;  %2579 = vmatpush.msrb.mxu3 %v8245_v49 }
 0x989   : > { %v2456_v18 = vpop.permute.xlu0 %2455  ;;  %v8292_v56 = vld [vmem:[#allocation3 + $0x28] sm:$0xff] }
 0x98a   : > { %v8251_v59 = vsel %vm456_vm4, %v2454_v48, %v2456_v18  ;;  %2464 = vst.msk [vmem:[#allocation3 + $0xa0] sm:$0xff] %vm358_vm1, %v2456_v18 }
 0x98b   : > { %2463 = vst [vmem:[#allocation3 + $0x98] sm:$0xff] %v8251_v59  ;;  %2561 = vmatpush.msra.mxu1 %v8251_v59 }
 0x98c   : > { %v8256_v34 = vld [vmem:[#allocation3 + $0xb8] sm:$0xff] }
 0x98d   : > { %2580 = vmatpush.msrb.mxu3 %v8256_v34 }
 0x991   : > { %v2436_v51 = vpop.permute.xlu0 %2435  ;;  %v8259_v50 = vld [vmem:[#allocation3 + $0xa0] sm:$0xff] }
 0x992   : > { %v8262_v54 = vsel %vm435_vm5, %v2434_v55, %v2436_v51  ;;  %2444 = vst.msk [vmem:[#allocation3 + $0x88] sm:$0xff] %vm358_vm1, %v2436_v51  ;;  %2581 = vmatpush.msrb.mxu3 %v8259_v50 }
 0x993   : > { %2443 = vst [vmem:[#allocation3 + $0x80] sm:$0xff] %v8262_v54  ;;  %2562 = vmatpush.msra.mxu1 %v8262_v54 }
 0x995   : > { %2563 = vmatpush.msra.mxu1 %v8224_v20 }
 0x997   : > { %2564 = vmatpush.msra.mxu1 %v8211_v63 }
 0x999   : > { %v2388_v4 = vpop.permute.xlu0 %2387  ;;  %v8270_v23 = vld [vmem:[#allocation3 + $0x88] sm:$0xff] }
 0x99a   : > { %v8274_v41 = vsel %vm10594_vm9, %v8186_v11, %v2388_v4  ;;  %2396 = vst.msk [vmem:[#allocation3 + $0x40] sm:$0xff] %vm358_vm1, %v2388_v4  ;;  %2582 = vmatpush.msrb.mxu3 %v8270_v23  ;;  %vm10597_vm9 = vcmask 900096  }
 0x99b   : > { %2395 = vst [vmem:[#allocation3 + $0x38] sm:$0xff] %v8274_v41  ;;  %2565 = vmatpush.msra.mxu1 %v8274_v41 }
 0x99c   : > { %2583 = vmatpush.msrb.mxu3 %v8279_v14 }
 0x99d   : > { %2566 = vmatpush.msra.mxu1 %v8236_v6 }
 0x99e   : > { %2584 = vmatpush.msrb.mxu3 %v8283_v27 }
 0x99f   : > { %2567 = vmatpush.msra.mxu1 %v8137_v9 }
 0x9a0   : > { %6470 = vmatmul.msk.f32.vlgmr.msra.gmra.mxu1 %vm10595_vm15, %v2529_v37  ;;  %vm10598_vm15 = vmmov %vm10597_vm9 }
 0x9a1   : > { %v8289_v45 = vld [vmem:[#allocation3 + $0x40] sm:$0xff]  ;;  %v2525_v29 = vpop.permute.xlu0 %2524 }
 0x9a2   : > { %2585 = vmatpush.msrb.mxu3 %v8289_v45 }
 0x9a4   : > { %2586 = vmatpush.msrb.mxu3 %v8292_v56 }
 0x9a6   : > { %2587 = vmatpush.msrb.mxu3 %v8295_v36 }
 0x9a7   : > { %6471 = vmatmul.msk.f32.vlgmr.msrb.gmra.mxu3 %vm10596_vm3, %v2529_v37  ;;  %vm10599_vm3 = vcmask 1031168  }
 0x9f7   : > { %v2549_v2 = vpop.f32.mrf.mxu3 }
 0x9f8   : > { %v2550_v26 = vadd.f32 %v2549_v2, %v2525_v29 }
 0x9fa   : > { %v2592_v17 = vmul.f32 0.2, %v2550_v26 }
 0x9fc   : > { %v2595_v24 = vmax.f32 %v2550_v26, %v2592_v17 }
 0x9fe   : > { %v2598_v58 = vsel %vm7185_vm12, %v2595_v24, 0.0 }
 0xa1d   : > { %v2569_v39 = vpop.f32.mrf.mxu1 }
 0xa1e   : > { %v2570_v57 = vadd.f32 %v2569_v39, %v2525_v29 }
 0xa20   : > { %v2593_v5 = vmul.f32 0.2, %v2570_v57 }
 0xa22   : > { %v2596_v52 = vmax.f32 %v2570_v57, %v2593_v5 }
 0xa24   : > { %v2599_v8 = vsel %vm7189_vm0, %v2596_v52, 0.0 }
 0xa25   : > { %2606 = vrot.lane.b32.xlu1 %v2599_v8, %s6823_s29 }
 0xa2a   : > { %v2589_v42 = vpop.f32.mrf.mxu3 }
 0xa2b   : > { %v2590_v16 = vadd.f32 %v2589_v42, %v2525_v29 }
 0xa2d   : > { %v2594_v13 = vmul.f32 0.2, %v2590_v16  ;;  %2604 = vrot.lane.b32.xlu1 %v2598_v58, %s6823_s29 }
 0xa2f   : > { %v2597_v35 = vmax.f32 %v2590_v16, %v2594_v13 }
 0xa31   : > { %v2600_v15 = vsel %vm7199_vm7, %v2597_v35, 0.0 }
 0xa32   : > { %2608 = vrot.lane.b32.xlu2 %v2600_v15, %s6823_s29 }
 0xa8c   : > { %v2609_v19 = vpop.permute.xlu2 %2608 }
 0xa97   : > { %v2607_v11 = vpop.permute.xlu1 %2606 }
 0xa98   : > { %v2611_v21 = vsel %vm336_vm8, %v2607_v11, %v2609_v19 }
 0xa99   : > { %2617 = vst.msk [vmem:[#allocation2 + $0x28] sm:$0xff] %vm625_vm14, %v2611_v21 }
 0xa9f   : > { %v2605_v33 = vpop.permute.xlu1 %2604 }
 0xaa0   : > { %v8311_v47 = vsel %vm336_vm8, %v2605_v33, %v2607_v11  ;;  %2615 = vst.msk [vmem:[#allocation2 + $0x18] sm:$0xff] %vm622_vm10, %v2605_v33  ;;  %v2705_v55 = vld [vmem:[#allocation2 + $0x28] sm:$0xff] }
 0xaa1   : > { %2711 = vrot.lane.b32.xlu1 %v8311_v47, %s6816_s17  ;;  %2622 = vst [vmem:[#allocation3 + $0xe0] sm:$0xff] %v8311_v47 }
 0xaa2   : > { %2623 = vst.msk [vmem:[#allocation3 + $0xe8] sm:$0xff] %vm358_vm1, %v2705_v55 }
 0xaa7   : > { %v8318_v48 = vld [vmem:[#allocation2 + $0x18] sm:$0xff] }
 0xaa8   : > { %2737 = vrot.lane.b32.xlu2 %v8318_v48, %s6814_s23  ;;  %2709 = vrot.lane.b32.xlu0 %v8318_v48, %s6816_s17  ;;  %2621 = vst [vmem:[#allocation3 + $0xd8] sm:$0xff] %v8318_v48 }
 0xaa9   : > { %2691 = vrot.lane.b32.xlu1 %v8311_v47, %s6817_s24 }
 0xab0   : > { %2713 = vrot.lane.b32.xlu2 %v2705_v55, %s6816_s17  ;;  %2689 = vrot.lane.b32.xlu0 %v8318_v48, %s6817_s24 }
 0xab1   : > { %2677 = vrot.lane.b32.xlu1 %v8311_v47, %s6818_s25 }
 0xab8   : > { %2693 = vrot.lane.b32.xlu2 %v2705_v55, %s6817_s24  ;;  %2675 = vrot.lane.b32.xlu0 %v8318_v48, %s6818_s25 }
 0xab9   : > { %2663 = vrot.lane.b32.xlu1 %v8311_v47, %s6819_s26 }
 0xac0   : > { %2679 = vrot.lane.b32.xlu2 %v2705_v55, %s6818_s25  ;;  %2661 = vrot.lane.b32.xlu0 %v8318_v48, %s6819_s26 }
 0xac1   : > { %2643 = vrot.lane.b32.xlu1 %v8311_v47, %s6820_s27 }
 0xac8   : > { %2665 = vrot.lane.b32.xlu2 %v2705_v55, %s6819_s26  ;;  %2641 = vrot.lane.b32.xlu0 %v8318_v48, %s6820_s27 }
 0xac9   : > { %2629 = vrot.lane.b32.xlu1 %v8311_v47, %s6821_s28 }
 0xad0   : > { %2645 = vrot.lane.b32.xlu2 %v2705_v55, %s6820_s27  ;;  %2627 = vrot.lane.b32.xlu0 %v8318_v48, %s6821_s28 }
 0xad1   : > { %2723 = vrot.lane.b32.xlu1 %v8318_v48, %s6815_s18 }
 0xad8   : > { %2631 = vrot.lane.b32.xlu2 %v2705_v55, %s6821_s28  ;;  %2739 = vrot.lane.b32.xlu0 %v8311_v47, %s6814_s23 }
 0xad9   : > { %2727 = vrot.lane.b32.xlu1 %v2705_v55, %s6815_s18 }
 0xae0   : > { %2725 = vrot.lane.b32.xlu2 %v8311_v47, %s6815_s18  ;;  %2741 = vrot.lane.b32.xlu0 %v2705_v55, %s6814_s23 }
 0xb02   : > { %v8359_v28 = vpop.permute.xlu2 %2737 }
 0xb0a   : > { %v2714_v25 = vpop.permute.xlu2 %2713 }
 0xb0b   : > { %2722 = vst.msk [vmem:[#allocation3 + $0x178] sm:$0xff] %vm358_vm1, %v2714_v25 }
 0xb12   : > { %v2694_v3 = vpop.permute.xlu2 %2693  ;;  %v8362_v1 = vld [vmem:[#allocation3 + $0x178] sm:$0xff] }
 0xb13   : > { %2702 = vst.msk [vmem:[#allocation3 + $0x160] sm:$0xff] %vm358_vm1, %v2694_v3  ;;  %2896 = vmatpush.msra.mxu3 %v8362_v1  ;;  %v2712_v37 = vpop.permute.xlu1 %2711 }
 0xb14   : > { %v8367_v61 = vsel %vm456_vm4, %v2712_v37, %v2714_v25 }
 0xb15   : > { %2721 = vst [vmem:[#allocation3 + $0x170] sm:$0xff] %v8367_v61  ;;  %2856 = vmatpush.msrb.mxu1 %v8367_v61 }
 0xb1a   : > { %v2680_v40 = vpop.permute.xlu2 %2679  ;;  %v2710_v38 = vpop.permute.xlu0 %2709  ;;  %v8371_v18 = vld [vmem:[#allocation3 + $0x160] sm:$0xff] }
 0xb1b   : > { %2688 = vst.msk [vmem:[#allocation3 + $0x148] sm:$0xff] %vm358_vm1, %v2680_v40  ;;  %2897 = vmatpush.msra.mxu3 %v8371_v18  ;;  %v8376_v51 = vsel %vm456_vm4, %v2710_v38, %v2712_v37  ;;  %v2692_v4 = vpop.permute.xlu1 %2691  ;;  %v8434_v37 = vld [vmem:[#allocation3 + $0xe8] sm:$0xff] }
 0xb1c   : > { %2720 = vst [vmem:[#allocation3 + $0x168] sm:$0xff] %v8376_v51  ;;  %v8380_v29 = vsel %vm435_vm5, %v2692_v4, %v2694_v3  ;;  %2816 = vmatpush.msra.mxu0 %v8376_v51 }
 0xb1d   : > { %2701 = vst [vmem:[#allocation3 + $0x158] sm:$0xff] %v8380_v29  ;;  %2857 = vmatpush.msrb.mxu1 %v8380_v29 }
 0xb22   : > { %v2666_v2 = vpop.permute.xlu2 %2665  ;;  %v2690_v39 = vpop.permute.xlu0 %2689  ;;  %v8385_v57 = vld [vmem:[#allocation3 + $0x148] sm:$0xff] }
 0xb23   : > { %2674 = vst.msk [vmem:[#allocation3 + $0x130] sm:$0xff] %vm358_vm1, %v2666_v2  ;;  %2898 = vmatpush.msra.mxu3 %v8385_v57  ;;  %v8390_v26 = vsel %vm435_vm5, %v2690_v39, %v2692_v4  ;;  %v2678_v5 = vpop.permute.xlu1 %2677 }
 0xb24   : > { %2700 = vst [vmem:[#allocation3 + $0x150] sm:$0xff] %v8390_v26  ;;  %v8394_v52 = vsel %vm420_vm6, %v2678_v5, %v2680_v40  ;;  %2817 = vmatpush.msra.mxu0 %v8390_v26 }
 0xb25   : > { %2687 = vst [vmem:[#allocation3 + $0x140] sm:$0xff] %v8394_v52  ;;  %2858 = vmatpush.msrb.mxu1 %v8394_v52 }
 0xb2a   : > { %v2646_v8 = vpop.permute.xlu2 %2645  ;;  %v2676_v17 = vpop.permute.xlu0 %2675  ;;  %v8399_v24 = vld [vmem:[#allocation3 + $0x130] sm:$0xff] }
 0xb2b   : > { %2654 = vst.msk [vmem:[#allocation3 + $0x118] sm:$0xff] %vm358_vm1, %v2646_v8  ;;  %2899 = vmatpush.msra.mxu3 %v8399_v24  ;;  %v8404_v42 = vsel %vm420_vm6, %v2676_v17, %v2678_v5  ;;  %v2664_v16 = vpop.permute.xlu1 %2663  ;;  %v6835_v17 = vmov 6  }
 0xb2c   : > { %2686 = vst [vmem:[#allocation3 + $0x138] sm:$0xff] %v8404_v42  ;;  %v8408_v58 = vsel %vm10597_vm9, %v2664_v16, %v2666_v2  ;;  %2818 = vmatpush.msra.mxu0 %v8404_v42  ;;  %vm10600_vm9 = vmmov %vm10599_vm3  ;;  %6625 = vset.pattern.permute.xlu2 %v6835_v17 }
 0xb2d   : > { %2673 = vst [vmem:[#allocation3 + $0x128] sm:$0xff] %v8408_v58  ;;  %2859 = vmatpush.msrb.mxu1 %v8408_v58 }
 0xb32   : > { %v2632_v13 = vpop.permute.xlu2 %2631  ;;  %v2662_v35 = vpop.permute.xlu0 %2661  ;;  %v8413_v15 = vld [vmem:[#allocation3 + $0x118] sm:$0xff] }
 0xb33   : > { %2640 = vst.msk [vmem:[#allocation3 + $0x100] sm:$0xff] %vm358_vm1, %v2632_v13  ;;  %2900 = vmatpush.msra.mxu3 %v8413_v15  ;;  %v8418_v19 = vsel %vm10598_vm15, %v2662_v35, %v2664_v16  ;;  %v2644_v11 = vpop.permute.xlu1 %2643  ;;  %vm10601_vm15 = vcmask 1039360  }
 0xb34   : > { %2672 = vst [vmem:[#allocation3 + $0x120] sm:$0xff] %v8418_v19  ;;  %v8422_v21 = vsel %vm10599_vm3, %v2644_v11, %v2646_v8  ;;  %2819 = vmatpush.msra.mxu0 %v8418_v19  ;;  %vm10602_vm3 = vmmov %vm10601_vm15  ;;  %v8516_v8 = vld [vmem:[#allocation9] sm:$0xff] }
 0xb35   : > { %2653 = vst [vmem:[#allocation3 + $0x110] sm:$0xff] %v8422_v21  ;;  %2860 = vmatpush.msrb.mxu1 %v8422_v21  ;;  %2810 = vperm.xlu2 %6625, %v8516_v8  }
 0xb3a   : > { %v2642_v33 = vpop.permute.xlu0 %2641  ;;  %v8427_v55 = vld [vmem:[#allocation3 + $0x100] sm:$0xff]  ;;  %v2726_v4 = vpop.permute.xlu2 %2725 }
 0xb3b   : > { %2901 = vmatpush.msra.mxu3 %v8427_v55  ;;  %v8431_v25 = vsel %vm10600_vm9, %v2642_v33, %v2644_v11  ;;  %v2630_v3 = vpop.permute.xlu1 %2629  ;;  %vm10603_vm9 = vcmask 744448  }
 0xb3c   : > { %2652 = vst [vmem:[#allocation3 + $0x108] sm:$0xff] %v8431_v25  ;;  %v8437_v40 = vsel %vm10601_vm15, %v2630_v3, %v2632_v13  ;;  %2820 = vmatpush.msra.mxu0 %v8431_v25  ;;  %vm10604_vm15 = vcmask 736256  }
 0xb3d   : > { %2902 = vmatpush.msra.mxu3 %v8434_v37  ;;  %2639 = vst [vmem:[#allocation3 + $0xf8] sm:$0xff] %v8437_v40  ;;  %2861 = vmatpush.msrb.mxu1 %v8437_v40 }
 0xb3f   : > { %2903 = vmatpush.msra.mxu3 %v8245_v49  ;;  %2862 = vmatpush.msrb.mxu1 %v8311_v47 }
 0xb41   : > { %2904 = vmatpush.msra.mxu3 %v8256_v34  ;;  %2863 = vmatpush.msrb.mxu1 %v8228_v62 }
 0xb42   : > { %v2628_v38 = vpop.permute.xlu0 %2627 }
 0xb43   : > { %2905 = vmatpush.msra.mxu3 %v8259_v50  ;;  %v8449_v2 = vsel %vm10602_vm3, %v2628_v38, %v2630_v3  ;;  %v2724_v39 = vpop.permute.xlu1 %2723  ;;  %2864 = vmatpush.msrb.mxu1 %v8240_v32  ;;  %vm10605_vm3 = vmmov %vm10603_vm9 }
 0xb44   : > { %2638 = vst [vmem:[#allocation3 + $0xf0] sm:$0xff] %v8449_v2  ;;  %v8454_v49 = vsel %vm10603_vm9, %v2724_v39, %v2726_v4  ;;  %2821 = vmatpush.msra.mxu0 %v8449_v2  ;;  %vm10606_vm9 = vmmov %vm10604_vm15 }
 0xb45   : > { %2906 = vmatpush.msra.mxu3 %v8270_v23  ;;  %2734 = vst [vmem:[#allocation3 + $0x180] sm:$0xff] %v8454_v49  ;;  %2865 = vmatpush.msrb.mxu1 %v8251_v59 }
 0xb46   : > { %2822 = vmatpush.msra.mxu0 %v8318_v48 }
 0xb47   : > { %2907 = vmatpush.msra.mxu3 %v8279_v14  ;;  %2866 = vmatpush.msrb.mxu1 %v8262_v54 }
 0xb48   : > { %2823 = vmatpush.msra.mxu0 %v8189_v46 }
 0xb49   : > { %2908 = vmatpush.msra.mxu3 %v8283_v27  ;;  %2867 = vmatpush.msrb.mxu1 %v8224_v20  ;;  %v8479_v27 = vld [vmem:[#allocation7 + $0x50] sm:$0xff] }
 0xb4a   : > { %v2740_v34 = vpop.permute.xlu0 %2739  ;;  %2824 = vmatpush.msra.mxu0 %v8175_v10 }
 0xb4b   : > { %v8469_v50 = vsel %vm10604_vm15, %v8359_v28, %v2740_v34  ;;  %2909 = vmatpush.msra.mxu3 %v8289_v45  ;;  %v2728_v23 = vpop.permute.xlu1 %2727  ;;  %2868 = vmatpush.msrb.mxu1 %v8211_v63  ;;  %v2751_v28 = vld [vmem:[#allocation7 + $0x48] sm:$0xff]  ;;  %vm10607_vm15 = vmmov %vm10605_vm3 }
 0xb4c   : > { %2748 = vst [vmem:[#allocation3 + $0x198] sm:$0xff] %v8469_v50  ;;  %v8475_v14 = vsel %vm10605_vm3, %v2726_v4, %v2728_v23  ;;  %2850 = vmatpush.msrb.mxu2 %v8469_v50  ;;  %2825 = vmatpush.msra.mxu0 %v8203_v60 }
 0xb4d   : > { %2910 = vmatpush.msra.mxu3 %v8292_v56  ;;  %2735 = vst [vmem:[#allocation3 + $0x188] sm:$0xff] %v8475_v14  ;;  %2869 = vmatpush.msrb.mxu1 %v8274_v41 }
 0xb4e   : > { %2736 = vst.msk [vmem:[#allocation3 + $0x190] sm:$0xff] %vm358_vm1, %v2728_v23  ;;  %2851 = vmatpush.msrb.mxu2 %v8454_v49  ;;  %2826 = vmatpush.msra.mxu0 %v8200_v31  ;;  %v8609_v23 = vld [vmem:[#allocation7 + $0x58] sm:$0xff] }
 0xb4f   : > { %2911 = vmatpush.msra.mxu3 %v8295_v36  ;;  %6472 = vmatmul.msk.f32.vlgmr.msrb.gmra.mxu2 %vm10495_vm13, %v8479_v27 }
 0xb50   : > { %2827 = vmatpush.msra.mxu0 %v8179_v12  ;;  %2912 = vmatmul.f32.vlgmr.msra.gmra.mxu3 %v2751_v28 }
 0xb51   : > { %2870 = vmatpush.msrb.mxu1 %v8236_v6 }
 0xb52   : > { %v2742_v45 = vpop.permute.xlu0 %2741  ;;  %2828 = vmatpush.msra.mxu0 %v8183_v22 }
 0xb53   : > { %v8494_v56 = vsel %vm10606_vm9, %v2740_v34, %v2742_v45  ;;  %2750 = vst.msk [vmem:[#allocation3 + $0x1a8] sm:$0xff] %vm358_vm1, %v2742_v45  ;;  %2871 = vmatpush.msrb.mxu1 %v8137_v9  ;;  %vm10608_vm9 = vcmask 900096  }
 0xb54   : > { %2749 = vst [vmem:[#allocation3 + $0x1a0] sm:$0xff] %v8494_v56  ;;  %2890 = vmatpush.msra.mxu2 %v8494_v56  ;;  %2829 = vmatpush.msra.mxu0 %v8193_v53 }
 0xb55   : > { %2872 = vmatmul.f32.vlgmr.msrb.gmra.mxu1 %v2751_v28  ;;  %v8512_v5 = vld [vmem:[#allocation3 + $0x190] sm:$0xff] }
 0xb56   : > { %2891 = vmatpush.msra.mxu2 %v8475_v14  ;;  %2830 = vmatpush.msra.mxu0 %v8216_v7 }
 0xb57   : > { %6473 = vmatmul.msk.f32.vlgmr.msra.gmra.mxu2 %vm10495_vm13, %v8479_v27  ;;  %3235 = vmatpush.msra.mxu1 %v8367_v61 }
 0xb58   : > { %2831 = vmatpush.msra.mxu0 %v8121_v43 }
 0xb59   : > { %2832 = vmatmul.f32.vlgmr.msra.gmra.mxu0 %v2751_v28  ;;  %3236 = vmatpush.msra.mxu1 %v8380_v29 }
 0xb5a   : > { %v8508_v36 = vld [vmem:[#allocation3 + $0x1a8] sm:$0xff] }
 0xb5b   : > { %2930 = vmatpush.msrb.mxu2 %v8508_v36  ;;  %3237 = vmatpush.msra.mxu1 %v8394_v52 }
 0xb5d   : > { %2931 = vmatpush.msrb.mxu2 %v8512_v5  ;;  %3238 = vmatpush.msra.mxu1 %v8408_v58 }
 0xb5f   : > { %3195 = vmatpush.msra.mxu2 %v8376_v51  ;;  %3239 = vmatpush.msra.mxu1 %v8422_v21 }
 0xb60   : > { %6474 = vmatmul.msk.f32.vlgmr.msrb.gmra.mxu2 %vm10495_vm13, %v8479_v27  ;;  %vm10636_vm13 = vcmask 1039360  }
 0xb61   : > { %3196 = vmatpush.msra.mxu2 %v8390_v26  ;;  %3240 = vmatpush.msra.mxu1 %v8437_v40 }
 0xb63   : > { %3197 = vmatpush.msra.mxu2 %v8404_v42  ;;  %3241 = vmatpush.msra.mxu1 %v8311_v47 }
 0xb65   : > { %3198 = vmatpush.msra.mxu2 %v8418_v19  ;;  %3242 = vmatpush.msra.mxu1 %v8228_v62 }
 0xb67   : > { %3199 = vmatpush.msra.mxu2 %v8431_v25  ;;  %3243 = vmatpush.msra.mxu1 %v8240_v32 }
 0xb69   : > { %3200 = vmatpush.msra.mxu2 %v8449_v2  ;;  %3244 = vmatpush.msra.mxu1 %v8251_v59 }
 0xb6b   : > { %3201 = vmatpush.msra.mxu2 %v8318_v48  ;;  %3245 = vmatpush.msra.mxu1 %v8262_v54 }
 0xb6d   : > { %3202 = vmatpush.msra.mxu2 %v8189_v46  ;;  %3246 = vmatpush.msra.mxu1 %v8224_v20 }
 0xb6f   : > { %3203 = vmatpush.msra.mxu2 %v8175_v10  ;;  %3247 = vmatpush.msra.mxu1 %v8211_v63 }
 0xb71   : > { %3204 = vmatpush.msra.mxu2 %v8203_v60  ;;  %3248 = vmatpush.msra.mxu1 %v8274_v41 }
 0xb73   : > { %3205 = vmatpush.msra.mxu2 %v8200_v31  ;;  %3249 = vmatpush.msra.mxu1 %v8236_v6 }
 0xb75   : > { %3206 = vmatpush.msra.mxu2 %v8179_v12  ;;  %3250 = vmatpush.msra.mxu1 %v8137_v9 }
 0xb77   : > { %3207 = vmatpush.msra.mxu2 %v8183_v22 }
 0xb79   : > { %3208 = vmatpush.msra.mxu2 %v8193_v53 }
 0xb7b   : > { %3209 = vmatpush.msra.mxu2 %v8216_v7 }
 0xb7d   : > { %3210 = vmatpush.msra.mxu2 %v8121_v43 }
 0xb8f   : > { %v2811_v46 = vpop.permute.xlu2 %2810 }
 0xbd2   : > { %v2853_v10 = vpop.f32.mrf.mxu2  ;;  %v2873_v63 = vpop.f32.mrf.mxu1 }
 0xbd3   : > { %v2874_v62 = vadd.f32 %v2873_v63, %v2811_v46  ;;  %v2913_v54 = vpop.f32.mrf.mxu3 }
 0xbd4   : > { %v2914_v43 = vadd.f32 %v2913_v54, %v2811_v46 }
 0xbd6   : > { %v2833_v60 = vpop.f32.mrf.mxu0 }
 0xbd7   : > { %v2834_v20 = vadd.f32 %v2833_v60, %v2811_v46 }
 0xbd9   : > { %v2854_v31 = vadd.f32 %v2853_v10, %v2834_v20 }
 0xbda   : > { %v2893_v6 = vpop.f32.mrf.mxu2 }
 0xbdb   : > { %v2936_v32 = vmul.f32 0.2, %v2854_v31  ;;  %v2894_v12 = vadd.f32 %v2893_v6, %v2874_v62 }
 0xbdd   : > { %v2939_v59 = vmax.f32 %v2854_v31, %v2936_v32  ;;  %v2937_v9 = vmul.f32 0.2, %v2894_v12 }
 0xbdf   : > { %v2940_v22 = vmax.f32 %v2894_v12, %v2937_v9  ;;  %v2942_v53 = vsel %vm7185_vm12, %v2939_v59, 0.0 }
 0xbe0   : > { %2948 = vrot.lane.b32.xlu0 %v2942_v53, %s6823_s29 }
 0xbe1   : > { %v2943_v7 = vsel %vm7189_vm0, %v2940_v22, 0.0 }
 0xbe2   : > { %2950 = vrot.lane.b32.xlu1 %v2943_v7, %s6823_s29 }
 0xbe3   : > { %v2933_v41 = vpop.f32.mrf.mxu2 }
 0xbe4   : > { %v2934_v47 = vadd.f32 %v2933_v41, %v2914_v43 }
 0xbe6   : > { %v2938_v16 = vmul.f32 0.2, %v2934_v47 }
 0xbe8   : > { %v2941_v13 = vmax.f32 %v2934_v47, %v2938_v16 }
 0xbea   : > { %v2944_v35 = vsel %vm7199_vm7, %v2941_v13, 0.0 }
 0xbeb   : > { %2952 = vrot.lane.b32.xlu2 %v2944_v35, %s6823_s29 }
 0xc45   : > { %v2953_v33 = vpop.permute.xlu2 %2952 }
 0xc52   : > { %v2949_v11 = vpop.permute.xlu0 %2948 }
 0xc53   : > { %2959 = vst.msk [vmem:[#allocation2 + $0x30] sm:$0xff] %vm622_vm10, %v2949_v11 }
 0xc54   : > { %v2951_v3 = vpop.permute.xlu1 %2950 }
 0xc55   : > { %v8560_v38 = vsel %vm336_vm8, %v2949_v11, %v2951_v3  ;;  %v2955_v4 = vsel %vm336_vm8, %v2951_v3, %v2953_v33 }
 0xc56   : > { %2961 = vst.msk [vmem:[#allocation2 + $0x40] sm:$0xff] %vm625_vm14, %v2955_v4 }
 0xc57   : > { %2966 = vst [vmem:[#allocation3 + $0x1b8] sm:$0xff] %v8560_v38 }
 0xc5a   : > { %v8565_v39 = vld [vmem:[#allocation2 + $0x30] sm:$0xff] }
 0xc5b   : > { %3081 = vrot.lane.b32.xlu0 %v8565_v39, %s6814_s23  ;;  %3067 = vrot.lane.b32.xlu2 %v8565_v39, %s6815_s18  ;;  %2965 = vst [vmem:[#allocation3 + $0x1b0] sm:$0xff] %v8565_v39 }
 0xc5c   : > { %3053 = vrot.lane.b32.xlu1 %v8565_v39, %s6816_s17 }
 0xc5d   : > { %v3049_v34 = vld [vmem:[#allocation2 + $0x40] sm:$0xff] }
 0xc5e   : > { %2967 = vst.msk [vmem:[#allocation3 + $0x1c0] sm:$0xff] %vm358_vm1, %v3049_v34 }
 0xc63   : > { %3055 = vrot.lane.b32.xlu2 %v8560_v38, %s6816_s17  ;;  %3069 = vrot.lane.b32.xlu0 %v8560_v38, %s6815_s18 }
 0xc64   : > { %3033 = vrot.lane.b32.xlu1 %v8565_v39, %s6817_s24 }
 0xc6b   : > { %3085 = vrot.lane.b32.xlu0 %v3049_v34, %s6814_s23  ;;  %3035 = vrot.lane.b32.xlu2 %v8560_v38, %s6817_s24 }
 0xc6c   : > { %3019 = vrot.lane.b32.xlu1 %v8565_v39, %s6818_s25 }
 0xc73   : > { %3071 = vrot.lane.b32.xlu0 %v3049_v34, %s6815_s18  ;;  %3021 = vrot.lane.b32.xlu2 %v8560_v38, %s6818_s25 }
 0xc74   : > { %3005 = vrot.lane.b32.xlu1 %v8565_v39, %s6819_s26 }
 0xc7b   : > { %3057 = vrot.lane.b32.xlu0 %v3049_v34, %s6816_s17  ;;  %3007 = vrot.lane.b32.xlu2 %v8560_v38, %s6819_s26 }
 0xc7c   : > { %2985 = vrot.lane.b32.xlu1 %v8565_v39, %s6820_s27 }
 0xc83   : > { %3037 = vrot.lane.b32.xlu0 %v3049_v34, %s6817_s24  ;;  %2987 = vrot.lane.b32.xlu2 %v8560_v38, %s6820_s27 }
 0xc84   : > { %3083 = vrot.lane.b32.xlu1 %v8560_v38, %s6814_s23 }
 0xc8b   : > { %3023 = vrot.lane.b32.xlu0 %v3049_v34, %s6818_s25  ;;  %2973 = vrot.lane.b32.xlu2 %v8560_v38, %s6821_s28 }
 0xc8c   : > { %2971 = vrot.lane.b32.xlu1 %v8565_v39, %s6821_s28 }
 0xc93   : > { %3009 = vrot.lane.b32.xlu0 %v3049_v34, %s6819_s26  ;;  %2975 = vrot.lane.b32.xlu2 %v3049_v34, %s6821_s28 }
 0xc94   : > { %2989 = vrot.lane.b32.xlu1 %v3049_v34, %s6820_s27 }
 0xc9b   : > { %3186 = vrot.lane.b32.xlu0 %v8479_v27, %s6836_s21 }
 0xc9c   : > { %3188 = vrot.lane.b32.xlu1 %v8609_v23, %s6836_s21 }
 0xcb5   : > { %v3068_v28 = vpop.permute.xlu2 %3067 }
 0xcbd   : > { %v3056_v45 = vpop.permute.xlu2 %3055 }
 0xcc5   : > { %v3036_v17 = vpop.permute.xlu2 %3035 }
 0xccd   : > { %v3082_v10 = vpop.permute.xlu0 %3081  ;;  %v3022_v46 = vpop.permute.xlu2 %3021 }
 0xcce   : > { %v3054_v60 = vpop.permute.xlu1 %3053 }
 0xccf   : > { %v8614_v63 = vsel %vm456_vm4, %v3054_v60, %v3056_v45 }
 0xcd0   : > { %3064 = vst [vmem:[#allocation3 + $0x240] sm:$0xff] %v8614_v63 }
 0xcd5   : > { %v3070_v20 = vpop.permute.xlu0 %3069  ;;  %v8617_v31 = vpop.permute.xlu2 %3007 }
 0xcd6   : > { %v8620_v62 = vsel %vm10607_vm15, %v3068_v28, %v3070_v20  ;;  %v3034_v27 = vpop.permute.xlu1 %3033  ;;  %vm10609_vm15 = vcmask 1039360  }
 0xcd7   : > { %3078 = vst [vmem:[#allocation3 + $0x258] sm:$0xff] %v8620_v62  ;;  %v8624_v6 = vsel %vm435_vm5, %v3034_v27, %v3036_v17 }
 0xcd8   : > { %3044 = vst [vmem:[#allocation3 + $0x228] sm:$0xff] %v8624_v6 }
 0xcdd   : > { %v3086_v32 = vpop.permute.xlu0 %3085  ;;  %v8627_v12 = vpop.permute.xlu2 %2987 }
 0xcde   : > { %3094 = vst.msk [vmem:[#allocation3 + $0x280] sm:$0xff] %vm358_vm1, %v3086_v32  ;;  %v3020_v59 = vpop.permute.xlu1 %3019 }
 0xcdf   : > { %v8631_v9 = vsel %vm420_vm6, %v3020_v59, %v3022_v46 }
 0xce0   : > { %3030 = vst [vmem:[#allocation3 + $0x210] sm:$0xff] %v8631_v9 }
 0xce5   : > { %v3072_v54 = vpop.permute.xlu0 %3071  ;;  %v2974_v22 = vpop.permute.xlu2 %2973  ;;  %v8634_v53 = vld [vmem:[#allocation3 + $0x280] sm:$0xff] }
 0xce6   : > { %v8637_v43 = vsel %vm10605_vm3, %v3070_v20, %v3072_v54  ;;  %3080 = vst.msk [vmem:[#allocation3 + $0x268] sm:$0xff] %vm358_vm1, %v3072_v54  ;;  %v3006_v7 = vpop.permute.xlu1 %3005  ;;  %3300 = vmatpush.msrb.mxu2 %v8634_v53  ;;  %vm10610_vm3 = vcmask 1031168  }
 0xce7   : > { %3079 = vst [vmem:[#allocation3 + $0x260] sm:$0xff] %v8637_v43  ;;  %v8644_v41 = vsel %vm10608_vm9, %v3006_v7, %v8617_v31  ;;  %vm10611_vm9 = vcmask 736256  }
 0xce8   : > { %3016 = vst [vmem:[#allocation3 + $0x1f8] sm:$0xff] %v8644_v41 }
 0xced   : > { %v3058_v47 = vpop.permute.xlu0 %3057  ;;  %v2976_v16 = vpop.permute.xlu2 %2975  ;;  %v8647_v13 = vld [vmem:[#allocation3 + $0x268] sm:$0xff] }
 0xcee   : > { %v8650_v35 = vsel %vm456_vm4, %v3056_v45, %v3058_v47  ;;  %3066 = vst.msk [vmem:[#allocation3 + $0x250] sm:$0xff] %vm358_vm1, %v3058_v47  ;;  %v8654_v11 = vsel %vm10609_vm15, %v2974_v22, %v2976_v16  ;;  %v2986_v33 = vpop.permute.xlu1 %2985  ;;  %3301 = vmatpush.msrb.mxu2 %v8647_v13  ;;  %vm10612_vm15 = vmmov %vm10611_vm9 }
 0xcef   : > { %3065 = vst [vmem:[#allocation3 + $0x248] sm:$0xff] %v8650_v35  ;;  %v8660_v3 = vsel %vm10610_vm3, %v2986_v33, %v8627_v12  ;;  %vm10613_vm3 = vcmask 1039360   ;;  %v6837_v33 = vmov 7  }
 0xcf0   : > { %2983 = vst [vmem:[#allocation3 + $0x1d0] sm:$0xff] %v8654_v11  ;;  %6626 = vset.pattern.permute.xlu2 %v6837_v33 }
 0xcf1   : > { %2984 = vst.msk [vmem:[#allocation3 + $0x1d8] sm:$0xff] %vm358_vm1, %v2976_v16  ;;  %3181 = vperm.xlu2 %6626, %v8516_v8  }
 0xcf2   : > { %2996 = vst [vmem:[#allocation3 + $0x1e0] sm:$0xff] %v8660_v3 }
 0xcf5   : > { %v3038_v4 = vpop.permute.xlu0 %3037  ;;  %v8665_v34 = vld [vmem:[#allocation3 + $0x250] sm:$0xff] }
 0xcf6   : > { %v8668_v28 = vsel %vm435_vm5, %v3036_v17, %v3038_v4  ;;  %3046 = vst.msk [vmem:[#allocation3 + $0x238] sm:$0xff] %vm358_vm1, %v3038_v4  ;;  %v3084_v45 = vpop.permute.xlu1 %3083  ;;  %3302 = vmatpush.msrb.mxu2 %v8665_v34 }
 0xcf7   : > { %3045 = vst [vmem:[#allocation3 + $0x230] sm:$0xff] %v8668_v28  ;;  %v8674_v60 = vsel %vm10611_vm9, %v3082_v10, %v3084_v45  ;;  %v8677_v20 = vsel %vm10612_vm15, %v3084_v45, %v3086_v32  ;;  %vm10614_vm9 = vcmask 900096   ;;  %vm10615_vm15 = vcmask 1031168   ;;  %v8826_v45 = vld [vmem:[#allocation3 + $0xb0] sm:$0xff] }
 0xcf8   : > { %3093 = vst [vmem:[#allocation3 + $0x278] sm:$0xff] %v8677_v20  ;;  %3220 = vmatpush.msrb.mxu0 %v8674_v60  ;;  %3260 = vmatpush.msrb.mxu3 %v8677_v20 }
 0xcf9   : > { %10625 = vst [vmem:[#allocation23_spill] sm:$0xff] %v8826_v45 }
 0xcfa   : > { %3221 = vmatpush.msrb.mxu0 %v8620_v62  ;;  %3261 = vmatpush.msrb.mxu3 %v8637_v43 }
 0xcfc   : > { %3222 = vmatpush.msrb.mxu0 %v8614_v63  ;;  %3262 = vmatpush.msrb.mxu3 %v8650_v35 }
 0xcfd   : > { %v3024_v17 = vpop.permute.xlu0 %3023  ;;  %v8686_v10 = vld [vmem:[#allocation3 + $0x238] sm:$0xff] }
 0xcfe   : > { %v8689_v27 = vsel %vm420_vm6, %v3022_v46, %v3024_v17  ;;  %3032 = vst.msk [vmem:[#allocation3 + $0x220] sm:$0xff] %vm358_vm1, %v3024_v17  ;;  %v2972_v32 = vpop.permute.xlu1 %2971  ;;  %3303 = vmatpush.msrb.mxu2 %v8686_v10  ;;  %3223 = vmatpush.msrb.mxu0 %v8624_v6  ;;  %v8841_v17 = vld [vmem:[#allocation3 + $0x38] sm:$0xff] }
 0xcff   : > { %3031 = vst [vmem:[#allocation3 + $0x218] sm:$0xff] %v8689_v27  ;;  %3263 = vmatpush.msrb.mxu3 %v8668_v28  ;;  %v8701_v46 = vsel %vm10613_vm3, %v2972_v32, %v2974_v22  ;;  %vm3190_vm3 = vcmask 916480   ;;  %v8844_v32 = vld [vmem:[#allocation3 + $0x20] sm:$0xff] }
 0xd00   : > { %3224 = vmatpush.msrb.mxu0 %v8631_v9  ;;  %10630 = vst [vmem:[#allocation28_spill] sm:$0xff] %v8841_v17 }
 0xd01   : > { %3264 = vmatpush.msrb.mxu3 %v8689_v27  ;;  %10631 = vst [vmem:[#allocation29_spill] sm:$0xff] %v8844_v32 }
 0xd02   : > { %3225 = vmatpush.msrb.mxu0 %v8644_v41 }
 0xd04   : > { %3226 = vmatpush.msrb.mxu0 %v8660_v3 }
 0xd05   : > { %v3010_v59 = vpop.permute.xlu0 %3009  ;;  %v8703_v54 = vld [vmem:[#allocation3 + $0x220] sm:$0xff] }
 0xd06   : > { %v8707_v7 = vsel %vm10614_vm9, %v8617_v31, %v3010_v59  ;;  %3018 = vst.msk [vmem:[#allocation3 + $0x208] sm:$0xff] %vm358_vm1, %v3010_v59  ;;  %v2990_v47 = vpop.permute.xlu1 %2989  ;;  %3304 = vmatpush.msrb.mxu2 %v8703_v54  ;;  %3227 = vmatpush.msrb.mxu0 %v8701_v46  ;;  %vm10616_vm9 = vcmask 719872   ;;  %v8847_v59 = vld [vmem:[#allocation3 + $0x8] sm:$0xff] }
 0xd07   : > { %3017 = vst [vmem:[#allocation3 + $0x200] sm:$0xff] %v8707_v7  ;;  %v8715_v22 = vsel %vm10615_vm15, %v8627_v12, %v2990_v47  ;;  %3265 = vmatpush.msrb.mxu3 %v8707_v7  ;;  %vm10617_vm15 = vmmov %vm10616_vm9 }
 0xd08   : > { %2997 = vst [vmem:[#allocation3 + $0x1e8] sm:$0xff] %v8715_v22  ;;  %3228 = vmatpush.msrb.mxu0 %v8565_v39 }
 0xd09   : > { %2998 = vst.msk [vmem:[#allocation3 + $0x1f0] sm:$0xff] %vm358_vm1, %v2990_v47  ;;  %3266 = vmatpush.msrb.mxu3 %v8715_v22 }
 0xd0a   : > { %3229 = vmatpush.msrb.mxu0 %v8469_v50  ;;  %v8742_v50 = vld [vmem:[#allocation3 + $0x1c0] sm:$0xff]  ;;  %10632 = vst [vmem:[#allocation30_spill] sm:$0xff] %v8847_v59 }
 0xd0b   : > { %3267 = vmatpush.msrb.mxu3 %v8654_v11 }
 0xd0c   : > { %3230 = vmatpush.msrb.mxu0 %v8454_v49 }
 0xd0d   : > { %v3187_v31 = vpop.permute.xlu0 %3186  ;;  %v8725_v12 = vld [vmem:[#allocation3 + $0x208] sm:$0xff]  ;;  %3268 = vmatpush.msrb.mxu3 %v8560_v38  ;;  %v8814_v38 = vld [vmem:[#allocation3] sm:$0xff] }
 0xd0e   : > { %3275 = vmatpush.msra.mxu0 %v8362_v1  ;;  %v3189_v16 = vpop.permute.xlu1 %3188  ;;  %3305 = vmatpush.msrb.mxu2 %v8725_v12  ;;  %v8736_v1 = vld [vmem:[#allocation3 + $0x1d8] sm:$0xff]  ;;  %10623 = vst [vmem:[#allocation21_spill] sm:$0xff] %v8814_v38 }
 0xd0f   : > { %v3191_v4 = vsel %vm3190_vm3, %v3187_v31, %v3189_v16  ;;  %6475 = vmatmul.msk.f32.vlgmr.msrb.gmra.mxu0 %vm10616_vm9, %v3189_v16  ;;  %3269 = vmatpush.msrb.mxu3 %v8494_v56  ;;  %vm10618_vm3 = vmmov %vm10616_vm9  ;;  %v8802_v56 = vld [vmem:[#allocation3 + $0x48] sm:$0xff]  ;;  %vm3604_vm9 = vcmask 195584  }
 0xd10   : > { %3211 = vmatmul.f32.vlgmr.msra.gmra.mxu2 %v3191_v4  ;;  %3251 = vmatmul.f32.vlgmr.msra.gmra.mxu1 %v3191_v4  ;;  %v8732_v49 = vld [vmem:[#allocation3 + $0x1f0] sm:$0xff]  ;;  %10620 = vst [vmem:[#allocation18_spill] sm:$0xff] %v8802_v56 }
 0xd11   : > { %3306 = vmatpush.msrb.mxu2 %v8732_v49  ;;  %3276 = vmatpush.msra.mxu0 %v8371_v18  ;;  %v8757_v18 = vld [vmem:[#allocation3 + $0xd0] sm:$0xff] }
 0xd12   : > { %3270 = vmatpush.msrb.mxu3 %v8475_v14  ;;  %v8799_v14 = vld [vmem:[#allocation3 + $0x10] sm:$0xff] }
 0xd13   : > { %3307 = vmatpush.msrb.mxu2 %v8736_v1  ;;  %3277 = vmatpush.msra.mxu0 %v8385_v57  ;;  %v8765_v57 = vld [vmem:[#allocation3 + $0xa0] sm:$0xff] }
 0xd14   : > { %6476 = vmatmul.msk.f32.vlgmr.msrb.gmra.mxu3 %vm10617_vm15, %v3189_v16  ;;  %vm10634_vm15 = vcmask 900096  }
 0xd15   : > { %3308 = vmatpush.msrb.mxu2 %v8742_v50  ;;  %3278 = vmatpush.msra.mxu0 %v8399_v24  ;;  %v8772_v24 = vld [vmem:[#allocation3 + $0xc0] sm:$0xff] }
 0xd16   : > { %3612 = vmatpush.msra.mxu3 %v8376_v51  ;;  %v8761_v51 = vld [vmem:[#allocation3 + $0xb8] sm:$0xff] }
 0xd17   : > { %3309 = vmatpush.msrb.mxu2 %v8508_v36  ;;  %3279 = vmatpush.msra.mxu0 %v8413_v15  ;;  %v8778_v15 = vld [vmem:[#allocation3 + $0xa8] sm:$0xff]  ;;  %v8806_v36 = vld [vmem:[#allocation3 + $0x30] sm:$0xff] }
 0xd18   : > { %3613 = vmatpush.msra.mxu3 %v8390_v26  ;;  %v8769_v26 = vld [vmem:[#allocation3 + $0x88] sm:$0xff]  ;;  %10621 = vst [vmem:[#allocation19_spill] sm:$0xff] %v8806_v36 }
 0xd19   : > { %3310 = vmatpush.msrb.mxu2 %v8512_v5  ;;  %3280 = vmatpush.msra.mxu0 %v8427_v55  ;;  %v8787_v55 = vld [vmem:[#allocation3 + $0x40] sm:$0xff]  ;;  %v8810_v5 = vld [vmem:[#allocation3 + $0x18] sm:$0xff] }
 0xd1a   : > { %6477 = vmatmul.msk.f32.vlgmr.msrb.gmra.mxu2 %vm10618_vm3, %v3189_v16  ;;  %3614 = vmatpush.msra.mxu3 %v8404_v42  ;;  %v8775_v42 = vld [vmem:[#allocation3 + $0x70] sm:$0xff]  ;;  %10622 = vst [vmem:[#allocation20_spill] sm:$0xff] %v8810_v5  ;;  %vm10635_vm3 = vcmask 1031168  }
 0xd1b   : > { %3281 = vmatpush.msra.mxu0 %v8434_v37  ;;  %v8793_v37 = vld [vmem:[#allocation3 + $0x28] sm:$0xff] }
 0xd1c   : > { %3615 = vmatpush.msra.mxu3 %v8418_v19  ;;  %v8781_v19 = vld [vmem:[#allocation3 + $0x58] sm:$0xff] }
 0xd1d   : > { %3282 = vmatpush.msra.mxu0 %v8757_v18 }
 0xd1e   : > { %3616 = vmatpush.msra.mxu3 %v8431_v25  ;;  %v8790_v25 = vld [vmem:[#allocation3 + $0x78] sm:$0xff] }
 0xd1f   : > { %3283 = vmatpush.msra.mxu0 %v8761_v51 }
 0xd20   : > { %3617 = vmatpush.msra.mxu3 %v8449_v2  ;;  %v8796_v2 = vld [vmem:[#allocation3 + $0x60] sm:$0xff] }
 0xd21   : > { %3284 = vmatpush.msra.mxu0 %v8765_v57  ;;  %10619 = vst [vmem:[#allocation17_spill] sm:$0xff] %v8796_v2 }
 0xd22   : > { %3618 = vmatpush.msra.mxu3 %v8318_v48  ;;  %v8784_v48 = vld [vmem:[#allocation3 + $0x90] sm:$0xff] }
 0xd23   : > { %3285 = vmatpush.msra.mxu0 %v8769_v26 }
 0xd24   : > { %3619 = vmatpush.msra.mxu3 %v8772_v24 }
 0xd25   : > { %3286 = vmatpush.msra.mxu0 %v8775_v42 }
 0xd26   : > { %3620 = vmatpush.msra.mxu3 %v8778_v15 }
 0xd27   : > { %3287 = vmatpush.msra.mxu0 %v8781_v19 }
 0xd28   : > { %3621 = vmatpush.msra.mxu3 %v8784_v48 }
 0xd29   : > { %3288 = vmatpush.msra.mxu0 %v8787_v55 }
 0xd2a   : > { %3622 = vmatpush.msra.mxu3 %v8790_v25 }
 0xd2b   : > { %3289 = vmatpush.msra.mxu0 %v8793_v37 }
 0xd2c   : > { %3623 = vmatpush.msra.mxu3 %v8796_v2 }
 0xd2d   : > { %3290 = vmatpush.msra.mxu0 %v8799_v14 }
 0xd2e   : > { %3624 = vmatpush.msra.mxu3 %v8802_v56  ;;  %3291 = vmatmul.f32.vlgmr.msra.gmra.mxu0 %v3191_v4 }
 0xd2f   : > { %3672 = vmatpush.msrb.mxu0 %v8367_v61  ;;  %v8820_v61 = vld [vmem:[#allocation3 + $0xe0] sm:$0xff] }
 0xd30   : > { %3625 = vmatpush.msra.mxu3 %v8806_v36 }
 0xd31   : > { %3673 = vmatpush.msrb.mxu0 %v8380_v29  ;;  %v8823_v29 = vld [vmem:[#allocation3 + $0xc8] sm:$0xff] }
 0xd32   : > { %3626 = vmatpush.msra.mxu3 %v8810_v5  ;;  %10624 = vst [vmem:[#allocation22_spill] sm:$0xff] %v8823_v29 }
 0xd33   : > { %3674 = vmatpush.msrb.mxu0 %v8394_v52  ;;  %v8829_v52 = vld [vmem:[#allocation3 + $0x98] sm:$0xff] }
 0xd34   : > { %3627 = vmatpush.msra.mxu3 %v8814_v38  ;;  %10626 = vst [vmem:[#allocation24_spill] sm:$0xff] %v8829_v52 }
 0xd35   : > { %3675 = vmatpush.msrb.mxu0 %v8408_v58  ;;  %v8832_v58 = vld [vmem:[#allocation3 + $0x80] sm:$0xff] }
 0xd36   : > { %10627 = vst [vmem:[#allocation25_spill] sm:$0xff] %v8832_v58 }
 0xd37   : > { %3676 = vmatpush.msrb.mxu0 %v8422_v21  ;;  %v8835_v21 = vld [vmem:[#allocation3 + $0x68] sm:$0xff] }
 0xd38   : > { %10628 = vst [vmem:[#allocation26_spill] sm:$0xff] %v8835_v21 }
 0xd39   : > { %3677 = vmatpush.msrb.mxu0 %v8437_v40  ;;  %v8838_v40 = vld [vmem:[#allocation3 + $0x50] sm:$0xff] }
 0xd3a   : > { %10629 = vst [vmem:[#allocation27_spill] sm:$0xff] %v8838_v40 }
 0xd3b   : > { %3678 = vmatpush.msrb.mxu0 %v8820_v61 }
 0xd3d   : > { %3679 = vmatpush.msrb.mxu0 %v8823_v29  ;;  %v8983_v29 = vld [vmem:[#allocation3 + $0x198] sm:$0xff] }
 0xd3f   : > { %3680 = vmatpush.msrb.mxu0 %v8826_v45 }
 0xd41   : > { %3681 = vmatpush.msrb.mxu0 %v8829_v52 }
 0xd43   : > { %3682 = vmatpush.msrb.mxu0 %v8832_v58 }
 0xd45   : > { %3683 = vmatpush.msrb.mxu0 %v8835_v21 }
 0xd47   : > { %3684 = vmatpush.msrb.mxu0 %v8838_v40 }
 0xd49   : > { %3685 = vmatpush.msrb.mxu0 %v8841_v17 }
 0xd4b   : > { %3686 = vmatpush.msrb.mxu0 %v8844_v32  ;;  %v3182_v47 = vpop.permute.xlu2 %3181 }
 0xd4d   : > { %3687 = vmatpush.msrb.mxu0 %v8847_v59 }
 0xd8c   : > { %v3232_v4 = vpop.f32.mrf.mxu0 }
 0xd8d   : > { %v3252_v31 = vpop.f32.mrf.mxu1 }
 0xd8e   : > { %v3253_v21 = vadd.f32 %v3252_v31, %v3182_v47 }
 0xd93   : > { %v3212_v16 = vpop.f32.mrf.mxu2 }
 0xd94   : > { %v3213_v33 = vadd.f32 %v3212_v16, %v3182_v47 }
 0xd96   : > { %v3233_v38 = vadd.f32 %v3232_v4, %v3213_v33 }
 0xd97   : > { %v3272_v40 = vpop.f32.mrf.mxu3 }
 0xd98   : > { %v3315_v58 = vmul.f32 0.2, %v3233_v38  ;;  %v3273_v5 = vadd.f32 %v3272_v40, %v3253_v21 }
 0xd9a   : > { %v3318_v52 = vmax.f32 %v3233_v38, %v3315_v58  ;;  %v3316_v17 = vmul.f32 0.2, %v3273_v5 }
 0xd9c   : > { %v3321_v36 = vsel %vm7185_vm12, %v3318_v52, 0.0  ;;  %v3319_v32 = vmax.f32 %v3273_v5, %v3316_v17  ;;  %v3475_v52 = vld [vmem:[#allocation7 + $0x60] sm:$0xff]  ;;  %v3476_v17 = vld [vmem:[#allocation7 + $0x68] sm:$0xff] }
 0xd9d   : > { %3327 = vrot.lane.b32.xlu0 %v3321_v36, %s6823_s29  ;;  %v3312_v31 = vpop.f32.mrf.mxu2  ;;  %v6627_v5 = vpack.i.bf16 %v3475_v52, %v8609_v23 }
 0xd9e   : > { %v3322_v59 = vsel %vm7189_vm0, %v3319_v32, 0.0  ;;  %v8910_v32 = vld [vmem:[#allocation7 + $0x70] sm:$0xff] }
 0xd9f   : > { %3329 = vrot.lane.b32.xlu1 %v3322_v59, %s6823_s29  ;;  %10633 = vst [vmem:[#allocation31_spill] sm:$0xff] %v8910_v32 }
 0xda5   : > { %6628 = vrot.lane.b32.xlu0 %v6627_v5, %s6838_s5 }
 0xdab   : > { %v3292_v16 = vpop.f32.mrf.mxu0 }
 0xdac   : > { %v3293_v45 = vadd.f32 %v3292_v16, %v3182_v47 }
 0xdae   : > { %v3313_v33 = vadd.f32 %v3312_v31, %v3293_v45 }
 0xdb0   : > { %v3317_v4 = vmul.f32 0.2, %v3313_v33 }
 0xdb2   : > { %v3320_v56 = vmax.f32 %v3313_v33, %v3317_v4  ;;  %v6839_v4 = vmov 8  }
 0xdb3   : > { %6632 = vset.pattern.permute.xlu0 %v6839_v4 }
 0xdb4   : > { %v3323_v38 = vsel %vm7199_vm7, %v3320_v56, 0.0 }
 0xdb5   : > { %3331 = vrot.lane.b32.xlu2 %v3323_v38, %s6823_s29 }
 0xe0f   : > { %v3328_v36 = vpop.permute.xlu0 %3327  ;;  %v3332_v58 = vpop.permute.xlu2 %3331 }
 0xe10   : > { %3338 = vst.msk [vmem:[#allocation2 + $0x48] sm:$0xff] %vm622_vm10, %v3328_v36 }
 0xe11   : > { %v3330_v21 = vpop.permute.xlu1 %3329 }
 0xe12   : > { %v3334_v45 = vsel %vm336_vm8, %v3330_v21, %v3332_v58  ;;  %v8874_v56 = vsel %vm336_vm8, %v3328_v36, %v3330_v21 }
 0xe13   : > { %3340 = vst.msk [vmem:[#allocation2 + $0x58] sm:$0xff] %vm625_vm14, %v3334_v45 }
 0xe17   : > { %v8864_v40 = vld [vmem:[#allocation2 + $0x48] sm:$0xff]  ;;  %v8915_v59 = vpop.permute.xlu0 %6628 }
 0xe18   : > { %3446 = vrot.lane.b32.xlu0 %v8864_v40, %s6815_s18  ;;  %3398 = vrot.lane.b32.xlu1 %v8864_v40, %s6818_s25  ;;  %v10493_v47 = vunpack.i.h.bf16 %v8915_v59  ;;  %v6630_v16 = vunpack.i.l.bf16 %v8915_v59 }
 0xe19   : > { %3350 = vrot.lane.b32.xlu2 %v8864_v40, %s6821_s28 }
 0xe1a   : > { %v3380_v23 = vld [vmem:[#allocation2 + $0x58] sm:$0xff]  ;;  %v8922_v31 = vsel %vm3604_vm9, %v6630_v16, %v10493_v47 }
 0xe1b   : > { %3346 = vst.msk [vmem:[#allocation3 + $0x298] sm:$0xff] %vm358_vm1, %v3380_v23  ;;  %3628 = vmatmul.f32.vlgmr.msra.gmra.mxu3 %v8922_v31  ;;  %3688 = vmatmul.f32.vlgmr.msrb.gmra.mxu0 %v8922_v31 }
 0xe20   : > { %3384 = vrot.lane.b32.xlu1 %v8864_v40, %s6819_s26  ;;  %3400 = vrot.lane.b32.xlu0 %v8874_v56, %s6818_s25 }
 0xe21   : > { %3432 = vrot.lane.b32.xlu2 %v8864_v40, %s6816_s17 }
 0xe28   : > { %3364 = vrot.lane.b32.xlu1 %v8864_v40, %s6820_s27  ;;  %3388 = vrot.lane.b32.xlu0 %v3380_v23, %s6819_s26 }
 0xe29   : > { %3386 = vrot.lane.b32.xlu2 %v8874_v56, %s6819_s26 }
 0xe30   : > { %3460 = vrot.lane.b32.xlu1 %v8864_v40, %s6814_s23  ;;  %3368 = vrot.lane.b32.xlu0 %v3380_v23, %s6820_s27 }
 0xe31   : > { %3366 = vrot.lane.b32.xlu2 %v8874_v56, %s6820_s27 }
 0xe38   : > { %3402 = vrot.lane.b32.xlu1 %v3380_v23, %s6818_s25  ;;  %3354 = vrot.lane.b32.xlu0 %v3380_v23, %s6821_s28 }
 0xe39   : > { %3352 = vrot.lane.b32.xlu2 %v8874_v56, %s6821_s28 }
 0xe40   : > { %3412 = vrot.lane.b32.xlu1 %v8864_v40, %s6817_s24  ;;  %3434 = vrot.lane.b32.xlu0 %v8874_v56, %s6816_s17 }
 0xe41   : > { %3462 = vrot.lane.b32.xlu2 %v8874_v56, %s6814_s23 }
 0xe48   : > { %3448 = vrot.lane.b32.xlu1 %v8874_v56, %s6815_s18  ;;  %3464 = vrot.lane.b32.xlu0 %v3380_v23, %s6814_s23 }
 0xe49   : > { %3414 = vrot.lane.b32.xlu2 %v8874_v56, %s6817_s24 }
 0xe50   : > { %3450 = vrot.lane.b32.xlu1 %v3380_v23, %s6815_s18  ;;  %3416 = vrot.lane.b32.xlu0 %v3380_v23, %s6817_s24 }
 0xe51   : > { %3436 = vrot.lane.b32.xlu2 %v3380_v23, %s6816_s17 }
 0xe58   : > { %3600 = vrot.lane.b32.xlu1 %v3476_v17, %s6838_s5  ;;  %3589 = vperm.xlu0 %6632, %v8516_v8  }
 0xe59   : > { %3602 = vrot.lane.b32.xlu2 %v8910_v32, %s6838_s5 }
 0xe73   : > { %v3351_v33 = vpop.permute.xlu2 %3350 }
 0xe7b   : > { %v3433_v38 = vpop.permute.xlu2 %3432 }
 0xe83   : > { %v8927_v52 = vpop.permute.xlu2 %3386 }
 0xe8a   : > { %v3399_v5 = vpop.permute.xlu1 %3398  ;;  %v3447_v36 = vpop.permute.xlu0 %3446 }
 0xe8b   : > { %v8929_v58 = vpop.permute.xlu2 %3366 }
 0xe92   : > { %v3385_v21 = vpop.permute.xlu1 %3384  ;;  %v8931_v45 = vpop.permute.xlu0 %3400 }
 0xe93   : > { %v8933_v23 = vpop.permute.xlu2 %3352  ;;  %v8937_v17 = vsel %vm420_vm6, %v3399_v5, %v8931_v45  ;;  %v8942_v8 = vsel %vm10634_vm15, %v3385_v21, %v8927_v52  ;;  %vm10637_vm15 = vcmask 736256  }
 0xe94   : > { %3632 = vmatpush.msrb.mxu1 %v8937_v17  ;;  %v8956_v5 = vsel %vm10636_vm13, %v3351_v33, %v8933_v23  ;;  %vm10640_vm13 = vcmask 744448  }
 0xe96   : > { %3633 = vmatpush.msrb.mxu1 %v8942_v8 }
 0xe9a   : > { %v3365_v16 = vpop.permute.xlu1 %3364  ;;  %v8945_v4 = vpop.permute.xlu0 %3388 }
 0xe9b   : > { %v8949_v47 = vsel %vm10635_vm3, %v3365_v16, %v8929_v58  ;;  %v3463_v32 = vpop.permute.xlu2 %3462  ;;  %3397 = vst.msk [vmem:[#allocation3 + $0x2e0] sm:$0xff] %vm358_vm1, %v8945_v4  ;;  %vm10641_vm3 = vmmov %vm10637_vm15 }
 0xe9c   : > { %3634 = vmatpush.msrb.mxu1 %v8949_v47 }
 0xe9e   : > { %3635 = vmatpush.msrb.mxu1 %v8956_v5 }
 0xea0   : > { %3636 = vmatpush.msrb.mxu1 %v8864_v40 }
 0xea2   : > { %v3461_v21 = vpop.permute.xlu1 %3460  ;;  %v8960_v0 = vpop.permute.xlu0 %3368  ;;  %3637 = vmatpush.msrb.mxu1 %v8674_v60 }
 0xea3   : > { %v3466_v16 = vsel %vm10637_vm15, %v3461_v21, %v3463_v32  ;;  %v3415_v44 = vpop.permute.xlu2 %3414  ;;  %3377 = vst.msk [vmem:[#allocation3 + $0x2c8] sm:$0xff] %vm358_vm1, %v8960_v0  ;;  %vm10644_vm15 = vcmask 900096  }
 0xea4   : > { %3471 = vst [vmem:[#allocation3 + $0x348] sm:$0xff] %v3466_v16  ;;  %3638 = vmatpush.msrb.mxu1 %v8620_v62  ;;  %3664 = vmatpush.msra.mxu2 %v3466_v16 }
 0xea6   : > { %3639 = vmatpush.msrb.mxu1 %v8614_v63 }
 0xea8   : > { %3640 = vmatpush.msrb.mxu1 %v8624_v6 }
 0xeaa   : > { %v3403_v33 = vpop.permute.xlu1 %3402  ;;  %v8969_v30 = vpop.permute.xlu0 %3354  ;;  %3641 = vmatpush.msrb.mxu1 %v8631_v9 }
 0xeab   : > { %3411 = vst.msk [vmem:[#allocation3 + $0x2f8] sm:$0xff] %vm358_vm1, %v3403_v33  ;;  %v3437_v21 = vpop.permute.xlu2 %3436 }
 0xeac   : > { %3445 = vst.msk [vmem:[#allocation3 + $0x328] sm:$0xff] %vm358_vm1, %v3437_v21  ;;  %3642 = vmatpush.msrb.mxu1 %v8644_v41  ;;  %v8986_v41 = vld [vmem:[#allocation3 + $0x180] sm:$0xff] }
 0xead   : > { %3363 = vst.msk [vmem:[#allocation3 + $0x2b0] sm:$0xff] %vm358_vm1, %v8969_v30 }
 0xeae   : > { %3643 = vmatpush.msrb.mxu1 %v8660_v3  ;;  %v8989_v3 = vld [vmem:[#allocation3 + $0x178] sm:$0xff] }
 0xeaf   : > { %10638 = vst [vmem:[#allocation32_spill] sm:$0xff] %v8989_v3 }
 0xeb0   : > { %3644 = vmatpush.msrb.mxu1 %v8701_v46 }
 0xeb2   : > { %v3413_v63 = vpop.permute.xlu1 %3412  ;;  %v3435_v62 = vpop.permute.xlu0 %3434  ;;  %3645 = vmatpush.msrb.mxu1 %v8565_v39  ;;  %v8992_v39 = vld [vmem:[#allocation3 + $0x160] sm:$0xff] }
 0xeb3   : > { %v3418_v6 = vsel %vm435_vm5, %v3413_v63, %v3415_v44  ;;  %v3438_v9 = vsel %vm456_vm4, %v3433_v38, %v3435_v62  ;;  %v3439_v16 = vsel %vm456_vm4, %v3435_v62, %v3437_v21  ;;  %10639 = vst [vmem:[#allocation33_spill] sm:$0xff] %v8992_v39  ;;  %v8995_v63 = vld [vmem:[#allocation3 + $0x148] sm:$0xff] }
 0xeb4   : > { %3423 = vst [vmem:[#allocation3 + $0x300] sm:$0xff] %v3418_v6  ;;  %3646 = vmatpush.msrb.mxu1 %v8983_v29 }
 0xeb5   : > { %3443 = vst [vmem:[#allocation3 + $0x318] sm:$0xff] %v3438_v9 }
 0xeb6   : > { %3444 = vst [vmem:[#allocation3 + $0x320] sm:$0xff] %v3439_v16  ;;  %3647 = vmatpush.msrb.mxu1 %v8986_v41 }
 0xeb8   : > { %3732 = vmatpush.msra.mxu1 %v8989_v3  ;;  %v9004_v3 = vld [vmem:[#allocation3 + $0x130] sm:$0xff] }
 0xeb9   : > { %10642 = vst [vmem:[#allocation34_spill] sm:$0xff] %v9004_v3 }
 0xeba   : > { %3733 = vmatpush.msra.mxu1 %v8992_v39  ;;  %v3449_v38 = vpop.permute.xlu1 %3448  ;;  %v3465_v21 = vpop.permute.xlu0 %3464  ;;  %v9007_v39 = vld [vmem:[#allocation3 + $0x118] sm:$0xff] }
 0xebb   : > { %v8998_v62 = vsel %vm10640_vm13, %v3447_v36, %v3449_v38  ;;  %v3467_v2 = vsel %vm10641_vm3, %v3463_v32, %v3465_v21  ;;  %3473 = vst.msk [vmem:[#allocation3 + $0x358] sm:$0xff] %vm358_vm1, %v3465_v21  ;;  %v9012_v32 = vsel %vm420_vm6, %v8931_v45, %v3403_v33  ;;  %v9014_v36 = vld [vmem:[#allocation3 + $0x100] sm:$0xff]  ;;  %v9027_v33 = vld [vmem:[#allocation3 + $0xe8] sm:$0xff]  ;;  %vm10645_vm3 = vcmask 1031168  }
 0xebc   : > { %3734 = vmatpush.msra.mxu1 %v8995_v63  ;;  %3472 = vst [vmem:[#allocation3 + $0x350] sm:$0xff] %v3467_v2  ;;  %3665 = vmatpush.msra.mxu2 %v8998_v62 }
 0xebd   : > { %3724 = vmatpush.msrb.mxu3 %v3467_v2  ;;  %10643 = vst [vmem:[#allocation35_spill] sm:$0xff] %v9007_v39  ;;  %v9021_v2 = vsel %vm10644_vm15, %v8927_v52, %v8945_v4  ;;  %vm10646_vm15 = vcmask 1039360   ;;  %v9045_v52 = vld [vmem:[#allocation3 + $0x2f8] sm:$0xff] }
 0xebe   : > { %3735 = vmatpush.msra.mxu1 %v9004_v3  ;;  %3666 = vmatpush.msra.mxu2 %v3438_v9 }
 0xec0   : > { %3736 = vmatpush.msra.mxu1 %v9007_v39  ;;  %3667 = vmatpush.msra.mxu2 %v3418_v6  ;;  %v9032_v6 = vsel %vm10645_vm3, %v8929_v58, %v8960_v0  ;;  %v3603_v0 = vpop.permute.xlu2 %3602  ;;  %vm10667_vm3 = vcmask 744448  }
 0xec2   : > { %3692 = vmatpush.msrb.mxu2 %v9012_v32  ;;  %3737 = vmatpush.msra.mxu1 %v9014_v36  ;;  %v3451_v9 = vpop.permute.xlu1 %3450  ;;  %v3417_v21 = vpop.permute.xlu0 %3416  ;;  %v3585_v3 = vld [vmem:[#allocation3 + $0x358] sm:$0xff] }
 0xec3   : > { %v3453_v39 = vsel %vm10640_vm13, %v3449_v38, %v3451_v9  ;;  %3459 = vst.msk [vmem:[#allocation3 + $0x340] sm:$0xff] %vm358_vm1, %v3451_v9  ;;  %v3419_v45 = vsel %vm435_vm5, %v3415_v44, %v3417_v21  ;;  %3784 = vmatpush.msra.mxu0 %v3585_v3  ;;  %v9039_v44 = vsel %vm10646_vm15, %v8933_v23, %v8969_v30  ;;  %v10659_v3 = vld [vmem:[#allocation28_spill] sm:$0xff]  ;;  %v10661_v38 = vld [vmem:[#allocation30_spill] sm:$0xff]  ;;  %v4033_v9 = vld [vmem:[#allocation3 + $0x278] sm:$0xff]  ;;  %vm10666_vm13 = vcmask 736256  }
 0xec4   : > { %3693 = vmatpush.msrb.mxu2 %v9021_v2  ;;  %3458 = vst [vmem:[#allocation3 + $0x338] sm:$0xff] %v3453_v39  ;;  %3738 = vmatpush.msra.mxu1 %v9027_v33  ;;  %vm10668_vm15 = vcmask 900096  }
 0xec5   : > { %3725 = vmatpush.msrb.mxu3 %v3453_v39  ;;  %3424 = vst [vmem:[#allocation3 + $0x308] sm:$0xff] %v3419_v45  ;;  %v10660_v39 = vld [vmem:[#allocation29_spill] sm:$0xff] }
 0xec6   : > { %3694 = vmatpush.msrb.mxu2 %v9032_v6  ;;  %3425 = vst.msk [vmem:[#allocation3 + $0x310] sm:$0xff] %vm358_vm1, %v3417_v21  ;;  %3739 = vmatpush.msra.mxu1 %v8757_v18  ;;  %v10647_v18 = vunpack.i.h.bf16 %v8915_v59  ;;  %v3985_v59 = vld [vmem:[#allocation3 + $0xf8] sm:$0xff]  ;;  %v4024_v21 = vld [vmem:[#allocation3 + $0x230] sm:$0xff] }
 0xec7   : > { %3726 = vmatpush.msrb.mxu3 %v3439_v16  ;;  %v9060_v16 = vld [vmem:[#allocation3 + $0x2e0] sm:$0xff] }
 0xec8   : > { %3695 = vmatpush.msrb.mxu2 %v9039_v44  ;;  %3740 = vmatpush.msra.mxu1 %v8761_v51  ;;  %v3579_v51 = vld [vmem:[#allocation3 + $0x328] sm:$0xff] }
 0xec9   : > { %3727 = vmatpush.msrb.mxu3 %v3419_v45  ;;  %v4021_v45 = vld [vmem:[#allocation3 + $0x218] sm:$0xff] }
 0xeca   : > { %3696 = vmatpush.msrb.mxu2 %v8874_v56  ;;  %v3601_v58 = vpop.permute.xlu1 %3600  ;;  %v3582_v30 = vld [vmem:[#allocation3 + $0x340] sm:$0xff]  ;;  %3741 = vmatpush.msra.mxu1 %v8765_v57 }
 0xecb   : > { %3752 = vmatpush.msra.mxu3 %v9045_v52  ;;  %v3607_v23 = vsel %vm3604_vm9, %v3601_v58, %v3603_v0  ;;  %3785 = vmatpush.msra.mxu0 %v3582_v30  ;;  %v9054_v4 = vsel %vm3604_vm9, %v10647_v18, %v3601_v58  ;;  %v4015_v0 = vld [vmem:[#allocation3 + $0x1e8] sm:$0xff]  ;;  %v4012_v58 = vld [vmem:[#allocation3 + $0x1d0] sm:$0xff]  ;;  %v4025_v30 = vld [vmem:[#allocation3 + $0x238] sm:$0xff]  ;;  %vm4104_vm9 = vcmask 982016  }
 0xecc   : > { %3697 = vmatpush.msrb.mxu2 %v8677_v20  ;;  %3648 = vmatmul.f32.vlgmr.msrb.gmra.mxu1 %v9054_v4  ;;  %v9070_v20 = vld [vmem:[#allocation3 + $0x2c8] sm:$0xff] }
 0xecd   : > { %6478 = vmatmul.msk.f32.vlgmr.msra.gmra.mxu2 %vm1629_vm2, %v3607_v23  ;;  %3786 = vmatpush.msra.mxu0 %v3579_v51  ;;  %v9062_v57 = vld [vmem:[#allocation3 + $0x310] sm:$0xff]  ;;  %v4019_v18 = vld [vmem:[#allocation3 + $0x208] sm:$0xff]  ;;  %v4013_v51 = vld [vmem:[#allocation3 + $0x1d8] sm:$0xff] }
 0xece   : > { %6479 = vmatmul.msk.f32.vlgmr.msrb.gmra.mxu3 %vm1629_vm2, %v3607_v23  ;;  %3742 = vmatpush.msra.mxu1 %v8769_v26  ;;  %v9076_v26 = vld [vmem:[#allocation3 + $0x2b0] sm:$0xff] }
 0xecf   : > { %3753 = vmatpush.msra.mxu3 %v9060_v16  ;;  %3787 = vmatpush.msra.mxu0 %v9062_v57 }
 0xed0   : > { %3698 = vmatpush.msrb.mxu2 %v8637_v43  ;;  %6480 = vmatmul.msk.f32.vlgmr.msra.gmra.mxu0 %vm1629_vm2, %v3607_v23  ;;  %v9082_v43 = vld [vmem:[#allocation3 + $0x298] sm:$0xff]  ;;  %v4022_v23 = vld [vmem:[#allocation3 + $0x220] sm:$0xff] }
 0xed1   : > { %3743 = vmatpush.msra.mxu1 %v8775_v42  ;;  %4131 = vmatpush.msrb.mxu0 %v8937_v17  ;;  %v3990_v42 = vld [vmem:[#allocation3 + $0x120] sm:$0xff]  ;;  %v10650_v17 = vld [vmem:[#allocation18_spill] sm:$0xff] }
 0xed2   : > { %3754 = vmatpush.msra.mxu3 %v9070_v20  ;;  %3699 = vmatpush.msrb.mxu2 %v8650_v35  ;;  %v4029_v35 = vld [vmem:[#allocation3 + $0x258] sm:$0xff] }
 0xed3   : > { %3744 = vmatpush.msra.mxu1 %v8781_v19  ;;  %4132 = vmatpush.msrb.mxu0 %v8942_v8  ;;  %v9119_v19 = vld [vmem:[#allocation3 + $0x190] sm:$0xff]  ;;  %v10652_v8 = vld [vmem:[#allocation19_spill] sm:$0xff] }
 0xed4   : > { %3755 = vmatpush.msra.mxu3 %v9076_v26  ;;  %3700 = vmatpush.msrb.mxu2 %v8668_v28  ;;  %v4026_v28 = vld [vmem:[#allocation3 + $0x240] sm:$0xff] }
 0xed5   : > { %3745 = vmatpush.msra.mxu1 %v8787_v55  ;;  %4133 = vmatpush.msrb.mxu0 %v8949_v47  ;;  %v3997_v55 = vld [vmem:[#allocation3 + $0x158] sm:$0xff]  ;;  %v10648_v47 = vld [vmem:[#allocation17_spill] sm:$0xff] }
 0xed6   : > { %3756 = vmatpush.msra.mxu3 %v9082_v43  ;;  %3701 = vmatpush.msrb.mxu2 %v8689_v27  ;;  %v4023_v27 = vld [vmem:[#allocation3 + $0x228] sm:$0xff] }
 0xed7   : > { %3746 = vmatpush.msra.mxu1 %v8793_v37  ;;  %4134 = vmatpush.msrb.mxu0 %v8956_v5  ;;  %v3981_v37 = vld [vmem:[#allocation3 + $0xd8] sm:$0xff]  ;;  %v10654_v5 = vld [vmem:[#allocation20_spill] sm:$0xff] }
 0xed8   : > { %3757 = vmatpush.msra.mxu3 %v8634_v53  ;;  %3702 = vmatpush.msrb.mxu2 %v8707_v7  ;;  %v9100_v53 = vld [vmem:[#allocation3 + $0x1b8] sm:$0xff]  ;;  %v3996_v7 = vld [vmem:[#allocation3 + $0x150] sm:$0xff] }
 0xed9   : > { %3747 = vmatpush.msra.mxu1 %v8799_v14  ;;  %4135 = vmatpush.msrb.mxu0 %v8864_v40  ;;  %v3994_v14 = vld [vmem:[#allocation3 + $0x140] sm:$0xff]  ;;  %v3991_v40 = vld [vmem:[#allocation3 + $0x128] sm:$0xff] }
 0xeda   : > { %3758 = vmatpush.msra.mxu3 %v8647_v13  ;;  %3748 = vmatmul.f32.vlgmr.msra.gmra.mxu1 %v8922_v31  ;;  %v9104_v13 = vld [vmem:[#allocation3 + $0x1a0] sm:$0xff]  ;;  %v10649_v31 = vld [vmem:[#allocation22_spill] sm:$0xff] }
 0xedb   : > { %3703 = vmatpush.msrb.mxu2 %v8715_v22  ;;  %4136 = vmatpush.msrb.mxu0 %v8674_v60  ;;  %v4017_v60 = vld [vmem:[#allocation3 + $0x1f8] sm:$0xff] }
 0xedc   : > { %3759 = vmatpush.msra.mxu3 %v8665_v34  ;;  %v4020_v34 = vld [vmem:[#allocation3 + $0x210] sm:$0xff]  ;;  %v3993_v22 = vld [vmem:[#allocation3 + $0x138] sm:$0xff] }
 0xedd   : > { %3704 = vmatpush.msrb.mxu2 %v8654_v11  ;;  %4137 = vmatpush.msrb.mxu0 %v4029_v35  ;;  %v9108_v11 = vld [vmem:[#allocation3 + $0x188] sm:$0xff] }
 0xede   : > { %3760 = vmatpush.msra.mxu3 %v8686_v10  ;;  %v3999_v10 = vld [vmem:[#allocation3 + $0x168] sm:$0xff] }
 0xedf   : > { %3705 = vmatpush.msrb.mxu2 %v9100_v53  ;;  %4138 = vmatpush.msrb.mxu0 %v4026_v28 }
 0xee0   : > { %3761 = vmatpush.msra.mxu3 %v8703_v54  ;;  %v4014_v54 = vld [vmem:[#allocation3 + $0x1e0] sm:$0xff] }
 0xee1   : > { %3706 = vmatpush.msrb.mxu2 %v9104_v13  ;;  %4139 = vmatpush.msrb.mxu0 %v4023_v27 }
 0xee2   : > { %3762 = vmatpush.msra.mxu3 %v8725_v12  ;;  %v9116_v12 = vld [vmem:[#allocation3 + $0x1a8] sm:$0xff] }
 0xee3   : > { %3707 = vmatpush.msrb.mxu2 %v9108_v11  ;;  %4140 = vmatpush.msrb.mxu0 %v4020_v34 }
 0xee4   : > { %3763 = vmatpush.msra.mxu3 %v8732_v49  ;;  %3708 = vmatmul.f32.vlgmr.msrb.gmra.mxu2 %v9054_v4  ;;  %v4008_v49 = vld [vmem:[#allocation3 + $0x1b0] sm:$0xff] }
 0xee5   : > { %4141 = vmatpush.msrb.mxu0 %v4017_v60  ;;  %4111 = vmatpush.msra.mxu2 %v3999_v10  ;;  %v3689_v10 = vpop.f32.mrf.mxu0 }
 0xee6   : > { %3764 = vmatpush.msra.mxu3 %v8736_v1  ;;  %v3987_v1 = vld [vmem:[#allocation3 + $0x108] sm:$0xff] }
 0xee7   : > { %4142 = vmatpush.msrb.mxu0 %v4014_v54  ;;  %4112 = vmatpush.msra.mxu2 %v3996_v7 }
 0xee8   : > { %3765 = vmatpush.msra.mxu3 %v8742_v50  ;;  %v4000_v50 = vld [vmem:[#allocation3 + $0x170] sm:$0xff] }
 0xee9   : > { %4143 = vmatpush.msrb.mxu0 %v8701_v46  ;;  %4113 = vmatpush.msra.mxu2 %v3993_v22  ;;  %v3984_v46 = vld [vmem:[#allocation3 + $0xf0] sm:$0xff] }
 0xeea   : > { %3766 = vmatpush.msra.mxu3 %v9116_v12 }
 0xeeb   : > { %4144 = vmatpush.msrb.mxu0 %v4008_v49  ;;  %4114 = vmatpush.msra.mxu2 %v3990_v42 }
 0xeec   : > { %3767 = vmatpush.msra.mxu3 %v9119_v19 }
 0xeed   : > { %4145 = vmatpush.msrb.mxu0 %v8983_v29  ;;  %3768 = vmatmul.f32.vlgmr.msra.gmra.mxu3 %v9054_v4  ;;  %v3988_v29 = vld [vmem:[#allocation3 + $0x110] sm:$0xff] }
 0xeee   : > { %4115 = vmatpush.msra.mxu2 %v3987_v1  ;;  %4171 = vmatpush.msrb.mxu3 %v4000_v50  ;;  %v4016_v4 = vld [vmem:[#allocation3 + $0x1f0] sm:$0xff] }
 0xeef   : > { %4146 = vmatpush.msrb.mxu0 %v8986_v41  ;;  %v10656_v41 = vld [vmem:[#allocation21_spill] sm:$0xff] }
 0xef0   : > { %4116 = vmatpush.msra.mxu2 %v3984_v46  ;;  %4172 = vmatpush.msrb.mxu3 %v3997_v55 }
 0xef2   : > { %4117 = vmatpush.msra.mxu2 %v3981_v37  ;;  %4173 = vmatpush.msrb.mxu3 %v3994_v14 }
 0xef4   : > { %4118 = vmatpush.msra.mxu2 %v8772_v24  ;;  %4174 = vmatpush.msrb.mxu3 %v3991_v40  ;;  %v10651_v24 = vld [vmem:[#allocation23_spill] sm:$0xff] }
 0xef6   : > { %4119 = vmatpush.msra.mxu2 %v8778_v15  ;;  %4175 = vmatpush.msrb.mxu3 %v3988_v29  ;;  %v10653_v15 = vld [vmem:[#allocation24_spill] sm:$0xff] }
 0xef8   : > { %4120 = vmatpush.msra.mxu2 %v8784_v48  ;;  %4176 = vmatpush.msrb.mxu3 %v3985_v59  ;;  %v10655_v48 = vld [vmem:[#allocation25_spill] sm:$0xff] }
 0xefa   : > { %4121 = vmatpush.msra.mxu2 %v8790_v25  ;;  %4177 = vmatpush.msrb.mxu3 %v8820_v61  ;;  %v10657_v25 = vld [vmem:[#allocation26_spill] sm:$0xff]  ;;  %v10658_v61 = vld [vmem:[#allocation27_spill] sm:$0xff] }
 0xefc   : > { %4122 = vmatpush.msra.mxu2 %v10648_v47  ;;  %4178 = vmatpush.msrb.mxu3 %v10649_v31 }
 0xefe   : > { %4123 = vmatpush.msra.mxu2 %v10650_v17  ;;  %4179 = vmatpush.msrb.mxu3 %v10651_v24 }
 0xf00   : > { %4124 = vmatpush.msra.mxu2 %v10652_v8  ;;  %4180 = vmatpush.msrb.mxu3 %v10653_v15  ;;  %v3952_v15 = vld [vmem:[#allocation7 + $0x78] sm:$0xff] }
 0xf02   : > { %4125 = vmatpush.msra.mxu2 %v10654_v5  ;;  %4181 = vmatpush.msrb.mxu3 %v10655_v48  ;;  %v10665_v5 = vld [vmem:[#allocation31_spill] sm:$0xff] }
 0xf03   : > { %v6633_v48 = vpack.i.bf16 %v3952_v15, %v10665_v5  ;;  %v4050_v15 = vld [vmem:[#allocation3 + $0x300] sm:$0xff] }
 0xf04   : > { %4126 = vmatpush.msra.mxu2 %v10656_v41  ;;  %4182 = vmatpush.msrb.mxu3 %v10657_v25 }
 0xf06   : > { %4191 = vmatpush.msrb.mxu2 %v9012_v32  ;;  %4183 = vmatpush.msrb.mxu3 %v10658_v61  ;;  %v4030_v32 = vld [vmem:[#allocation3 + $0x260] sm:$0xff] }
 0xf08   : > { %4192 = vmatpush.msrb.mxu2 %v9021_v2  ;;  %4184 = vmatpush.msrb.mxu3 %v10659_v3  ;;  %v4027_v2 = vld [vmem:[#allocation3 + $0x248] sm:$0xff] }
 0xf0a   : > { %4193 = vmatpush.msrb.mxu2 %v9032_v6  ;;  %4185 = vmatpush.msrb.mxu3 %v10660_v39  ;;  %v4018_v6 = vld [vmem:[#allocation3 + $0x200] sm:$0xff] }
 0xf0c   : > { %4194 = vmatpush.msrb.mxu2 %v9039_v44  ;;  %4186 = vmatpush.msrb.mxu3 %v10661_v38  ;;  %v4031_v44 = vld [vmem:[#allocation3 + $0x268] sm:$0xff]  ;;  %v6841_v38 = vmov 9  }
 0xf0d   : > { %6638 = vset.pattern.permute.xlu1 %v6841_v38 }
 0xf0e   : > { %4195 = vmatpush.msrb.mxu2 %v8874_v56  ;;  %4251 = vmatpush.msra.mxu3 %v9045_v52  ;;  %v4034_v56 = vld [vmem:[#allocation3 + $0x280] sm:$0xff]  ;;  %v4028_v52 = vld [vmem:[#allocation3 + $0x250] sm:$0xff] }
 0xf10   : > { %4196 = vmatpush.msrb.mxu2 %v4033_v9  ;;  %4252 = vmatpush.msra.mxu3 %v9060_v16  ;;  %v4010_v16 = vld [vmem:[#allocation3 + $0x1c0] sm:$0xff]  ;;  %v9216_v9 = vld [vmem:[#allocation7 + $0x80] sm:$0xff] }
 0xf12   : > { %4197 = vmatpush.msrb.mxu2 %v4030_v32  ;;  %4253 = vmatpush.msra.mxu3 %v9070_v20  ;;  %v3629_v20 = vpop.f32.mrf.mxu3  ;;  %v4295_v32 = vld [vmem:[#allocation2 + $0x8] sm:$0xff] }
 0xf14   : > { %4198 = vmatpush.msrb.mxu2 %v4027_v2  ;;  %4254 = vmatpush.msra.mxu3 %v9076_v26  ;;  %v3590_v26 = vpop.permute.xlu0 %3589  ;;  %v4294_v2 = vld [vmem:[#allocation2] sm:$0xff] }
 0xf15   : > { %v3630_v35 = vadd.f32 %v3629_v20, %v3590_v26  ;;  %v3690_v54 = vadd.f32 %v3689_v10, %v3590_v26 }
 0xf16   : > { %4199 = vmatpush.msrb.mxu2 %v4024_v21  ;;  %4255 = vmatpush.msra.mxu3 %v9082_v43  ;;  %v9223_v21 = vld [vmem:[#allocation9] sm:$0xff] }
 0xf18   : > { %4200 = vmatpush.msrb.mxu2 %v4021_v45  ;;  %4256 = vmatpush.msra.mxu3 %v4034_v56  ;;  %v4296_v45 = vld [vmem:[#allocation2 + $0x10] sm:$0xff] }
 0xf1a   : > { %4201 = vmatpush.msrb.mxu2 %v4018_v6  ;;  %4257 = vmatpush.msra.mxu3 %v4031_v44 }
 0xf1c   : > { %4202 = vmatpush.msrb.mxu2 %v4015_v0  ;;  %4258 = vmatpush.msra.mxu3 %v4028_v52 }
 0xf1e   : > { %4203 = vmatpush.msrb.mxu2 %v4012_v58  ;;  %4259 = vmatpush.msra.mxu3 %v4025_v30 }
 0xf20   : > { %4204 = vmatpush.msrb.mxu2 %v9100_v53  ;;  %4260 = vmatpush.msra.mxu3 %v4022_v23 }
 0xf22   : > { %4205 = vmatpush.msrb.mxu2 %v9104_v13  ;;  %4261 = vmatpush.msra.mxu3 %v4019_v18 }
 0xf24   : > { %4206 = vmatpush.msrb.mxu2 %v9108_v11  ;;  %4262 = vmatpush.msra.mxu3 %v4016_v4 }
 0xf26   : > { %4263 = vmatpush.msra.mxu3 %v4013_v51 }
 0xf28   : > { %4264 = vmatpush.msra.mxu3 %v4010_v16 }
 0xf2a   : > { %4265 = vmatpush.msra.mxu3 %v9116_v12 }
 0xf2c   : > { %4266 = vmatpush.msra.mxu3 %v9119_v19 }
 0xf49   : > { %v3649_v43 = vpop.f32.mrf.mxu1 }
 0xf4a   : > { %v3650_v53 = vadd.f32 %v3649_v43, %v3630_v35 }
 0xf4d   : > { %v3789_v40 = vpop.f32.mrf.mxu0 }
 0xf50   : > { %v3669_v28 = vpop.f32.mrf.mxu2 }
 0xf51   : > { %v3670_v13 = vadd.f32 %v3669_v28, %v3650_v53  ;;  %v3729_v22 = vpop.f32.mrf.mxu3 }
 0xf53   : > { %v3792_v27 = vmul.f32 0.2, %v3670_v13 }
 0xf55   : > { %v3795_v34 = vmax.f32 %v3670_v13, %v3792_v27 }
 0xf57   : > { %v3798_v11 = vsel %vm7185_vm12, %v3795_v34, 0.0  ;;  %v3749_v42 = vpop.f32.mrf.mxu1 }
 0xf58   : > { %3804 = vrot.lane.b32.xlu1 %v3798_v11, %s6823_s29  ;;  %v3750_v50 = vadd.f32 %v3749_v42, %v3590_v26 }
 0xf67   : > { %v3709_v7 = vpop.f32.mrf.mxu2 }
 0xf68   : > { %v3710_v12 = vadd.f32 %v3709_v7, %v3690_v54 }
 0xf6a   : > { %v3730_v49 = vadd.f32 %v3729_v22, %v3710_v12 }
 0xf6c   : > { %v3793_v19 = vmul.f32 0.2, %v3730_v49 }
 0xf6e   : > { %v3796_v1 = vmax.f32 %v3730_v49, %v3793_v19 }
 0xf70   : > { %v3769_v46 = vpop.f32.mrf.mxu3  ;;  %v3799_v37 = vsel %vm7189_vm0, %v3796_v1, 0.0 }
 0xf71   : > { %v3770_v14 = vadd.f32 %v3769_v46, %v3750_v50  ;;  %3806 = vrot.lane.b32.xlu2 %v3799_v37, %s6823_s29 }
 0xf73   : > { %v3790_v29 = vadd.f32 %v3789_v40, %v3770_v14 }
 0xf75   : > { %v3794_v59 = vmul.f32 0.2, %v3790_v29 }
 0xf77   : > { %v3797_v47 = vmax.f32 %v3790_v29, %v3794_v59 }
 0xf79   : > { %v3800_v17 = vsel %vm7199_vm7, %v3797_v47, 0.0  ;;  %v4059_v47 = vld [vmem:[#allocation3 + $0x348] sm:$0xff] }
 0xf7a   : > { %3808 = vrot.lane.b32.xlu1 %v3800_v17, %s6823_s29 }
 0xfca   : > { %v3805_v24 = vpop.permute.xlu1 %3804 }
 0xfcb   : > { %3815 = vst.msk [vmem:[#allocation2 + $0x60] sm:$0xff] %vm622_vm10, %v3805_v24  ;;  %v3807_v41 = vpop.permute.xlu2 %3806 }
 0xfcc   : > { %v9179_v25 = vsel %vm336_vm8, %v3805_v24, %v3807_v41  ;;  %v4053_v24 = vld [vmem:[#allocation3 + $0x318] sm:$0xff] }
 0xfd2   : > { %v9169_v8 = vld [vmem:[#allocation2 + $0x60] sm:$0xff] }
 0xfd3   : > { %3909 = vrot.lane.b32.xlu0 %v9169_v8, %s6816_s17  ;;  %3923 = vrot.lane.b32.xlu1 %v9169_v8, %s6815_s18 }
 0xfd4   : > { %3937 = vrot.lane.b32.xlu2 %v9169_v8, %s6814_s23 }
 0xfdb   : > { %6634 = vrot.lane.b32.xlu1 %v6633_v48, %s6840_s6  ;;  %3939 = vrot.lane.b32.xlu0 %v9179_v25, %s6814_s23 }
 0xfdc   : > { %3889 = vrot.lane.b32.xlu2 %v9169_v8, %s6817_s24 }
 0xfe3   : > { %3911 = vrot.lane.b32.xlu1 %v9179_v25, %s6816_s17  ;;  %3891 = vrot.lane.b32.xlu0 %v9179_v25, %s6817_s24 }
 0xfe4   : > { %3875 = vrot.lane.b32.xlu2 %v9169_v8, %s6818_s25 }
 0xfeb   : > { %3877 = vrot.lane.b32.xlu0 %v9179_v25, %s6818_s25 }
 0xfec   : > { %3861 = vrot.lane.b32.xlu2 %v9169_v8, %s6819_s26  ;;  %v3809_v61 = vpop.permute.xlu1 %3808 }
 0xfed   : > { %v3811_v3 = vsel %vm336_vm8, %v3807_v41, %v3809_v61  ;;  %v10672_v41 = vld [vmem:[#allocation32_spill] sm:$0xff] }
 0xfee   : > { %3817 = vst.msk [vmem:[#allocation2 + $0x70] sm:$0xff] %vm625_vm14, %v3811_v3  ;;  %v10673_v3 = vld [vmem:[#allocation33_spill] sm:$0xff] }
 0xff3   : > { %3863 = vrot.lane.b32.xlu0 %v9179_v25, %s6819_s26 }
 0xff4   : > { %3841 = vrot.lane.b32.xlu2 %v9169_v8, %s6820_s27 }
 0xff5   : > { %v3905_v39 = vld [vmem:[#allocation2 + $0x70] sm:$0xff] }
 0xff6   : > { %3941 = vrot.lane.b32.xlu1 %v3905_v39, %s6814_s23  ;;  %3823 = vst.msk [vmem:[#allocation3 + $0x370] sm:$0xff] %vm358_vm1, %v3905_v39 }
 0xffb   : > { %3843 = vrot.lane.b32.xlu0 %v9179_v25, %s6820_s27 }
 0xffc   : > { %3925 = vrot.lane.b32.xlu2 %v9179_v25, %s6815_s18 }
 0xffe   : > { %3927 = vrot.lane.b32.xlu1 %v3905_v39, %s6815_s18 }
0x1003   : > { %3829 = vrot.lane.b32.xlu0 %v9179_v25, %s6821_s28 }
0x1004   : > { %3827 = vrot.lane.b32.xlu2 %v9169_v8, %s6821_s28 }
0x1006   : > { %3913 = vrot.lane.b32.xlu1 %v3905_v39, %s6816_s17 }
0x100b   : > { %3865 = vrot.lane.b32.xlu0 %v3905_v39, %s6819_s26 }
0x100c   : > { %3879 = vrot.lane.b32.xlu2 %v3905_v39, %s6818_s25 }
0x100e   : > { %3893 = vrot.lane.b32.xlu1 %v3905_v39, %s6817_s24 }
0x1013   : > { %4102 = vrot.lane.b32.xlu0 %v9216_v9, %s6840_s6 }
0x1014   : > { %3831 = vrot.lane.b32.xlu2 %v3905_v39, %s6821_s28 }
0x1016   : > { %3845 = vrot.lane.b32.xlu1 %v3905_v39, %s6820_s27 }
0x101b   : > { %4302 = vrot.lane.b32.xlu0 %v4295_v32, %s6818_s25 }
0x101c   : > { %4300 = vrot.lane.b32.xlu2 %v4294_v2, %s6818_s25 }
0x101e   : > { %4092 = vperm.xlu1 %6638, %v9223_v21  }
0x1026   : > { %4304 = vrot.lane.b32.xlu1 %v4296_v45, %s6818_s25 }
0x102e   : > { %v3938_v56 = vpop.permute.xlu2 %3937 }
0x1036   : > { %v3890_v6 = vpop.permute.xlu2 %3889 }
0x103e   : > { %v3876_v44 = vpop.permute.xlu2 %3875 }
0x1045   : > { %v3910_v0 = vpop.permute.xlu0 %3909  ;;  %v3924_v52 = vpop.permute.xlu1 %3923 }
0x1046   : > { %v3862_v58 = vpop.permute.xlu2 %3861 }
0x104d   : > { %v3940_v30 = vpop.permute.xlu0 %3939  ;;  %v9227_v23 = vpop.permute.xlu1 %6634 }
0x104e   : > { %v3842_v18 = vpop.permute.xlu2 %3841  ;;  %v3943_v4 = vsel %vm10666_vm13, %v3938_v56, %v3940_v30  ;;  %v6637_v51 = vunpack.i.h.bf16 %v9227_v23  ;;  %v6636_v16 = vunpack.i.l.bf16 %v9227_v23  ;;  %v10676_v56 = vld [vmem:[#allocation34_spill] sm:$0xff]  ;;  %v4057_v23 = vld [vmem:[#allocation3 + $0x338] sm:$0xff] }
0x104f   : > { %4154 = vmatpush.msrb.mxu1 %v3943_v4  ;;  %v3977_v4 = vld [vmem:[#allocation3 + $0xb8] sm:$0xff] }
0x1050   : > { %v9235_v20 = vsel %vm4104_vm9, %v6636_v16, %v6637_v51  ;;  %v4064_v16 = vld [vmem:[#allocation3 + $0x370] sm:$0xff] }
0x1051   : > { %4127 = vmatmul.f32.vlgmr.msra.gmra.mxu2 %v9235_v20  ;;  %4187 = vmatmul.f32.vlgmr.msrb.gmra.mxu3 %v9235_v20 }
0x1055   : > { %v3892_v26 = vpop.permute.xlu0 %3891  ;;  %v3912_v35 = vpop.permute.xlu1 %3911 }
0x1056   : > { %v3926_v43 = vpop.permute.xlu2 %3925  ;;  %v3915_v28 = vsel %vm456_vm4, %v3910_v0, %v3912_v35  ;;  %v3895_v13 = vsel %vm435_vm5, %v3890_v6, %v3892_v26  ;;  %v10678_v0 = vld [vmem:[#allocation35_spill] sm:$0xff] }
0x1057   : > { %v3929_v53 = vsel %vm10667_vm3, %v3924_v52, %v3926_v43  ;;  %vm10669_vm3 = vcmask 1031168  }
0x1058   : > { %4155 = vmatpush.msrb.mxu1 %v3929_v53  ;;  %v4055_v53 = vld [vmem:[#allocation3 + $0x328] sm:$0xff] }
0x105a   : > { %4156 = vmatpush.msrb.mxu1 %v3915_v28  ;;  %v3965_v28 = vld [vmem:[#allocation3 + $0x58] sm:$0xff] }
0x105c   : > { %4157 = vmatpush.msrb.mxu1 %v3895_v13  ;;  %v3962_v13 = vld [vmem:[#allocation3 + $0x40] sm:$0xff] }
0x105d   : > { %v3878_v27 = vpop.permute.xlu0 %3877 }
0x105e   : > { %v3828_v34 = vpop.permute.xlu2 %3827  ;;  %v3881_v11 = vsel %vm420_vm6, %v3876_v44, %v3878_v27 }
0x105f   : > { %4158 = vmatpush.msrb.mxu1 %v3881_v11 }
0x1065   : > { %v3864_v10 = vpop.permute.xlu0 %3863 }
0x1066   : > { %v3867_v54 = vsel %vm10668_vm15, %v3862_v58, %v3864_v10  ;;  %v3880_v7 = vpop.permute.xlu2 %3879  ;;  %vm10670_vm15 = vcmask 744448  }
0x1067   : > { %3888 = vst.msk [vmem:[#allocation3 + $0x3d0] sm:$0xff] %vm358_vm1, %v3880_v7  ;;  %4159 = vmatpush.msrb.mxu1 %v3867_v54  ;;  %v3882_v61 = vsel %vm420_vm6, %v3878_v27, %v3880_v7  ;;  %v3959_v27 = vld [vmem:[#allocation3 + $0x28] sm:$0xff] }
0x1068   : > { %v3942_v22 = vpop.permute.xlu1 %3941 }
0x1069   : > { %v3944_v12 = vsel %vm10666_vm13, %v3940_v30, %v3942_v22  ;;  %3950 = vst.msk [vmem:[#allocation3 + $0x430] sm:$0xff] %vm358_vm1, %v3942_v22  ;;  %vm10671_vm13 = vcmask 1039360   ;;  %v3980_v30 = vld [vmem:[#allocation3 + $0xd0] sm:$0xff] }
0x106a   : > { %4214 = vmatpush.msra.mxu0 %v3944_v12 }
0x106d   : > { %v3844_v49 = vpop.permute.xlu0 %3843 }
0x106e   : > { %v3847_v42 = vsel %vm10669_vm3, %v3842_v18, %v3844_v49  ;;  %v3832_v19 = vpop.permute.xlu2 %3831  ;;  %vm10674_vm3 = vcmask 900096   ;;  %v4076_v6 = vld [vmem:[#allocation3 + $0x3d0] sm:$0xff] }
0x106f   : > { %3840 = vst.msk [vmem:[#allocation3 + $0x388] sm:$0xff] %vm358_vm1, %v3832_v19  ;;  %4160 = vmatpush.msrb.mxu1 %v3847_v42 }
0x1070   : > { %v3928_v1 = vpop.permute.xlu1 %3927  ;;  %v4088_v50 = vld [vmem:[#allocation3 + $0x430] sm:$0xff] }
0x1071   : > { %v3930_v46 = vsel %vm10670_vm15, %v3926_v43, %v3928_v1  ;;  %3936 = vst.msk [vmem:[#allocation3 + $0x418] sm:$0xff] %vm358_vm1, %v3928_v1  ;;  %4274 = vmatpush.msra.mxu2 %v4088_v50  ;;  %vm10675_vm15 = vcmask 1031168   ;;  %v4058_v43 = vld [vmem:[#allocation3 + $0x340] sm:$0xff] }
0x1072   : > { %4215 = vmatpush.msra.mxu0 %v3930_v46 }
0x1075   : > { %v3830_v37 = vpop.permute.xlu0 %3829 }
0x1076   : > { %v3833_v14 = vsel %vm10671_vm13, %v3828_v34, %v3830_v37  ;;  %v4067_v18 = vld [vmem:[#allocation3 + $0x388] sm:$0xff]  ;;  %v3956_v34 = vld [vmem:[#allocation3 + $0x10] sm:$0xff] }
0x1077   : > { %4161 = vmatpush.msrb.mxu1 %v3833_v14 }
0x1078   : > { %v3914_v40 = vpop.permute.xlu1 %3913  ;;  %v4085_v29 = vld [vmem:[#allocation3 + $0x418] sm:$0xff] }
0x1079   : > { %4162 = vmatpush.msrb.mxu1 %v9169_v8  ;;  %v3916_v59 = vsel %vm456_vm4, %v3912_v35, %v3914_v40  ;;  %3922 = vst.msk [vmem:[#allocation3 + $0x400] sm:$0xff] %vm358_vm1, %v3914_v40  ;;  %4275 = vmatpush.msra.mxu2 %v4085_v29  ;;  %v3968_v35 = vld [vmem:[#allocation3 + $0x70] sm:$0xff] }
0x107a   : > { %4216 = vmatpush.msra.mxu0 %v3916_v59 }
0x107b   : > { %4163 = vmatpush.msrb.mxu1 %v4059_v47 }
0x107d   : > { %v3866_v17 = vpop.permute.xlu0 %3865  ;;  %4164 = vmatpush.msrb.mxu1 %v8998_v62 }
0x107e   : > { %3874 = vst.msk [vmem:[#allocation3 + $0x3b8] sm:$0xff] %vm358_vm1, %v3866_v17  ;;  %v3868_v38 = vsel %vm10674_vm3, %v3864_v10, %v3866_v17  ;;  %vm10680_vm3 = vcmask 736256  }
0x107f   : > { %4165 = vmatpush.msrb.mxu1 %v4053_v24 }
0x1080   : > { %v3894_v5 = vpop.permute.xlu1 %3893  ;;  %v4082_v48 = vld [vmem:[#allocation3 + $0x400] sm:$0xff] }
0x1081   : > { %4166 = vmatpush.msrb.mxu1 %v4050_v15  ;;  %v3896_v8 = vsel %vm435_vm5, %v3892_v26, %v3894_v5  ;;  %3902 = vst.msk [vmem:[#allocation3 + $0x3e8] sm:$0xff] %vm358_vm1, %v3894_v5  ;;  %4276 = vmatpush.msra.mxu2 %v4082_v48  ;;  %v3974_v26 = vld [vmem:[#allocation3 + $0xa0] sm:$0xff] }
0x1082   : > { %4217 = vmatpush.msra.mxu0 %v3896_v8 }
0x1083   : > { %4231 = vmatpush.msra.mxu1 %v10672_v41 }
0x1084   : > { %4218 = vmatpush.msra.mxu0 %v3882_v61 }
0x1085   : > { %4232 = vmatpush.msra.mxu1 %v10673_v3  ;;  %v9262_v62 = vpop.permute.xlu0 %4102  ;;  %v4073_v52 = vld [vmem:[#allocation3 + $0x3b8] sm:$0xff] }
0x1086   : > { %v4106_v39 = vsel %vm4104_vm9, %v6637_v51, %v9262_v62  ;;  %6481 = vmatmul.msk.f32.vlgmr.msrb.gmra.mxu1 %vm10519_vm11, %v9262_v62  ;;  %4219 = vmatpush.msra.mxu0 %v3868_v38  ;;  %vm10677_vm9 = vmmov %vm10671_vm13  ;;  %v4054_v51 = vld [vmem:[#allocation3 + $0x320] sm:$0xff]  ;;  %vm10679_vm13 = vcmask 744448  }
0x1087   : > { %4147 = vmatmul.f32.vlgmr.msrb.gmra.mxu0 %v4106_v39  ;;  %4207 = vmatmul.f32.vlgmr.msrb.gmra.mxu2 %v4106_v39  ;;  %v3834_v44 = vsel %vm10677_vm9, %v3830_v37, %v3832_v19  ;;  %v4301_v19 = vpop.permute.xlu2 %4300  ;;  %vm10682_vm9 = vcmask 1031168  }
0x1088   : > { %4267 = vmatmul.f32.vlgmr.msra.gmra.mxu3 %v4106_v39  ;;  %4233 = vmatpush.msra.mxu1 %v8995_v63  ;;  %v3846_v32 = vpop.permute.xlu1 %3845  ;;  %v4079_v2 = vld [vmem:[#allocation3 + $0x3e8] sm:$0xff]  ;;  %v4060_v63 = vld [vmem:[#allocation3 + $0x350] sm:$0xff] }
0x1089   : > { %v3848_v45 = vsel %vm10675_vm15, %v3844_v49, %v3846_v32  ;;  %3854 = vst.msk [vmem:[#allocation3 + $0x3a0] sm:$0xff] %vm358_vm1, %v3846_v32  ;;  %4277 = vmatpush.msra.mxu2 %v4079_v2  ;;  %vm10681_vm15 = vcmask 900096  }
0x108a   : > { %4234 = vmatpush.msra.mxu1 %v10676_v56  ;;  %4220 = vmatpush.msra.mxu0 %v3848_v45 }
0x108b   : > { %4278 = vmatpush.msra.mxu2 %v4076_v6 }
0x108c   : > { %4235 = vmatpush.msra.mxu1 %v10678_v0  ;;  %4221 = vmatpush.msra.mxu0 %v3834_v44 }
0x108d   : > { %4279 = vmatpush.msra.mxu2 %v4073_v52  ;;  %v4303_v49 = vpop.permute.xlu0 %4302 }
0x108e   : > { %4236 = vmatpush.msra.mxu1 %v9014_v36  ;;  %4222 = vmatpush.msra.mxu0 %v9179_v25  ;;  %v4051_v36 = vld [vmem:[#allocation3 + $0x308] sm:$0xff]  ;;  %v4306_v1 = vsel %vm420_vm6, %v4301_v19, %v4303_v49 }
0x108f   : > { %v3971_v25 = vld [vmem:[#allocation3 + $0x88] sm:$0xff] }
0x1090   : > { %4237 = vmatpush.msra.mxu1 %v9027_v33  ;;  %v4070_v58 = vld [vmem:[#allocation3 + $0x3a0] sm:$0xff]  ;;  %4223 = vmatpush.msra.mxu0 %v4060_v63  ;;  %v4061_v33 = vld [vmem:[#allocation3 + $0x358] sm:$0xff]  ;;  %v4093_v10 = vpop.permute.xlu1 %4092  ;;  %v9350_v63 = vld [vmem:[#allocation7 + $0x88] sm:$0xff] }
0x1091   : > { %4280 = vmatpush.msra.mxu2 %v4070_v58 }
0x1092   : > { %4238 = vmatpush.msra.mxu1 %v3980_v30  ;;  %4224 = vmatpush.msra.mxu0 %v4057_v23 }
0x1093   : > { %4281 = vmatpush.msra.mxu2 %v4067_v18 }
0x1094   : > { %4239 = vmatpush.msra.mxu1 %v3977_v4  ;;  %4225 = vmatpush.msra.mxu0 %v4054_v51 }
0x1095   : > { %4282 = vmatpush.msra.mxu2 %v4064_v16 }
0x1096   : > { %4240 = vmatpush.msra.mxu1 %v3974_v26  ;;  %4226 = vmatpush.msra.mxu0 %v4051_v36 }
0x1097   : > { %4283 = vmatpush.msra.mxu2 %v4061_v33  ;;  %6482 = vmatmul.msk.f32.vlgmr.msra.gmra.mxu0 %vm10519_vm11, %v9262_v62 }
0x1098   : > { %4241 = vmatpush.msra.mxu1 %v3971_v25  ;;  %v4305_v59 = vpop.permute.xlu1 %4304 }
0x1099   : > { %4284 = vmatpush.msra.mxu2 %v4058_v43  ;;  %v4307_v24 = vsel %vm420_vm6, %v4303_v49, %v4305_v59 }
0x109a   : > { %4242 = vmatpush.msra.mxu1 %v3968_v35 }
0x109b   : > { %4285 = vmatpush.msra.mxu2 %v4055_v53 }
0x109c   : > { %4243 = vmatpush.msra.mxu1 %v3965_v28 }
0x109d   : > { %4286 = vmatpush.msra.mxu2 %v9062_v57 }
0x109e   : > { %4244 = vmatpush.msra.mxu1 %v3962_v13  ;;  %6483 = vmatmul.msk.f32.vlgmr.msra.gmra.mxu2 %vm10519_vm11, %v9262_v62 }
0x10a0   : > { %4245 = vmatpush.msra.mxu1 %v3959_v27 }
0x10a2   : > { %4246 = vmatpush.msra.mxu1 %v3956_v34 }
0x10a3   : > { %4247 = vmatmul.f32.vlgmr.msra.gmra.mxu1 %v9235_v20 }
0x10d4   : > { %v4128_v11 = vpop.f32.mrf.mxu2  ;;  %v4188_v37 = vpop.f32.mrf.mxu3 }
0x10d5   : > { %v4129_v54 = vadd.f32 %v4128_v11, %v4093_v10  ;;  %v4189_v14 = vadd.f32 %v4188_v37, %v4093_v10 }
0x1103   : > { %v4168_v22 = vpop.f32.mrf.mxu1 }
0x1104   : > { %v4148_v7 = vpop.f32.mrf.mxu0 }
0x1105   : > { %v4149_v12 = vadd.f32 %v4148_v7, %v4129_v54 }
0x1107   : > { %v4169_v42 = vadd.f32 %v4168_v22, %v4149_v12 }
0x1109   : > { %v4291_v57 = vmul.f32 0.2, %v4169_v42 }
0x110a   : > { %v4208_v20 = vpop.f32.mrf.mxu2 }
0x110b   : > { %v4311_v50 = vadd.f32 %v4306_v1, %v4291_v57  ;;  %v4209_v40 = vadd.f32 %v4208_v20, %v4189_v14  ;;  %v4268_v41 = vpop.f32.mrf.mxu3 }
0x110d   : > { %v4314_v46 = vsel %vm7185_vm12, %v4311_v50, 0.0 }
0x110e   : > { %4320 = vrot.lane.b32.xlu2 %v4314_v46, %s6823_s29 }
0x1114   : > { %v4228_v29 = vpop.f32.mrf.mxu0 }
0x1115   : > { %v4229_v47 = vadd.f32 %v4228_v29, %v4209_v40 }
0x1117   : > { %v4292_v17 = vmul.f32 0.2, %v4229_v47 }
0x1119   : > { %v4312_v15 = vadd.f32 %v4307_v24, %v4292_v17  ;;  %v6843_v24 = vmov 10  }
0x111a   : > { %6639 = vset.pattern.permute.xlu1 %v6843_v24 }
0x111b   : > { %v4315_v5 = vsel %vm7189_vm0, %v4312_v15, 0.0 }
0x111c   : > { %4322 = vrot.lane.b32.xlu0 %v4315_v5, %s6823_s29 }
0x1120   : > { %v4248_v48 = vpop.f32.mrf.mxu1 }
0x1121   : > { %v4249_v8 = vadd.f32 %v4248_v48, %v4093_v10  ;;  %v4288_v3 = vpop.f32.mrf.mxu2 }
0x1123   : > { %v4269_v61 = vadd.f32 %v4268_v41, %v4249_v8 }
0x1125   : > { %v4289_v62 = vadd.f32 %v4288_v3, %v4269_v61 }
0x1127   : > { %v4293_v39 = vmul.f32 0.2, %v4289_v62 }
0x1129   : > { %v4313_v38 = vadd.f32 %v4305_v59, %v4293_v39 }
0x112b   : > { %v4316_v32 = vsel %vm7199_vm7, %v4313_v38, 0.0 }
0x112c   : > { %4324 = vrot.lane.b32.xlu1 %v4316_v32, %s6823_s29 }
0x1168   : > { %v4321_v2 = vpop.permute.xlu2 %4320 }
0x1169   : > { %4331 = vst.msk [vmem:[#allocation2] sm:$0xff] %vm622_vm10, %v4321_v2 }
0x1170   : > { %v9298_v45 = vld [vmem:[#allocation2] sm:$0xff] }
0x1171   : > { %4439 = vrot.lane.b32.xlu1 %v9298_v45, %s6815_s18  ;;  %4453 = vrot.lane.b32.xlu2 %v9298_v45, %s6814_s23  ;;  %4337 = vst [vmem:[#allocation3] sm:$0xff] %v9298_v45 }
0x1179   : > { %4425 = vrot.lane.b32.xlu1 %v9298_v45, %s6816_s17 }
0x1181   : > { %4405 = vrot.lane.b32.xlu1 %v9298_v45, %s6817_s24 }
0x1189   : > { %4391 = vrot.lane.b32.xlu1 %v9298_v45, %s6818_s25 }
0x118e   : > { %v4323_v56 = vpop.permute.xlu0 %4322 }
0x118f   : > { %v9314_v6 = vsel %vm336_vm8, %v4321_v2, %v4323_v56 }
0x1190   : > { %4332 = vst [vmem:[#allocation2 + $0x8] sm:$0xff] %v9314_v6  ;;  %4441 = vrot.lane.b32.xlu2 %v9314_v6, %s6815_s18  ;;  %4455 = vrot.lane.b32.xlu0 %v9314_v6, %s6814_s23 }
0x1191   : > { %4377 = vrot.lane.b32.xlu1 %v9298_v45, %s6819_s26  ;;  %4338 = vst [vmem:[#allocation3 + $0x8] sm:$0xff] %v9314_v6 }
0x1198   : > { %4427 = vrot.lane.b32.xlu2 %v9314_v6, %s6816_s17 }
0x1199   : > { %4357 = vrot.lane.b32.xlu1 %v9298_v45, %s6820_s27 }
0x119e   : > { %v4325_v44 = vpop.permute.xlu1 %4324 }
0x119f   : > { %v4327_v0 = vsel %vm336_vm8, %v4323_v56, %v4325_v44 }
0x11a0   : > { %4333 = vst.msk [vmem:[#allocation2 + $0x10] sm:$0xff] %vm625_vm14, %v4327_v0  ;;  %4407 = vrot.lane.b32.xlu2 %v9314_v6, %s6817_s24 }
0x11a1   : > { %4343 = vrot.lane.b32.xlu1 %v9298_v45, %s6821_s28 }
0x11a7   : > { %v4336_v52 = vld [vmem:[#allocation2 + $0x10] sm:$0xff] }
0x11a8   : > { %4339 = vst.msk [vmem:[#allocation3 + $0x10] sm:$0xff] %vm358_vm1, %v4336_v52  ;;  %4457 = vrot.lane.b32.xlu0 %v4336_v52, %s6814_s23  ;;  %4393 = vrot.lane.b32.xlu2 %v9314_v6, %s6818_s25 }
0x11a9   : > { %4347 = vrot.lane.b32.xlu1 %v4336_v52, %s6821_s28 }
0x11af   : > { %v9471_v32 = vld [vmem:[#allocation3 + $0x10] sm:$0xff] }
0x11b0   : > { %4443 = vrot.lane.b32.xlu0 %v4336_v52, %s6815_s18  ;;  %4379 = vrot.lane.b32.xlu2 %v9314_v6, %s6819_s26 }
0x11b1   : > { %4499 = vperm.xlu1 %6639, %v9223_v21  }
0x11b8   : > { %4429 = vrot.lane.b32.xlu0 %v4336_v52, %s6816_s17  ;;  %4359 = vrot.lane.b32.xlu2 %v9314_v6, %s6820_s27 }
0x11c0   : > { %4409 = vrot.lane.b32.xlu0 %v4336_v52, %s6817_s24  ;;  %4345 = vrot.lane.b32.xlu2 %v9314_v6, %s6821_s28 }
0x11c8   : > { %4395 = vrot.lane.b32.xlu0 %v4336_v52, %s6818_s25  ;;  %4504 = vrot.lane.b32.xlu2 %v9216_v9, %s6842_s20 }
0x11cb   : > { %v4454_v30 = vpop.permute.xlu2 %4453 }
0x11d0   : > { %4381 = vrot.lane.b32.xlu0 %v4336_v52, %s6819_s26 }
0x11d8   : > { %4361 = vrot.lane.b32.xlu0 %v4336_v52, %s6820_s27 }
0x11e0   : > { %4506 = vrot.lane.b32.xlu0 %v9350_v63, %s6842_s20 }
0x11e3   : > { %v4440_v58 = vpop.permute.xlu1 %4439 }
0x11ea   : > { %v4442_v18 = vpop.permute.xlu2 %4441 }
0x11eb   : > { %v4426_v23 = vpop.permute.xlu1 %4425  ;;  %v9354_v4 = vsel %vm10679_vm13, %v4440_v58, %v4442_v18  ;;  %vm10683_vm13 = vmmov %vm10680_vm3 }
0x11ec   : > { %4450 = vst [vmem:[#allocation3 + $0xa8] sm:$0xff] %v9354_v4 }
0x11f2   : > { %v4428_v16 = vpop.permute.xlu2 %4427 }
0x11f3   : > { %v4406_v51 = vpop.permute.xlu1 %4405  ;;  %v9358_v9 = vsel %vm456_vm4, %v4426_v23, %v4428_v16 }
0x11f4   : > { %4436 = vst [vmem:[#allocation3 + $0x90] sm:$0xff] %v9358_v9 }
0x11fa   : > { %v4408_v36 = vpop.permute.xlu2 %4407 }
0x11fb   : > { %v4392_v26 = vpop.permute.xlu1 %4391  ;;  %v9362_v33 = vsel %vm435_vm5, %v4406_v51, %v4408_v36 }
0x11fc   : > { %4416 = vst [vmem:[#allocation3 + $0x78] sm:$0xff] %v9362_v33 }
0x1202   : > { %v4456_v43 = vpop.permute.xlu0 %4455  ;;  %v4394_v35 = vpop.permute.xlu2 %4393 }
0x1203   : > { %v4378_v25 = vpop.permute.xlu1 %4377  ;;  %v9366_v53 = vsel %vm10680_vm3, %v4454_v30, %v4456_v43  ;;  %v9369_v28 = vsel %vm420_vm6, %v4392_v26, %v4394_v35  ;;  %vm10684_vm3 = vcmask 1039360  }
0x1204   : > { %4464 = vst [vmem:[#allocation3 + $0xc0] sm:$0xff] %v9366_v53  ;;  %4518 = vmatpush.msrb.mxu0 %v9366_v53 }
0x1205   : > { %4402 = vst [vmem:[#allocation3 + $0x60] sm:$0xff] %v9369_v28 }
0x1206   : > { %4519 = vmatpush.msrb.mxu0 %v9354_v4 }
0x1208   : > { %4520 = vmatpush.msrb.mxu0 %v9358_v9 }
0x120a   : > { %v4380_v27 = vpop.permute.xlu2 %4379  ;;  %4521 = vmatpush.msrb.mxu0 %v9362_v33 }
0x120b   : > { %v4358_v13 = vpop.permute.xlu1 %4357  ;;  %v9378_v34 = vsel %vm10681_vm15, %v4378_v25, %v4380_v27  ;;  %vm10685_vm15 = vmmov %vm10684_vm3 }
0x120c   : > { %4388 = vst [vmem:[#allocation3 + $0x48] sm:$0xff] %v9378_v34  ;;  %4522 = vmatpush.msrb.mxu0 %v9369_v28 }
0x120e   : > { %4523 = vmatpush.msrb.mxu0 %v9378_v34 }
0x1212   : > { %v4360_v10 = vpop.permute.xlu2 %4359 }
0x1213   : > { %v4344_v11 = vpop.permute.xlu1 %4343  ;;  %v9384_v54 = vsel %vm10682_vm9, %v4358_v13, %v4360_v10  ;;  %vm10686_vm9 = vcmask 744448  }
0x1214   : > { %4368 = vst [vmem:[#allocation3 + $0x30] sm:$0xff] %v9384_v54  ;;  %4524 = vmatpush.msrb.mxu0 %v9384_v54 }
0x121a   : > { %v4458_v7 = vpop.permute.xlu0 %4457  ;;  %v4346_v49 = vpop.permute.xlu2 %4345 }
0x121b   : > { %v4348_v22 = vpop.permute.xlu1 %4347  ;;  %v9389_v12 = vsel %vm10683_vm13, %v4456_v43, %v4458_v7  ;;  %4466 = vst.msk [vmem:[#allocation3 + $0xd0] sm:$0xff] %vm358_vm1, %v4458_v7  ;;  %v9396_v42 = vsel %vm10684_vm3, %v4344_v11, %v4346_v49  ;;  %vm10687_vm13 = vcmask 900096   ;;  %vm10688_vm3 = vcmask 1031168  }
0x121c   : > { %4356 = vst.msk [vmem:[#allocation3 + $0x28] sm:$0xff] %vm358_vm1, %v4348_v22  ;;  %4538 = vmatpush.msrb.mxu1 %v9389_v12  ;;  %v9399_v19 = vsel %vm10685_vm15, %v4346_v49, %v4348_v22  ;;  %4525 = vmatpush.msrb.mxu0 %v9396_v42  ;;  %vm10689_vm15 = vcmask 130048  }
0x121d   : > { %4465 = vst [vmem:[#allocation3 + $0xc8] sm:$0xff] %v9389_v12 }
0x121e   : > { %4354 = vst [vmem:[#allocation3 + $0x18] sm:$0xff] %v9396_v42  ;;  %4526 = vmatpush.msrb.mxu0 %v9298_v45 }
0x121f   : > { %4355 = vst [vmem:[#allocation3 + $0x20] sm:$0xff] %v9399_v19 }
0x1222   : > { %v4444_v57 = vpop.permute.xlu0 %4443  ;;  %v9405_v1 = vld [vmem:[#allocation3 + $0xd0] sm:$0xff]  ;;  %v4505_v21 = vpop.permute.xlu2 %4504 }
0x1223   : > { %v9408_v50 = vsel %vm10686_vm9, %v4442_v18, %v4444_v57  ;;  %4452 = vst.msk [vmem:[#allocation3 + $0xb8] sm:$0xff] %vm358_vm1, %v4444_v57  ;;  %4558 = vmatpush.msra.mxu0 %v9405_v1  ;;  %vm10690_vm9 = vcmask 588800   ;;  %v9467_v38 = vld [vmem:[#allocation3 + $0x28] sm:$0xff]  ;;  %v4500_v2 = vpop.permute.xlu1 %4499  ;;  %v9531_v57 = vld [vmem:[#allocation7 + $0x90] sm:$0xff] }
0x1224   : > { %4451 = vst [vmem:[#allocation3 + $0xb0] sm:$0xff] %v9408_v50  ;;  %4539 = vmatpush.msrb.mxu1 %v9408_v50 }
0x122a   : > { %v4430_v46 = vpop.permute.xlu0 %4429  ;;  %v9414_v37 = vld [vmem:[#allocation3 + $0xb8] sm:$0xff] }
0x122b   : > { %v9417_v20 = vsel %vm456_vm4, %v4428_v16, %v4430_v46  ;;  %4438 = vst.msk [vmem:[#allocation3 + $0xa0] sm:$0xff] %vm358_vm1, %v4430_v46  ;;  %4559 = vmatpush.msra.mxu0 %v9414_v37 }
0x122c   : > { %4437 = vst [vmem:[#allocation3 + $0x98] sm:$0xff] %v9417_v20  ;;  %4540 = vmatpush.msrb.mxu1 %v9417_v20 }
0x1232   : > { %v4410_v14 = vpop.permute.xlu0 %4409  ;;  %v9423_v40 = vld [vmem:[#allocation3 + $0xa0] sm:$0xff] }
0x1233   : > { %v9426_v29 = vsel %vm435_vm5, %v4408_v36, %v4410_v14  ;;  %4418 = vst.msk [vmem:[#allocation3 + $0x88] sm:$0xff] %vm358_vm1, %v4410_v14  ;;  %4560 = vmatpush.msra.mxu0 %v9423_v40 }
0x1234   : > { %4417 = vst [vmem:[#allocation3 + $0x80] sm:$0xff] %v9426_v29  ;;  %4541 = vmatpush.msrb.mxu1 %v9426_v29 }
0x123a   : > { %v4396_v59 = vpop.permute.xlu0 %4395  ;;  %v9432_v47 = vld [vmem:[#allocation3 + $0x88] sm:$0xff] }
0x123b   : > { %v9435_v17 = vsel %vm420_vm6, %v4394_v35, %v4396_v59  ;;  %4404 = vst.msk [vmem:[#allocation3 + $0x70] sm:$0xff] %vm358_vm1, %v4396_v59  ;;  %4561 = vmatpush.msra.mxu0 %v9432_v47 }
0x123c   : > { %4403 = vst [vmem:[#allocation3 + $0x68] sm:$0xff] %v9435_v17  ;;  %4542 = vmatpush.msrb.mxu1 %v9435_v17 }
0x1242   : > { %v4382_v15 = vpop.permute.xlu0 %4381  ;;  %v9442_v5 = vld [vmem:[#allocation3 + $0x70] sm:$0xff] }
0x1243   : > { %v9445_v48 = vsel %vm10687_vm13, %v4380_v27, %v4382_v15  ;;  %4390 = vst.msk [vmem:[#allocation3 + $0x58] sm:$0xff] %vm358_vm1, %v4382_v15  ;;  %4562 = vmatpush.msra.mxu0 %v9442_v5  ;;  %vm10691_vm13 = vmmov %vm10690_vm9 }
0x1244   : > { %4389 = vst [vmem:[#allocation3 + $0x50] sm:$0xff] %v9445_v48  ;;  %4543 = vmatpush.msrb.mxu1 %v9445_v48 }
0x124a   : > { %v4362_v8 = vpop.permute.xlu0 %4361  ;;  %v9451_v41 = vld [vmem:[#allocation3 + $0x58] sm:$0xff] }
0x124b   : > { %v9454_v61 = vsel %vm10688_vm3, %v4360_v10, %v4362_v8  ;;  %4370 = vst.msk [vmem:[#allocation3 + $0x40] sm:$0xff] %vm358_vm1, %v4362_v8  ;;  %4563 = vmatpush.msra.mxu0 %v9451_v41  ;;  %vm10692_vm3 = vmmov %vm10690_vm9 }
0x124c   : > { %4369 = vst [vmem:[#allocation3 + $0x38] sm:$0xff] %v9454_v61  ;;  %4544 = vmatpush.msrb.mxu1 %v9454_v61 }
0x124e   : > { %4545 = vmatpush.msrb.mxu1 %v9399_v19 }
0x1250   : > { %4546 = vmatpush.msrb.mxu1 %v9314_v6 }
0x1252   : > { %v4507_v3 = vpop.permute.xlu0 %4506  ;;  %v9462_v62 = vld [vmem:[#allocation3 + $0x40] sm:$0xff] }
0x1253   : > { %v4508_v39 = vsel %vm10689_vm15, %v4505_v21, %v4507_v3  ;;  %4564 = vmatpush.msra.mxu0 %v9462_v62  ;;  %vm10693_vm15 = vcmask 900096  }
0x1254   : > { %6484 = vmatmul.msk.f32.vlgmr.msrb.gmra.mxu0 %vm10690_vm9, %v4508_v39  ;;  %6485 = vmatmul.msk.f32.vlgmr.msrb.gmra.mxu1 %vm10691_vm13, %v4508_v39  ;;  %vm10694_vm9 = vmmov %vm10693_vm15  ;;  %vm10695_vm13 = vcmask 1031168  }
0x1255   : > { %4565 = vmatpush.msra.mxu0 %v9467_v38 }
0x1257   : > { %4566 = vmatpush.msra.mxu0 %v9471_v32 }
0x125c   : > { %6486 = vmatmul.msk.f32.vlgmr.msra.gmra.mxu0 %vm10692_vm3, %v4508_v39  ;;  %vm10696_vm3 = vcmask 1039360  }
0x12d1   : > { %v4528_v56 = vpop.f32.mrf.mxu0  ;;  %v4548_v44 = vpop.f32.mrf.mxu1 }
0x12d2   : > { %v4529_v0 = vadd.f32 %v4528_v56, %v4500_v2  ;;  %v4549_v52 = vadd.f32 %v4548_v44, %v4500_v2 }
0x12d4   : > { %v4571_v58 = vmul.f32 0.2, %v4529_v0  ;;  %v4572_v30 = vmul.f32 0.2, %v4549_v52 }
0x12d6   : > { %v4574_v23 = vmax.f32 %v4529_v0, %v4571_v58  ;;  %v4575_v18 = vmax.f32 %v4549_v52, %v4572_v30 }
0x12d8   : > { %v4577_v51 = vsel %vm7185_vm12, %v4574_v23, 0.0  ;;  %v4578_v16 = vsel %vm7189_vm0, %v4575_v18, 0.0 }
0x12d9   : > { %v4568_v26 = vpop.f32.mrf.mxu0  ;;  %4583 = vrot.lane.b32.xlu2 %v4577_v51, %s6823_s29  ;;  %4585 = vrot.lane.b32.xlu0 %v4578_v16, %s6823_s29 }
0x12da   : > { %v4569_v36 = vadd.f32 %v4568_v26, %v4500_v2 }
0x12dc   : > { %v4573_v25 = vmul.f32 0.2, %v4569_v36 }
0x12de   : > { %v4576_v43 = vmax.f32 %v4569_v36, %v4573_v25 }
0x12e0   : > { %v4579_v35 = vsel %vm7199_vm7, %v4576_v43, 0.0 }
0x12e1   : > { %4587 = vrot.lane.b32.xlu1 %v4579_v35, %s6823_s29 }
0x1333   : > { %v4584_v13 = vpop.permute.xlu2 %4583 }
0x1334   : > { %4594 = vst.msk [vmem:[#allocation2 + $0x18] sm:$0xff] %vm622_vm10, %v4584_v13 }
0x133b   : > { %v9485_v27 = vld [vmem:[#allocation2 + $0x18] sm:$0xff] }
0x133c   : > { %4688 = vrot.lane.b32.xlu2 %v9485_v27, %s6816_s17  ;;  %4668 = vrot.lane.b32.xlu1 %v9485_v27, %s6817_s24  ;;  %4600 = vst [vmem:[#allocation3 + $0xd8] sm:$0xff] %v9485_v27 }
0x133d   : > { %4654 = vrot.lane.b32.xlu0 %v9485_v27, %s6818_s25 }
0x1344   : > { %4640 = vrot.lane.b32.xlu2 %v9485_v27, %s6819_s26 }
0x134b   : > { %v4586_v11 = vpop.permute.xlu0 %4585 }
0x134c   : > { %4620 = vrot.lane.b32.xlu2 %v9485_v27, %s6820_s27  ;;  %v9499_v10 = vsel %vm336_vm8, %v4584_v13, %v4586_v11 }
0x134d   : > { %4690 = vrot.lane.b32.xlu0 %v9499_v10, %s6816_s17  ;;  %4656 = vrot.lane.b32.xlu1 %v9499_v10, %s6818_s25  ;;  %4601 = vst [vmem:[#allocation3 + $0xe0] sm:$0xff] %v9499_v10 }
0x1353   : > { %v4588_v7 = vpop.permute.xlu1 %4587 }
0x1354   : > { %v4590_v22 = vsel %vm336_vm8, %v4586_v11, %v4588_v7  ;;  %4606 = vrot.lane.b32.xlu2 %v9485_v27, %s6821_s28 }
0x1355   : > { %4596 = vst.msk [vmem:[#allocation2 + $0x28] sm:$0xff] %vm625_vm14, %v4590_v22  ;;  %4642 = vrot.lane.b32.xlu0 %v9499_v10, %s6819_s26 }
0x135c   : > { %4670 = vrot.lane.b32.xlu2 %v9499_v10, %s6817_s24  ;;  %v4684_v49 = vld [vmem:[#allocation2 + $0x28] sm:$0xff] }
0x135d   : > { %4692 = vrot.lane.b32.xlu1 %v4684_v49, %s6816_s17  ;;  %4622 = vrot.lane.b32.xlu0 %v9499_v10, %s6820_s27  ;;  %4602 = vst.msk [vmem:[#allocation3 + $0xe8] sm:$0xff] %vm358_vm1, %v4684_v49 }
0x1364   : > { %4644 = vrot.lane.b32.xlu2 %v4684_v49, %s6819_s26 }
0x1365   : > { %4672 = vrot.lane.b32.xlu1 %v4684_v49, %s6817_s24  ;;  %4608 = vrot.lane.b32.xlu0 %v9499_v10, %s6821_s28 }
0x136c   : > { %4716 = vrot.lane.b32.xlu2 %v9485_v27, %s6814_s23 }
0x136d   : > { %4658 = vrot.lane.b32.xlu1 %v4684_v49, %s6818_s25  ;;  %4624 = vrot.lane.b32.xlu0 %v4684_v49, %s6820_s27 }
0x1374   : > { %4704 = vrot.lane.b32.xlu2 %v9499_v10, %s6815_s18 }
0x1375   : > { %4610 = vrot.lane.b32.xlu1 %v4684_v49, %s6821_s28  ;;  %4718 = vrot.lane.b32.xlu0 %v9499_v10, %s6814_s23 }
0x137c   : > { %4796 = vrot.lane.b32.xlu2 %v9531_v57, %s6833_s11 }
0x137d   : > { %4702 = vrot.lane.b32.xlu1 %v9485_v27, %s6815_s18  ;;  %4720 = vrot.lane.b32.xlu0 %v4684_v49, %s6814_s23 }
0x1385   : > { %4706 = vrot.lane.b32.xlu1 %v4684_v49, %s6815_s18  ;;  %4794 = vrot.lane.b32.xlu0 %v9350_v63, %s6833_s11 }
0x1396   : > { %v4689_v46 = vpop.permute.xlu2 %4688 }
0x139e   : > { %v4641_v14 = vpop.permute.xlu2 %4640 }
0x13a6   : > { %v4621_v59 = vpop.permute.xlu2 %4620 }
0x13ae   : > { %v4607_v24 = vpop.permute.xlu2 %4606  ;;  %v4669_v15 = vpop.permute.xlu1 %4668 }
0x13af   : > { %v4655_v21 = vpop.permute.xlu0 %4654 }
0x13b6   : > { %v4671_v8 = vpop.permute.xlu2 %4670 }
0x13b7   : > { %v9542_v3 = vsel %vm435_vm5, %v4669_v15, %v4671_v8 }
0x13b8   : > { %4679 = vst [vmem:[#allocation3 + $0x150] sm:$0xff] %v9542_v3 }
0x13be   : > { %v4645_v39 = vpop.permute.xlu2 %4644 }
0x13bf   : > { %4653 = vst.msk [vmem:[#allocation3 + $0x130] sm:$0xff] %vm358_vm1, %v4645_v39  ;;  %v4657_v2 = vpop.permute.xlu1 %4656  ;;  %v4691_v56 = vpop.permute.xlu0 %4690 }
0x13c0   : > { %v9547_v44 = vsel %vm420_vm6, %v4655_v21, %v4657_v2  ;;  %v9550_v63 = vsel %vm456_vm4, %v4689_v46, %v4691_v56 }
0x13c1   : > { %4665 = vst [vmem:[#allocation3 + $0x138] sm:$0xff] %v9547_v44  ;;  %4802 = vmatpush.msrb.mxu3 %v9550_v63 }
0x13c2   : > { %4699 = vst [vmem:[#allocation3 + $0x168] sm:$0xff] %v9550_v63 }
0x13c3   : > { %4803 = vmatpush.msrb.mxu3 %v9542_v3 }
0x13c5   : > { %4804 = vmatpush.msrb.mxu3 %v9547_v44 }
0x13c6   : > { %v4717_v35 = vpop.permute.xlu2 %4716  ;;  %v9625_v21 = vld [vmem:[#allocation3 + $0x130] sm:$0xff] }
0x13c7   : > { %v4643_v0 = vpop.permute.xlu0 %4642 }
0x13c8   : > { %v9558_v52 = vsel %vm10693_vm15, %v4641_v14, %v4643_v0  ;;  %v9561_v58 = vsel %vm10694_vm9, %v4643_v0, %v4645_v39  ;;  %vm10697_vm15 = vmmov %vm10695_vm13 }
0x13c9   : > { %4651 = vst [vmem:[#allocation3 + $0x120] sm:$0xff] %v9558_v52  ;;  %4805 = vmatpush.msrb.mxu3 %v9558_v52  ;;  %vm10698_vm9 = vmmov %vm10696_vm3 }
0x13ca   : > { %4652 = vst [vmem:[#allocation3 + $0x128] sm:$0xff] %v9561_v58 }
0x13ce   : > { %v4705_v46 = vpop.permute.xlu2 %4704 }
0x13cf   : > { %v4693_v30 = vpop.permute.xlu1 %4692  ;;  %v4623_v23 = vpop.permute.xlu0 %4622 }
0x13d0   : > { %v9567_v18 = vsel %vm456_vm4, %v4691_v56, %v4693_v30  ;;  %4701 = vst.msk [vmem:[#allocation3 + $0x178] sm:$0xff] %vm358_vm1, %v4693_v30  ;;  %v9571_v51 = vsel %vm10695_vm13, %v4621_v59, %v4623_v23  ;;  %vm10699_vm13 = vcmask 736256   ;;  %v6844_v56 = vmov 11  }
0x13d1   : > { %4700 = vst [vmem:[#allocation3 + $0x170] sm:$0xff] %v9567_v18  ;;  %4842 = vmatpush.msra.mxu1 %v9567_v18  ;;  %4806 = vmatpush.msrb.mxu3 %v9571_v51 }
0x13d2   : > { %4631 = vst [vmem:[#allocation3 + $0x108] sm:$0xff] %v9571_v51  ;;  %6640 = vset.pattern.permute.xlu1 %v6844_v56 }
0x13d6   : > { %v4797_v0 = vpop.permute.xlu2 %4796 }
0x13d7   : > { %v4673_v16 = vpop.permute.xlu1 %4672  ;;  %v9577_v26 = vld [vmem:[#allocation3 + $0x178] sm:$0xff]  ;;  %v4609_v36 = vpop.permute.xlu0 %4608 }
0x13d8   : > { %v9580_v25 = vsel %vm435_vm5, %v4671_v8, %v4673_v16  ;;  %4681 = vst.msk [vmem:[#allocation3 + $0x160] sm:$0xff] %vm358_vm1, %v4673_v16  ;;  %4882 = vmatpush.msrb.mxu0 %v9577_v26  ;;  %v9585_v43 = vsel %vm10696_vm3, %v4607_v24, %v4609_v36  ;;  %vm10700_vm3 = vcmask 744448  }
0x13d9   : > { %4680 = vst [vmem:[#allocation3 + $0x158] sm:$0xff] %v9580_v25  ;;  %4843 = vmatpush.msra.mxu1 %v9580_v25  ;;  %4807 = vmatpush.msrb.mxu3 %v9585_v43 }
0x13da   : > { %4617 = vst [vmem:[#allocation3 + $0xf0] sm:$0xff] %v9585_v43 }
0x13db   : > { %4808 = vmatpush.msrb.mxu3 %v9485_v27 }
0x13dd   : > { %4809 = vmatpush.msrb.mxu3 %v9366_v53 }
0x13df   : > { %v4659_v13 = vpop.permute.xlu1 %4658  ;;  %v9593_v11 = vld [vmem:[#allocation3 + $0x160] sm:$0xff]  ;;  %v4625_v7 = vpop.permute.xlu0 %4624  ;;  %4810 = vmatpush.msrb.mxu3 %v9354_v4 }
0x13e0   : > { %v9597_v22 = vsel %vm420_vm6, %v4657_v2, %v4659_v13  ;;  %4667 = vst.msk [vmem:[#allocation3 + $0x148] sm:$0xff] %vm358_vm1, %v4659_v13  ;;  %4883 = vmatpush.msrb.mxu0 %v9593_v11  ;;  %v9602_v49 = vsel %vm10697_vm15, %v4623_v23, %v4625_v7  ;;  %v9636_v2 = vld [vmem:[#allocation9] sm:$0xff]  ;;  %vm10701_vm15 = vmmov %vm10699_vm13  ;;  %v9654_v13 = vld [vmem:[#allocation3 + $0xe8] sm:$0xff] }
0x13e1   : > { %4666 = vst [vmem:[#allocation3 + $0x140] sm:$0xff] %v9597_v22  ;;  %4844 = vmatpush.msra.mxu1 %v9597_v22  ;;  %4811 = vmatpush.msrb.mxu3 %v9358_v9 }
0x13e2   : > { %4632 = vst [vmem:[#allocation3 + $0x110] sm:$0xff] %v9602_v49  ;;  %4789 = vperm.xlu1 %6640, %v9636_v2  }
0x13e3   : > { %4633 = vst.msk [vmem:[#allocation3 + $0x118] sm:$0xff] %vm358_vm1, %v4625_v7  ;;  %4845 = vmatpush.msra.mxu1 %v9561_v58  ;;  %4812 = vmatpush.msrb.mxu3 %v9362_v33 }
0x13e5   : > { %4846 = vmatpush.msra.mxu1 %v9602_v49  ;;  %4813 = vmatpush.msrb.mxu3 %v9369_v28 }
0x13e7   : > { %v4611_v14 = vpop.permute.xlu1 %4610  ;;  %v9613_v59 = vld [vmem:[#allocation3 + $0x148] sm:$0xff]  ;;  %v4719_v24 = vpop.permute.xlu0 %4718  ;;  %4814 = vmatpush.msrb.mxu3 %v9378_v34 }
0x13e8   : > { %v9617_v15 = vsel %vm10698_vm9, %v4609_v36, %v4611_v14  ;;  %4619 = vst.msk [vmem:[#allocation3 + $0x100] sm:$0xff] %vm358_vm1, %v4611_v14  ;;  %4884 = vmatpush.msrb.mxu0 %v9613_v59  ;;  %v9622_v8 = vsel %vm10699_vm13, %v4717_v35, %v4719_v24  ;;  %vm10702_vm9 = vcmask 130048   ;;  %vm10703_vm13 = vmmov %vm10700_vm3 }
0x13e9   : > { %4618 = vst [vmem:[#allocation3 + $0xf8] sm:$0xff] %v9617_v15  ;;  %4847 = vmatpush.msra.mxu1 %v9617_v15  ;;  %4815 = vmatpush.msrb.mxu3 %v9384_v54 }
0x13ea   : > { %4885 = vmatpush.msrb.mxu0 %v9625_v21  ;;  %4727 = vst [vmem:[#allocation3 + $0x198] sm:$0xff] %v9622_v8  ;;  %4836 = vmatpush.msrb.mxu2 %v9622_v8  ;;  %v9632_v39 = vld [vmem:[#allocation3 + $0x118] sm:$0xff] }
0x13eb   : > { %4848 = vmatpush.msra.mxu1 %v9499_v10  ;;  %4816 = vmatpush.msrb.mxu3 %v9396_v42 }
0x13ec   : > { %4886 = vmatpush.msrb.mxu0 %v9632_v39 }
0x13ed   : > { %4849 = vmatpush.msra.mxu1 %v9389_v12  ;;  %4817 = vmatpush.msrb.mxu3 %v9298_v45 }
0x13ef   : > { %v4703_v30 = vpop.permute.xlu1 %4702  ;;  %v9642_v23 = vld [vmem:[#allocation3 + $0x100] sm:$0xff]  ;;  %v4721_v16 = vpop.permute.xlu0 %4720  ;;  %4850 = vmatpush.msra.mxu1 %v9408_v50 }
0x13f0   : > { %v9646_v36 = vsel %vm10700_vm3, %v4703_v30, %v4705_v46  ;;  %4887 = vmatpush.msrb.mxu0 %v9642_v23  ;;  %v9650_v35 = vsel %vm10701_vm15, %v4719_v24, %v4721_v16  ;;  %4729 = vst.msk [vmem:[#allocation3 + $0x1a8] sm:$0xff] %vm358_vm1, %v4721_v16  ;;  %vm10704_vm3 = vcmask 588800   ;;  %vm10705_vm15 = vmmov %vm10702_vm9  ;;  %v9778_v30 = vld [vmem:[#allocation7 + $0xa0] sm:$0xff]  ;;  %v5082_v16 = vld [vmem:[#allocation7 + $0x98] sm:$0xff] }
0x13f1   : > { %4713 = vst [vmem:[#allocation3 + $0x180] sm:$0xff] %v9646_v36  ;;  %4837 = vmatpush.msrb.mxu2 %v9646_v36  ;;  %4851 = vmatpush.msra.mxu1 %v9417_v20 }
0x13f2   : > { %4888 = vmatpush.msrb.mxu0 %v9654_v13  ;;  %4728 = vst [vmem:[#allocation3 + $0x1a0] sm:$0xff] %v9650_v35  ;;  %6487 = vmatmul.msk.f32.vlgmr.msrb.gmra.mxu2 %vm10702_vm9, %v4797_v0 }
0x13f3   : > { %4852 = vmatpush.msra.mxu1 %v9426_v29  ;;  %4876 = vmatpush.msra.mxu2 %v9650_v35 }
0x13f4   : > { %4889 = vmatpush.msrb.mxu0 %v9405_v1 }
0x13f5   : > { %4853 = vmatpush.msra.mxu1 %v9435_v17 }
0x13f6   : > { %4890 = vmatpush.msrb.mxu0 %v9414_v37 }
0x13f7   : > { %v4707_v7 = vpop.permute.xlu1 %4706  ;;  %v4795_v14 = vpop.permute.xlu0 %4794  ;;  %4854 = vmatpush.msra.mxu1 %v9445_v48  ;;  %v9678_v1 = vld [vmem:[#allocation3 + $0x1a8] sm:$0xff] }
0x13f8   : > { %v9668_v24 = vsel %vm10703_vm13, %v4705_v46, %v4707_v7  ;;  %4715 = vst.msk [vmem:[#allocation3 + $0x190] sm:$0xff] %vm358_vm1, %v4707_v7  ;;  %4891 = vmatpush.msrb.mxu0 %v9423_v40  ;;  %v4798_v56 = vsel %vm10704_vm3, %v4795_v14, %v4797_v0  ;;  %vm10706_vm13 = vcmask 900096   ;;  %vm10707_vm3 = vcmask 736256  }
0x13f9   : > { %4714 = vst [vmem:[#allocation3 + $0x188] sm:$0xff] %v9668_v24  ;;  %4818 = vmatmul.f32.vlgmr.msrb.gmra.mxu3 %v4798_v56  ;;  %4855 = vmatpush.msra.mxu1 %v9454_v61 }
0x13fa   : > { %4892 = vmatpush.msrb.mxu0 %v9432_v47  ;;  %4877 = vmatpush.msra.mxu2 %v9668_v24 }
0x13fb   : > { %6488 = vmatmul.msk.f32.vlgmr.msra.gmra.mxu2 %vm10705_vm15, %v4797_v0  ;;  %4856 = vmatpush.msra.mxu1 %v9399_v19  ;;  %vm10708_vm15 = vmmov %vm10707_vm3 }
0x13fc   : > { %4893 = vmatpush.msrb.mxu0 %v9442_v5  ;;  %4916 = vmatpush.msrb.mxu2 %v9678_v1 }
0x13fd   : > { %4857 = vmatpush.msra.mxu1 %v9314_v6 }
0x13fe   : > { %4894 = vmatpush.msrb.mxu0 %v9451_v41  ;;  %4858 = vmatmul.f32.vlgmr.msra.gmra.mxu1 %v4798_v56 }
0x13ff   : > { %v9685_v37 = vld [vmem:[#allocation3 + $0x190] sm:$0xff]  ;;  %5225 = vmatpush.msrb.mxu1 %v9567_v18 }
0x1400   : > { %4895 = vmatpush.msrb.mxu0 %v9462_v62  ;;  %4917 = vmatpush.msrb.mxu2 %v9685_v37 }
0x1401   : > { %5226 = vmatpush.msrb.mxu1 %v9580_v25 }
0x1402   : > { %5185 = vmatpush.msra.mxu2 %v9550_v63  ;;  %4896 = vmatpush.msrb.mxu0 %v9467_v38 }
0x1403   : > { %5227 = vmatpush.msrb.mxu1 %v9597_v22  ;;  %6489 = vmatmul.msk.f32.vlgmr.msrb.gmra.mxu2 %vm10702_vm9, %v4797_v0  ;;  %vm10709_vm9 = vcmask 1031168  }
0x1404   : > { %5186 = vmatpush.msra.mxu2 %v9542_v3  ;;  %4897 = vmatpush.msrb.mxu0 %v9471_v32 }
0x1405   : > { %4898 = vmatmul.f32.vlgmr.msrb.gmra.mxu0 %v4798_v56  ;;  %5228 = vmatpush.msrb.mxu1 %v9561_v58 }
0x1406   : > { %5187 = vmatpush.msra.mxu2 %v9547_v44 }
0x1407   : > { %5229 = vmatpush.msrb.mxu1 %v9602_v49 }
0x1408   : > { %5188 = vmatpush.msra.mxu2 %v9558_v52 }
0x1409   : > { %5230 = vmatpush.msrb.mxu1 %v9617_v15 }
0x140a   : > { %5189 = vmatpush.msra.mxu2 %v9571_v51 }
0x140b   : > { %5231 = vmatpush.msrb.mxu1 %v9499_v10 }
0x140c   : > { %5190 = vmatpush.msra.mxu2 %v9585_v43 }
0x140d   : > { %5232 = vmatpush.msrb.mxu1 %v9389_v12 }
0x140e   : > { %5191 = vmatpush.msra.mxu2 %v9485_v27 }
0x140f   : > { %5233 = vmatpush.msrb.mxu1 %v9408_v50 }
0x1410   : > { %5192 = vmatpush.msra.mxu2 %v9366_v53 }
0x1411   : > { %5234 = vmatpush.msrb.mxu1 %v9417_v20 }
0x1412   : > { %5193 = vmatpush.msra.mxu2 %v9354_v4 }
0x1413   : > { %5235 = vmatpush.msrb.mxu1 %v9426_v29 }
0x1414   : > { %5194 = vmatpush.msra.mxu2 %v9358_v9 }
0x1415   : > { %5236 = vmatpush.msrb.mxu1 %v9435_v17 }
0x1416   : > { %5195 = vmatpush.msra.mxu2 %v9362_v33 }
0x1417   : > { %5237 = vmatpush.msrb.mxu1 %v9445_v48 }
0x1418   : > { %5196 = vmatpush.msra.mxu2 %v9369_v28 }
0x1419   : > { %5238 = vmatpush.msrb.mxu1 %v9454_v61 }
0x141a   : > { %5197 = vmatpush.msra.mxu2 %v9378_v34 }
0x141b   : > { %5239 = vmatpush.msrb.mxu1 %v9399_v19 }
0x141c   : > { %5198 = vmatpush.msra.mxu2 %v9384_v54 }
0x141d   : > { %5240 = vmatpush.msrb.mxu1 %v9314_v6 }
0x141e   : > { %5199 = vmatpush.msra.mxu2 %v9396_v42 }
0x1420   : > { %5200 = vmatpush.msra.mxu2 %v9298_v45 }
0x1454   : > { %v4790_v9 = vpop.permute.xlu1 %4789 }
0x1475   : > { %v4839_v4 = vpop.f32.mrf.mxu2 }
0x147b   : > { %v4859_v33 = vpop.f32.mrf.mxu1 }
0x147c   : > { %v4819_v53 = vpop.f32.mrf.mxu3  ;;  %v4860_v28 = vadd.f32 %v4859_v33, %v4790_v9 }
0x147d   : > { %v4820_v12 = vadd.f32 %v4819_v53, %v4790_v9 }
0x147e   : > { %v4879_v50 = vpop.f32.mrf.mxu2 }
0x147f   : > { %v4840_v34 = vadd.f32 %v4839_v4, %v4820_v12  ;;  %v4880_v20 = vadd.f32 %v4879_v50, %v4860_v28 }
0x1481   : > { %v4922_v40 = vmul.f32 0.2, %v4840_v34  ;;  %v4923_v29 = vmul.f32 0.2, %v4880_v20 }
0x1482   : > { %v4899_v54 = vpop.f32.mrf.mxu0 }
0x1483   : > { %v4925_v47 = vmax.f32 %v4840_v34, %v4922_v40  ;;  %v4926_v19 = vmax.f32 %v4880_v20, %v4923_v29  ;;  %v4900_v17 = vadd.f32 %v4899_v54, %v4790_v9 }
0x1485   : > { %v4928_v6 = vsel %vm7185_vm12, %v4925_v47, 0.0  ;;  %v4929_v45 = vsel %vm7189_vm0, %v4926_v19, 0.0 }
0x1486   : > { %4934 = vrot.lane.b32.xlu2 %v4928_v6, %s6823_s29  ;;  %4936 = vrot.lane.b32.xlu0 %v4929_v45, %s6823_s29  ;;  %v4919_v42 = vpop.f32.mrf.mxu2 }
0x1487   : > { %v4920_v5 = vadd.f32 %v4919_v42, %v4900_v17 }
0x1489   : > { %v4924_v48 = vmul.f32 0.2, %v4920_v5 }
0x148b   : > { %v4927_v41 = vmax.f32 %v4920_v5, %v4924_v48 }
0x148d   : > { %v4930_v61 = vsel %vm7199_vm7, %v4927_v41, 0.0 }
0x148e   : > { %4938 = vrot.lane.b32.xlu1 %v4930_v61, %s6823_s29 }
0x14e0   : > { %v4935_v62 = vpop.permute.xlu2 %4934 }
0x14e1   : > { %4945 = vst.msk [vmem:[#allocation2 + $0x30] sm:$0xff] %vm622_vm10, %v4935_v62 }
0x14e8   : > { %v9734_v38 = vld [vmem:[#allocation2 + $0x30] sm:$0xff] }
0x14e9   : > { %5039 = vrot.lane.b32.xlu0 %v9734_v38, %s6816_s17  ;;  %5053 = vrot.lane.b32.xlu1 %v9734_v38, %s6815_s18  ;;  %4951 = vst [vmem:[#allocation3 + $0x1b0] sm:$0xff] %v9734_v38 }
0x14f1   : > { %4991 = vrot.lane.b32.xlu0 %v9734_v38, %s6819_s26  ;;  %5005 = vrot.lane.b32.xlu1 %v9734_v38, %s6818_s25 }
0x14f8   : > { %v4937_v32 = vpop.permute.xlu0 %4936 }
0x14f9   : > { %v9746_v27 = vsel %vm336_vm8, %v4935_v62, %v4937_v32  ;;  %4971 = vrot.lane.b32.xlu0 %v9734_v38, %s6820_s27 }
0x14fa   : > { %5041 = vrot.lane.b32.xlu1 %v9746_v27, %s6816_s17  ;;  %4952 = vst [vmem:[#allocation3 + $0x1b8] sm:$0xff] %v9746_v27 }
0x1500   : > { %v4939_v10 = vpop.permute.xlu1 %4938 }
0x1501   : > { %4957 = vrot.lane.b32.xlu0 %v9734_v38, %s6821_s28  ;;  %v4941_v46 = vsel %vm336_vm8, %v4937_v32, %v4939_v10 }
0x1502   : > { %4993 = vrot.lane.b32.xlu1 %v9746_v27, %s6819_s26  ;;  %4947 = vst.msk [vmem:[#allocation2 + $0x40] sm:$0xff] %vm625_vm14, %v4941_v46 }
0x1509   : > { %5069 = vrot.lane.b32.xlu0 %v9746_v27, %s6814_s23  ;;  %v5035_v0 = vld [vmem:[#allocation2 + $0x40] sm:$0xff] }
0x150a   : > { %4973 = vrot.lane.b32.xlu1 %v9746_v27, %s6820_s27  ;;  %5071 = vrot.lane.b32.xlu2 %v5035_v0, %s6814_s23  ;;  %4953 = vst.msk [vmem:[#allocation3 + $0x1c0] sm:$0xff] %vm358_vm1, %v5035_v0 }
0x1511   : > { %5021 = vrot.lane.b32.xlu0 %v9746_v27, %s6817_s24 }
0x1512   : > { %4959 = vrot.lane.b32.xlu1 %v9746_v27, %s6821_s28  ;;  %5057 = vrot.lane.b32.xlu2 %v5035_v0, %s6815_s18 }
0x1519   : > { %5023 = vrot.lane.b32.xlu0 %v5035_v0, %s6817_s24 }
0x151a   : > { %5009 = vrot.lane.b32.xlu1 %v5035_v0, %s6818_s25  ;;  %5067 = vrot.lane.b32.xlu2 %v9734_v38, %s6814_s23 }
0x1521   : > { %4975 = vrot.lane.b32.xlu0 %v5035_v0, %s6820_s27 }
0x1522   : > { %4961 = vrot.lane.b32.xlu1 %v5035_v0, %s6821_s28  ;;  %5019 = vrot.lane.b32.xlu2 %v9734_v38, %s6817_s24 }
0x1529   : > { %5178 = vrot.lane.b32.xlu0 %v9778_v30, %s6825_s30 }
0x152a   : > { %5174 = vrot.lane.b32.xlu1 %v9531_v57, %s6825_s30  ;;  %5055 = vrot.lane.b32.xlu2 %v9746_v27, %s6815_s18 }
0x1532   : > { %5007 = vrot.lane.b32.xlu2 %v9746_v27, %s6818_s25 }
0x153a   : > { %5043 = vrot.lane.b32.xlu2 %v5035_v0, %s6816_s17 }
0x1542   : > { %4995 = vrot.lane.b32.xlu2 %v5035_v0, %s6819_s26 }
0x154a   : > { %5176 = vrot.lane.b32.xlu2 %v5082_v16, %s6825_s30  ;;  %s6846_s30 = smov 96  }
0x155b   : > { %v5040_v7 = vpop.permute.xlu0 %5039  ;;  %v5054_v14 = vpop.permute.xlu1 %5053 }
0x1563   : > { %v4992_v56 = vpop.permute.xlu0 %4991  ;;  %v5006_v4 = vpop.permute.xlu1 %5005 }
0x1564   : > { %v5072_v9 = vpop.permute.xlu2 %5071 }
0x1565   : > { %5080 = vst.msk [vmem:[#allocation3 + $0x280] sm:$0xff] %vm358_vm1, %v5072_v9 }
0x156b   : > { %v4972_v57 = vpop.permute.xlu0 %4971 }
0x156c   : > { %v5042_v33 = vpop.permute.xlu1 %5041  ;;  %v5058_v53 = vpop.permute.xlu2 %5057  ;;  %v9792_v28 = vld [vmem:[#allocation3 + $0x280] sm:$0xff] }
0x156d   : > { %v9795_v12 = vsel %vm456_vm4, %v5040_v7, %v5042_v33  ;;  %5066 = vst.msk [vmem:[#allocation3 + $0x268] sm:$0xff] %vm358_vm1, %v5058_v53  ;;  %5290 = vmatpush.msrb.mxu2 %v9792_v28 }
0x156e   : > { %5050 = vst [vmem:[#allocation3 + $0x240] sm:$0xff] %v9795_v12 }
0x1573   : > { %v4958_v50 = vpop.permute.xlu0 %4957 }
0x1574   : > { %v9800_v34 = vpop.permute.xlu1 %4993  ;;  %v5068_v20 = vpop.permute.xlu2 %5067  ;;  %v9802_v40 = vld [vmem:[#allocation3 + $0x268] sm:$0xff] }
0x1575   : > { %v9806_v29 = vsel %vm10706_vm13, %v4992_v56, %v9800_v34  ;;  %5291 = vmatpush.msrb.mxu2 %v9802_v40  ;;  %vm10710_vm13 = vcmask 1039360  }
0x1576   : > { %5002 = vst [vmem:[#allocation3 + $0x1f8] sm:$0xff] %v9806_v29 }
0x157b   : > { %v5070_v54 = vpop.permute.xlu0 %5069 }
0x157c   : > { %v9811_v47 = vsel %vm10707_vm3, %v5068_v20, %v5070_v54  ;;  %v9814_v19 = vsel %vm10708_vm15, %v5070_v54, %v5072_v9  ;;  %v4974_v17 = vpop.permute.xlu1 %4973  ;;  %v5020_v6 = vpop.permute.xlu2 %5019  ;;  %vm10711_vm3 = vcmask 744448  }
0x157d   : > { %v9817_v45 = vsel %vm10709_vm9, %v4972_v57, %v4974_v17  ;;  %5210 = vmatpush.msra.mxu3 %v9811_v47  ;;  %5250 = vmatpush.msra.mxu0 %v9814_v19  ;;  %5079 = vst [vmem:[#allocation3 + $0x278] sm:$0xff] %v9814_v19  ;;  %vm10712_vm15 = vmmov %vm10711_vm3 }
0x157e   : > { %4982 = vst [vmem:[#allocation3 + $0x1e0] sm:$0xff] %v9817_v45 }
0x1583   : > { %v5022_v42 = vpop.permute.xlu0 %5021 }
0x1584   : > { %v9824_v5 = vsel %vm435_vm5, %v5020_v6, %v5022_v42  ;;  %v4960_v48 = vpop.permute.xlu1 %4959  ;;  %v5056_v41 = vpop.permute.xlu2 %5055 }
0x1585   : > { %5030 = vst [vmem:[#allocation3 + $0x228] sm:$0xff] %v9824_v5  ;;  %v9828_v61 = vsel %vm10710_vm13, %v4958_v50, %v4960_v48  ;;  %v9831_v62 = vsel %vm10711_vm3, %v5054_v14, %v5056_v41  ;;  %v9834_v32 = vsel %vm10712_vm15, %v5056_v41, %v5058_v53  ;;  %vm10713_vm3 = vcmask 900096   ;;  %v9977_v41 = vld [vmem:[#allocation3 + $0x78] sm:$0xff] }
0x1586   : > { %4968 = vst [vmem:[#allocation3 + $0x1c8] sm:$0xff] %v9828_v61  ;;  %5211 = vmatpush.msra.mxu3 %v9831_v62  ;;  %5251 = vmatpush.msra.mxu0 %v9834_v32  ;;  %vm10714_vm15 = vcmask 457728  }
0x1587   : > { %5064 = vst [vmem:[#allocation3 + $0x258] sm:$0xff] %v9831_v62 }
0x1588   : > { %5065 = vst [vmem:[#allocation3 + $0x260] sm:$0xff] %v9834_v32  ;;  %5212 = vmatpush.msra.mxu3 %v9795_v12 }
0x158a   : > { %5213 = vmatpush.msra.mxu3 %v9824_v5 }
0x158b   : > { %v5024_v10 = vpop.permute.xlu0 %5023 }
0x158c   : > { %v9844_v46 = vsel %vm435_vm5, %v5022_v42, %v5024_v10  ;;  %5032 = vst.msk [vmem:[#allocation3 + $0x238] sm:$0xff] %vm358_vm1, %v5024_v10  ;;  %v5010_v0 = vpop.permute.xlu1 %5009  ;;  %v5008_v16 = vpop.permute.xlu2 %5007  ;;  %v9981_v10 = vld [vmem:[#allocation3 + $0x60] sm:$0xff] }
0x158d   : > { %5031 = vst [vmem:[#allocation3 + $0x230] sm:$0xff] %v9844_v46  ;;  %v9849_v7 = vsel %vm420_vm6, %v5006_v4, %v5008_v16  ;;  %v9852_v14 = vsel %vm420_vm6, %v5008_v16, %v5010_v0  ;;  %v10002_v16 = vld [vmem:[#allocation3 + $0xc8] sm:$0xff] }
0x158e   : > { %5018 = vst.msk [vmem:[#allocation3 + $0x220] sm:$0xff] %vm358_vm1, %v5010_v0  ;;  %5214 = vmatpush.msra.mxu3 %v9849_v7  ;;  %v9985_v0 = vld [vmem:[#allocation3 + $0x48] sm:$0xff] }
0x158f   : > { %5016 = vst [vmem:[#allocation3 + $0x210] sm:$0xff] %v9849_v7 }
0x1590   : > { %5017 = vst [vmem:[#allocation3 + $0x218] sm:$0xff] %v9852_v14  ;;  %5215 = vmatpush.msra.mxu3 %v9806_v29 }
0x1591   : > { %10719 = vst [vmem:[#allocation17_spill] sm:$0xff] %v9981_v10 }
0x1592   : > { %5216 = vmatpush.msra.mxu3 %v9817_v45  ;;  %10720 = vst [vmem:[#allocation22_spill] sm:$0xff] %v9985_v0 }
0x1593   : > { %v4976_v56 = vpop.permute.xlu0 %4975  ;;  %10725 = vst [vmem:[#allocation20_spill] sm:$0xff] %v10002_v16 }
0x1594   : > { %v9861_v9 = vsel %vm10709_vm9, %v4974_v17, %v4976_v56  ;;  %4984 = vst.msk [vmem:[#allocation3 + $0x1f0] sm:$0xff] %vm358_vm1, %v4976_v56  ;;  %v4962_v4 = vpop.permute.xlu1 %4961  ;;  %v5044_v57 = vpop.permute.xlu2 %5043  ;;  %5217 = vmatpush.msra.mxu3 %v9828_v61  ;;  %vm10715_vm9 = vmmov %vm10714_vm15  ;;  %v10011_v56 = vld [vmem:[#allocation3 + $0x80] sm:$0xff] }
0x1595   : > { %4983 = vst [vmem:[#allocation3 + $0x1e8] sm:$0xff] %v9861_v9  ;;  %v9866_v53 = vsel %vm10710_vm13, %v4960_v48, %v4962_v4  ;;  %v9870_v50 = vsel %vm456_vm4, %v5042_v33, %v5044_v57  ;;  %vm10716_vm13 = vcmask 719872   ;;  %v9924_v48 = vld [vmem:[#allocation3 + $0x1c0] sm:$0xff] }
0x1596   : > { %5052 = vst.msk [vmem:[#allocation3 + $0x250] sm:$0xff] %vm358_vm1, %v5044_v57  ;;  %5218 = vmatpush.msra.mxu3 %v9734_v38  ;;  %5252 = vmatpush.msra.mxu0 %v9870_v50  ;;  %v10017_v57 = vld [vmem:[#allocation3 + $0x50] sm:$0xff] }
0x1597   : > { %5051 = vst [vmem:[#allocation3 + $0x248] sm:$0xff] %v9870_v50 }
0x1598   : > { %4969 = vst [vmem:[#allocation3 + $0x1d0] sm:$0xff] %v9866_v53  ;;  %5219 = vmatpush.msra.mxu3 %v9622_v8  ;;  %5253 = vmatpush.msra.mxu0 %v9844_v46  ;;  %v9893_v8 = vld [vmem:[#allocation3 + $0x238] sm:$0xff] }
0x1599   : > { %4970 = vst.msk [vmem:[#allocation3 + $0x1d8] sm:$0xff] %vm358_vm1, %v4962_v4  ;;  %v10014_v4 = vld [vmem:[#allocation3 + $0x68] sm:$0xff] }
0x159a   : > { %5220 = vmatpush.msra.mxu3 %v9646_v36  ;;  %5254 = vmatpush.msra.mxu0 %v9852_v14  ;;  %10728 = vst [vmem:[#allocation26_spill] sm:$0xff] %v10011_v56 }
0x159b   : > { %v5179_v36 = vpop.permute.xlu0 %5178  ;;  %10729 = vst [vmem:[#allocation27_spill] sm:$0xff] %v10014_v4 }
0x159c   : > { %5265 = vmatpush.msrb.mxu3 %v9577_v26  ;;  %v4996_v33 = vpop.permute.xlu2 %4995  ;;  %v9898_v26 = vld [vmem:[#allocation3 + $0x220] sm:$0xff]  ;;  %10730 = vst [vmem:[#allocation28_spill] sm:$0xff] %v10017_v57 }
0x159d   : > { %v9883_v20 = vld [vmem:[#allocation3 + $0x250] sm:$0xff]  ;;  %v9887_v54 = vsel %vm10713_vm3, %v9800_v34, %v4996_v33  ;;  %5004 = vst.msk [vmem:[#allocation3 + $0x208] sm:$0xff] %vm358_vm1, %v4996_v33  ;;  %v6845_v34 = vmov 12   ;;  %vm10717_vm3 = vmmov %vm10716_vm13  ;;  %v10020_v33 = vld [vmem:[#allocation3 + $0x38] sm:$0xff] }
0x159e   : > { %5292 = vmatpush.msrb.mxu2 %v9883_v20  ;;  %5266 = vmatpush.msrb.mxu3 %v9593_v11  ;;  %5003 = vst [vmem:[#allocation3 + $0x200] sm:$0xff] %v9887_v54  ;;  %v5175_v11 = vpop.permute.xlu1 %5174 }
0x159f   : > { %5255 = vmatpush.msra.mxu0 %v9887_v54  ;;  %6641 = vset.pattern.permute.xlu2 %v6845_v34  ;;  %10731 = vst [vmem:[#allocation29_spill] sm:$0xff] %v10020_v33 }
0x15a0   : > { %5293 = vmatpush.msrb.mxu2 %v9893_v8  ;;  %5267 = vmatpush.msrb.mxu3 %v9613_v59 }
0x15a1   : > { %5256 = vmatpush.msra.mxu0 %v9861_v9  ;;  %5168 = vperm.xlu2 %6641, %v9636_v2  }
0x15a2   : > { %5294 = vmatpush.msrb.mxu2 %v9898_v26  ;;  %5268 = vmatpush.msrb.mxu3 %v9625_v21  ;;  %v9914_v21 = vld [vmem:[#allocation3 + $0x1f0] sm:$0xff] }
0x15a3   : > { %5257 = vmatpush.msra.mxu0 %v9866_v53 }
0x15a4   : > { %5269 = vmatpush.msrb.mxu3 %v9632_v39  ;;  %v5177_v17 = vpop.permute.xlu2 %5176  ;;  %v9905_v6 = vld [vmem:[#allocation3 + $0x208] sm:$0xff]  ;;  %v9917_v39 = vld [vmem:[#allocation3 + $0x1d8] sm:$0xff] }
0x15a5   : > { %5258 = vmatpush.msra.mxu0 %v9746_v27  ;;  %v5180_v59 = vsel %vm10714_vm15, %v5175_v11, %v5177_v17  ;;  %v5181_v42 = vsel %vm10715_vm9, %v5177_v17, %v5179_v36  ;;  %5295 = vmatpush.msrb.mxu2 %v9905_v6  ;;  %v9922_v27 = vld [vmem:[#allocation3 + $0xd0] sm:$0xff]  ;;  %vm10718_vm15 = vmmov %vm10717_vm3  ;;  %v10023_v36 = vld [vmem:[#allocation3 + $0x20] sm:$0xff]  ;;  %vm5590_vm9 = vcmask 785408  }
0x15a6   : > { %5270 = vmatpush.msrb.mxu3 %v9642_v23  ;;  %5201 = vmatmul.f32.vlgmr.msra.gmra.mxu2 %v5180_v59  ;;  %v9930_v23 = vld [vmem:[#allocation3 + $0xb8] sm:$0xff]  ;;  %10732 = vst [vmem:[#allocation30_spill] sm:$0xff] %v10023_v36  ;;  %v10026_v11 = vld [vmem:[#allocation3 + $0x8] sm:$0xff] }
0x15a7   : > { %6490 = vmatmul.msk.f32.vlgmr.msra.gmra.mxu3 %vm10716_vm13, %v5181_v42  ;;  %5241 = vmatmul.f32.vlgmr.msrb.gmra.mxu1 %v5180_v59  ;;  %10733 = vst [vmem:[#allocation31_spill] sm:$0xff] %v10026_v11  ;;  %vm10735_vm13 = vcmask 1031168  }
0x15a8   : > { %5296 = vmatpush.msrb.mxu2 %v9914_v21  ;;  %5259 = vmatpush.msra.mxu0 %v9650_v35  ;;  %v9935_v35 = vld [vmem:[#allocation3 + $0xa0] sm:$0xff] }
0x15a9   : > { %5271 = vmatpush.msrb.mxu3 %v9654_v13  ;;  %v9942_v13 = vld [vmem:[#allocation3 + $0x88] sm:$0xff] }
0x15aa   : > { %5297 = vmatpush.msrb.mxu2 %v9917_v39  ;;  %5260 = vmatpush.msra.mxu0 %v9668_v24  ;;  %v9954_v24 = vld [vmem:[#allocation3 + $0x40] sm:$0xff] }
0x15ab   : > { %5272 = vmatpush.msrb.mxu3 %v9922_v27  ;;  %6491 = vmatmul.msk.f32.vlgmr.msra.gmra.mxu0 %vm10717_vm3, %v5181_v42  ;;  %vm10736_vm3 = vcmask 1039360  }
0x15ac   : > { %5298 = vmatpush.msrb.mxu2 %v9924_v48  ;;  %5597 = vmatpush.msrb.mxu0 %v9550_v63  ;;  %v9946_v63 = vld [vmem:[#allocation3 + $0x70] sm:$0xff]  ;;  %vm10738_vm11 = vmmov %vm10736_vm3 }
0x15ad   : > { %5273 = vmatpush.msrb.mxu3 %v9930_v23 }
0x15ae   : > { %5299 = vmatpush.msrb.mxu2 %v9678_v1  ;;  %5598 = vmatpush.msrb.mxu0 %v9542_v3  ;;  %v9950_v3 = vld [vmem:[#allocation3 + $0x58] sm:$0xff]  ;;  %v9963_v1 = vld [vmem:[#allocation3 + $0xc0] sm:$0xff] }
0x15af   : > { %5274 = vmatpush.msrb.mxu3 %v9935_v35 }
0x15b0   : > { %5300 = vmatpush.msrb.mxu2 %v9685_v37  ;;  %5599 = vmatpush.msrb.mxu0 %v9547_v44  ;;  %v9957_v44 = vld [vmem:[#allocation3 + $0xd8] sm:$0xff]  ;;  %v9973_v37 = vld [vmem:[#allocation3 + $0x90] sm:$0xff] }
0x15b1   : > { %6492 = vmatmul.msk.f32.vlgmr.msrb.gmra.mxu2 %vm10718_vm15, %v5181_v42  ;;  %5275 = vmatpush.msrb.mxu3 %v9942_v13  ;;  %vm10737_vm15 = vcmask 900096  }
0x15b2   : > { %5600 = vmatpush.msrb.mxu0 %v9558_v52  ;;  %v9960_v52 = vld [vmem:[#allocation3 + $0x28] sm:$0xff] }
0x15b3   : > { %5276 = vmatpush.msrb.mxu3 %v9946_v63 }
0x15b4   : > { %5601 = vmatpush.msrb.mxu0 %v9571_v51  ;;  %v9966_v51 = vld [vmem:[#allocation3 + $0x10] sm:$0xff] }
0x15b5   : > { %5277 = vmatpush.msrb.mxu3 %v9950_v3 }
0x15b6   : > { %5602 = vmatpush.msrb.mxu0 %v9585_v43  ;;  %v9969_v43 = vld [vmem:[#allocation3 + $0xa8] sm:$0xff] }
0x15b7   : > { %5278 = vmatpush.msrb.mxu3 %v9954_v24 }
0x15b8   : > { %5603 = vmatpush.msrb.mxu0 %v9957_v44 }
0x15b9   : > { %5279 = vmatpush.msrb.mxu3 %v9960_v52 }
0x15ba   : > { %5604 = vmatpush.msrb.mxu0 %v9963_v1 }
0x15bb   : > { %5280 = vmatpush.msrb.mxu3 %v9966_v51 }
0x15bc   : > { %5605 = vmatpush.msrb.mxu0 %v9969_v43  ;;  %5281 = vmatmul.f32.vlgmr.msrb.gmra.mxu3 %v5180_v59 }
0x15bd   : > { %5657 = vmatpush.msra.mxu3 %v9567_v18  ;;  %v9989_v18 = vld [vmem:[#allocation3 + $0x30] sm:$0xff] }
0x15be   : > { %5606 = vmatpush.msrb.mxu0 %v9973_v37  ;;  %10721 = vst [vmem:[#allocation18_spill] sm:$0xff] %v9989_v18 }
0x15bf   : > { %5658 = vmatpush.msra.mxu3 %v9580_v25  ;;  %v9993_v25 = vld [vmem:[#allocation3 + $0x18] sm:$0xff] }
0x15c0   : > { %5607 = vmatpush.msrb.mxu0 %v9977_v41  ;;  %10722 = vst [vmem:[#allocation23_spill] sm:$0xff] %v9993_v25 }
0x15c1   : > { %5659 = vmatpush.msra.mxu3 %v9597_v22  ;;  %v9996_v22 = vld [vmem:[#allocation3 + $0xe0] sm:$0xff] }
0x15c2   : > { %5608 = vmatpush.msrb.mxu0 %v9981_v10  ;;  %10723 = vst [vmem:[#allocation19_spill] sm:$0xff] %v9996_v22 }
0x15c3   : > { %5660 = vmatpush.msra.mxu3 %v9561_v58  ;;  %v9999_v58 = vld [vmem:[#allocation3] sm:$0xff] }
0x15c4   : > { %5609 = vmatpush.msrb.mxu0 %v9985_v0  ;;  %10724 = vst [vmem:[#allocation24_spill] sm:$0xff] %v9999_v58 }
0x15c5   : > { %5661 = vmatpush.msra.mxu3 %v9602_v49  ;;  %v10005_v49 = vld [vmem:[#allocation3 + $0xb0] sm:$0xff] }
0x15c6   : > { %5610 = vmatpush.msrb.mxu0 %v9989_v18  ;;  %10726 = vst [vmem:[#allocation25_spill] sm:$0xff] %v10005_v49 }
0x15c7   : > { %5662 = vmatpush.msra.mxu3 %v9617_v15  ;;  %v10008_v15 = vld [vmem:[#allocation3 + $0x98] sm:$0xff] }
0x15c8   : > { %5611 = vmatpush.msrb.mxu0 %v9993_v25  ;;  %10727 = vst [vmem:[#allocation21_spill] sm:$0xff] %v10008_v15 }
0x15c9   : > { %5663 = vmatpush.msra.mxu3 %v9996_v22 }
0x15ca   : > { %5612 = vmatpush.msrb.mxu0 %v9999_v58 }
0x15cb   : > { %5664 = vmatpush.msra.mxu3 %v10002_v16 }
0x15cd   : > { %5665 = vmatpush.msra.mxu3 %v10005_v49 }
0x15cf   : > { %5666 = vmatpush.msra.mxu3 %v10008_v15 }
0x15d1   : > { %5667 = vmatpush.msra.mxu3 %v10011_v56 }
0x15d3   : > { %5668 = vmatpush.msra.mxu3 %v10014_v4 }
0x15d5   : > { %5669 = vmatpush.msra.mxu3 %v10017_v57 }
0x15d7   : > { %5670 = vmatpush.msra.mxu3 %v10020_v33 }
0x15d9   : > { %5671 = vmatpush.msra.mxu3 %v10023_v36 }
0x15db   : > { %5672 = vmatpush.msra.mxu3 %v10026_v11 }
0x15fb   : > { %v5169_v34 = vpop.permute.xlu2 %5168 }
0x1624   : > { %v5242_v17 = vpop.f32.mrf.mxu1 }
0x1625   : > { %v5243_v59 = vadd.f32 %v5242_v17, %v5169_v34 }
0x1628   : > { %v5262_v42 = vpop.f32.mrf.mxu0 }
0x1629   : > { %v5202_v4 = vpop.f32.mrf.mxu2  ;;  %v5263_v56 = vadd.f32 %v5262_v42, %v5243_v59 }
0x162a   : > { %v5203_v15 = vadd.f32 %v5202_v4, %v5169_v34  ;;  %v5222_v57 = vpop.f32.mrf.mxu3 }
0x162b   : > { %v5306_v58 = vmul.f32 0.2, %v5263_v56 }
0x162c   : > { %v5223_v49 = vadd.f32 %v5222_v57, %v5203_v15 }
0x162d   : > { %v5309_v25 = vmax.f32 %v5263_v56, %v5306_v58 }
0x162e   : > { %v5305_v33 = vmul.f32 0.2, %v5223_v49 }
0x162f   : > { %v5312_v16 = vsel %vm7189_vm0, %v5309_v25, 0.0  ;;  %v5465_v25 = vld [vmem:[#allocation7 + $0xa8] sm:$0xff] }
0x1630   : > { %v5308_v36 = vmax.f32 %v5223_v49, %v5305_v33  ;;  %5319 = vrot.lane.b32.xlu1 %v5312_v16, %s6823_s29  ;;  %v6642_v49 = vpack.i.bf16 %v5465_v25, %v9778_v30  ;;  %v10089_v30 = vld [vmem:[#allocation7 + $0xb0] sm:$0xff] }
0x1631   : > { %10734 = vst [vmem:[#allocation32_spill] sm:$0xff] %v10089_v30 }
0x1632   : > { %v5311_v11 = vsel %vm7185_vm12, %v5308_v36, 0.0 }
0x1633   : > { %5317 = vrot.lane.b32.xlu0 %v5311_v11, %s6823_s29 }
0x1634   : > { %v5302_v59 = vpop.f32.mrf.mxu2 }
0x163b   : > { %6643 = vrot.lane.b32.xlu0 %v6642_v49, %s6846_s30 }
0x163f   : > { %v5282_v17 = vpop.f32.mrf.mxu3 }
0x1640   : > { %v5283_v18 = vadd.f32 %v5282_v17, %v5169_v34 }
0x1642   : > { %v5303_v4 = vadd.f32 %v5302_v59, %v5283_v18 }
0x1644   : > { %v5307_v42 = vmul.f32 0.2, %v5303_v4 }
0x1646   : > { %v5310_v22 = vmax.f32 %v5303_v4, %v5307_v42 }
0x1648   : > { %v5313_v58 = vsel %vm7199_vm7, %v5310_v22, 0.0 }
0x1649   : > { %5321 = vrot.lane.b32.xlu2 %v5313_v58, %s6823_s29 }
0x16a2   : > { %v5320_v16 = vpop.permute.xlu1 %5319 }
0x16a3   : > { %v5322_v15 = vpop.permute.xlu2 %5321 }
0x16a4   : > { %v5324_v56 = vsel %vm336_vm8, %v5320_v16, %v5322_v15  ;;  %v6847_v15 = vmov 13  }
0x16a5   : > { %v5318_v57 = vpop.permute.xlu0 %5317  ;;  %5330 = vst.msk [vmem:[#allocation2 + $0x58] sm:$0xff] %vm625_vm14, %v5324_v56  ;;  %6647 = vset.pattern.permute.xlu2 %v6847_v15 }
0x16a6   : > { %5328 = vst.msk [vmem:[#allocation2 + $0x48] sm:$0xff] %vm622_vm10, %v5318_v57  ;;  %v10044_v18 = vsel %vm336_vm8, %v5318_v57, %v5320_v16 }
0x16ac   : > { %v5370_v22 = vld [vmem:[#allocation2 + $0x58] sm:$0xff] }
0x16ad   : > { %v10046_v33 = vld [vmem:[#allocation2 + $0x48] sm:$0xff]  ;;  %5336 = vst.msk [vmem:[#allocation3 + $0x298] sm:$0xff] %vm358_vm1, %v5370_v22  ;;  %v10093_v36 = vpop.permute.xlu0 %6643 }
0x16ae   : > { %5374 = vrot.lane.b32.xlu2 %v10046_v33, %s6819_s26  ;;  %5388 = vrot.lane.b32.xlu0 %v10046_v33, %s6818_s25  ;;  %v10518_v11 = vunpack.i.h.bf16 %v10093_v36  ;;  %v6645_v34 = vunpack.i.l.bf16 %v10093_v36 }
0x16af   : > { %5354 = vrot.lane.b32.xlu1 %v10046_v33, %s6820_s27 }
0x16b0   : > { %v10100_v17 = vsel %vm5590_vm9, %v6645_v34, %v10518_v11 }
0x16b1   : > { %5613 = vmatmul.f32.vlgmr.msrb.gmra.mxu0 %v10100_v17  ;;  %5673 = vmatmul.f32.vlgmr.msra.gmra.mxu3 %v10100_v17 }
0x16b6   : > { %5376 = vrot.lane.b32.xlu0 %v10044_v18, %s6819_s26  ;;  %5356 = vrot.lane.b32.xlu2 %v10044_v18, %s6820_s27 }
0x16b7   : > { %5340 = vrot.lane.b32.xlu1 %v10046_v33, %s6821_s28 }
0x16be   : > { %5392 = vrot.lane.b32.xlu0 %v5370_v22, %s6818_s25  ;;  %5342 = vrot.lane.b32.xlu2 %v10044_v18, %s6821_s28 }
0x16bf   : > { %5450 = vrot.lane.b32.xlu1 %v10046_v33, %s6814_s23 }
0x16c6   : > { %5378 = vrot.lane.b32.xlu0 %v5370_v22, %s6819_s26  ;;  %5452 = vrot.lane.b32.xlu2 %v10044_v18, %s6814_s23 }
0x16c7   : > { %5390 = vrot.lane.b32.xlu1 %v10044_v18, %s6818_s25 }
0x16ce   : > { %5436 = vrot.lane.b32.xlu0 %v10046_v33, %s6815_s18  ;;  %5344 = vrot.lane.b32.xlu2 %v5370_v22, %s6821_s28 }
0x16cf   : > { %5358 = vrot.lane.b32.xlu1 %v5370_v22, %s6820_s27 }
0x16d6   : > { %5424 = vrot.lane.b32.xlu0 %v10044_v18, %s6816_s17  ;;  %5422 = vrot.lane.b32.xlu2 %v10046_v33, %s6816_s17 }
0x16d7   : > { %5438 = vrot.lane.b32.xlu1 %v10044_v18, %s6815_s18 }
0x16de   : > { %5454 = vrot.lane.b32.xlu0 %v5370_v22, %s6814_s23  ;;  %5404 = vrot.lane.b32.xlu2 %v10044_v18, %s6817_s24 }
0x16df   : > { %5402 = vrot.lane.b32.xlu1 %v10046_v33, %s6817_s24 }
0x16e6   : > { %5406 = vrot.lane.b32.xlu0 %v5370_v22, %s6817_s24  ;;  %5426 = vrot.lane.b32.xlu2 %v5370_v22, %s6816_s17 }
0x16e7   : > { %5440 = vrot.lane.b32.xlu1 %v5370_v22, %s6815_s18 }
0x16ee   : > { %5578 = vperm.xlu2 %6647, %v9636_v2  }
0x16ef   : > { %5588 = vrot.lane.b32.xlu1 %v10089_v30, %s6846_s30 }
0x1708   : > { %v5375_v59 = vpop.permute.xlu2 %5374 }
0x1710   : > { %v5357_v4 = vpop.permute.xlu2 %5356 }
0x1718   : > { %v5343_v42 = vpop.permute.xlu2 %5342 }
0x1720   : > { %v5453_v58 = vpop.permute.xlu2 %5452  ;;  %v5389_v25 = vpop.permute.xlu0 %5388 }
0x1721   : > { %v5355_v49 = vpop.permute.xlu1 %5354 }
0x1722   : > { %v10105_v16 = vsel %vm10735_vm13, %v5355_v49, %v5357_v4  ;;  %vm10739_vm13 = vcmask 736256  }
0x1728   : > { %v5345_v56 = vpop.permute.xlu2 %5344  ;;  %v5377_v57 = vpop.permute.xlu0 %5376 }
0x1729   : > { %v5341_v22 = vpop.permute.xlu1 %5340  ;;  %v10109_v34 = vsel %vm10736_vm3, %v5343_v42, %v5345_v56  ;;  %5353 = vst.msk [vmem:[#allocation3 + $0x2b0] sm:$0xff] %vm358_vm1, %v5345_v56  ;;  %v10113_v11 = vsel %vm10737_vm15, %v5375_v59, %v5377_v57  ;;  %vm10740_vm3 = vmmov %vm10737_vm15  ;;  %vm10742_vm15 = vcmask 744448  }
0x172a   : > { %v10116_v30 = vsel %vm10738_vm11, %v5341_v22, %v5343_v42  ;;  %vm10741_vm11 = vcmask 1031168  }
0x1730   : > { %v5423_v49 = vpop.permute.xlu2 %5422  ;;  %v5393_v31 = vpop.permute.xlu0 %5392 }
0x1731   : > { %v5451_v55 = vpop.permute.xlu1 %5450  ;;  %5401 = vst.msk [vmem:[#allocation3 + $0x2f8] sm:$0xff] %vm358_vm1, %v5393_v31 }
0x1732   : > { %v5456_v2 = vsel %vm10739_vm13, %v5451_v55, %v5453_v58 }
0x1733   : > { %5461 = vst [vmem:[#allocation3 + $0x348] sm:$0xff] %v5456_v2  ;;  %5649 = vmatpush.msra.mxu2 %v5456_v2 }
0x1738   : > { %v5405_v15 = vpop.permute.xlu2 %5404  ;;  %v5379_v60 = vpop.permute.xlu0 %5378 }
0x1739   : > { %v5391_v0 = vpop.permute.xlu1 %5390  ;;  %v10121_v56 = vsel %vm10740_vm3, %v5377_v57, %v5379_v60  ;;  %5387 = vst.msk [vmem:[#allocation3 + $0x2e0] sm:$0xff] %vm358_vm1, %v5379_v60  ;;  %vm10743_vm3 = vmmov %vm10742_vm15 }
0x173a   : > { %v10125_v59 = vsel %vm420_vm6, %v5389_v25, %v5391_v0  ;;  %v10128_v42 = vsel %vm420_vm6, %v5391_v0, %v5393_v31 }
0x173b   : > { %5617 = vmatpush.msra.mxu1 %v10125_v59 }
0x173d   : > { %5618 = vmatpush.msra.mxu1 %v10113_v11 }
0x173f   : > { %5619 = vmatpush.msra.mxu1 %v10105_v16 }
0x1740   : > { %v5427_v55 = vpop.permute.xlu2 %5426  ;;  %v5437_v22 = vpop.permute.xlu0 %5436 }
0x1741   : > { %v5359_v2 = vpop.permute.xlu1 %5358  ;;  %5435 = vst.msk [vmem:[#allocation3 + $0x328] sm:$0xff] %vm358_vm1, %v5427_v55  ;;  %5620 = vmatpush.msra.mxu1 %v10116_v30 }
0x1742   : > { %v10136_v60 = vsel %vm10741_vm11, %v5357_v4, %v5359_v2  ;;  %5367 = vst.msk [vmem:[#allocation3 + $0x2c8] sm:$0xff] %vm358_vm1, %v5359_v2 }
0x1743   : > { %5621 = vmatpush.msra.mxu1 %v10046_v33 }
0x1745   : > { %5622 = vmatpush.msra.mxu1 %v9811_v47 }
0x1747   : > { %5623 = vmatpush.msra.mxu1 %v9831_v62 }
0x1748   : > { %v5425_v31 = vpop.permute.xlu0 %5424 }
0x1749   : > { %v5439_v0 = vpop.permute.xlu1 %5438  ;;  %v5428_v25 = vsel %vm456_vm4, %v5423_v49, %v5425_v31  ;;  %v5429_v57 = vsel %vm456_vm4, %v5425_v31, %v5427_v55  ;;  %5624 = vmatpush.msra.mxu1 %v9795_v12  ;;  %v10172_v31 = vld [vmem:[#allocation3 + $0x160] sm:$0xff] }
0x174a   : > { %v5442_v10 = vsel %vm10742_vm15, %v5437_v22, %v5439_v0  ;;  %5433 = vst [vmem:[#allocation3 + $0x318] sm:$0xff] %v5428_v25  ;;  %vm10767_vm15 = vcmask 900096  }
0x174b   : > { %5447 = vst [vmem:[#allocation3 + $0x330] sm:$0xff] %v5442_v10  ;;  %5625 = vmatpush.msra.mxu1 %v9824_v5  ;;  %5650 = vmatpush.msra.mxu2 %v5442_v10 }
0x174c   : > { %5434 = vst [vmem:[#allocation3 + $0x320] sm:$0xff] %v5429_v57 }
0x174d   : > { %5626 = vmatpush.msra.mxu1 %v9849_v7  ;;  %5651 = vmatpush.msra.mxu2 %v5428_v25  ;;  %v10184_v25 = vld [vmem:[#allocation3 + $0x2f8] sm:$0xff] }
0x174f   : > { %5627 = vmatpush.msra.mxu1 %v9806_v29  ;;  %v10157_v29 = vld [vmem:[#allocation3 + $0x198] sm:$0xff] }
0x1750   : > { %v5455_v4 = vpop.permute.xlu0 %5454 }
0x1751   : > { %v5403_v2 = vpop.permute.xlu1 %5402  ;;  %v5457_v49 = vsel %vm10739_vm13, %v5453_v58, %v5455_v4  ;;  %5463 = vst.msk [vmem:[#allocation3 + $0x358] sm:$0xff] %vm358_vm1, %v5455_v4  ;;  %5628 = vmatpush.msra.mxu1 %v9817_v45  ;;  %v10161_v58 = vld [vmem:[#allocation3 + $0x180] sm:$0xff] }
0x1752   : > { %v5408_v12 = vsel %vm435_vm5, %v5403_v2, %v5405_v15  ;;  %5462 = vst [vmem:[#allocation3 + $0x350] sm:$0xff] %v5457_v49  ;;  %5709 = vmatpush.msra.mxu0 %v5457_v49  ;;  %v5568_v49 = vld [vmem:[#allocation3 + $0x328] sm:$0xff] }
0x1753   : > { %5413 = vst [vmem:[#allocation3 + $0x300] sm:$0xff] %v5408_v12  ;;  %5629 = vmatpush.msra.mxu1 %v9828_v61  ;;  %5652 = vmatpush.msra.mxu2 %v5408_v12  ;;  %v10198_v12 = vld [vmem:[#allocation3 + $0x2e0] sm:$0xff] }
0x1755   : > { %5677 = vmatpush.msrb.mxu2 %v10128_v42  ;;  %5630 = vmatpush.msra.mxu1 %v9734_v38  ;;  %v10166_v38 = vld [vmem:[#allocation3 + $0x178] sm:$0xff] }
0x1757   : > { %5678 = vmatpush.msrb.mxu2 %v10121_v56  ;;  %5631 = vmatpush.msra.mxu1 %v10157_v29 }
0x1758   : > { %v5407_v10 = vpop.permute.xlu0 %5406  ;;  %v5574_v45 = vld [vmem:[#allocation3 + $0x358] sm:$0xff] }
0x1759   : > { %5679 = vmatpush.msrb.mxu2 %v10136_v60  ;;  %v5441_v55 = vpop.permute.xlu1 %5440  ;;  %v5409_v61 = vsel %vm435_vm5, %v5405_v15, %v5407_v10  ;;  %5415 = vst.msk [vmem:[#allocation3 + $0x310] sm:$0xff] %vm358_vm1, %v5407_v10  ;;  %5769 = vmatpush.msrb.mxu3 %v5574_v45  ;;  %v10176_v15 = vld [vmem:[#allocation3 + $0x148] sm:$0xff] }
0x175a   : > { %5632 = vmatpush.msra.mxu1 %v10161_v58  ;;  %v5443_v22 = vsel %vm10743_vm3, %v5439_v0, %v5441_v55  ;;  %5449 = vst.msk [vmem:[#allocation3 + $0x340] sm:$0xff] %vm358_vm1, %v5441_v55  ;;  %v10180_v0 = vld [vmem:[#allocation3 + $0x130] sm:$0xff]  ;;  %v10205_v45 = vld [vmem:[#allocation3 + $0x2c8] sm:$0xff] }
0x175b   : > { %5680 = vmatpush.msrb.mxu2 %v10109_v34  ;;  %5448 = vst [vmem:[#allocation3 + $0x338] sm:$0xff] %v5443_v22  ;;  %5710 = vmatpush.msra.mxu0 %v5443_v22  ;;  %v10213_v55 = vld [vmem:[#allocation3 + $0x2b0] sm:$0xff] }
0x175c   : > { %5717 = vmatpush.msrb.mxu1 %v10166_v38  ;;  %5414 = vst [vmem:[#allocation3 + $0x308] sm:$0xff] %v5409_v61  ;;  %v5998_v22 = vld [vmem:[#allocation3 + $0x1d0] sm:$0xff] }
0x175d   : > { %5681 = vmatpush.msrb.mxu2 %v10044_v18  ;;  %5711 = vmatpush.msra.mxu0 %v5429_v57 }
0x175e   : > { %5718 = vmatpush.msrb.mxu1 %v10172_v31 }
0x175f   : > { %5682 = vmatpush.msrb.mxu2 %v9814_v19  ;;  %5712 = vmatpush.msra.mxu0 %v5409_v61  ;;  %v10744_v19 = vunpack.i.h.bf16 %v10093_v36  ;;  %v10202_v36 = vld [vmem:[#allocation3 + $0x100] sm:$0xff] }
0x1760   : > { %5719 = vmatpush.msrb.mxu1 %v10176_v15  ;;  %v5565_v10 = vld [vmem:[#allocation3 + $0x310] sm:$0xff]  ;;  %v6020_v61 = vld [vmem:[#allocation3 + $0x280] sm:$0xff] }
0x1761   : > { %5683 = vmatpush.msrb.mxu2 %v9834_v32  ;;  %v5589_v4 = vpop.permute.xlu1 %5588  ;;  %v5571_v2 = vld [vmem:[#allocation3 + $0x340] sm:$0xff]  ;;  %5737 = vmatpush.msrb.mxu0 %v10184_v25  ;;  %v10195_v32 = vld [vmem:[#allocation3 + $0x118] sm:$0xff] }
0x1762   : > { %5720 = vmatpush.msrb.mxu1 %v10180_v0  ;;  %6493 = vmatmul.msk.f32.vlgmr.msra.gmra.mxu2 %vm1629_vm2, %v5589_v4  ;;  %v10191_v57 = vsel %vm5590_vm9, %v10744_v19, %v5589_v4  ;;  %v6008_v19 = vld [vmem:[#allocation3 + $0x220] sm:$0xff]  ;;  %vm10765_vm9 = vmmov %vm10739_vm13 }
0x1763   : > { %5770 = vmatpush.msrb.mxu3 %v5571_v2  ;;  %5633 = vmatmul.f32.vlgmr.msra.gmra.mxu1 %v10191_v57  ;;  %v6011_v2 = vld [vmem:[#allocation3 + $0x238] sm:$0xff]  ;;  %vm10768_vm13 = vmmov %vm10765_vm9 }
0x1764   : > { %5684 = vmatpush.msrb.mxu2 %v9870_v50  ;;  %5721 = vmatpush.msrb.mxu1 %v10195_v32  ;;  %v10209_v50 = vld [vmem:[#allocation3 + $0xe8] sm:$0xff] }
0x1765   : > { %5771 = vmatpush.msrb.mxu3 %v5568_v49  ;;  %5738 = vmatpush.msrb.mxu0 %v10198_v12  ;;  %v6002_v49 = vld [vmem:[#allocation3 + $0x1f0] sm:$0xff] }
0x1766   : > { %5685 = vmatpush.msrb.mxu2 %v9844_v46  ;;  %5722 = vmatpush.msrb.mxu1 %v10202_v36  ;;  %v10219_v46 = vld [vmem:[#allocation3 + $0x298] sm:$0xff] }
0x1767   : > { %5772 = vmatpush.msrb.mxu3 %v5565_v10  ;;  %5739 = vmatpush.msrb.mxu0 %v10205_v45  ;;  %v5996_v10 = vld [vmem:[#allocation3 + $0x1c0] sm:$0xff] }
0x1768   : > { %5686 = vmatpush.msrb.mxu2 %v9852_v14  ;;  %5723 = vmatpush.msrb.mxu1 %v10209_v50  ;;  %v10233_v14 = vld [vmem:[#allocation3 + $0x1b8] sm:$0xff] }
0x1769   : > { %6121 = vmatpush.msra.mxu3 %v10125_v59  ;;  %5740 = vmatpush.msrb.mxu0 %v10213_v55  ;;  %v10758_v59 = vld [vmem:[#allocation30_spill] sm:$0xff] }
0x176a   : > { %5687 = vmatpush.msrb.mxu2 %v9887_v54  ;;  %5724 = vmatpush.msrb.mxu1 %v9922_v27  ;;  %v5976_v54 = vld [vmem:[#allocation3 + $0x120] sm:$0xff]  ;;  %v10264_v27 = vld [vmem:[#allocation3 + $0x190] sm:$0xff] }
0x176b   : > { %6122 = vmatpush.msra.mxu3 %v10113_v11  ;;  %5741 = vmatpush.msrb.mxu0 %v10219_v46  ;;  %v10756_v11 = vld [vmem:[#allocation28_spill] sm:$0xff] }
0x176c   : > { %5688 = vmatpush.msrb.mxu2 %v9861_v9  ;;  %5725 = vmatpush.msrb.mxu1 %v9930_v23  ;;  %v6012_v9 = vld [vmem:[#allocation3 + $0x240] sm:$0xff] }
0x176d   : > { %6123 = vmatpush.msra.mxu3 %v10105_v16  ;;  %5742 = vmatpush.msrb.mxu0 %v9792_v28  ;;  %v10239_v28 = vld [vmem:[#allocation3 + $0x1a0] sm:$0xff]  ;;  %v6019_v16 = vld [vmem:[#allocation3 + $0x278] sm:$0xff] }
0x176e   : > { %6494 = vmatmul.msk.f32.vlgmr.msra.gmra.mxu0 %vm1629_vm2, %v5589_v4  ;;  %6495 = vmatmul.msk.f32.vlgmr.msrb.gmra.mxu3 %vm1629_vm2, %v5589_v4  ;;  %v5980_v23 = vld [vmem:[#allocation3 + $0x140] sm:$0xff]  ;;  %v6014_v4 = vld [vmem:[#allocation3 + $0x250] sm:$0xff]  ;;  %vm10764_vm2 = vmmov %vm10743_vm3 }
0x176f   : > { %6124 = vmatpush.msra.mxu3 %v10116_v30  ;;  %5689 = vmatpush.msrb.mxu2 %v9866_v53  ;;  %v6003_v53 = vld [vmem:[#allocation3 + $0x1f8] sm:$0xff]  ;;  %vm10766_vm11 = vmmov %vm10764_vm2 }
0x1770   : > { %5726 = vmatpush.msrb.mxu1 %v9935_v35  ;;  %5743 = vmatpush.msrb.mxu0 %v9802_v40  ;;  %v10245_v40 = vld [vmem:[#allocation3 + $0x188] sm:$0xff]  ;;  %v10755_v30 = vld [vmem:[#allocation27_spill] sm:$0xff]  ;;  %vm10771_vm3 = vmmov %vm10767_vm15 }
0x1771   : > { %6125 = vmatpush.msra.mxu3 %v10046_v33  ;;  %5690 = vmatpush.msrb.mxu2 %v10233_v14  ;;  %v5977_v35 = vld [vmem:[#allocation3 + $0x128] sm:$0xff]  ;;  %v10754_v33 = vld [vmem:[#allocation26_spill] sm:$0xff] }
0x1772   : > { %5727 = vmatpush.msrb.mxu1 %v9942_v13  ;;  %5744 = vmatpush.msrb.mxu0 %v9883_v20  ;;  %v5979_v20 = vld [vmem:[#allocation3 + $0x138] sm:$0xff]  ;;  %v5974_v13 = vld [vmem:[#allocation3 + $0x110] sm:$0xff] }
0x1773   : > { %6126 = vmatpush.msra.mxu3 %v9811_v47  ;;  %5691 = vmatpush.msrb.mxu2 %v10239_v28  ;;  %v5985_v47 = vld [vmem:[#allocation3 + $0x168] sm:$0xff] }
0x1774   : > { %5728 = vmatpush.msrb.mxu1 %v9946_v63  ;;  %5745 = vmatpush.msrb.mxu0 %v9893_v8  ;;  %v5973_v8 = vld [vmem:[#allocation3 + $0x108] sm:$0xff] }
0x1775   : > { %6127 = vmatpush.msra.mxu3 %v9831_v62  ;;  %5692 = vmatpush.msrb.mxu2 %v10245_v40  ;;  %v5982_v62 = vld [vmem:[#allocation3 + $0x150] sm:$0xff]  ;;  %v10745_v63 = vld [vmem:[#allocation17_spill] sm:$0xff] }
0x1776   : > { %5729 = vmatpush.msrb.mxu1 %v9950_v3  ;;  %5746 = vmatpush.msrb.mxu0 %v9898_v26  ;;  %v5994_v26 = vld [vmem:[#allocation3 + $0x1b0] sm:$0xff]  ;;  %v5971_v3 = vld [vmem:[#allocation3 + $0xf8] sm:$0xff] }
0x1777   : > { %6128 = vmatpush.msra.mxu3 %v6012_v9  ;;  %5693 = vmatmul.f32.vlgmr.msrb.gmra.mxu2 %v10191_v57 }
0x1778   : > { %6101 = vmatpush.msra.mxu2 %v5985_v47  ;;  %5730 = vmatpush.msrb.mxu1 %v9954_v24  ;;  %v10746_v24 = vld [vmem:[#allocation22_spill] sm:$0xff] }
0x1779   : > { %6129 = vmatpush.msra.mxu3 %v9824_v5  ;;  %5747 = vmatpush.msrb.mxu0 %v9905_v6  ;;  %v6000_v5 = vld [vmem:[#allocation3 + $0x1e0] sm:$0xff]  ;;  %v10261_v6 = vld [vmem:[#allocation3 + $0x1a8] sm:$0xff] }
0x177a   : > { %6102 = vmatpush.msra.mxu2 %v5982_v62  ;;  %5731 = vmatpush.msrb.mxu1 %v9960_v52  ;;  %v10748_v52 = vld [vmem:[#allocation18_spill] sm:$0xff] }
0x177b   : > { %6130 = vmatpush.msra.mxu3 %v9849_v7  ;;  %5748 = vmatpush.msrb.mxu0 %v9914_v21  ;;  %v5997_v7 = vld [vmem:[#allocation3 + $0x1c8] sm:$0xff]  ;;  %v5970_v21 = vld [vmem:[#allocation3 + $0xf0] sm:$0xff] }
0x177c   : > { %6103 = vmatpush.msra.mxu2 %v5979_v20  ;;  %5732 = vmatpush.msrb.mxu1 %v9966_v51  ;;  %v10750_v51 = vld [vmem:[#allocation23_spill] sm:$0xff] }
0x177d   : > { %6131 = vmatpush.msra.mxu3 %v6003_v53  ;;  %5749 = vmatpush.msrb.mxu0 %v9917_v39  ;;  %v5986_v39 = vld [vmem:[#allocation3 + $0x170] sm:$0xff] }
0x177e   : > { %5733 = vmatmul.f32.vlgmr.msrb.gmra.mxu1 %v10100_v17  ;;  %6104 = vmatpush.msra.mxu2 %v5976_v54  ;;  %v10757_v17 = vld [vmem:[#allocation29_spill] sm:$0xff] }
0x177f   : > { %6132 = vmatpush.msra.mxu3 %v6000_v5  ;;  %5750 = vmatpush.msrb.mxu0 %v9924_v48  ;;  %v5983_v48 = vld [vmem:[#allocation3 + $0x158] sm:$0xff]  ;;  %v5674_v5 = vpop.f32.mrf.mxu3 }
0x1780   : > { %6105 = vmatpush.msra.mxu2 %v5973_v8 }
0x1781   : > { %6133 = vmatpush.msra.mxu3 %v5997_v7  ;;  %5751 = vmatpush.msrb.mxu0 %v10261_v6 }
0x1782   : > { %6106 = vmatpush.msra.mxu2 %v5970_v21 }
0x1783   : > { %6134 = vmatpush.msra.mxu3 %v5994_v26  ;;  %5752 = vmatpush.msrb.mxu0 %v10264_v27 }
0x1784   : > { %5753 = vmatmul.f32.vlgmr.msrb.gmra.mxu0 %v10191_v57  ;;  %6107 = vmatpush.msra.mxu2 %v9957_v44  ;;  %v10747_v44 = vld [vmem:[#allocation19_spill] sm:$0xff]  ;;  %v6005_v57 = vld [vmem:[#allocation3 + $0x208] sm:$0xff] }
0x1785   : > { %6135 = vmatpush.msra.mxu3 %v10157_v29  ;;  %6161 = vmatpush.msra.mxu0 %v5986_v39  ;;  %v10759_v29 = vld [vmem:[#allocation31_spill] sm:$0xff] }
0x1786   : > { %6108 = vmatpush.msra.mxu2 %v9963_v1  ;;  %v10749_v1 = vld [vmem:[#allocation20_spill] sm:$0xff] }
0x1787   : > { %6136 = vmatpush.msra.mxu3 %v10161_v58  ;;  %6162 = vmatpush.msra.mxu0 %v5983_v48  ;;  %v6001_v58 = vld [vmem:[#allocation3 + $0x1e8] sm:$0xff] }
0x1788   : > { %6109 = vmatpush.msra.mxu2 %v9969_v43  ;;  %v10751_v43 = vld [vmem:[#allocation25_spill] sm:$0xff] }
0x1789   : > { %6163 = vmatpush.msra.mxu0 %v5980_v23 }
0x178a   : > { %6110 = vmatpush.msra.mxu2 %v9973_v37  ;;  %v10752_v37 = vld [vmem:[#allocation24_spill] sm:$0xff] }
0x178b   : > { %6164 = vmatpush.msra.mxu0 %v5977_v35 }
0x178c   : > { %6111 = vmatpush.msra.mxu2 %v9977_v41  ;;  %v10753_v41 = vld [vmem:[#allocation21_spill] sm:$0xff] }
0x178d   : > { %6165 = vmatpush.msra.mxu0 %v5974_v13 }
0x178e   : > { %6112 = vmatpush.msra.mxu2 %v10745_v63 }
0x178f   : > { %6166 = vmatpush.msra.mxu0 %v5971_v3 }
0x1790   : > { %6113 = vmatpush.msra.mxu2 %v10746_v24 }
0x1791   : > { %6167 = vmatpush.msra.mxu0 %v10747_v44 }
0x1792   : > { %6114 = vmatpush.msra.mxu2 %v10748_v52 }
0x1793   : > { %6168 = vmatpush.msra.mxu0 %v10749_v1 }
0x1794   : > { %6115 = vmatpush.msra.mxu2 %v10750_v51 }
0x1795   : > { %6169 = vmatpush.msra.mxu0 %v10751_v43 }
0x1796   : > { %6116 = vmatpush.msra.mxu2 %v10752_v37 }
0x1797   : > { %6170 = vmatpush.msra.mxu0 %v10753_v41 }
0x1798   : > { %6181 = vmatpush.msrb.mxu2 %v10128_v42  ;;  %v6016_v42 = vld [vmem:[#allocation3 + $0x260] sm:$0xff] }
0x1799   : > { %6171 = vmatpush.msra.mxu0 %v10754_v33 }
0x179a   : > { %6182 = vmatpush.msrb.mxu2 %v10121_v56  ;;  %v6013_v56 = vld [vmem:[#allocation3 + $0x248] sm:$0xff] }
0x179b   : > { %6172 = vmatpush.msra.mxu0 %v10755_v30 }
0x179c   : > { %6183 = vmatpush.msrb.mxu2 %v10136_v60  ;;  %v6010_v60 = vld [vmem:[#allocation3 + $0x230] sm:$0xff] }
0x179d   : > { %6173 = vmatpush.msra.mxu0 %v10756_v11 }
0x179e   : > { %6184 = vmatpush.msrb.mxu2 %v10109_v34  ;;  %v6007_v34 = vld [vmem:[#allocation3 + $0x218] sm:$0xff] }
0x179f   : > { %6174 = vmatpush.msra.mxu0 %v10757_v17 }
0x17a0   : > { %6185 = vmatpush.msrb.mxu2 %v10044_v18  ;;  %v6004_v18 = vld [vmem:[#allocation3 + $0x200] sm:$0xff] }
0x17a1   : > { %6175 = vmatpush.msra.mxu0 %v10758_v59  ;;  %v5938_v59 = vld [vmem:[#allocation7 + $0xc0] sm:$0xff] }
0x17a2   : > { %6186 = vmatpush.msrb.mxu2 %v6019_v16  ;;  %v6848_v16 = vmov 14  }
0x17a3   : > { %6176 = vmatpush.msra.mxu0 %v10759_v29  ;;  %6648 = vset.pattern.permute.xlu1 %v6848_v16  ;;  %v5937_v29 = vld [vmem:[#allocation7 + $0xb8] sm:$0xff] }
0x17a4   : > { %6187 = vmatpush.msrb.mxu2 %v6016_v42  ;;  %6649 = vset.pattern.permute.xlu0 %v6848_v16  ;;  %v6075_v42 = vld [vmem:[#allocation9] sm:$0xff]  ;;  %v6046_v16 = vld [vmem:[#allocation3 + $0x350] sm:$0xff] }
0x17a5   : > { %6241 = vmatpush.msrb.mxu0 %v10184_v25  ;;  %v6017_v25 = vld [vmem:[#allocation3 + $0x268] sm:$0xff] }
0x17a6   : > { %6188 = vmatpush.msrb.mxu2 %v6013_v56  ;;  %v6286_v56 = vld [vmem:[#allocation2 + $0x10] sm:$0xff] }
0x17a7   : > { %6242 = vmatpush.msrb.mxu0 %v10198_v12  ;;  %v5999_v12 = vld [vmem:[#allocation3 + $0x1d8] sm:$0xff] }
0x17a8   : > { %6189 = vmatpush.msrb.mxu2 %v6010_v60  ;;  %v10763_v60 = vld [vmem:[#allocation32_spill] sm:$0xff] }
0x17a9   : > { %6243 = vmatpush.msrb.mxu0 %v10205_v45  ;;  %v5579_v45 = vpop.permute.xlu2 %5578 }
0x17aa   : > { %6190 = vmatpush.msrb.mxu2 %v6007_v34  ;;  %v5675_v54 = vadd.f32 %v5674_v5, %v5579_v45  ;;  %v5939_v34 = vld [vmem:[#allocation7 + $0xc8] sm:$0xff] }
0x17ab   : > { %6244 = vmatpush.msrb.mxu0 %v10213_v55  ;;  %v5614_v55 = vpop.f32.mrf.mxu0 }
0x17ac   : > { %6191 = vmatpush.msrb.mxu2 %v6004_v18  ;;  %v6284_v18 = vld [vmem:[#allocation2] sm:$0xff] }
0x17ad   : > { %6245 = vmatpush.msrb.mxu0 %v10219_v46 }
0x17ae   : > { %6192 = vmatpush.msrb.mxu2 %v6001_v58  ;;  %v6285_v58 = vld [vmem:[#allocation2 + $0x8] sm:$0xff] }
0x17af   : > { %6246 = vmatpush.msrb.mxu0 %v6020_v61 }
0x17b0   : > { %6193 = vmatpush.msrb.mxu2 %v5998_v22 }
0x17b1   : > { %6247 = vmatpush.msrb.mxu0 %v6017_v25 }
0x17b2   : > { %6194 = vmatpush.msrb.mxu2 %v10233_v14  ;;  %v5615_v14 = vadd.f32 %v5614_v55, %v5579_v45 }
0x17b3   : > { %6248 = vmatpush.msrb.mxu0 %v6014_v4 }
0x17b4   : > { %6195 = vmatpush.msrb.mxu2 %v10239_v28 }
0x17b5   : > { %6249 = vmatpush.msrb.mxu0 %v6011_v2 }
0x17b6   : > { %6196 = vmatpush.msrb.mxu2 %v10245_v40 }
0x17b7   : > { %6250 = vmatpush.msrb.mxu0 %v6008_v19 }
0x17b9   : > { %6251 = vmatpush.msrb.mxu0 %v6005_v57 }
0x17bb   : > { %6252 = vmatpush.msrb.mxu0 %v6002_v49 }
0x17bd   : > { %6253 = vmatpush.msrb.mxu0 %v5999_v12 }
0x17bf   : > { %6254 = vmatpush.msrb.mxu0 %v5996_v10 }
0x17c1   : > { %6255 = vmatpush.msrb.mxu0 %v10261_v6 }
0x17c3   : > { %6256 = vmatpush.msrb.mxu0 %v10264_v27 }
0x17e0   : > { %v5634_v46 = vpop.f32.mrf.mxu1 }
0x17e1   : > { %v5635_v28 = vadd.f32 %v5634_v46, %v5615_v14 }
0x17e5   : > { %v5654_v9 = vpop.f32.mrf.mxu2 }
0x17e6   : > { %v5655_v40 = vadd.f32 %v5654_v9, %v5635_v28 }
0x17e8   : > { %v5777_v47 = vmul.f32 0.2, %v5655_v40 }
0x17ea   : > { %v5780_v62 = vmax.f32 %v5655_v40, %v5777_v47 }
0x17eb   : > { %v5714_v7 = vpop.f32.mrf.mxu0 }
0x17ec   : > { %v5783_v20 = vsel %vm7185_vm12, %v5780_v62, 0.0 }
0x17ed   : > { %5789 = vrot.lane.b32.xlu0 %v5783_v20, %s6823_s29 }
0x17f1   : > { %v5774_v13 = vpop.f32.mrf.mxu3 }
0x17fa   : > { %v5694_v8 = vpop.f32.mrf.mxu2 }
0x17fb   : > { %v5695_v26 = vadd.f32 %v5694_v8, %v5675_v54  ;;  %v5734_v21 = vpop.f32.mrf.mxu1 }
0x17fc   : > { %v5735_v39 = vadd.f32 %v5734_v21, %v5579_v45 }
0x17fd   : > { %v5715_v6 = vadd.f32 %v5714_v7, %v5695_v26 }
0x17ff   : > { %v5778_v27 = vmul.f32 0.2, %v5715_v6 }
0x1801   : > { %v5781_v48 = vmax.f32 %v5715_v6, %v5778_v27  ;;  %v5754_v23 = vpop.f32.mrf.mxu0 }
0x1802   : > { %v5755_v35 = vadd.f32 %v5754_v23, %v5735_v39 }
0x1803   : > { %v5784_v3 = vsel %vm7189_vm0, %v5781_v48, 0.0 }
0x1804   : > { %v5775_v24 = vadd.f32 %v5774_v13, %v5755_v35  ;;  %5791 = vrot.lane.b32.xlu1 %v5784_v3, %s6823_s29 }
0x1806   : > { %v5779_v44 = vmul.f32 0.2, %v5775_v24 }
0x1808   : > { %v5782_v52 = vmax.f32 %v5775_v24, %v5779_v44 }
0x180a   : > { %v5785_v51 = vsel %vm7199_vm7, %v5782_v52, 0.0  ;;  %v6045_v52 = vld [vmem:[#allocation3 + $0x348] sm:$0xff] }
0x180b   : > { %5793 = vrot.lane.b32.xlu2 %v5785_v51, %s6823_s29 }
0x185f   : > { %v5790_v43 = vpop.permute.xlu0 %5789 }
0x1860   : > { %5800 = vst.msk [vmem:[#allocation2 + $0x60] sm:$0xff] %vm622_vm10, %v5790_v43 }
0x1865   : > { %v5794_v41 = vpop.permute.xlu2 %5793 }
0x1867   : > { %v10315_v37 = vld [vmem:[#allocation2 + $0x60] sm:$0xff] }
0x1868   : > { %5922 = vrot.lane.b32.xlu1 %v10315_v37, %s6814_s23 }
0x1870   : > { %5908 = vrot.lane.b32.xlu1 %v10315_v37, %s6815_s18 }
0x1876   : > { %v5792_v33 = vpop.permute.xlu1 %5791 }
0x1877   : > { %v10322_v30 = vsel %vm336_vm8, %v5790_v43, %v5792_v33  ;;  %v5796_v11 = vsel %vm336_vm8, %v5792_v33, %v5794_v41  ;;  %v6042_v43 = vld [vmem:[#allocation3 + $0x330] sm:$0xff]  ;;  %v6039_v33 = vld [vmem:[#allocation3 + $0x318] sm:$0xff] }
0x1878   : > { %5894 = vrot.lane.b32.xlu1 %v10315_v37, %s6816_s17  ;;  %5910 = vrot.lane.b32.xlu2 %v10322_v30, %s6815_s18  ;;  %5802 = vst.msk [vmem:[#allocation2 + $0x70] sm:$0xff] %vm625_vm14, %v5796_v11  ;;  %v6036_v11 = vld [vmem:[#allocation3 + $0x300] sm:$0xff] }
0x1879   : > { %5924 = vrot.lane.b32.xlu0 %v10322_v30, %s6814_s23 }
0x187f   : > { %v5890_v17 = vld [vmem:[#allocation2 + $0x70] sm:$0xff] }
0x1880   : > { %5874 = vrot.lane.b32.xlu1 %v10315_v37, %s6817_s24  ;;  %5896 = vrot.lane.b32.xlu2 %v10322_v30, %s6816_s17  ;;  %5808 = vst.msk [vmem:[#allocation3 + $0x370] sm:$0xff] %vm358_vm1, %v5890_v17 }
0x1881   : > { %5912 = vrot.lane.b32.xlu0 %v5890_v17, %s6815_s18  ;;  %s6849_s18 = smov 64  }
0x1888   : > { %5860 = vrot.lane.b32.xlu1 %v10315_v37, %s6818_s25  ;;  %5876 = vrot.lane.b32.xlu2 %v10322_v30, %s6817_s24 }
0x1889   : > { %5898 = vrot.lane.b32.xlu0 %v5890_v17, %s6816_s17  ;;  %s6505_s17 = smul.u32 24, %s6891_s16 }
0x1890   : > { %5846 = vrot.lane.b32.xlu1 %v10315_v37, %s6819_s26  ;;  %5862 = vrot.lane.b32.xlu2 %v10322_v30, %s6818_s25 }
0x1891   : > { %5878 = vrot.lane.b32.xlu0 %v5890_v17, %s6817_s24 }
0x1898   : > { %5926 = vrot.lane.b32.xlu1 %v5890_v17, %s6814_s23  ;;  %5848 = vrot.lane.b32.xlu2 %v10322_v30, %s6819_s26  ;;  %s217_s23 = scalar_lea.vmem [#allocation10], %s6504_s10  ;;  %s6351_s10 = scalar_lea.hbm %s10463_s3, %s6505_s17 }
0x1899   : > { %5864 = vrot.lane.b32.xlu0 %v5890_v17, %s6818_s25 }
0x18a0   : > { %5826 = vrot.lane.b32.xlu1 %v10315_v37, %s6820_s27  ;;  %5828 = vrot.lane.b32.xlu2 %v10322_v30, %s6820_s27 }
0x18a1   : > { %5850 = vrot.lane.b32.xlu0 %v5890_v17, %s6819_s26  ;;  %s6353_s26 = sshll.u32 %s217_s23, 4  ;;  %s6354_s26 = int_to_ptr.vmem [resolvable:$true] %s6353_s26 }
0x18a8   : > { %6089 = vrot.lane.b32.xlu1 %v5938_v59, %s6849_s18  ;;  %5814 = vrot.lane.b32.xlu2 %v10322_v30, %s6821_s28  ;;  %v6043_v59 = vld [vmem:[#allocation3 + $0x338] sm:$0xff] }
0x18a9   : > { %5830 = vrot.lane.b32.xlu0 %v5890_v17, %s6820_s27  ;;  %s6355_s27 = sshll.u32 %s6351_s10, 4  ;;  %s6356_s27 = int_to_ptr.hbm [resolvable:$true] %s6355_s27 }
0x18b0   : > { %6078 = vperm.xlu1 %6648, %v6075_v42   ;;  %5812 = vrot.lane.b32.xlu2 %v10315_v37, %s6821_s28 }
0x18b1   : > { %5816 = vrot.lane.b32.xlu0 %v5890_v17, %s6821_s28  ;;  %s6340_s28 = scalar_lea.sflag [#allocation6], %s6966_s9 }
0x18b8   : > { %6294 = vrot.lane.b32.xlu1 %v6286_v56, %s6818_s25  ;;  %6085 = vrot.lane.b32.xlu2 %v10763_v60, %s6849_s18  ;;  %v6037_v56 = vld [vmem:[#allocation3 + $0x308] sm:$0xff]  ;;  %v5960_v60 = vld [vmem:[#allocation3 + $0xa0] sm:$0xff] }
0x18b9   : > { %6087 = vrot.lane.b32.xlu0 %v5937_v29, %s6849_s18 }
0x18c0   : > { %6290 = vrot.lane.b32.xlu2 %v6284_v18, %s6818_s25 }
0x18c1   : > { %6091 = vrot.lane.b32.xlu0 %v5939_v34, %s6849_s18 }
0x18c9   : > { %6292 = vrot.lane.b32.xlu0 %v6285_v58, %s6818_s25 }
0x18d2   : > { %v5911_v61 = vpop.permute.xlu2 %5910 }
0x18da   : > { %v5923_v22 = vpop.permute.xlu1 %5922  ;;  %v5897_v25 = vpop.permute.xlu2 %5896 }
0x18e2   : > { %v5909_v4 = vpop.permute.xlu1 %5908  ;;  %v5877_v2 = vpop.permute.xlu2 %5876 }
0x18e3   : > { %v5914_v19 = vsel %vm10764_vm2, %v5909_v4, %v5911_v61 }
0x18ea   : > { %v5895_v57 = vpop.permute.xlu1 %5894  ;;  %v5863_v49 = vpop.permute.xlu2 %5862 }
0x18eb   : > { %v5900_v12 = vsel %vm456_vm4, %v5895_v57, %v5897_v25  ;;  %v5925_v10 = vpop.permute.xlu0 %5924  ;;  %v5945_v57 = vld [vmem:[#allocation3 + $0x28] sm:$0xff] }
0x18ec   : > { %v5928_v45 = vsel %vm10765_vm9, %v5923_v22, %v5925_v10 }
0x18ed   : > { %6144 = vmatpush.msra.mxu1 %v5928_v45 }
0x18ef   : > { %6145 = vmatpush.msra.mxu1 %v5914_v19 }
0x18f1   : > { %6146 = vmatpush.msra.mxu1 %v5900_v12  ;;  %v5942_v12 = vld [vmem:[#allocation3 + $0x10] sm:$0xff] }
0x18f2   : > { %v5875_v55 = vpop.permute.xlu1 %5874  ;;  %v5849_v46 = vpop.permute.xlu2 %5848 }
0x18f3   : > { %v5880_v14 = vsel %vm435_vm5, %v5875_v55, %v5877_v2  ;;  %v5913_v28 = vpop.permute.xlu0 %5912  ;;  %v6050_v55 = vld [vmem:[#allocation3 + $0x370] sm:$0xff] }
0x18f4   : > { %v5915_v9 = vsel %vm10766_vm11, %v5911_v61, %v5913_v28  ;;  %6147 = vmatpush.msra.mxu1 %v5880_v14  ;;  %5921 = vst.msk [vmem:[#allocation3 + $0x418] sm:$0xff] %vm358_vm1, %v5913_v28  ;;  %vm6093_vm11 = vcmask 523264   ;;  %v5954_v61 = vld [vmem:[#allocation3 + $0x70] sm:$0xff]  ;;  %v6044_v14 = vld [vmem:[#allocation3 + $0x340] sm:$0xff]  ;;  %v6041_v28 = vld [vmem:[#allocation3 + $0x328] sm:$0xff] }
0x18fa   : > { %v5861_v40 = vpop.permute.xlu1 %5860  ;;  %v5829_v47 = vpop.permute.xlu2 %5828 }
0x18fb   : > { %v5866_v62 = vsel %vm420_vm6, %v5861_v40, %v5863_v49  ;;  %v5899_v20 = vpop.permute.xlu0 %5898  ;;  %v6071_v18 = vld [vmem:[#allocation3 + $0x418] sm:$0xff] }
0x18fc   : > { %v5901_v5 = vsel %vm456_vm4, %v5897_v25, %v5899_v20  ;;  %6148 = vmatpush.msra.mxu1 %v5866_v62  ;;  %5907 = vst.msk [vmem:[#allocation3 + $0x400] sm:$0xff] %vm358_vm1, %v5899_v20  ;;  %vm10769_vm4 = vcmask 1039360   ;;  %v5951_v25 = vld [vmem:[#allocation3 + $0x58] sm:$0xff] }
0x18fd   : > { %vm10773_vm9 = vmmov %vm10769_vm4 }
0x1902   : > { %v5847_v54 = vpop.permute.xlu1 %5846  ;;  %v5815_v7 = vpop.permute.xlu2 %5814 }
0x1903   : > { %v5852_v8 = vsel %vm10767_vm15, %v5847_v54, %v5849_v46  ;;  %v5879_v26 = vpop.permute.xlu0 %5878  ;;  %v6068_v22 = vld [vmem:[#allocation3 + $0x400] sm:$0xff] }
0x1904   : > { %6149 = vmatpush.msra.mxu1 %v5852_v8  ;;  %v5881_v6 = vsel %vm435_vm5, %v5877_v2, %v5879_v26  ;;  %5887 = vst.msk [vmem:[#allocation3 + $0x3e8] sm:$0xff] %vm358_vm1, %v5879_v26  ;;  %vm10770_vm5 = vcmask 1031168   ;;  %v5948_v2 = vld [vmem:[#allocation3 + $0x40] sm:$0xff] }
0x1905   : > { %vm10772_vm2 = vmmov %vm10770_vm5 }
0x190a   : > { %v5927_v21 = vpop.permute.xlu1 %5926  ;;  %v5813_v27 = vpop.permute.xlu2 %5812 }
0x190b   : > { %v5929_v39 = vsel %vm10768_vm13, %v5925_v10, %v5927_v21  ;;  %5935 = vst.msk [vmem:[#allocation3 + $0x430] sm:$0xff] %vm358_vm1, %v5927_v21  ;;  %v5865_v48 = vpop.permute.xlu0 %5864  ;;  %v5818_v35 = vsel %vm10769_vm4, %v5813_v27, %v5815_v7  ;;  %v6065_v4 = vld [vmem:[#allocation3 + $0x3e8] sm:$0xff] }
0x190c   : > { %6204 = vmatpush.msrb.mxu3 %v5929_v39  ;;  %v5867_v23 = vsel %vm420_vm6, %v5863_v49, %v5865_v48  ;;  %5873 = vst.msk [vmem:[#allocation3 + $0x3d0] sm:$0xff] %vm358_vm1, %v5865_v48 }
0x190e   : > { %6205 = vmatpush.msrb.mxu3 %v5915_v9  ;;  %v6038_v9 = vld [vmem:[#allocation3 + $0x310] sm:$0xff] }
0x1910   : > { %6206 = vmatpush.msrb.mxu3 %v5901_v5 }
0x1912   : > { %v5827_v13 = vpop.permute.xlu1 %5826  ;;  %6207 = vmatpush.msrb.mxu3 %v5881_v6 }
0x1913   : > { %v5832_v3 = vsel %vm10770_vm5, %v5827_v13, %v5829_v47  ;;  %v5851_v24 = vpop.permute.xlu0 %5850  ;;  %v6062_v19 = vld [vmem:[#allocation3 + $0x3d0] sm:$0xff] }
0x1914   : > { %6150 = vmatpush.msra.mxu1 %v5832_v3  ;;  %v5853_v44 = vsel %vm10771_vm3, %v5849_v46, %v5851_v24  ;;  %6208 = vmatpush.msrb.mxu3 %v5867_v23  ;;  %5859 = vst.msk [vmem:[#allocation3 + $0x3b8] sm:$0xff] %vm358_vm1, %v5851_v24  ;;  %v6047_v46 = vld [vmem:[#allocation3 + $0x358] sm:$0xff] }
0x1916   : > { %6151 = vmatpush.msra.mxu1 %v5818_v35  ;;  %6209 = vmatpush.msrb.mxu3 %v5853_v44 }
0x1918   : > { %6152 = vmatpush.msra.mxu1 %v10315_v37 }
0x191a   : > { %6153 = vmatpush.msra.mxu1 %v6045_v52 }
0x191b   : > { %v5831_v51 = vpop.permute.xlu0 %5830  ;;  %v6059_v49 = vld [vmem:[#allocation3 + $0x3b8] sm:$0xff] }
0x191c   : > { %v5833_v41 = vsel %vm10772_vm2, %v5829_v47, %v5831_v51  ;;  %5839 = vst.msk [vmem:[#allocation3 + $0x3a0] sm:$0xff] %vm358_vm1, %v5831_v51  ;;  %6154 = vmatpush.msra.mxu1 %v6042_v43 }
0x191d   : > { %6210 = vmatpush.msrb.mxu3 %v5833_v41 }
0x191e   : > { %6155 = vmatpush.msra.mxu1 %v6039_v33 }
0x1920   : > { %6156 = vmatpush.msra.mxu1 %v6036_v11 }
0x1922   : > { %6221 = vmatpush.msrb.mxu1 %v10166_v38  ;;  %v6086_v38 = vpop.permute.xlu2 %6085 }
0x1923   : > { %v5817_v17 = vpop.permute.xlu0 %5816  ;;  %v6056_v10 = vld [vmem:[#allocation3 + $0x3a0] sm:$0xff] }
0x1924   : > { %6222 = vmatpush.msrb.mxu1 %v10172_v31  ;;  %v5819_v37 = vsel %vm10773_vm9, %v5815_v7, %v5817_v17  ;;  %5825 = vst.msk [vmem:[#allocation3 + $0x388] sm:$0xff] %vm358_vm1, %v5817_v17  ;;  %v6090_v31 = vpop.permute.xlu1 %6089  ;;  %vm10774_vm1 = vcmask 850944  }
0x1925   : > { %6211 = vmatpush.msrb.mxu3 %v5819_v37  ;;  %vm10775_vm15 = vmmov %vm10774_vm1 }
0x1926   : > { %6223 = vmatpush.msrb.mxu1 %v10176_v15  ;;  %vm10776_vm13 = vmmov %vm10774_vm1 }
0x1927   : > { %6212 = vmatpush.msrb.mxu3 %v10322_v30  ;;  %v5963_v30 = vld [vmem:[#allocation3 + $0xb8] sm:$0xff] }
0x1928   : > { %6224 = vmatpush.msrb.mxu1 %v10180_v0  ;;  %v5966_v0 = vld [vmem:[#allocation3 + $0xd0] sm:$0xff] }
0x1929   : > { %6213 = vmatpush.msrb.mxu3 %v6046_v16 }
0x192a   : > { %6225 = vmatpush.msrb.mxu1 %v10195_v32  ;;  %v6040_v32 = vld [vmem:[#allocation3 + $0x320] sm:$0xff]  ;;  %v6291_v6 = vpop.permute.xlu2 %6290 }
0x192b   : > { %v6088_v42 = vpop.permute.xlu0 %6087  ;;  %6214 = vmatpush.msrb.mxu3 %v6043_v59  ;;  %v6053_v45 = vld [vmem:[#allocation3 + $0x388] sm:$0xff] }
0x192c   : > { %6226 = vmatpush.msrb.mxu1 %v10202_v36  ;;  %v6094_v29 = vsel %vm6093_vm11, %v6086_v38, %v6088_v42  ;;  %v6095_v15 = vsel %vm6093_vm11, %v6088_v42, %v6090_v31  ;;  %v6074_v36 = vld [vmem:[#allocation3 + $0x430] sm:$0xff]  ;;  %v6079_v40 = vpop.permute.xlu1 %6078 }
0x192d   : > { %6117 = vmatmul.f32.vlgmr.msra.gmra.mxu2 %v6094_v29  ;;  %6137 = vmatmul.f32.vlgmr.msra.gmra.mxu3 %v6095_v15 }
0x192e   : > { %6227 = vmatpush.msrb.mxu1 %v10209_v50  ;;  %6177 = vmatmul.f32.vlgmr.msra.gmra.mxu0 %v6094_v29  ;;  %v5957_v50 = vld [vmem:[#allocation3 + $0x88] sm:$0xff] }
0x192f   : > { %6215 = vmatpush.msrb.mxu3 %v6040_v32 }
0x1930   : > { %6228 = vmatpush.msrb.mxu1 %v5966_v0 }
0x1931   : > { %6216 = vmatpush.msrb.mxu3 %v6037_v56  ;;  %v6331_v56 = vld [vmem:[%s6972_s22 + $0x8] sm:$0xff] }
0x1932   : > { %6229 = vmatpush.msrb.mxu1 %v5963_v30 }
0x1933   : > { %6264 = vmatpush.msra.mxu3 %v6074_v36  ;;  %v6092_v34 = vpop.permute.xlu0 %6091 }
0x1934   : > { %6230 = vmatpush.msrb.mxu1 %v5960_v60  ;;  %v6096_v58 = vsel %vm6093_vm11, %v6090_v31, %v6092_v34  ;;  %v6295_v44 = vpop.permute.xlu1 %6294 }
0x1935   : > { %6265 = vmatpush.msra.mxu3 %v6071_v18  ;;  %6197 = vmatmul.f32.vlgmr.msrb.gmra.mxu2 %v6095_v15 }
0x1936   : > { %6231 = vmatpush.msrb.mxu1 %v5957_v50  ;;  %6497 = vmatmul.msk.f32.vlgmr.msrb.gmra.mxu3 %vm10775_vm15, %v6096_v58 }
0x1937   : > { %6496 = vmatmul.msk.f32.vlgmr.msra.gmra.mxu1 %vm10774_vm1, %v6096_v58  ;;  %6257 = vmatmul.f32.vlgmr.msrb.gmra.mxu0 %v6095_v15 }
0x1938   : > { %6232 = vmatpush.msrb.mxu1 %v5954_v61  ;;  %6266 = vmatpush.msra.mxu3 %v6068_v22 }
0x193a   : > { %6233 = vmatpush.msrb.mxu1 %v5951_v25  ;;  %6267 = vmatpush.msra.mxu3 %v6065_v4 }
0x193b   : > { %v6293_v7 = vpop.permute.xlu0 %6292 }
0x193c   : > { %6234 = vmatpush.msrb.mxu1 %v5948_v2  ;;  %6268 = vmatpush.msra.mxu3 %v6062_v19  ;;  %v6296_v39 = vsel %vm420_vm6, %v6291_v6, %v6293_v7  ;;  %v6297_v51 = vsel %vm420_vm6, %v6293_v7, %v6295_v44  ;;  %vm10777_vm6 = vcmask 556032  }
0x193e   : > { %6235 = vmatpush.msrb.mxu1 %v5945_v57  ;;  %6269 = vmatpush.msra.mxu3 %v6059_v49 }
0x1940   : > { %6236 = vmatpush.msrb.mxu1 %v5942_v12  ;;  %6270 = vmatpush.msra.mxu3 %v6056_v10 }
0x1941   : > { %6237 = vmatmul.f32.vlgmr.msrb.gmra.mxu1 %v6094_v29  ;;  %v6330_v29 = vld [vmem:[%s6972_s22] sm:$0xff] }
0x1942   : > { %6271 = vmatpush.msra.mxu3 %v6053_v45 }
0x1944   : > { %6272 = vmatpush.msra.mxu3 %v6050_v55 }
0x1946   : > { %6273 = vmatpush.msra.mxu3 %v6047_v46 }
0x1948   : > { %6274 = vmatpush.msra.mxu3 %v6044_v14 }
0x194a   : > { %6275 = vmatpush.msra.mxu3 %v6041_v28 }
0x194c   : > { %6276 = vmatpush.msra.mxu3 %v6038_v9 }
0x194d   : > { %6498 = vmatmul.msk.f32.vlgmr.msra.gmra.mxu3 %vm10776_vm13, %v6096_v58  ;;  %v6332_v58 = vld [vmem:[%s6972_s22 + $0x10] sm:$0xff]  ;;  %s6760_s22 = scalar_lea.hbm %s10463_s3, 48 }
0x19ab   : > { %v6178_v26 = vpop.f32.mrf.mxu0 }
0x19ac   : > { %v6179_v21 = vadd.f32 %v6178_v26, %v6079_v40 }
0x19b0   : > { %v6118_v47 = vpop.f32.mrf.mxu2  ;;  %v6138_v20 = vpop.f32.mrf.mxu3 }
0x19b1   : > { %v6119_v62 = vadd.f32 %v6118_v47, %v6079_v40 }
0x19b3   : > { %v6139_v5 = vadd.f32 %v6138_v20, %v6119_v62 }
0x19b4   : > { %v6158_v54 = vpop.f32.mrf.mxu1  ;;  %v6258_v17 = vpop.f32.mrf.mxu0 }
0x19b5   : > { %v6159_v8 = vadd.f32 %v6158_v54, %v6139_v5 }
0x19b7   : > { %v6281_v27 = vmul.f32 0.2, %v6159_v8 }
0x19b8   : > { %v6198_v48 = vpop.f32.mrf.mxu2 }
0x19b9   : > { %v6301_v23 = vadd.f32 %v6296_v39, %v6281_v27  ;;  %v6199_v35 = vadd.f32 %v6198_v48, %v6179_v21  ;;  %v6218_v13 = vpop.f32.mrf.mxu3 }
0x19bb   : > { %v6219_v3 = vadd.f32 %v6218_v13, %v6199_v35  ;;  %v6304_v24 = vsel %vm7185_vm12, %v6301_v23, 0.0 }
0x19bc   : > { %6310 = vrot.lane.b32.xlu2 %v6304_v24, %s6823_s29 }
0x19bd   : > { %v6282_v52 = vmul.f32 0.2, %v6219_v3 }
0x19be   : > { %v6238_v33 = vpop.f32.mrf.mxu1 }
0x19bf   : > { %v6302_v43 = vadd.f32 %v6297_v51, %v6282_v52  ;;  %v6239_v11 = vadd.f32 %v6238_v33, %v6079_v40 }
0x19c1   : > { %v6305_v41 = vsel %vm7189_vm0, %v6302_v43, 0.0  ;;  %v6259_v37 = vadd.f32 %v6258_v17, %v6239_v11 }
0x19c2   : > { %6312 = vrot.lane.b32.xlu0 %v6305_v41, %s6823_s29 }
0x19d0   : > { %v6278_v53 = vpop.f32.mrf.mxu3 }
0x19d1   : > { %v6279_v16 = vadd.f32 %v6278_v53, %v6259_v37 }
0x19d3   : > { %v6283_v38 = vmul.f32 0.2, %v6279_v16 }
0x19d5   : > { %v6303_v59 = vadd.f32 %v6295_v44, %v6283_v38 }
0x19d7   : > { %v6306_v31 = vsel %vm7199_vm7, %v6303_v59, 0.0 }
0x19d8   : > { %6314 = vrot.lane.b32.xlu1 %v6306_v31, %s6823_s29  ;;  %s6754_s29 = sshra.s32 %s6356_s27, 4  ;;  %s6755_s29 = int_to_ptr.hbm [resolvable:$true] %s6754_s29 }
0x19d9   : > { %s6756_s11 = scalar_lea.hbm %s6755_s29, 24  ;;  %p6761_p9 = scmp.lt.s32.totalorder %s6755_s29, %s10463_s3 }
0x19da   : > { %p6757_p1 = scmp.ne.s32.totalorder %s6755_s29, %s6756_s11  ;;  %p6762_p10 = scmp.lt.s32.totalorder %s6760_s22, %s6756_s11 }
0x19dc   : > { %p6758_p4 = pnand %p6757_p1, %p6936_p3  ;;  %p6763_p2 = por %p6762_p10, %p6761_p9 }
0x19de   : > { %p6759_p8 = pneg %p6758_p4 }
0x19e0   : > { %p6764_p11 = pnand %p6763_p2, %p6759_p8 }
0x1a16   : > { %v6311_v63 = vpop.permute.xlu2 %6310 }
0x1a17   : > { %6321 = vst.msk [vmem:[#allocation2] sm:$0xff] %vm622_vm10, %v6311_v63 }
0x1a1e   : > { %v6324_v42 = vld [vmem:[#allocation2] sm:$0xff] }
0x1a1f   : > { %v6327_v15 = vmul.f32 0.2, %v6324_v42 }
0x1a21   : > { %v6333_v0 = vadd.f32 %v6330_v29, %v6327_v15 }
0x1a23   : > { %6336 = vst [vmem:[%s217_s23] sm:$0xff] %v6333_v0 }
0x1a34   : > { %v6313_v32 = vpop.permute.xlu0 %6312 }
0x1a35   : > { %v6316_v30 = vsel %vm336_vm8, %v6311_v63, %v6313_v32 }
0x1a36   : > { %6322 = vst [vmem:[#allocation2 + $0x8] sm:$0xff] %v6316_v30  ;;  %v6328_v1 = vmul.f32 0.2, %v6316_v30 }
0x1a38   : > { %v6334_v36 = vadd.f32 %v6331_v56, %v6328_v1 }
0x1a3a   : > { %6337 = vst [vmem:[%s217_s23 + $0x8] sm:$0xff] %v6334_v36 }
0x1a4a   : > { %v6315_v60 = vpop.permute.xlu1 %6314 }
0x1a4b   : > { %v6317_v34 = vsel %vm336_vm8, %v6313_v32, %v6315_v60 }
0x1a4c   : > { %6323 = vst.msk [vmem:[#allocation2 + $0x10] sm:$0xff] %vm625_vm14, %v6317_v34 }
0x1a53   : > { %v6326_v18 = vld [vmem:[#allocation2 + $0x10] sm:$0xff] }
0x1a54   : > { %v6329_v50 = vmul.f32 0.2, %v6326_v18 }
0x1a56   : > { %v6335_v61 = vadd.f32 %v6332_v58, %v6329_v50 }
0x1a58   : > { %6338 = vst.msk [vmem:[%s217_s23 + $0x10] sm:$0xff] %vm10777_vm6, %v6335_v61 }
0x1a59   : > { %6767 = shalt.err (!%p6764_p11)
}
0x1a5a   : > { %6516 = dma.vmem_to_hbm [thread:$0]  (%p6936_p3), %s6354_s26, 384, %s6356_s27, %s6340_s28  }
0x1a5b PF: > { %s6367_s9 = sand.u32 1, %s6798_s12   ;;  %p10778_p12 = scmp.ge.s32.totalorder %s6810_s15, 2 }
0x1a5c   : > { %s6368_s20 = scalar_lea.sflag [#allocation6], %s6367_s9 }
0x1a5d   : > { %p6530_p13 = pnand %p10778_p12, %p6905_p6 }
0x1a5f   : > { %p6531_p0 = pneg %p6530_p13 }
0x1a61   : > { %6793 = dma.done.wait (%p6531_p0), %s6368_s20, 384  }
0x1a62   : > { %6795 = vsyncadd (%p6531_p0), %s6368_s20, 4294966912  ;;  %p17_p5 = scmp.ge.s32.totalorder %s6926_s4, 4   ;;  %s10779_s12 = smov %s6802_s13 }
0x1a63   : > { %s10780_s13 = smov %s6806_s14  ;;  %s10781_s14 = smov %s6942_s8 }
0x1a64   : > { %s10782_s15 = smov %s6926_s4  ;;  %19 = sbr.rel (!%p17_p5) target bundleno = 6 (0x6), region = 85 }
0x1a69   :  { %6374 = vsyncpa [#allocation5], 1 }
0x1a6a   :  { %6376 = vsyncpa [#allocation5 + $0x1], 1 }
0x1a6b   :  { %6377 = vsyncpa [#allocation8], 1 }
0x1a6c   :  { %6378 = vsyncpa [#allocation6], 1 }
0x1a6d   :  { %6380 = vsyncpa [#allocation6 + $0x1], 1 }

</bundles_post_ra>
